<compile_context>
chip_gen: v6e
topology: v6e:2x2x1
jax: 0.10.0
libtpu: 0.0.40
codegen_flags: <defaults>
</compile_context>

<pallas_src>
import math

import numpy as np
import jax
import jax.numpy as jnp
from jax.experimental import pallas as pl
from jax.experimental.pallas import tpu as pltpu

_OFFS = tuple((dy, dx) for dy in (-1, 0, 1) for dx in (-1, 0, 1))
_BN_EPS = 1e-5


# ----------------------------------------------------------------------------
# Host-side constant builders (numpy; computed once, passed as kernel operands)
# ----------------------------------------------------------------------------
def _np_tap_masks(nb, h, w):
    """(9,1,M) validity masks for the 9 rolled taps on geometry (nb,h,w)."""
    m = np.arange(nb * h * w)
    wp = m % w
    hp = (m // w) % h
    masks = np.zeros((9, 1, m.size), np.float32)
    for j, (dy, dx) in enumerate(_OFFS):
        ok = (wp + dx >= 0) & (wp + dx < w) & (hp + dy >= 0) & (hp + dy < h)
        masks[j, 0] = ok.astype(np.float32)
    return masks


def _np_tap_mats(nb, h, w):
    """(9,M,M) 0/1 shift matrices (tap_j = x @ T_j).  Only used for tiny M < 128."""
    mm = nb * h * w
    mats = np.zeros((9, mm, mm), np.float32)
    for j, (dy, dx) in enumerate(_OFFS):
        for m in range(mm):
            wp = m % w
            hp = (m // w) % h
            if 0 <= wp + dx < w and 0 <= hp + dy < h:
                mats[j, m + dy * w + dx, m] = 1.0
    return mats


def _np_subsample(nb, h, w):
    """(M_in, M_out) 0/1 column-select matrix implementing stride-2 subsampling."""
    ho, wo = (h - 1) // 2 + 1, (w - 1) // 2 + 1
    s = np.zeros((nb * h * w, nb * ho * wo), np.float32)
    for n in range(nb):
        for i in range(ho):
            for j in range(wo):
                s[n * h * w + 2 * i * w + 2 * j, n * ho * wo + i * wo + j] = 1.0
    return s


def _np_pool(nb, hw):
    """(M, N) matrix for global average pooling per image."""
    p = np.zeros((nb * hw, nb), np.float32)
    for n in range(nb):
        p[n * hw:(n + 1) * hw, n] = 1.0 / hw
    return p


# ----------------------------------------------------------------------------
# Parameter init (deterministic; matches the PyTorch __init__ shapes / schemes,
# stored directly in kernel-ready layout: per-tap (9,Cout,Cin) bf16, (C,1) f32 BN)
# ----------------------------------------------------------------------------
def init_resnet_params(key, depth=8, num_filters=(4, 4, 8, 16), num_classes=10):
    assert (depth - 2) % 6 == 0, 'depth should be 6n+2'
    n = (depth - 2) // 6
    keys = iter(jax.random.split(key, 6 * depth + 16))

    def conv3(cin, cout):
        # kaiming_normal_(mode='fan_out', nonlinearity='relu'): std = sqrt(2/(cout*3*3))
        std = math.sqrt(2.0 / (cout * 9))
        w = jax.random.normal(next(keys), (3, 3, cin, cout), jnp.float32) * std
        # (ky,kx,ci,co) -> per-tap (9, co, ci), bf16 for the MXU (cast once, at init)
        return jnp.transpose(w, (0, 1, 3, 2)).reshape(9, cout, cin).astype(jnp.bfloat16)

    def conv1(cin, cout):
        std = math.sqrt(2.0 / cout)                       # fan_out = cout*1*1
        return (jax.random.normal(next(keys), (cout, cin), jnp.float32) * std
                ).astype(jnp.bfloat16)

    def bn(c):
        return jnp.ones((c, 1), jnp.float32), jnp.zeros((c, 1), jnp.float32)

    params = {'stem_w': conv3(3, num_filters[0])}
    params['stem_g'], params['stem_b'] = bn(num_filters[0])

    inplanes = num_filters[0]
    layers = []
    for planes, stride in zip(num_filters[1:], (1, 2, 2)):
        blocks = []
        for bi in range(n):
            s = stride if bi == 0 else 1
            p = {'stride': s, 'w1': conv3(inplanes, planes), 'w2': conv3(planes, planes)}
            p['g1'], p['b1'] = bn(planes)
            p['g2'], p['b2'] = bn(planes)
            if s != 1 or inplanes != planes:
                p['wd'] = conv1(inplanes, planes)
                p['gd'], p['bd'] = bn(planes)
            inplanes = planes
            blocks.append(p)
        layers.append(blocks)
    params['layers'] = layers

    if num_classes > 0:
        fan_in = num_filters[3]
        bound = 1.0 / math.sqrt(fan_in)
        # PyTorch nn.Linear default init (Linear is NOT overridden by the init loop)
        params['fc_w'] = jax.random.uniform(next(keys), (num_classes, fan_in),
                                            jnp.float32, -bound, bound)
        params['fc_b'] = jax.random.uniform(next(keys), (num_classes, 1),
                                            jnp.float32, -bound, bound)
    return params


# ----------------------------------------------------------------------------
# Fused whole-network kernel builder
# ----------------------------------------------------------------------------
def make_resnet_forward(params, input_shape):
    """Builds x:(N,3,H,W) -> (N,num_classes) backed by ONE fused pallas_call."""
    Nb, Cin, H, W = input_shape
    M0 = Nb * H * W

    operands = []

    def add(a):
        operands.append(jnp.asarray(a))
        return len(operands) - 1

    geom_cache, sub_cache = {}, {}

    def geom(h, w):
        if (h, w) not in geom_cache:
            m = Nb * h * w
            if m % 128 == 0:     # lane-multiple M: roll-based taps + boundary masks
                geom_cache[(h, w)] = ('roll', add(_np_tap_masks(Nb, h, w)), w, m)
            else:                # tiny sub-128-lane tail: taps as 0/1 shift matrices
                geom_cache[(h, w)] = ('mat', add(_np_tap_mats(Nb, h, w)), w, m)
        return geom_cache[(h, w)]

    def subsample(h, w):
        if (h, w) not in sub_cache:
            sub_cache[(h, w)] = add(_np_subsample(Nb, h, w))
        return sub_cache[(h, w)]

    # ---- static per-conv plan (integer indices into `operands`) -------------
    plan = []
    h, w = H, W
    plan.append(dict(kind='stem', w=add(params['stem_w']), g=add(params['stem_g']),
                     b=add(params['stem_b']), geom=geom(h, w)))
    for blocks in params['layers']:
        for p in blocks:
            s = p['stride']
            g_in = geom(h, w)
            sub = subsample(h, w) if s == 2 else None
            ho, wo = (h - 1) // s + 1, (w - 1) // s + 1
            g_out = geom(ho, wo)
            down = None
            if 'wd' in p:
                down = dict(w=add(p['wd']), g=add(p['gd']), b=add(p['bd']), sub=sub)
            plan.append(dict(kind='block',
                             w1=add(p['w1']), g1=add(p['g1']), b1=add(p['b1']),
                             w2=add(p['w2']), g2=add(p['g2']), b2=add(p['b2']),
                             g_in=g_in, g_out=g_out, sub=sub, down=down))
            h, w = ho, wo

    pool = add(_np_pool(Nb, h * w))
    if 'fc_w' in params:
        fcw, fcb = add(params['fc_w']), add(params['fc_b'])
        out_rows = params['fc_w'].shape[0]
    else:                     # num_classes == 0 -> nn.Identity(): return pooled features
        fcw = fcb = None
        out_rows = params['layers'][-1][-1]['g2'].shape[0]

    n_in = 1 + len(operands)

    # ---- kernel ---------------------------------------------------------------
    def _conv3x3(x2, R, w_idx, g):
        """x2:(Cin,M) f32 -> (Cout,M) f32 via 9 shifted bf16 sub-matmuls (f32 accum)."""
        kind, cidx, gw, gm = g
        wref = R[w_idx]
        acc = None
        for j, (dy, dx) in enumerate(_OFFS):
            if kind == 'roll':
                o = dy * gw + dx
                if o == 0:
                    tap = x2.astype(jnp.bfloat16)
                else:
                    shifted = pltpu.roll(x2, (-o) % gm, 1)       # lane-axis rotate (XLU)
                    tap = (shifted * R[cidx][j]).astype(jnp.bfloat16)
            else:
                tap = jnp.dot(x2, R[cidx][j],
                              preferred_element_type=jnp.float32).astype(jnp.bfloat16)
            d = jnp.dot(wref[j], tap, preferred_element_type=jnp.float32)
            acc = d if acc is None else acc + d
        return acc

    def _bn(acc, R, g_idx, b_idx):
        inv_m = 1.0 / acc.shape[1]
        mean = jnp.sum(acc, axis=1, keepdims=True) * inv_m
        cent = acc - mean
        var = jnp.sum(cent * cent, axis=1, keepdims=True) * inv_m   # centered (no cancellation)
        return cent * jax.lax.rsqrt(var + _BN_EPS) * R[g_idx][...] + R[b_idx][...]

    def kernel(*refs):
        x_ref, o_ref = refs[0], refs[-1]
        R = refs[1:n_in]
        x2 = x_ref[...]                                     # (C, M) f32, lane-dense M
        for st in plan:
            if st['kind'] == 'stem':
                acc = _conv3x3(x2, R, st['w'], st['geom'])
                x2 = jnp.maximum(_bn(acc, R, st['g'], st['b']), 0.0)
            else:
                acc = _conv3x3(x2, R, st['w1'], st['g_in'])
                if st['sub'] is not None:                   # stride-2: exact f32 column select
                    acc = jnp.dot(acc, R[st['sub']][...], preferred_element_type=jnp.float32)
                h1 = jnp.maximum(_bn(acc, R, st['g1'], st['b1']), 0.0)
                out = _bn(_conv3x3(h1, R, st['w2'], st['g_out']), R, st['g2'], st['b2'])
                dwn = st['down']
                if dwn is None:
                    res = x2
                else:
                    xs = x2
                    if dwn['sub'] is not None:
                        xs = jnp.dot(xs, R[dwn['sub']][...], preferred_element_type=jnp.float32)
                    r = jnp.dot(R[dwn['w']][...], xs.astype(jnp.bfloat16),
                                preferred_element_type=jnp.float32)
                    res = _bn(r, R, dwn['g'], dwn['b'])
                x2 = jnp.maximum(out + res, 0.0)
        # fused global average pool (+ fc): sub-128-lane tensors never leave VMEM
        pooled = jnp.dot(x2, R[pool][...], preferred_element_type=jnp.float32)   # (C, N)
        if fcw is not None:
            o_ref[...] = jnp.dot(R[fcw][...], pooled,
                                 preferred_element_type=jnp.float32) + R[fcb][...]
        else:
            o_ref[...] = pooled

    in_specs = [pl.BlockSpec((Cin, M0), lambda i: (0, 0))]
    for a in operands:
        in_specs.append(pl.BlockSpec(a.shape, lambda i, nd=a.ndim: (0,) * nd))

    call = pl.pallas_call(
        kernel,
        out_shape=jax.ShapeDtypeStruct((out_rows, Nb), jnp.float32),
        grid=(1,),
        in_specs=in_specs,
        out_specs=pl.BlockSpec((out_rows, Nb), lambda i: (0, 0)),
        compiler_params=pltpu.CompilerParams(dimension_semantics=("arbitrary",)),
    )

    def forward(x_nchw):
        # NCHW -> channels-first (C, M=N*H*W): M sits on the 128-lane axis of every GEMM.
        x2 = jnp.transpose(x_nchw.astype(jnp.float32), (1, 0, 2, 3)).reshape(Cin, M0)
        return call(x2, *operands).T                        # (N, num_classes)

    return forward


if __name__ == "__main__":
    key = jax.random.PRNGKey(0)
    pkey, xkey = jax.random.split(key)
    params = init_resnet_params(pkey, depth=8, num_filters=(4, 4, 8, 16), num_classes=10)
    x = jax.random.normal(xkey, (2, 3, 16, 16), jnp.float32)   # NCHW (stem expects 3 ch)

    fwd = jax.jit(make_resnet_forward(params, x.shape))
    out = fwd(x)
    jax.block_until_ready(out)
    assert out.shape == (2, 10) and out.dtype == jnp.float32
    assert bool(jnp.all(jnp.isfinite(out)))
    print("KERNEL_OK")
</pallas_src>

<mosaic_0001>
module attributes {stable_mosaic.version = 11 : i64} {
  func.func @kernel(%arg0: i32, %arg1: memref<3x512xf32, #tpu.memory_space<vmem>>, %arg2: memref<9x4x3xbf16, #tpu.memory_space<vmem>>, %arg3: memref<4x1xf32, #tpu.memory_space<vmem>>, %arg4: memref<4x1xf32, #tpu.memory_space<vmem>>, %arg5: memref<9x1x512xf32, #tpu.memory_space<vmem>>, %arg6: memref<9x4x4xbf16, #tpu.memory_space<vmem>>, %arg7: memref<4x1xf32, #tpu.memory_space<vmem>>, %arg8: memref<4x1xf32, #tpu.memory_space<vmem>>, %arg9: memref<9x4x4xbf16, #tpu.memory_space<vmem>>, %arg10: memref<4x1xf32, #tpu.memory_space<vmem>>, %arg11: memref<4x1xf32, #tpu.memory_space<vmem>>, %arg12: memref<512x128xf32, #tpu.memory_space<vmem>>, %arg13: memref<9x1x128xf32, #tpu.memory_space<vmem>>, %arg14: memref<8x4xbf16, #tpu.memory_space<vmem>>, %arg15: memref<8x1xf32, #tpu.memory_space<vmem>>, %arg16: memref<8x1xf32, #tpu.memory_space<vmem>>, %arg17: memref<9x8x4xbf16, #tpu.memory_space<vmem>>, %arg18: memref<8x1xf32, #tpu.memory_space<vmem>>, %arg19: memref<8x1xf32, #tpu.memory_space<vmem>>, %arg20: memref<9x8x8xbf16, #tpu.memory_space<vmem>>, %arg21: memref<8x1xf32, #tpu.memory_space<vmem>>, %arg22: memref<8x1xf32, #tpu.memory_space<vmem>>, %arg23: memref<128x32xf32, #tpu.memory_space<vmem>>, %arg24: memref<9x32x32xf32, #tpu.memory_space<vmem>>, %arg25: memref<16x8xbf16, #tpu.memory_space<vmem>>, %arg26: memref<16x1xf32, #tpu.memory_space<vmem>>, %arg27: memref<16x1xf32, #tpu.memory_space<vmem>>, %arg28: memref<9x16x8xbf16, #tpu.memory_space<vmem>>, %arg29: memref<16x1xf32, #tpu.memory_space<vmem>>, %arg30: memref<16x1xf32, #tpu.memory_space<vmem>>, %arg31: memref<9x16x16xbf16, #tpu.memory_space<vmem>>, %arg32: memref<16x1xf32, #tpu.memory_space<vmem>>, %arg33: memref<16x1xf32, #tpu.memory_space<vmem>>, %arg34: memref<32x2xf32, #tpu.memory_space<vmem>>, %arg35: memref<10x16xf32, #tpu.memory_space<vmem>>, %arg36: memref<10x1xf32, #tpu.memory_space<vmem>>, %arg37: memref<10x2xf32, #tpu.memory_space<vmem>>) attributes {dimension_semantics = [#tpu.dimension_semantics<arbitrary>], iteration_bounds = array<i64: 1>, scalar_prefetch = 0 : i64, scratch_operands = 0 : i64, tpu.core_type = #tpu.core_type<tc>, window_params = [{pipeline_mode = #tpu.pipeline_mode<synchronous>, transform_indices = @transform_0, window_bounds = array<i64: 3, 512>}, {pipeline_mode = #tpu.pipeline_mode<synchronous>, transform_indices = @transform_1, window_bounds = array<i64: 9, 4, 3>}, {pipeline_mode = #tpu.pipeline_mode<synchronous>, transform_indices = @transform_2, window_bounds = array<i64: 4, 1>}, {pipeline_mode = #tpu.pipeline_mode<synchronous>, transform_indices = @transform_3, window_bounds = array<i64: 4, 1>}, {pipeline_mode = #tpu.pipeline_mode<synchronous>, transform_indices = @transform_4, window_bounds = array<i64: 9, 1, 512>}, {pipeline_mode = #tpu.pipeline_mode<synchronous>, transform_indices = @transform_5, window_bounds = array<i64: 9, 4, 4>}, {pipeline_mode = #tpu.pipeline_mode<synchronous>, transform_indices = @transform_6, window_bounds = array<i64: 4, 1>}, {pipeline_mode = #tpu.pipeline_mode<synchronous>, transform_indices = @transform_7, window_bounds = array<i64: 4, 1>}, {pipeline_mode = #tpu.pipeline_mode<synchronous>, transform_indices = @transform_8, window_bounds = array<i64: 9, 4, 4>}, {pipeline_mode = #tpu.pipeline_mode<synchronous>, transform_indices = @transform_9, window_bounds = array<i64: 4, 1>}, {pipeline_mode = #tpu.pipeline_mode<synchronous>, transform_indices = @transform_10, window_bounds = array<i64: 4, 1>}, {pipeline_mode = #tpu.pipeline_mode<synchronous>, transform_indices = @transform_11, window_bounds = array<i64: 512, 128>}, {pipeline_mode = #tpu.pipeline_mode<synchronous>, transform_indices = @transform_12, window_bounds = array<i64: 9, 1, 128>}, {pipeline_mode = #tpu.pipeline_mode<synchronous>, transform_indices = @transform_13, window_bounds = array<i64: 8, 4>}, {pipeline_mode = #tpu.pipeline_mode<synchronous>, transform_indices = @transform_14, window_bounds = array<i64: 8, 1>}, {pipeline_mode = #tpu.pipeline_mode<synchronous>, transform_indices = @transform_15, window_bounds = array<i64: 8, 1>}, {pipeline_mode = #tpu.pipeline_mode<synchronous>, transform_indices = @transform_16, window_bounds = array<i64: 9, 8, 4>}, {pipeline_mode = #tpu.pipeline_mode<synchronous>, transform_indices = @transform_17, window_bounds = array<i64: 8, 1>}, {pipeline_mode = #tpu.pipeline_mode<synchronous>, transform_indices = @transform_18, window_bounds = array<i64: 8, 1>}, {pipeline_mode = #tpu.pipeline_mode<synchronous>, transform_indices = @transform_19, window_bounds = array<i64: 9, 8, 8>}, {pipeline_mode = #tpu.pipeline_mode<synchronous>, transform_indices = @transform_20, window_bounds = array<i64: 8, 1>}, {pipeline_mode = #tpu.pipeline_mode<synchronous>, transform_indices = @transform_21, window_bounds = array<i64: 8, 1>}, {pipeline_mode = #tpu.pipeline_mode<synchronous>, transform_indices = @transform_22, window_bounds = array<i64: 128, 32>}, {pipeline_mode = #tpu.pipeline_mode<synchronous>, transform_indices = @transform_23, window_bounds = array<i64: 9, 32, 32>}, {pipeline_mode = #tpu.pipeline_mode<synchronous>, transform_indices = @transform_24, window_bounds = array<i64: 16, 8>}, {pipeline_mode = #tpu.pipeline_mode<synchronous>, transform_indices = @transform_25, window_bounds = array<i64: 16, 1>}, {pipeline_mode = #tpu.pipeline_mode<synchronous>, transform_indices = @transform_26, window_bounds = array<i64: 16, 1>}, {pipeline_mode = #tpu.pipeline_mode<synchronous>, transform_indices = @transform_27, window_bounds = array<i64: 9, 16, 8>}, {pipeline_mode = #tpu.pipeline_mode<synchronous>, transform_indices = @transform_28, window_bounds = array<i64: 16, 1>}, {pipeline_mode = #tpu.pipeline_mode<synchronous>, transform_indices = @transform_29, window_bounds = array<i64: 16, 1>}, {pipeline_mode = #tpu.pipeline_mode<synchronous>, transform_indices = @transform_30, window_bounds = array<i64: 9, 16, 16>}, {pipeline_mode = #tpu.pipeline_mode<synchronous>, transform_indices = @transform_31, window_bounds = array<i64: 16, 1>}, {pipeline_mode = #tpu.pipeline_mode<synchronous>, transform_indices = @transform_32, window_bounds = array<i64: 16, 1>}, {pipeline_mode = #tpu.pipeline_mode<synchronous>, transform_indices = @transform_33, window_bounds = array<i64: 32, 2>}, {pipeline_mode = #tpu.pipeline_mode<synchronous>, transform_indices = @transform_34, window_bounds = array<i64: 10, 16>}, {pipeline_mode = #tpu.pipeline_mode<synchronous>, transform_indices = @transform_35, window_bounds = array<i64: 10, 1>}, {pipeline_mode = #tpu.pipeline_mode<synchronous>, transform_indices = @transform_36, window_bounds = array<i64: 10, 2>}]} {
    %c0 = arith.constant 0 : index
    %c0_0 = arith.constant 0 : index
    %0 = vector.load %arg1[%c0, %c0_0] : memref<3x512xf32, #tpu.memory_space<vmem>>, vector<3x512xf32>
    %c17_i32 = arith.constant 17 : i32
    %1 = tpu.dynamic_rotate %0 by %c17_i32 dim 1 : vector<3x512xf32>, i32 -> vector<3x512xf32>
    %c0_1 = arith.constant 0 : index
    %c0_2 = arith.constant 0 : index
    %c0_3 = arith.constant 0 : index
    %2 = vector.load %arg5[%c0_1, %c0_2, %c0_3] : memref<9x1x512xf32, #tpu.memory_space<vmem>>, vector<1x1x512xf32>
    %3 = vector.shape_cast %2 : vector<1x1x512xf32> to vector<1x512xf32>
    %4 = vector.broadcast %3 : vector<1x512xf32> to vector<3x512xf32>
    %5 = arith.mulf %1, %4 : vector<3x512xf32>
    %6 = arith.truncf %5 : vector<3x512xf32> to vector<3x512xbf16>
    %c0_4 = arith.constant 0 : index
    %c0_5 = arith.constant 0 : index
    %c0_6 = arith.constant 0 : index
    %7 = vector.load %arg2[%c0_4, %c0_5, %c0_6] : memref<9x4x3xbf16, #tpu.memory_space<vmem>>, vector<1x4x3xbf16>
    %8 = vector.shape_cast %7 : vector<1x4x3xbf16> to vector<4x3xbf16>
    %cst = arith.constant dense<0.000000e+00> : vector<4x512xf32>
    %9 = tpu.matmul %8, %6, %cst {dimension_numbers = #tpu.dot_dimension_numbers<[1], [0], [0], [1], [0, 0, 1, 1], [], []>} : vector<4x3xbf16>, vector<3x512xbf16>, vector<4x512xf32> -> vector<4x512xf32>
    %c16_i32 = arith.constant 16 : i32
    %10 = tpu.dynamic_rotate %0 by %c16_i32 dim 1 : vector<3x512xf32>, i32 -> vector<3x512xf32>
    %c1 = arith.constant 1 : index
    %c0_7 = arith.constant 0 : index
    %c0_8 = arith.constant 0 : index
    %11 = vector.load %arg5[%c1, %c0_7, %c0_8] : memref<9x1x512xf32, #tpu.memory_space<vmem>>, vector<1x1x512xf32>
    %12 = vector.shape_cast %11 : vector<1x1x512xf32> to vector<1x512xf32>
    %13 = vector.broadcast %12 : vector<1x512xf32> to vector<3x512xf32>
    %14 = arith.mulf %10, %13 : vector<3x512xf32>
    %15 = arith.truncf %14 : vector<3x512xf32> to vector<3x512xbf16>
    %c1_9 = arith.constant 1 : index
    %c0_10 = arith.constant 0 : index
    %c0_11 = arith.constant 0 : index
    %16 = vector.load %arg2[%c1_9, %c0_10, %c0_11] : memref<9x4x3xbf16, #tpu.memory_space<vmem>>, vector<1x4x3xbf16>
    %17 = vector.shape_cast %16 : vector<1x4x3xbf16> to vector<4x3xbf16>
    %cst_12 = arith.constant dense<0.000000e+00> : vector<4x512xf32>
    %18 = tpu.matmul %17, %15, %cst_12 {dimension_numbers = #tpu.dot_dimension_numbers<[1], [0], [0], [1], [0, 0, 1, 1], [], []>} : vector<4x3xbf16>, vector<3x512xbf16>, vector<4x512xf32> -> vector<4x512xf32>
    %19 = arith.addf %9, %18 : vector<4x512xf32>
    %c15_i32 = arith.constant 15 : i32
    %20 = tpu.dynamic_rotate %0 by %c15_i32 dim 1 : vector<3x512xf32>, i32 -> vector<3x512xf32>
    %c2 = arith.constant 2 : index
    %c0_13 = arith.constant 0 : index
    %c0_14 = arith.constant 0 : index
    %21 = vector.load %arg5[%c2, %c0_13, %c0_14] : memref<9x1x512xf32, #tpu.memory_space<vmem>>, vector<1x1x512xf32>
    %22 = vector.shape_cast %21 : vector<1x1x512xf32> to vector<1x512xf32>
    %23 = vector.broadcast %22 : vector<1x512xf32> to vector<3x512xf32>
    %24 = arith.mulf %20, %23 : vector<3x512xf32>
    %25 = arith.truncf %24 : vector<3x512xf32> to vector<3x512xbf16>
    %c2_15 = arith.constant 2 : index
    %c0_16 = arith.constant 0 : index
    %c0_17 = arith.constant 0 : index
    %26 = vector.load %arg2[%c2_15, %c0_16, %c0_17] : memref<9x4x3xbf16, #tpu.memory_space<vmem>>, vector<1x4x3xbf16>
    %27 = vector.shape_cast %26 : vector<1x4x3xbf16> to vector<4x3xbf16>
    %cst_18 = arith.constant dense<0.000000e+00> : vector<4x512xf32>
    %28 = tpu.matmul %27, %25, %cst_18 {dimension_numbers = #tpu.dot_dimension_numbers<[1], [0], [0], [1], [0, 0, 1, 1], [], []>} : vector<4x3xbf16>, vector<3x512xbf16>, vector<4x512xf32> -> vector<4x512xf32>
    %29 = arith.addf %19, %28 : vector<4x512xf32>
    %c1_i32 = arith.constant 1 : i32
    %30 = tpu.dynamic_rotate %0 by %c1_i32 dim 1 : vector<3x512xf32>, i32 -> vector<3x512xf32>
    %c3 = arith.constant 3 : index
    %c0_19 = arith.constant 0 : index
    %c0_20 = arith.constant 0 : index
    %31 = vector.load %arg5[%c3, %c0_19, %c0_20] : memref<9x1x512xf32, #tpu.memory_space<vmem>>, vector<1x1x512xf32>
    %32 = vector.shape_cast %31 : vector<1x1x512xf32> to vector<1x512xf32>
    %33 = vector.broadcast %32 : vector<1x512xf32> to vector<3x512xf32>
    %34 = arith.mulf %30, %33 : vector<3x512xf32>
    %35 = arith.truncf %34 : vector<3x512xf32> to vector<3x512xbf16>
    %c3_21 = arith.constant 3 : index
    %c0_22 = arith.constant 0 : index
    %c0_23 = arith.constant 0 : index
    %36 = vector.load %arg2[%c3_21, %c0_22, %c0_23] : memref<9x4x3xbf16, #tpu.memory_space<vmem>>, vector<1x4x3xbf16>
    %37 = vector.shape_cast %36 : vector<1x4x3xbf16> to vector<4x3xbf16>
    %cst_24 = arith.constant dense<0.000000e+00> : vector<4x512xf32>
    %38 = tpu.matmul %37, %35, %cst_24 {dimension_numbers = #tpu.dot_dimension_numbers<[1], [0], [0], [1], [0, 0, 1, 1], [], []>} : vector<4x3xbf16>, vector<3x512xbf16>, vector<4x512xf32> -> vector<4x512xf32>
    %39 = arith.addf %29, %38 : vector<4x512xf32>
    %40 = arith.truncf %0 : vector<3x512xf32> to vector<3x512xbf16>
    %c4 = arith.constant 4 : index
    %c0_25 = arith.constant 0 : index
    %c0_26 = arith.constant 0 : index
    %41 = vector.load %arg2[%c4, %c0_25, %c0_26] : memref<9x4x3xbf16, #tpu.memory_space<vmem>>, vector<1x4x3xbf16>
    %42 = vector.shape_cast %41 : vector<1x4x3xbf16> to vector<4x3xbf16>
    %cst_27 = arith.constant dense<0.000000e+00> : vector<4x512xf32>
    %43 = tpu.matmul %42, %40, %cst_27 {dimension_numbers = #tpu.dot_dimension_numbers<[1], [0], [0], [1], [0, 0, 1, 1], [], []>} : vector<4x3xbf16>, vector<3x512xbf16>, vector<4x512xf32> -> vector<4x512xf32>
    %44 = arith.addf %39, %43 : vector<4x512xf32>
    %c511_i32 = arith.constant 511 : i32
    %45 = tpu.dynamic_rotate %0 by %c511_i32 dim 1 : vector<3x512xf32>, i32 -> vector<3x512xf32>
    %c5 = arith.constant 5 : index
    %c0_28 = arith.constant 0 : index
    %c0_29 = arith.constant 0 : index
    %46 = vector.load %arg5[%c5, %c0_28, %c0_29] : memref<9x1x512xf32, #tpu.memory_space<vmem>>, vector<1x1x512xf32>
    %47 = vector.shape_cast %46 : vector<1x1x512xf32> to vector<1x512xf32>
    %48 = vector.broadcast %47 : vector<1x512xf32> to vector<3x512xf32>
    %49 = arith.mulf %45, %48 : vector<3x512xf32>
    %50 = arith.truncf %49 : vector<3x512xf32> to vector<3x512xbf16>
    %c5_30 = arith.constant 5 : index
    %c0_31 = arith.constant 0 : index
    %c0_32 = arith.constant 0 : index
    %51 = vector.load %arg2[%c5_30, %c0_31, %c0_32] : memref<9x4x3xbf16, #tpu.memory_space<vmem>>, vector<1x4x3xbf16>
    %52 = vector.shape_cast %51 : vector<1x4x3xbf16> to vector<4x3xbf16>
    %cst_33 = arith.constant dense<0.000000e+00> : vector<4x512xf32>
    %53 = tpu.matmul %52, %50, %cst_33 {dimension_numbers = #tpu.dot_dimension_numbers<[1], [0], [0], [1], [0, 0, 1, 1], [], []>} : vector<4x3xbf16>, vector<3x512xbf16>, vector<4x512xf32> -> vector<4x512xf32>
    %54 = arith.addf %44, %53 : vector<4x512xf32>
    %c497_i32 = arith.constant 497 : i32
    %55 = tpu.dynamic_rotate %0 by %c497_i32 dim 1 : vector<3x512xf32>, i32 -> vector<3x512xf32>
    %c6 = arith.constant 6 : index
    %c0_34 = arith.constant 0 : index
    %c0_35 = arith.constant 0 : index
    %56 = vector.load %arg5[%c6, %c0_34, %c0_35] : memref<9x1x512xf32, #tpu.memory_space<vmem>>, vector<1x1x512xf32>
    %57 = vector.shape_cast %56 : vector<1x1x512xf32> to vector<1x512xf32>
    %58 = vector.broadcast %57 : vector<1x512xf32> to vector<3x512xf32>
    %59 = arith.mulf %55, %58 : vector<3x512xf32>
    %60 = arith.truncf %59 : vector<3x512xf32> to vector<3x512xbf16>
    %c6_36 = arith.constant 6 : index
    %c0_37 = arith.constant 0 : index
    %c0_38 = arith.constant 0 : index
    %61 = vector.load %arg2[%c6_36, %c0_37, %c0_38] : memref<9x4x3xbf16, #tpu.memory_space<vmem>>, vector<1x4x3xbf16>
    %62 = vector.shape_cast %61 : vector<1x4x3xbf16> to vector<4x3xbf16>
    %cst_39 = arith.constant dense<0.000000e+00> : vector<4x512xf32>
    %63 = tpu.matmul %62, %60, %cst_39 {dimension_numbers = #tpu.dot_dimension_numbers<[1], [0], [0], [1], [0, 0, 1, 1], [], []>} : vector<4x3xbf16>, vector<3x512xbf16>, vector<4x512xf32> -> vector<4x512xf32>
    %64 = arith.addf %54, %63 : vector<4x512xf32>
    %c496_i32 = arith.constant 496 : i32
    %65 = tpu.dynamic_rotate %0 by %c496_i32 dim 1 : vector<3x512xf32>, i32 -> vector<3x512xf32>
    %c7 = arith.constant 7 : index
    %c0_40 = arith.constant 0 : index
    %c0_41 = arith.constant 0 : index
    %66 = vector.load %arg5[%c7, %c0_40, %c0_41] : memref<9x1x512xf32, #tpu.memory_space<vmem>>, vector<1x1x512xf32>
    %67 = vector.shape_cast %66 : vector<1x1x512xf32> to vector<1x512xf32>
    %68 = vector.broadcast %67 : vector<1x512xf32> to vector<3x512xf32>
    %69 = arith.mulf %65, %68 : vector<3x512xf32>
    %70 = arith.truncf %69 : vector<3x512xf32> to vector<3x512xbf16>
    %c7_42 = arith.constant 7 : index
    %c0_43 = arith.constant 0 : index
    %c0_44 = arith.constant 0 : index
    %71 = vector.load %arg2[%c7_42, %c0_43, %c0_44] : memref<9x4x3xbf16, #tpu.memory_space<vmem>>, vector<1x4x3xbf16>
    %72 = vector.shape_cast %71 : vector<1x4x3xbf16> to vector<4x3xbf16>
    %cst_45 = arith.constant dense<0.000000e+00> : vector<4x512xf32>
    %73 = tpu.matmul %72, %70, %cst_45 {dimension_numbers = #tpu.dot_dimension_numbers<[1], [0], [0], [1], [0, 0, 1, 1], [], []>} : vector<4x3xbf16>, vector<3x512xbf16>, vector<4x512xf32> -> vector<4x512xf32>
    %74 = arith.addf %64, %73 : vector<4x512xf32>
    %c495_i32 = arith.constant 495 : i32
    %75 = tpu.dynamic_rotate %0 by %c495_i32 dim 1 : vector<3x512xf32>, i32 -> vector<3x512xf32>
    %c8 = arith.constant 8 : index
    %c0_46 = arith.constant 0 : index
    %c0_47 = arith.constant 0 : index
    %76 = vector.load %arg5[%c8, %c0_46, %c0_47] : memref<9x1x512xf32, #tpu.memory_space<vmem>>, vector<1x1x512xf32>
    %77 = vector.shape_cast %76 : vector<1x1x512xf32> to vector<1x512xf32>
    %78 = vector.broadcast %77 : vector<1x512xf32> to vector<3x512xf32>
    %79 = arith.mulf %75, %78 : vector<3x512xf32>
    %80 = arith.truncf %79 : vector<3x512xf32> to vector<3x512xbf16>
    %c8_48 = arith.constant 8 : index
    %c0_49 = arith.constant 0 : index
    %c0_50 = arith.constant 0 : index
    %81 = vector.load %arg2[%c8_48, %c0_49, %c0_50] : memref<9x4x3xbf16, #tpu.memory_space<vmem>>, vector<1x4x3xbf16>
    %82 = vector.shape_cast %81 : vector<1x4x3xbf16> to vector<4x3xbf16>
    %cst_51 = arith.constant dense<0.000000e+00> : vector<4x512xf32>
    %83 = tpu.matmul %82, %80, %cst_51 {dimension_numbers = #tpu.dot_dimension_numbers<[1], [0], [0], [1], [0, 0, 1, 1], [], []>} : vector<4x3xbf16>, vector<3x512xbf16>, vector<4x512xf32> -> vector<4x512xf32>
    %84 = arith.addf %74, %83 : vector<4x512xf32>
    %cst_52 = arith.constant dense<0.000000e+00> : vector<4xf32>
    %85 = vector.multi_reduction <add>, %84, %cst_52 [1] : vector<4x512xf32> to vector<4xf32>
    %86 = vector.shape_cast %85 : vector<4xf32> to vector<4x1xf32>
    %cst_53 = arith.constant 0.001953125 : f32
    %87 = vector.broadcast %cst_53 : f32 to vector<4x1xf32>
    %88 = arith.mulf %86, %87 : vector<4x1xf32>
    %89 = vector.broadcast %88 : vector<4x1xf32> to vector<4x512xf32>
    %90 = arith.subf %84, %89 : vector<4x512xf32>
    %91 = arith.mulf %90, %90 : vector<4x512xf32>
    %cst_54 = arith.constant dense<0.000000e+00> : vector<4xf32>
    %92 = vector.multi_reduction <add>, %91, %cst_54 [1] : vector<4x512xf32> to vector<4xf32>
    %93 = vector.shape_cast %92 : vector<4xf32> to vector<4x1xf32>
    %cst_55 = arith.constant 0.001953125 : f32
    %94 = vector.broadcast %cst_55 : f32 to vector<4x1xf32>
    %95 = arith.mulf %93, %94 : vector<4x1xf32>
    %cst_56 = arith.constant 9.99999974E-6 : f32
    %96 = vector.broadcast %cst_56 : f32 to vector<4x1xf32>
    %97 = arith.addf %95, %96 : vector<4x1xf32>
    %98 = math.rsqrt %97 : vector<4x1xf32>
    %99 = vector.broadcast %98 : vector<4x1xf32> to vector<4x512xf32>
    %100 = arith.mulf %90, %99 : vector<4x512xf32>
    %c0_57 = arith.constant 0 : index
    %c0_58 = arith.constant 0 : index
    %101 = vector.load %arg3[%c0_57, %c0_58] : memref<4x1xf32, #tpu.memory_space<vmem>>, vector<4x1xf32>
    %102 = vector.broadcast %101 : vector<4x1xf32> to vector<4x512xf32>
    %103 = arith.mulf %100, %102 : vector<4x512xf32>
    %c0_59 = arith.constant 0 : index
    %c0_60 = arith.constant 0 : index
    %104 = vector.load %arg4[%c0_59, %c0_60] : memref<4x1xf32, #tpu.memory_space<vmem>>, vector<4x1xf32>
    %105 = vector.broadcast %104 : vector<4x1xf32> to vector<4x512xf32>
    %106 = arith.addf %103, %105 : vector<4x512xf32>
    %cst_61 = arith.constant 0.000000e+00 : f32
    %107 = vector.broadcast %cst_61 : f32 to vector<4x512xf32>
    %108 = arith.maximumf %106, %107 : vector<4x512xf32>
    %c17_i32_62 = arith.constant 17 : i32
    %109 = tpu.dynamic_rotate %108 by %c17_i32_62 dim 1 : vector<4x512xf32>, i32 -> vector<4x512xf32>
    %c0_63 = arith.constant 0 : index
    %c0_64 = arith.constant 0 : index
    %c0_65 = arith.constant 0 : index
    %110 = vector.load %arg5[%c0_63, %c0_64, %c0_65] : memref<9x1x512xf32, #tpu.memory_space<vmem>>, vector<1x1x512xf32>
    %111 = vector.shape_cast %110 : vector<1x1x512xf32> to vector<1x512xf32>
    %112 = vector.broadcast %111 : vector<1x512xf32> to vector<4x512xf32>
    %113 = arith.mulf %109, %112 : vector<4x512xf32>
    %114 = arith.truncf %113 : vector<4x512xf32> to vector<4x512xbf16>
    %c0_66 = arith.constant 0 : index
    %c0_67 = arith.constant 0 : index
    %c0_68 = arith.constant 0 : index
    %115 = vector.load %arg6[%c0_66, %c0_67, %c0_68] : memref<9x4x4xbf16, #tpu.memory_space<vmem>>, vector<1x4x4xbf16>
    %116 = vector.shape_cast %115 : vector<1x4x4xbf16> to vector<4x4xbf16>
    %cst_69 = arith.constant dense<0.000000e+00> : vector<4x512xf32>
    %117 = tpu.matmul %116, %114, %cst_69 {dimension_numbers = #tpu.dot_dimension_numbers<[1], [0], [0], [1], [0, 0, 1, 1], [], []>} : vector<4x4xbf16>, vector<4x512xbf16>, vector<4x512xf32> -> vector<4x512xf32>
    %c16_i32_70 = arith.constant 16 : i32
    %118 = tpu.dynamic_rotate %108 by %c16_i32_70 dim 1 : vector<4x512xf32>, i32 -> vector<4x512xf32>
    %c1_71 = arith.constant 1 : index
    %c0_72 = arith.constant 0 : index
    %c0_73 = arith.constant 0 : index
    %119 = vector.load %arg5[%c1_71, %c0_72, %c0_73] : memref<9x1x512xf32, #tpu.memory_space<vmem>>, vector<1x1x512xf32>
    %120 = vector.shape_cast %119 : vector<1x1x512xf32> to vector<1x512xf32>
    %121 = vector.broadcast %120 : vector<1x512xf32> to vector<4x512xf32>
    %122 = arith.mulf %118, %121 : vector<4x512xf32>
    %123 = arith.truncf %122 : vector<4x512xf32> to vector<4x512xbf16>
    %c1_74 = arith.constant 1 : index
    %c0_75 = arith.constant 0 : index
    %c0_76 = arith.constant 0 : index
    %124 = vector.load %arg6[%c1_74, %c0_75, %c0_76] : memref<9x4x4xbf16, #tpu.memory_space<vmem>>, vector<1x4x4xbf16>
    %125 = vector.shape_cast %124 : vector<1x4x4xbf16> to vector<4x4xbf16>
    %cst_77 = arith.constant dense<0.000000e+00> : vector<4x512xf32>
    %126 = tpu.matmul %125, %123, %cst_77 {dimension_numbers = #tpu.dot_dimension_numbers<[1], [0], [0], [1], [0, 0, 1, 1], [], []>} : vector<4x4xbf16>, vector<4x512xbf16>, vector<4x512xf32> -> vector<4x512xf32>
    %127 = arith.addf %117, %126 : vector<4x512xf32>
    %c15_i32_78 = arith.constant 15 : i32
    %128 = tpu.dynamic_rotate %108 by %c15_i32_78 dim 1 : vector<4x512xf32>, i32 -> vector<4x512xf32>
    %c2_79 = arith.constant 2 : index
    %c0_80 = arith.constant 0 : index
    %c0_81 = arith.constant 0 : index
    %129 = vector.load %arg5[%c2_79, %c0_80, %c0_81] : memref<9x1x512xf32, #tpu.memory_space<vmem>>, vector<1x1x512xf32>
    %130 = vector.shape_cast %129 : vector<1x1x512xf32> to vector<1x512xf32>
    %131 = vector.broadcast %130 : vector<1x512xf32> to vector<4x512xf32>
    %132 = arith.mulf %128, %131 : vector<4x512xf32>
    %133 = arith.truncf %132 : vector<4x512xf32> to vector<4x512xbf16>
    %c2_82 = arith.constant 2 : index
    %c0_83 = arith.constant 0 : index
    %c0_84 = arith.constant 0 : index
    %134 = vector.load %arg6[%c2_82, %c0_83, %c0_84] : memref<9x4x4xbf16, #tpu.memory_space<vmem>>, vector<1x4x4xbf16>
    %135 = vector.shape_cast %134 : vector<1x4x4xbf16> to vector<4x4xbf16>
    %cst_85 = arith.constant dense<0.000000e+00> : vector<4x512xf32>
    %136 = tpu.matmul %135, %133, %cst_85 {dimension_numbers = #tpu.dot_dimension_numbers<[1], [0], [0], [1], [0, 0, 1, 1], [], []>} : vector<4x4xbf16>, vector<4x512xbf16>, vector<4x512xf32> -> vector<4x512xf32>
    %137 = arith.addf %127, %136 : vector<4x512xf32>
    %c1_i32_86 = arith.constant 1 : i32
    %138 = tpu.dynamic_rotate %108 by %c1_i32_86 dim 1 : vector<4x512xf32>, i32 -> vector<4x512xf32>
    %c3_87 = arith.constant 3 : index
    %c0_88 = arith.constant 0 : index
    %c0_89 = arith.constant 0 : index
    %139 = vector.load %arg5[%c3_87, %c0_88, %c0_89] : memref<9x1x512xf32, #tpu.memory_space<vmem>>, vector<1x1x512xf32>
    %140 = vector.shape_cast %139 : vector<1x1x512xf32> to vector<1x512xf32>
    %141 = vector.broadcast %140 : vector<1x512xf32> to vector<4x512xf32>
    %142 = arith.mulf %138, %141 : vector<4x512xf32>
    %143 = arith.truncf %142 : vector<4x512xf32> to vector<4x512xbf16>
    %c3_90 = arith.constant 3 : index
    %c0_91 = arith.constant 0 : index
    %c0_92 = arith.constant 0 : index
    %144 = vector.load %arg6[%c3_90, %c0_91, %c0_92] : memref<9x4x4xbf16, #tpu.memory_space<vmem>>, vector<1x4x4xbf16>
    %145 = vector.shape_cast %144 : vector<1x4x4xbf16> to vector<4x4xbf16>
    %cst_93 = arith.constant dense<0.000000e+00> : vector<4x512xf32>
    %146 = tpu.matmul %145, %143, %cst_93 {dimension_numbers = #tpu.dot_dimension_numbers<[1], [0], [0], [1], [0, 0, 1, 1], [], []>} : vector<4x4xbf16>, vector<4x512xbf16>, vector<4x512xf32> -> vector<4x512xf32>
    %147 = arith.addf %137, %146 : vector<4x512xf32>
    %148 = arith.truncf %108 : vector<4x512xf32> to vector<4x512xbf16>
    %c4_94 = arith.constant 4 : index
    %c0_95 = arith.constant 0 : index
    %c0_96 = arith.constant 0 : index
    %149 = vector.load %arg6[%c4_94, %c0_95, %c0_96] : memref<9x4x4xbf16, #tpu.memory_space<vmem>>, vector<1x4x4xbf16>
    %150 = vector.shape_cast %149 : vector<1x4x4xbf16> to vector<4x4xbf16>
    %cst_97 = arith.constant dense<0.000000e+00> : vector<4x512xf32>
    %151 = tpu.matmul %150, %148, %cst_97 {dimension_numbers = #tpu.dot_dimension_numbers<[1], [0], [0], [1], [0, 0, 1, 1], [], []>} : vector<4x4xbf16>, vector<4x512xbf16>, vector<4x512xf32> -> vector<4x512xf32>
    %152 = arith.addf %147, %151 : vector<4x512xf32>
    %c511_i32_98 = arith.constant 511 : i32
    %153 = tpu.dynamic_rotate %108 by %c511_i32_98 dim 1 : vector<4x512xf32>, i32 -> vector<4x512xf32>
    %c5_99 = arith.constant 5 : index
    %c0_100 = arith.constant 0 : index
    %c0_101 = arith.constant 0 : index
    %154 = vector.load %arg5[%c5_99, %c0_100, %c0_101] : memref<9x1x512xf32, #tpu.memory_space<vmem>>, vector<1x1x512xf32>
    %155 = vector.shape_cast %154 : vector<1x1x512xf32> to vector<1x512xf32>
    %156 = vector.broadcast %155 : vector<1x512xf32> to vector<4x512xf32>
    %157 = arith.mulf %153, %156 : vector<4x512xf32>
    %158 = arith.truncf %157 : vector<4x512xf32> to vector<4x512xbf16>
    %c5_102 = arith.constant 5 : index
    %c0_103 = arith.constant 0 : index
    %c0_104 = arith.constant 0 : index
    %159 = vector.load %arg6[%c5_102, %c0_103, %c0_104] : memref<9x4x4xbf16, #tpu.memory_space<vmem>>, vector<1x4x4xbf16>
    %160 = vector.shape_cast %159 : vector<1x4x4xbf16> to vector<4x4xbf16>
    %cst_105 = arith.constant dense<0.000000e+00> : vector<4x512xf32>
    %161 = tpu.matmul %160, %158, %cst_105 {dimension_numbers = #tpu.dot_dimension_numbers<[1], [0], [0], [1], [0, 0, 1, 1], [], []>} : vector<4x4xbf16>, vector<4x512xbf16>, vector<4x512xf32> -> vector<4x512xf32>
    %162 = arith.addf %152, %161 : vector<4x512xf32>
    %c497_i32_106 = arith.constant 497 : i32
    %163 = tpu.dynamic_rotate %108 by %c497_i32_106 dim 1 : vector<4x512xf32>, i32 -> vector<4x512xf32>
    %c6_107 = arith.constant 6 : index
    %c0_108 = arith.constant 0 : index
    %c0_109 = arith.constant 0 : index
    %164 = vector.load %arg5[%c6_107, %c0_108, %c0_109] : memref<9x1x512xf32, #tpu.memory_space<vmem>>, vector<1x1x512xf32>
    %165 = vector.shape_cast %164 : vector<1x1x512xf32> to vector<1x512xf32>
    %166 = vector.broadcast %165 : vector<1x512xf32> to vector<4x512xf32>
    %167 = arith.mulf %163, %166 : vector<4x512xf32>
    %168 = arith.truncf %167 : vector<4x512xf32> to vector<4x512xbf16>
    %c6_110 = arith.constant 6 : index
    %c0_111 = arith.constant 0 : index
    %c0_112 = arith.constant 0 : index
    %169 = vector.load %arg6[%c6_110, %c0_111, %c0_112] : memref<9x4x4xbf16, #tpu.memory_space<vmem>>, vector<1x4x4xbf16>
    %170 = vector.shape_cast %169 : vector<1x4x4xbf16> to vector<4x4xbf16>
    %cst_113 = arith.constant dense<0.000000e+00> : vector<4x512xf32>
    %171 = tpu.matmul %170, %168, %cst_113 {dimension_numbers = #tpu.dot_dimension_numbers<[1], [0], [0], [1], [0, 0, 1, 1], [], []>} : vector<4x4xbf16>, vector<4x512xbf16>, vector<4x512xf32> -> vector<4x512xf32>
    %172 = arith.addf %162, %171 : vector<4x512xf32>
    %c496_i32_114 = arith.constant 496 : i32
    %173 = tpu.dynamic_rotate %108 by %c496_i32_114 dim 1 : vector<4x512xf32>, i32 -> vector<4x512xf32>
    %c7_115 = arith.constant 7 : index
    %c0_116 = arith.constant 0 : index
    %c0_117 = arith.constant 0 : index
    %174 = vector.load %arg5[%c7_115, %c0_116, %c0_117] : memref<9x1x512xf32, #tpu.memory_space<vmem>>, vector<1x1x512xf32>
    %175 = vector.shape_cast %174 : vector<1x1x512xf32> to vector<1x512xf32>
    %176 = vector.broadcast %175 : vector<1x512xf32> to vector<4x512xf32>
    %177 = arith.mulf %173, %176 : vector<4x512xf32>
    %178 = arith.truncf %177 : vector<4x512xf32> to vector<4x512xbf16>
    %c7_118 = arith.constant 7 : index
    %c0_119 = arith.constant 0 : index
    %c0_120 = arith.constant 0 : index
    %179 = vector.load %arg6[%c7_118, %c0_119, %c0_120] : memref<9x4x4xbf16, #tpu.memory_space<vmem>>, vector<1x4x4xbf16>
    %180 = vector.shape_cast %179 : vector<1x4x4xbf16> to vector<4x4xbf16>
    %cst_121 = arith.constant dense<0.000000e+00> : vector<4x512xf32>
    %181 = tpu.matmul %180, %178, %cst_121 {dimension_numbers = #tpu.dot_dimension_numbers<[1], [0], [0], [1], [0, 0, 1, 1], [], []>} : vector<4x4xbf16>, vector<4x512xbf16>, vector<4x512xf32> -> vector<4x512xf32>
    %182 = arith.addf %172, %181 : vector<4x512xf32>
    %c495_i32_122 = arith.constant 495 : i32
    %183 = tpu.dynamic_rotate %108 by %c495_i32_122 dim 1 : vector<4x512xf32>, i32 -> vector<4x512xf32>
    %c8_123 = arith.constant 8 : index
    %c0_124 = arith.constant 0 : index
    %c0_125 = arith.constant 0 : index
    %184 = vector.load %arg5[%c8_123, %c0_124, %c0_125] : memref<9x1x512xf32, #tpu.memory_space<vmem>>, vector<1x1x512xf32>
    %185 = vector.shape_cast %184 : vector<1x1x512xf32> to vector<1x512xf32>
    %186 = vector.broadcast %185 : vector<1x512xf32> to vector<4x512xf32>
    %187 = arith.mulf %183, %186 : vector<4x512xf32>
    %188 = arith.truncf %187 : vector<4x512xf32> to vector<4x512xbf16>
    %c8_126 = arith.constant 8 : index
    %c0_127 = arith.constant 0 : index
    %c0_128 = arith.constant 0 : index
    %189 = vector.load %arg6[%c8_126, %c0_127, %c0_128] : memref<9x4x4xbf16, #tpu.memory_space<vmem>>, vector<1x4x4xbf16>
    %190 = vector.shape_cast %189 : vector<1x4x4xbf16> to vector<4x4xbf16>
    %cst_129 = arith.constant dense<0.000000e+00> : vector<4x512xf32>
    %191 = tpu.matmul %190, %188, %cst_129 {dimension_numbers = #tpu.dot_dimension_numbers<[1], [0], [0], [1], [0, 0, 1, 1], [], []>} : vector<4x4xbf16>, vector<4x512xbf16>, vector<4x512xf32> -> vector<4x512xf32>
    %192 = arith.addf %182, %191 : vector<4x512xf32>
    %cst_130 = arith.constant dense<0.000000e+00> : vector<4xf32>
    %193 = vector.multi_reduction <add>, %192, %cst_130 [1] : vector<4x512xf32> to vector<4xf32>
    %194 = vector.shape_cast %193 : vector<4xf32> to vector<4x1xf32>
    %cst_131 = arith.constant 0.001953125 : f32
    %195 = vector.broadcast %cst_131 : f32 to vector<4x1xf32>
    %196 = arith.mulf %194, %195 : vector<4x1xf32>
    %197 = vector.broadcast %196 : vector<4x1xf32> to vector<4x512xf32>
    %198 = arith.subf %192, %197 : vector<4x512xf32>
    %199 = arith.mulf %198, %198 : vector<4x512xf32>
    %cst_132 = arith.constant dense<0.000000e+00> : vector<4xf32>
    %200 = vector.multi_reduction <add>, %199, %cst_132 [1] : vector<4x512xf32> to vector<4xf32>
    %201 = vector.shape_cast %200 : vector<4xf32> to vector<4x1xf32>
    %cst_133 = arith.constant 0.001953125 : f32
    %202 = vector.broadcast %cst_133 : f32 to vector<4x1xf32>
    %203 = arith.mulf %201, %202 : vector<4x1xf32>
    %cst_134 = arith.constant 9.99999974E-6 : f32
    %204 = vector.broadcast %cst_134 : f32 to vector<4x1xf32>
    %205 = arith.addf %203, %204 : vector<4x1xf32>
    %206 = math.rsqrt %205 : vector<4x1xf32>
    %207 = vector.broadcast %206 : vector<4x1xf32> to vector<4x512xf32>
    %208 = arith.mulf %198, %207 : vector<4x512xf32>
    %c0_135 = arith.constant 0 : index
    %c0_136 = arith.constant 0 : index
    %209 = vector.load %arg7[%c0_135, %c0_136] : memref<4x1xf32, #tpu.memory_space<vmem>>, vector<4x1xf32>
    %210 = vector.broadcast %209 : vector<4x1xf32> to vector<4x512xf32>
    %211 = arith.mulf %208, %210 : vector<4x512xf32>
    %c0_137 = arith.constant 0 : index
    %c0_138 = arith.constant 0 : index
    %212 = vector.load %arg8[%c0_137, %c0_138] : memref<4x1xf32, #tpu.memory_space<vmem>>, vector<4x1xf32>
    %213 = vector.broadcast %212 : vector<4x1xf32> to vector<4x512xf32>
    %214 = arith.addf %211, %213 : vector<4x512xf32>
    %cst_139 = arith.constant 0.000000e+00 : f32
    %215 = vector.broadcast %cst_139 : f32 to vector<4x512xf32>
    %216 = arith.maximumf %214, %215 : vector<4x512xf32>
    %c17_i32_140 = arith.constant 17 : i32
    %217 = tpu.dynamic_rotate %216 by %c17_i32_140 dim 1 : vector<4x512xf32>, i32 -> vector<4x512xf32>
    %c0_141 = arith.constant 0 : index
    %c0_142 = arith.constant 0 : index
    %c0_143 = arith.constant 0 : index
    %218 = vector.load %arg5[%c0_141, %c0_142, %c0_143] : memref<9x1x512xf32, #tpu.memory_space<vmem>>, vector<1x1x512xf32>
    %219 = vector.shape_cast %218 : vector<1x1x512xf32> to vector<1x512xf32>
    %220 = vector.broadcast %219 : vector<1x512xf32> to vector<4x512xf32>
    %221 = arith.mulf %217, %220 : vector<4x512xf32>
    %222 = arith.truncf %221 : vector<4x512xf32> to vector<4x512xbf16>
    %c0_144 = arith.constant 0 : index
    %c0_145 = arith.constant 0 : index
    %c0_146 = arith.constant 0 : index
    %223 = vector.load %arg9[%c0_144, %c0_145, %c0_146] : memref<9x4x4xbf16, #tpu.memory_space<vmem>>, vector<1x4x4xbf16>
    %224 = vector.shape_cast %223 : vector<1x4x4xbf16> to vector<4x4xbf16>
    %cst_147 = arith.constant dense<0.000000e+00> : vector<4x512xf32>
    %225 = tpu.matmul %224, %222, %cst_147 {dimension_numbers = #tpu.dot_dimension_numbers<[1], [0], [0], [1], [0, 0, 1, 1], [], []>} : vector<4x4xbf16>, vector<4x512xbf16>, vector<4x512xf32> -> vector<4x512xf32>
    %c16_i32_148 = arith.constant 16 : i32
    %226 = tpu.dynamic_rotate %216 by %c16_i32_148 dim 1 : vector<4x512xf32>, i32 -> vector<4x512xf32>
    %c1_149 = arith.constant 1 : index
    %c0_150 = arith.constant 0 : index
    %c0_151 = arith.constant 0 : index
    %227 = vector.load %arg5[%c1_149, %c0_150, %c0_151] : memref<9x1x512xf32, #tpu.memory_space<vmem>>, vector<1x1x512xf32>
    %228 = vector.shape_cast %227 : vector<1x1x512xf32> to vector<1x512xf32>
    %229 = vector.broadcast %228 : vector<1x512xf32> to vector<4x512xf32>
    %230 = arith.mulf %226, %229 : vector<4x512xf32>
    %231 = arith.truncf %230 : vector<4x512xf32> to vector<4x512xbf16>
    %c1_152 = arith.constant 1 : index
    %c0_153 = arith.constant 0 : index
    %c0_154 = arith.constant 0 : index
    %232 = vector.load %arg9[%c1_152, %c0_153, %c0_154] : memref<9x4x4xbf16, #tpu.memory_space<vmem>>, vector<1x4x4xbf16>
    %233 = vector.shape_cast %232 : vector<1x4x4xbf16> to vector<4x4xbf16>
    %cst_155 = arith.constant dense<0.000000e+00> : vector<4x512xf32>
    %234 = tpu.matmul %233, %231, %cst_155 {dimension_numbers = #tpu.dot_dimension_numbers<[1], [0], [0], [1], [0, 0, 1, 1], [], []>} : vector<4x4xbf16>, vector<4x512xbf16>, vector<4x512xf32> -> vector<4x512xf32>
    %235 = arith.addf %225, %234 : vector<4x512xf32>
    %c15_i32_156 = arith.constant 15 : i32
    %236 = tpu.dynamic_rotate %216 by %c15_i32_156 dim 1 : vector<4x512xf32>, i32 -> vector<4x512xf32>
    %c2_157 = arith.constant 2 : index
    %c0_158 = arith.constant 0 : index
    %c0_159 = arith.constant 0 : index
    %237 = vector.load %arg5[%c2_157, %c0_158, %c0_159] : memref<9x1x512xf32, #tpu.memory_space<vmem>>, vector<1x1x512xf32>
    %238 = vector.shape_cast %237 : vector<1x1x512xf32> to vector<1x512xf32>
    %239 = vector.broadcast %238 : vector<1x512xf32> to vector<4x512xf32>
    %240 = arith.mulf %236, %239 : vector<4x512xf32>
    %241 = arith.truncf %240 : vector<4x512xf32> to vector<4x512xbf16>
    %c2_160 = arith.constant 2 : index
    %c0_161 = arith.constant 0 : index
    %c0_162 = arith.constant 0 : index
    %242 = vector.load %arg9[%c2_160, %c0_161, %c0_162] : memref<9x4x4xbf16, #tpu.memory_space<vmem>>, vector<1x4x4xbf16>
    %243 = vector.shape_cast %242 : vector<1x4x4xbf16> to vector<4x4xbf16>
    %cst_163 = arith.constant dense<0.000000e+00> : vector<4x512xf32>
    %244 = tpu.matmul %243, %241, %cst_163 {dimension_numbers = #tpu.dot_dimension_numbers<[1], [0], [0], [1], [0, 0, 1, 1], [], []>} : vector<4x4xbf16>, vector<4x512xbf16>, vector<4x512xf32> -> vector<4x512xf32>
    %245 = arith.addf %235, %244 : vector<4x512xf32>
    %c1_i32_164 = arith.constant 1 : i32
    %246 = tpu.dynamic_rotate %216 by %c1_i32_164 dim 1 : vector<4x512xf32>, i32 -> vector<4x512xf32>
    %c3_165 = arith.constant 3 : index
    %c0_166 = arith.constant 0 : index
    %c0_167 = arith.constant 0 : index
    %247 = vector.load %arg5[%c3_165, %c0_166, %c0_167] : memref<9x1x512xf32, #tpu.memory_space<vmem>>, vector<1x1x512xf32>
    %248 = vector.shape_cast %247 : vector<1x1x512xf32> to vector<1x512xf32>
    %249 = vector.broadcast %248 : vector<1x512xf32> to vector<4x512xf32>
    %250 = arith.mulf %246, %249 : vector<4x512xf32>
    %251 = arith.truncf %250 : vector<4x512xf32> to vector<4x512xbf16>
    %c3_168 = arith.constant 3 : index
    %c0_169 = arith.constant 0 : index
    %c0_170 = arith.constant 0 : index
    %252 = vector.load %arg9[%c3_168, %c0_169, %c0_170] : memref<9x4x4xbf16, #tpu.memory_space<vmem>>, vector<1x4x4xbf16>
    %253 = vector.shape_cast %252 : vector<1x4x4xbf16> to vector<4x4xbf16>
    %cst_171 = arith.constant dense<0.000000e+00> : vector<4x512xf32>
    %254 = tpu.matmul %253, %251, %cst_171 {dimension_numbers = #tpu.dot_dimension_numbers<[1], [0], [0], [1], [0, 0, 1, 1], [], []>} : vector<4x4xbf16>, vector<4x512xbf16>, vector<4x512xf32> -> vector<4x512xf32>
    %255 = arith.addf %245, %254 : vector<4x512xf32>
    %256 = arith.truncf %216 : vector<4x512xf32> to vector<4x512xbf16>
    %c4_172 = arith.constant 4 : index
    %c0_173 = arith.constant 0 : index
    %c0_174 = arith.constant 0 : index
    %257 = vector.load %arg9[%c4_172, %c0_173, %c0_174] : memref<9x4x4xbf16, #tpu.memory_space<vmem>>, vector<1x4x4xbf16>
    %258 = vector.shape_cast %257 : vector<1x4x4xbf16> to vector<4x4xbf16>
    %cst_175 = arith.constant dense<0.000000e+00> : vector<4x512xf32>
    %259 = tpu.matmul %258, %256, %cst_175 {dimension_numbers = #tpu.dot_dimension_numbers<[1], [0], [0], [1], [0, 0, 1, 1], [], []>} : vector<4x4xbf16>, vector<4x512xbf16>, vector<4x512xf32> -> vector<4x512xf32>
    %260 = arith.addf %255, %259 : vector<4x512xf32>
    %c511_i32_176 = arith.constant 511 : i32
    %261 = tpu.dynamic_rotate %216 by %c511_i32_176 dim 1 : vector<4x512xf32>, i32 -> vector<4x512xf32>
    %c5_177 = arith.constant 5 : index
    %c0_178 = arith.constant 0 : index
    %c0_179 = arith.constant 0 : index
    %262 = vector.load %arg5[%c5_177, %c0_178, %c0_179] : memref<9x1x512xf32, #tpu.memory_space<vmem>>, vector<1x1x512xf32>
    %263 = vector.shape_cast %262 : vector<1x1x512xf32> to vector<1x512xf32>
    %264 = vector.broadcast %263 : vector<1x512xf32> to vector<4x512xf32>
    %265 = arith.mulf %261, %264 : vector<4x512xf32>
    %266 = arith.truncf %265 : vector<4x512xf32> to vector<4x512xbf16>
    %c5_180 = arith.constant 5 : index
    %c0_181 = arith.constant 0 : index
    %c0_182 = arith.constant 0 : index
    %267 = vector.load %arg9[%c5_180, %c0_181, %c0_182] : memref<9x4x4xbf16, #tpu.memory_space<vmem>>, vector<1x4x4xbf16>
    %268 = vector.shape_cast %267 : vector<1x4x4xbf16> to vector<4x4xbf16>
    %cst_183 = arith.constant dense<0.000000e+00> : vector<4x512xf32>
    %269 = tpu.matmul %268, %266, %cst_183 {dimension_numbers = #tpu.dot_dimension_numbers<[1], [0], [0], [1], [0, 0, 1, 1], [], []>} : vector<4x4xbf16>, vector<4x512xbf16>, vector<4x512xf32> -> vector<4x512xf32>
    %270 = arith.addf %260, %269 : vector<4x512xf32>
    %c497_i32_184 = arith.constant 497 : i32
    %271 = tpu.dynamic_rotate %216 by %c497_i32_184 dim 1 : vector<4x512xf32>, i32 -> vector<4x512xf32>
    %c6_185 = arith.constant 6 : index
    %c0_186 = arith.constant 0 : index
    %c0_187 = arith.constant 0 : index
    %272 = vector.load %arg5[%c6_185, %c0_186, %c0_187] : memref<9x1x512xf32, #tpu.memory_space<vmem>>, vector<1x1x512xf32>
    %273 = vector.shape_cast %272 : vector<1x1x512xf32> to vector<1x512xf32>
    %274 = vector.broadcast %273 : vector<1x512xf32> to vector<4x512xf32>
    %275 = arith.mulf %271, %274 : vector<4x512xf32>
    %276 = arith.truncf %275 : vector<4x512xf32> to vector<4x512xbf16>
    %c6_188 = arith.constant 6 : index
    %c0_189 = arith.constant 0 : index
    %c0_190 = arith.constant 0 : index
    %277 = vector.load %arg9[%c6_188, %c0_189, %c0_190] : memref<9x4x4xbf16, #tpu.memory_space<vmem>>, vector<1x4x4xbf16>
    %278 = vector.shape_cast %277 : vector<1x4x4xbf16> to vector<4x4xbf16>
    %cst_191 = arith.constant dense<0.000000e+00> : vector<4x512xf32>
    %279 = tpu.matmul %278, %276, %cst_191 {dimension_numbers = #tpu.dot_dimension_numbers<[1], [0], [0], [1], [0, 0, 1, 1], [], []>} : vector<4x4xbf16>, vector<4x512xbf16>, vector<4x512xf32> -> vector<4x512xf32>
    %280 = arith.addf %270, %279 : vector<4x512xf32>
    %c496_i32_192 = arith.constant 496 : i32
    %281 = tpu.dynamic_rotate %216 by %c496_i32_192 dim 1 : vector<4x512xf32>, i32 -> vector<4x512xf32>
    %c7_193 = arith.constant 7 : index
    %c0_194 = arith.constant 0 : index
    %c0_195 = arith.constant 0 : index
    %282 = vector.load %arg5[%c7_193, %c0_194, %c0_195] : memref<9x1x512xf32, #tpu.memory_space<vmem>>, vector<1x1x512xf32>
    %283 = vector.shape_cast %282 : vector<1x1x512xf32> to vector<1x512xf32>
    %284 = vector.broadcast %283 : vector<1x512xf32> to vector<4x512xf32>
    %285 = arith.mulf %281, %284 : vector<4x512xf32>
    %286 = arith.truncf %285 : vector<4x512xf32> to vector<4x512xbf16>
    %c7_196 = arith.constant 7 : index
    %c0_197 = arith.constant 0 : index
    %c0_198 = arith.constant 0 : index
    %287 = vector.load %arg9[%c7_196, %c0_197, %c0_198] : memref<9x4x4xbf16, #tpu.memory_space<vmem>>, vector<1x4x4xbf16>
    %288 = vector.shape_cast %287 : vector<1x4x4xbf16> to vector<4x4xbf16>
    %cst_199 = arith.constant dense<0.000000e+00> : vector<4x512xf32>
    %289 = tpu.matmul %288, %286, %cst_199 {dimension_numbers = #tpu.dot_dimension_numbers<[1], [0], [0], [1], [0, 0, 1, 1], [], []>} : vector<4x4xbf16>, vector<4x512xbf16>, vector<4x512xf32> -> vector<4x512xf32>
    %290 = arith.addf %280, %289 : vector<4x512xf32>
    %c495_i32_200 = arith.constant 495 : i32
    %291 = tpu.dynamic_rotate %216 by %c495_i32_200 dim 1 : vector<4x512xf32>, i32 -> vector<4x512xf32>
    %c8_201 = arith.constant 8 : index
    %c0_202 = arith.constant 0 : index
    %c0_203 = arith.constant 0 : index
    %292 = vector.load %arg5[%c8_201, %c0_202, %c0_203] : memref<9x1x512xf32, #tpu.memory_space<vmem>>, vector<1x1x512xf32>
    %293 = vector.shape_cast %292 : vector<1x1x512xf32> to vector<1x512xf32>
    %294 = vector.broadcast %293 : vector<1x512xf32> to vector<4x512xf32>
    %295 = arith.mulf %291, %294 : vector<4x512xf32>
    %296 = arith.truncf %295 : vector<4x512xf32> to vector<4x512xbf16>
    %c8_204 = arith.constant 8 : index
    %c0_205 = arith.constant 0 : index
    %c0_206 = arith.constant 0 : index
    %297 = vector.load %arg9[%c8_204, %c0_205, %c0_206] : memref<9x4x4xbf16, #tpu.memory_space<vmem>>, vector<1x4x4xbf16>
    %298 = vector.shape_cast %297 : vector<1x4x4xbf16> to vector<4x4xbf16>
    %cst_207 = arith.constant dense<0.000000e+00> : vector<4x512xf32>
    %299 = tpu.matmul %298, %296, %cst_207 {dimension_numbers = #tpu.dot_dimension_numbers<[1], [0], [0], [1], [0, 0, 1, 1], [], []>} : vector<4x4xbf16>, vector<4x512xbf16>, vector<4x512xf32> -> vector<4x512xf32>
    %300 = arith.addf %290, %299 : vector<4x512xf32>
    %cst_208 = arith.constant dense<0.000000e+00> : vector<4xf32>
    %301 = vector.multi_reduction <add>, %300, %cst_208 [1] : vector<4x512xf32> to vector<4xf32>
    %302 = vector.shape_cast %301 : vector<4xf32> to vector<4x1xf32>
    %cst_209 = arith.constant 0.001953125 : f32
    %303 = vector.broadcast %cst_209 : f32 to vector<4x1xf32>
    %304 = arith.mulf %302, %303 : vector<4x1xf32>
    %305 = vector.broadcast %304 : vector<4x1xf32> to vector<4x512xf32>
    %306 = arith.subf %300, %305 : vector<4x512xf32>
    %307 = arith.mulf %306, %306 : vector<4x512xf32>
    %cst_210 = arith.constant dense<0.000000e+00> : vector<4xf32>
    %308 = vector.multi_reduction <add>, %307, %cst_210 [1] : vector<4x512xf32> to vector<4xf32>
    %309 = vector.shape_cast %308 : vector<4xf32> to vector<4x1xf32>
    %cst_211 = arith.constant 0.001953125 : f32
    %310 = vector.broadcast %cst_211 : f32 to vector<4x1xf32>
    %311 = arith.mulf %309, %310 : vector<4x1xf32>
    %cst_212 = arith.constant 9.99999974E-6 : f32
    %312 = vector.broadcast %cst_212 : f32 to vector<4x1xf32>
    %313 = arith.addf %311, %312 : vector<4x1xf32>
    %314 = math.rsqrt %313 : vector<4x1xf32>
    %315 = vector.broadcast %314 : vector<4x1xf32> to vector<4x512xf32>
    %316 = arith.mulf %306, %315 : vector<4x512xf32>
    %c0_213 = arith.constant 0 : index
    %c0_214 = arith.constant 0 : index
    %317 = vector.load %arg10[%c0_213, %c0_214] : memref<4x1xf32, #tpu.memory_space<vmem>>, vector<4x1xf32>
    %318 = vector.broadcast %317 : vector<4x1xf32> to vector<4x512xf32>
    %319 = arith.mulf %316, %318 : vector<4x512xf32>
    %c0_215 = arith.constant 0 : index
    %c0_216 = arith.constant 0 : index
    %320 = vector.load %arg11[%c0_215, %c0_216] : memref<4x1xf32, #tpu.memory_space<vmem>>, vector<4x1xf32>
    %321 = vector.broadcast %320 : vector<4x1xf32> to vector<4x512xf32>
    %322 = arith.addf %319, %321 : vector<4x512xf32>
    %323 = arith.addf %322, %108 : vector<4x512xf32>
    %cst_217 = arith.constant 0.000000e+00 : f32
    %324 = vector.broadcast %cst_217 : f32 to vector<4x512xf32>
    %325 = arith.maximumf %323, %324 : vector<4x512xf32>
    %c17_i32_218 = arith.constant 17 : i32
    %326 = tpu.dynamic_rotate %325 by %c17_i32_218 dim 1 : vector<4x512xf32>, i32 -> vector<4x512xf32>
    %c0_219 = arith.constant 0 : index
    %c0_220 = arith.constant 0 : index
    %c0_221 = arith.constant 0 : index
    %327 = vector.load %arg5[%c0_219, %c0_220, %c0_221] : memref<9x1x512xf32, #tpu.memory_space<vmem>>, vector<1x1x512xf32>
    %328 = vector.shape_cast %327 : vector<1x1x512xf32> to vector<1x512xf32>
    %329 = vector.broadcast %328 : vector<1x512xf32> to vector<4x512xf32>
    %330 = arith.mulf %326, %329 : vector<4x512xf32>
    %331 = arith.truncf %330 : vector<4x512xf32> to vector<4x512xbf16>
    %c0_222 = arith.constant 0 : index
    %c0_223 = arith.constant 0 : index
    %c0_224 = arith.constant 0 : index
    %332 = vector.load %arg17[%c0_222, %c0_223, %c0_224] : memref<9x8x4xbf16, #tpu.memory_space<vmem>>, vector<1x8x4xbf16>
    %333 = vector.shape_cast %332 : vector<1x8x4xbf16> to vector<8x4xbf16>
    %cst_225 = arith.constant dense<0.000000e+00> : vector<8x512xf32>
    %334 = tpu.matmul %333, %331, %cst_225 {dimension_numbers = #tpu.dot_dimension_numbers<[1], [0], [0], [1], [0, 0, 1, 1], [], []>} : vector<8x4xbf16>, vector<4x512xbf16>, vector<8x512xf32> -> vector<8x512xf32>
    %c16_i32_226 = arith.constant 16 : i32
    %335 = tpu.dynamic_rotate %325 by %c16_i32_226 dim 1 : vector<4x512xf32>, i32 -> vector<4x512xf32>
    %c1_227 = arith.constant 1 : index
    %c0_228 = arith.constant 0 : index
    %c0_229 = arith.constant 0 : index
    %336 = vector.load %arg5[%c1_227, %c0_228, %c0_229] : memref<9x1x512xf32, #tpu.memory_space<vmem>>, vector<1x1x512xf32>
    %337 = vector.shape_cast %336 : vector<1x1x512xf32> to vector<1x512xf32>
    %338 = vector.broadcast %337 : vector<1x512xf32> to vector<4x512xf32>
    %339 = arith.mulf %335, %338 : vector<4x512xf32>
    %340 = arith.truncf %339 : vector<4x512xf32> to vector<4x512xbf16>
    %c1_230 = arith.constant 1 : index
    %c0_231 = arith.constant 0 : index
    %c0_232 = arith.constant 0 : index
    %341 = vector.load %arg17[%c1_230, %c0_231, %c0_232] : memref<9x8x4xbf16, #tpu.memory_space<vmem>>, vector<1x8x4xbf16>
    %342 = vector.shape_cast %341 : vector<1x8x4xbf16> to vector<8x4xbf16>
    %cst_233 = arith.constant dense<0.000000e+00> : vector<8x512xf32>
    %343 = tpu.matmul %342, %340, %cst_233 {dimension_numbers = #tpu.dot_dimension_numbers<[1], [0], [0], [1], [0, 0, 1, 1], [], []>} : vector<8x4xbf16>, vector<4x512xbf16>, vector<8x512xf32> -> vector<8x512xf32>
    %344 = arith.addf %334, %343 : vector<8x512xf32>
    %c15_i32_234 = arith.constant 15 : i32
    %345 = tpu.dynamic_rotate %325 by %c15_i32_234 dim 1 : vector<4x512xf32>, i32 -> vector<4x512xf32>
    %c2_235 = arith.constant 2 : index
    %c0_236 = arith.constant 0 : index
    %c0_237 = arith.constant 0 : index
    %346 = vector.load %arg5[%c2_235, %c0_236, %c0_237] : memref<9x1x512xf32, #tpu.memory_space<vmem>>, vector<1x1x512xf32>
    %347 = vector.shape_cast %346 : vector<1x1x512xf32> to vector<1x512xf32>
    %348 = vector.broadcast %347 : vector<1x512xf32> to vector<4x512xf32>
    %349 = arith.mulf %345, %348 : vector<4x512xf32>
    %350 = arith.truncf %349 : vector<4x512xf32> to vector<4x512xbf16>
    %c2_238 = arith.constant 2 : index
    %c0_239 = arith.constant 0 : index
    %c0_240 = arith.constant 0 : index
    %351 = vector.load %arg17[%c2_238, %c0_239, %c0_240] : memref<9x8x4xbf16, #tpu.memory_space<vmem>>, vector<1x8x4xbf16>
    %352 = vector.shape_cast %351 : vector<1x8x4xbf16> to vector<8x4xbf16>
    %cst_241 = arith.constant dense<0.000000e+00> : vector<8x512xf32>
    %353 = tpu.matmul %352, %350, %cst_241 {dimension_numbers = #tpu.dot_dimension_numbers<[1], [0], [0], [1], [0, 0, 1, 1], [], []>} : vector<8x4xbf16>, vector<4x512xbf16>, vector<8x512xf32> -> vector<8x512xf32>
    %354 = arith.addf %344, %353 : vector<8x512xf32>
    %c1_i32_242 = arith.constant 1 : i32
    %355 = tpu.dynamic_rotate %325 by %c1_i32_242 dim 1 : vector<4x512xf32>, i32 -> vector<4x512xf32>
    %c3_243 = arith.constant 3 : index
    %c0_244 = arith.constant 0 : index
    %c0_245 = arith.constant 0 : index
    %356 = vector.load %arg5[%c3_243, %c0_244, %c0_245] : memref<9x1x512xf32, #tpu.memory_space<vmem>>, vector<1x1x512xf32>
    %357 = vector.shape_cast %356 : vector<1x1x512xf32> to vector<1x512xf32>
    %358 = vector.broadcast %357 : vector<1x512xf32> to vector<4x512xf32>
    %359 = arith.mulf %355, %358 : vector<4x512xf32>
    %360 = arith.truncf %359 : vector<4x512xf32> to vector<4x512xbf16>
    %c3_246 = arith.constant 3 : index
    %c0_247 = arith.constant 0 : index
    %c0_248 = arith.constant 0 : index
    %361 = vector.load %arg17[%c3_246, %c0_247, %c0_248] : memref<9x8x4xbf16, #tpu.memory_space<vmem>>, vector<1x8x4xbf16>
    %362 = vector.shape_cast %361 : vector<1x8x4xbf16> to vector<8x4xbf16>
    %cst_249 = arith.constant dense<0.000000e+00> : vector<8x512xf32>
    %363 = tpu.matmul %362, %360, %cst_249 {dimension_numbers = #tpu.dot_dimension_numbers<[1], [0], [0], [1], [0, 0, 1, 1], [], []>} : vector<8x4xbf16>, vector<4x512xbf16>, vector<8x512xf32> -> vector<8x512xf32>
    %364 = arith.addf %354, %363 : vector<8x512xf32>
    %365 = arith.truncf %325 : vector<4x512xf32> to vector<4x512xbf16>
    %c4_250 = arith.constant 4 : index
    %c0_251 = arith.constant 0 : index
    %c0_252 = arith.constant 0 : index
    %366 = vector.load %arg17[%c4_250, %c0_251, %c0_252] : memref<9x8x4xbf16, #tpu.memory_space<vmem>>, vector<1x8x4xbf16>
    %367 = vector.shape_cast %366 : vector<1x8x4xbf16> to vector<8x4xbf16>
    %cst_253 = arith.constant dense<0.000000e+00> : vector<8x512xf32>
    %368 = tpu.matmul %367, %365, %cst_253 {dimension_numbers = #tpu.dot_dimension_numbers<[1], [0], [0], [1], [0, 0, 1, 1], [], []>} : vector<8x4xbf16>, vector<4x512xbf16>, vector<8x512xf32> -> vector<8x512xf32>
    %369 = arith.addf %364, %368 : vector<8x512xf32>
    %c511_i32_254 = arith.constant 511 : i32
    %370 = tpu.dynamic_rotate %325 by %c511_i32_254 dim 1 : vector<4x512xf32>, i32 -> vector<4x512xf32>
    %c5_255 = arith.constant 5 : index
    %c0_256 = arith.constant 0 : index
    %c0_257 = arith.constant 0 : index
    %371 = vector.load %arg5[%c5_255, %c0_256, %c0_257] : memref<9x1x512xf32, #tpu.memory_space<vmem>>, vector<1x1x512xf32>
    %372 = vector.shape_cast %371 : vector<1x1x512xf32> to vector<1x512xf32>
    %373 = vector.broadcast %372 : vector<1x512xf32> to vector<4x512xf32>
    %374 = arith.mulf %370, %373 : vector<4x512xf32>
    %375 = arith.truncf %374 : vector<4x512xf32> to vector<4x512xbf16>
    %c5_258 = arith.constant 5 : index
    %c0_259 = arith.constant 0 : index
    %c0_260 = arith.constant 0 : index
    %376 = vector.load %arg17[%c5_258, %c0_259, %c0_260] : memref<9x8x4xbf16, #tpu.memory_space<vmem>>, vector<1x8x4xbf16>
    %377 = vector.shape_cast %376 : vector<1x8x4xbf16> to vector<8x4xbf16>
    %cst_261 = arith.constant dense<0.000000e+00> : vector<8x512xf32>
    %378 = tpu.matmul %377, %375, %cst_261 {dimension_numbers = #tpu.dot_dimension_numbers<[1], [0], [0], [1], [0, 0, 1, 1], [], []>} : vector<8x4xbf16>, vector<4x512xbf16>, vector<8x512xf32> -> vector<8x512xf32>
    %379 = arith.addf %369, %378 : vector<8x512xf32>
    %c497_i32_262 = arith.constant 497 : i32
    %380 = tpu.dynamic_rotate %325 by %c497_i32_262 dim 1 : vector<4x512xf32>, i32 -> vector<4x512xf32>
    %c6_263 = arith.constant 6 : index
    %c0_264 = arith.constant 0 : index
    %c0_265 = arith.constant 0 : index
    %381 = vector.load %arg5[%c6_263, %c0_264, %c0_265] : memref<9x1x512xf32, #tpu.memory_space<vmem>>, vector<1x1x512xf32>
    %382 = vector.shape_cast %381 : vector<1x1x512xf32> to vector<1x512xf32>
    %383 = vector.broadcast %382 : vector<1x512xf32> to vector<4x512xf32>
    %384 = arith.mulf %380, %383 : vector<4x512xf32>
    %385 = arith.truncf %384 : vector<4x512xf32> to vector<4x512xbf16>
    %c6_266 = arith.constant 6 : index
    %c0_267 = arith.constant 0 : index
    %c0_268 = arith.constant 0 : index
    %386 = vector.load %arg17[%c6_266, %c0_267, %c0_268] : memref<9x8x4xbf16, #tpu.memory_space<vmem>>, vector<1x8x4xbf16>
    %387 = vector.shape_cast %386 : vector<1x8x4xbf16> to vector<8x4xbf16>
    %cst_269 = arith.constant dense<0.000000e+00> : vector<8x512xf32>
    %388 = tpu.matmul %387, %385, %cst_269 {dimension_numbers = #tpu.dot_dimension_numbers<[1], [0], [0], [1], [0, 0, 1, 1], [], []>} : vector<8x4xbf16>, vector<4x512xbf16>, vector<8x512xf32> -> vector<8x512xf32>
    %389 = arith.addf %379, %388 : vector<8x512xf32>
    %c496_i32_270 = arith.constant 496 : i32
    %390 = tpu.dynamic_rotate %325 by %c496_i32_270 dim 1 : vector<4x512xf32>, i32 -> vector<4x512xf32>
    %c7_271 = arith.constant 7 : index
    %c0_272 = arith.constant 0 : index
    %c0_273 = arith.constant 0 : index
    %391 = vector.load %arg5[%c7_271, %c0_272, %c0_273] : memref<9x1x512xf32, #tpu.memory_space<vmem>>, vector<1x1x512xf32>
    %392 = vector.shape_cast %391 : vector<1x1x512xf32> to vector<1x512xf32>
    %393 = vector.broadcast %392 : vector<1x512xf32> to vector<4x512xf32>
    %394 = arith.mulf %390, %393 : vector<4x512xf32>
    %395 = arith.truncf %394 : vector<4x512xf32> to vector<4x512xbf16>
    %c7_274 = arith.constant 7 : index
    %c0_275 = arith.constant 0 : index
    %c0_276 = arith.constant 0 : index
    %396 = vector.load %arg17[%c7_274, %c0_275, %c0_276] : memref<9x8x4xbf16, #tpu.memory_space<vmem>>, vector<1x8x4xbf16>
    %397 = vector.shape_cast %396 : vector<1x8x4xbf16> to vector<8x4xbf16>
    %cst_277 = arith.constant dense<0.000000e+00> : vector<8x512xf32>
    %398 = tpu.matmul %397, %395, %cst_277 {dimension_numbers = #tpu.dot_dimension_numbers<[1], [0], [0], [1], [0, 0, 1, 1], [], []>} : vector<8x4xbf16>, vector<4x512xbf16>, vector<8x512xf32> -> vector<8x512xf32>
    %399 = arith.addf %389, %398 : vector<8x512xf32>
    %c495_i32_278 = arith.constant 495 : i32
    %400 = tpu.dynamic_rotate %325 by %c495_i32_278 dim 1 : vector<4x512xf32>, i32 -> vector<4x512xf32>
    %c8_279 = arith.constant 8 : index
    %c0_280 = arith.constant 0 : index
    %c0_281 = arith.constant 0 : index
    %401 = vector.load %arg5[%c8_279, %c0_280, %c0_281] : memref<9x1x512xf32, #tpu.memory_space<vmem>>, vector<1x1x512xf32>
    %402 = vector.shape_cast %401 : vector<1x1x512xf32> to vector<1x512xf32>
    %403 = vector.broadcast %402 : vector<1x512xf32> to vector<4x512xf32>
    %404 = arith.mulf %400, %403 : vector<4x512xf32>
    %405 = arith.truncf %404 : vector<4x512xf32> to vector<4x512xbf16>
    %c8_282 = arith.constant 8 : index
    %c0_283 = arith.constant 0 : index
    %c0_284 = arith.constant 0 : index
    %406 = vector.load %arg17[%c8_282, %c0_283, %c0_284] : memref<9x8x4xbf16, #tpu.memory_space<vmem>>, vector<1x8x4xbf16>
    %407 = vector.shape_cast %406 : vector<1x8x4xbf16> to vector<8x4xbf16>
    %cst_285 = arith.constant dense<0.000000e+00> : vector<8x512xf32>
    %408 = tpu.matmul %407, %405, %cst_285 {dimension_numbers = #tpu.dot_dimension_numbers<[1], [0], [0], [1], [0, 0, 1, 1], [], []>} : vector<8x4xbf16>, vector<4x512xbf16>, vector<8x512xf32> -> vector<8x512xf32>
    %409 = arith.addf %399, %408 : vector<8x512xf32>
    %c0_286 = arith.constant 0 : index
    %c0_287 = arith.constant 0 : index
    %410 = vector.load %arg12[%c0_286, %c0_287] : memref<512x128xf32, #tpu.memory_space<vmem>>, vector<512x128xf32>
    %cst_288 = arith.constant dense<0.000000e+00> : vector<8x128xf32>
    %411 = tpu.matmul %409, %410, %cst_288 {dimension_numbers = #tpu.dot_dimension_numbers<[1], [0], [0], [1], [0, 0, 1, 1], [], []>} : vector<8x512xf32>, vector<512x128xf32>, vector<8x128xf32> -> vector<8x128xf32>
    %cst_289 = arith.constant dense<0.000000e+00> : vector<8xf32>
    %412 = vector.multi_reduction <add>, %411, %cst_289 [1] : vector<8x128xf32> to vector<8xf32>
    %413 = vector.shape_cast %412 : vector<8xf32> to vector<8x1xf32>
    %cst_290 = arith.constant 7.812500e-03 : f32
    %414 = vector.broadcast %cst_290 : f32 to vector<8x1xf32>
    %415 = arith.mulf %413, %414 : vector<8x1xf32>
    %416 = vector.broadcast %415 : vector<8x1xf32> to vector<8x128xf32>
    %417 = arith.subf %411, %416 : vector<8x128xf32>
    %418 = arith.mulf %417, %417 : vector<8x128xf32>
    %cst_291 = arith.constant dense<0.000000e+00> : vector<8xf32>
    %419 = vector.multi_reduction <add>, %418, %cst_291 [1] : vector<8x128xf32> to vector<8xf32>
    %420 = vector.shape_cast %419 : vector<8xf32> to vector<8x1xf32>
    %cst_292 = arith.constant 7.812500e-03 : f32
    %421 = vector.broadcast %cst_292 : f32 to vector<8x1xf32>
    %422 = arith.mulf %420, %421 : vector<8x1xf32>
    %cst_293 = arith.constant 9.99999974E-6 : f32
    %423 = vector.broadcast %cst_293 : f32 to vector<8x1xf32>
    %424 = arith.addf %422, %423 : vector<8x1xf32>
    %425 = math.rsqrt %424 : vector<8x1xf32>
    %426 = vector.broadcast %425 : vector<8x1xf32> to vector<8x128xf32>
    %427 = arith.mulf %417, %426 : vector<8x128xf32>
    %c0_294 = arith.constant 0 : index
    %c0_295 = arith.constant 0 : index
    %428 = vector.load %arg18[%c0_294, %c0_295] : memref<8x1xf32, #tpu.memory_space<vmem>>, vector<8x1xf32>
    %429 = vector.broadcast %428 : vector<8x1xf32> to vector<8x128xf32>
    %430 = arith.mulf %427, %429 : vector<8x128xf32>
    %c0_296 = arith.constant 0 : index
    %c0_297 = arith.constant 0 : index
    %431 = vector.load %arg19[%c0_296, %c0_297] : memref<8x1xf32, #tpu.memory_space<vmem>>, vector<8x1xf32>
    %432 = vector.broadcast %431 : vector<8x1xf32> to vector<8x128xf32>
    %433 = arith.addf %430, %432 : vector<8x128xf32>
    %cst_298 = arith.constant 0.000000e+00 : f32
    %434 = vector.broadcast %cst_298 : f32 to vector<8x128xf32>
    %435 = arith.maximumf %433, %434 : vector<8x128xf32>
    %c9_i32 = arith.constant 9 : i32
    %436 = tpu.dynamic_rotate %435 by %c9_i32 dim 1 : vector<8x128xf32>, i32 -> vector<8x128xf32>
    %c0_299 = arith.constant 0 : index
    %c0_300 = arith.constant 0 : index
    %c0_301 = arith.constant 0 : index
    %437 = vector.load %arg13[%c0_299, %c0_300, %c0_301] : memref<9x1x128xf32, #tpu.memory_space<vmem>>, vector<1x1x128xf32>
    %438 = vector.shape_cast %437 : vector<1x1x128xf32> to vector<1x128xf32>
    %439 = vector.broadcast %438 : vector<1x128xf32> to vector<8x128xf32>
    %440 = arith.mulf %436, %439 : vector<8x128xf32>
    %441 = arith.truncf %440 : vector<8x128xf32> to vector<8x128xbf16>
    %c0_302 = arith.constant 0 : index
    %c0_303 = arith.constant 0 : index
    %c0_304 = arith.constant 0 : index
    %442 = vector.load %arg20[%c0_302, %c0_303, %c0_304] : memref<9x8x8xbf16, #tpu.memory_space<vmem>>, vector<1x8x8xbf16>
    %443 = vector.shape_cast %442 : vector<1x8x8xbf16> to vector<8x8xbf16>
    %cst_305 = arith.constant dense<0.000000e+00> : vector<8x128xf32>
    %444 = tpu.matmul %443, %441, %cst_305 {dimension_numbers = #tpu.dot_dimension_numbers<[1], [0], [0], [1], [0, 0, 1, 1], [], []>} : vector<8x8xbf16>, vector<8x128xbf16>, vector<8x128xf32> -> vector<8x128xf32>
    %c8_i32 = arith.constant 8 : i32
    %445 = tpu.dynamic_rotate %435 by %c8_i32 dim 1 : vector<8x128xf32>, i32 -> vector<8x128xf32>
    %c1_306 = arith.constant 1 : index
    %c0_307 = arith.constant 0 : index
    %c0_308 = arith.constant 0 : index
    %446 = vector.load %arg13[%c1_306, %c0_307, %c0_308] : memref<9x1x128xf32, #tpu.memory_space<vmem>>, vector<1x1x128xf32>
    %447 = vector.shape_cast %446 : vector<1x1x128xf32> to vector<1x128xf32>
    %448 = vector.broadcast %447 : vector<1x128xf32> to vector<8x128xf32>
    %449 = arith.mulf %445, %448 : vector<8x128xf32>
    %450 = arith.truncf %449 : vector<8x128xf32> to vector<8x128xbf16>
    %c1_309 = arith.constant 1 : index
    %c0_310 = arith.constant 0 : index
    %c0_311 = arith.constant 0 : index
    %451 = vector.load %arg20[%c1_309, %c0_310, %c0_311] : memref<9x8x8xbf16, #tpu.memory_space<vmem>>, vector<1x8x8xbf16>
    %452 = vector.shape_cast %451 : vector<1x8x8xbf16> to vector<8x8xbf16>
    %cst_312 = arith.constant dense<0.000000e+00> : vector<8x128xf32>
    %453 = tpu.matmul %452, %450, %cst_312 {dimension_numbers = #tpu.dot_dimension_numbers<[1], [0], [0], [1], [0, 0, 1, 1], [], []>} : vector<8x8xbf16>, vector<8x128xbf16>, vector<8x128xf32> -> vector<8x128xf32>
    %454 = arith.addf %444, %453 : vector<8x128xf32>
    %c7_i32 = arith.constant 7 : i32
    %455 = tpu.dynamic_rotate %435 by %c7_i32 dim 1 : vector<8x128xf32>, i32 -> vector<8x128xf32>
    %c2_313 = arith.constant 2 : index
    %c0_314 = arith.constant 0 : index
    %c0_315 = arith.constant 0 : index
    %456 = vector.load %arg13[%c2_313, %c0_314, %c0_315] : memref<9x1x128xf32, #tpu.memory_space<vmem>>, vector<1x1x128xf32>
    %457 = vector.shape_cast %456 : vector<1x1x128xf32> to vector<1x128xf32>
    %458 = vector.broadcast %457 : vector<1x128xf32> to vector<8x128xf32>
    %459 = arith.mulf %455, %458 : vector<8x128xf32>
    %460 = arith.truncf %459 : vector<8x128xf32> to vector<8x128xbf16>
    %c2_316 = arith.constant 2 : index
    %c0_317 = arith.constant 0 : index
    %c0_318 = arith.constant 0 : index
    %461 = vector.load %arg20[%c2_316, %c0_317, %c0_318] : memref<9x8x8xbf16, #tpu.memory_space<vmem>>, vector<1x8x8xbf16>
    %462 = vector.shape_cast %461 : vector<1x8x8xbf16> to vector<8x8xbf16>
    %cst_319 = arith.constant dense<0.000000e+00> : vector<8x128xf32>
    %463 = tpu.matmul %462, %460, %cst_319 {dimension_numbers = #tpu.dot_dimension_numbers<[1], [0], [0], [1], [0, 0, 1, 1], [], []>} : vector<8x8xbf16>, vector<8x128xbf16>, vector<8x128xf32> -> vector<8x128xf32>
    %464 = arith.addf %454, %463 : vector<8x128xf32>
    %c1_i32_320 = arith.constant 1 : i32
    %465 = tpu.dynamic_rotate %435 by %c1_i32_320 dim 1 : vector<8x128xf32>, i32 -> vector<8x128xf32>
    %c3_321 = arith.constant 3 : index
    %c0_322 = arith.constant 0 : index
    %c0_323 = arith.constant 0 : index
    %466 = vector.load %arg13[%c3_321, %c0_322, %c0_323] : memref<9x1x128xf32, #tpu.memory_space<vmem>>, vector<1x1x128xf32>
    %467 = vector.shape_cast %466 : vector<1x1x128xf32> to vector<1x128xf32>
    %468 = vector.broadcast %467 : vector<1x128xf32> to vector<8x128xf32>
    %469 = arith.mulf %465, %468 : vector<8x128xf32>
    %470 = arith.truncf %469 : vector<8x128xf32> to vector<8x128xbf16>
    %c3_324 = arith.constant 3 : index
    %c0_325 = arith.constant 0 : index
    %c0_326 = arith.constant 0 : index
    %471 = vector.load %arg20[%c3_324, %c0_325, %c0_326] : memref<9x8x8xbf16, #tpu.memory_space<vmem>>, vector<1x8x8xbf16>
    %472 = vector.shape_cast %471 : vector<1x8x8xbf16> to vector<8x8xbf16>
    %cst_327 = arith.constant dense<0.000000e+00> : vector<8x128xf32>
    %473 = tpu.matmul %472, %470, %cst_327 {dimension_numbers = #tpu.dot_dimension_numbers<[1], [0], [0], [1], [0, 0, 1, 1], [], []>} : vector<8x8xbf16>, vector<8x128xbf16>, vector<8x128xf32> -> vector<8x128xf32>
    %474 = arith.addf %464, %473 : vector<8x128xf32>
    %475 = arith.truncf %435 : vector<8x128xf32> to vector<8x128xbf16>
    %c4_328 = arith.constant 4 : index
    %c0_329 = arith.constant 0 : index
    %c0_330 = arith.constant 0 : index
    %476 = vector.load %arg20[%c4_328, %c0_329, %c0_330] : memref<9x8x8xbf16, #tpu.memory_space<vmem>>, vector<1x8x8xbf16>
    %477 = vector.shape_cast %476 : vector<1x8x8xbf16> to vector<8x8xbf16>
    %cst_331 = arith.constant dense<0.000000e+00> : vector<8x128xf32>
    %478 = tpu.matmul %477, %475, %cst_331 {dimension_numbers = #tpu.dot_dimension_numbers<[1], [0], [0], [1], [0, 0, 1, 1], [], []>} : vector<8x8xbf16>, vector<8x128xbf16>, vector<8x128xf32> -> vector<8x128xf32>
    %479 = arith.addf %474, %478 : vector<8x128xf32>
    %c127_i32 = arith.constant 127 : i32
    %480 = tpu.dynamic_rotate %435 by %c127_i32 dim 1 : vector<8x128xf32>, i32 -> vector<8x128xf32>
    %c5_332 = arith.constant 5 : index
    %c0_333 = arith.constant 0 : index
    %c0_334 = arith.constant 0 : index
    %481 = vector.load %arg13[%c5_332, %c0_333, %c0_334] : memref<9x1x128xf32, #tpu.memory_space<vmem>>, vector<1x1x128xf32>
    %482 = vector.shape_cast %481 : vector<1x1x128xf32> to vector<1x128xf32>
    %483 = vector.broadcast %482 : vector<1x128xf32> to vector<8x128xf32>
    %484 = arith.mulf %480, %483 : vector<8x128xf32>
    %485 = arith.truncf %484 : vector<8x128xf32> to vector<8x128xbf16>
    %c5_335 = arith.constant 5 : index
    %c0_336 = arith.constant 0 : index
    %c0_337 = arith.constant 0 : index
    %486 = vector.load %arg20[%c5_335, %c0_336, %c0_337] : memref<9x8x8xbf16, #tpu.memory_space<vmem>>, vector<1x8x8xbf16>
    %487 = vector.shape_cast %486 : vector<1x8x8xbf16> to vector<8x8xbf16>
    %cst_338 = arith.constant dense<0.000000e+00> : vector<8x128xf32>
    %488 = tpu.matmul %487, %485, %cst_338 {dimension_numbers = #tpu.dot_dimension_numbers<[1], [0], [0], [1], [0, 0, 1, 1], [], []>} : vector<8x8xbf16>, vector<8x128xbf16>, vector<8x128xf32> -> vector<8x128xf32>
    %489 = arith.addf %479, %488 : vector<8x128xf32>
    %c121_i32 = arith.constant 121 : i32
    %490 = tpu.dynamic_rotate %435 by %c121_i32 dim 1 : vector<8x128xf32>, i32 -> vector<8x128xf32>
    %c6_339 = arith.constant 6 : index
    %c0_340 = arith.constant 0 : index
    %c0_341 = arith.constant 0 : index
    %491 = vector.load %arg13[%c6_339, %c0_340, %c0_341] : memref<9x1x128xf32, #tpu.memory_space<vmem>>, vector<1x1x128xf32>
    %492 = vector.shape_cast %491 : vector<1x1x128xf32> to vector<1x128xf32>
    %493 = vector.broadcast %492 : vector<1x128xf32> to vector<8x128xf32>
    %494 = arith.mulf %490, %493 : vector<8x128xf32>
    %495 = arith.truncf %494 : vector<8x128xf32> to vector<8x128xbf16>
    %c6_342 = arith.constant 6 : index
    %c0_343 = arith.constant 0 : index
    %c0_344 = arith.constant 0 : index
    %496 = vector.load %arg20[%c6_342, %c0_343, %c0_344] : memref<9x8x8xbf16, #tpu.memory_space<vmem>>, vector<1x8x8xbf16>
    %497 = vector.shape_cast %496 : vector<1x8x8xbf16> to vector<8x8xbf16>
    %cst_345 = arith.constant dense<0.000000e+00> : vector<8x128xf32>
    %498 = tpu.matmul %497, %495, %cst_345 {dimension_numbers = #tpu.dot_dimension_numbers<[1], [0], [0], [1], [0, 0, 1, 1], [], []>} : vector<8x8xbf16>, vector<8x128xbf16>, vector<8x128xf32> -> vector<8x128xf32>
    %499 = arith.addf %489, %498 : vector<8x128xf32>
    %c120_i32 = arith.constant 120 : i32
    %500 = tpu.dynamic_rotate %435 by %c120_i32 dim 1 : vector<8x128xf32>, i32 -> vector<8x128xf32>
    %c7_346 = arith.constant 7 : index
    %c0_347 = arith.constant 0 : index
    %c0_348 = arith.constant 0 : index
    %501 = vector.load %arg13[%c7_346, %c0_347, %c0_348] : memref<9x1x128xf32, #tpu.memory_space<vmem>>, vector<1x1x128xf32>
    %502 = vector.shape_cast %501 : vector<1x1x128xf32> to vector<1x128xf32>
    %503 = vector.broadcast %502 : vector<1x128xf32> to vector<8x128xf32>
    %504 = arith.mulf %500, %503 : vector<8x128xf32>
    %505 = arith.truncf %504 : vector<8x128xf32> to vector<8x128xbf16>
    %c7_349 = arith.constant 7 : index
    %c0_350 = arith.constant 0 : index
    %c0_351 = arith.constant 0 : index
    %506 = vector.load %arg20[%c7_349, %c0_350, %c0_351] : memref<9x8x8xbf16, #tpu.memory_space<vmem>>, vector<1x8x8xbf16>
    %507 = vector.shape_cast %506 : vector<1x8x8xbf16> to vector<8x8xbf16>
    %cst_352 = arith.constant dense<0.000000e+00> : vector<8x128xf32>
    %508 = tpu.matmul %507, %505, %cst_352 {dimension_numbers = #tpu.dot_dimension_numbers<[1], [0], [0], [1], [0, 0, 1, 1], [], []>} : vector<8x8xbf16>, vector<8x128xbf16>, vector<8x128xf32> -> vector<8x128xf32>
    %509 = arith.addf %499, %508 : vector<8x128xf32>
    %c119_i32 = arith.constant 119 : i32
    %510 = tpu.dynamic_rotate %435 by %c119_i32 dim 1 : vector<8x128xf32>, i32 -> vector<8x128xf32>
    %c8_353 = arith.constant 8 : index
    %c0_354 = arith.constant 0 : index
    %c0_355 = arith.constant 0 : index
    %511 = vector.load %arg13[%c8_353, %c0_354, %c0_355] : memref<9x1x128xf32, #tpu.memory_space<vmem>>, vector<1x1x128xf32>
    %512 = vector.shape_cast %511 : vector<1x1x128xf32> to vector<1x128xf32>
    %513 = vector.broadcast %512 : vector<1x128xf32> to vector<8x128xf32>
    %514 = arith.mulf %510, %513 : vector<8x128xf32>
    %515 = arith.truncf %514 : vector<8x128xf32> to vector<8x128xbf16>
    %c8_356 = arith.constant 8 : index
    %c0_357 = arith.constant 0 : index
    %c0_358 = arith.constant 0 : index
    %516 = vector.load %arg20[%c8_356, %c0_357, %c0_358] : memref<9x8x8xbf16, #tpu.memory_space<vmem>>, vector<1x8x8xbf16>
    %517 = vector.shape_cast %516 : vector<1x8x8xbf16> to vector<8x8xbf16>
    %cst_359 = arith.constant dense<0.000000e+00> : vector<8x128xf32>
    %518 = tpu.matmul %517, %515, %cst_359 {dimension_numbers = #tpu.dot_dimension_numbers<[1], [0], [0], [1], [0, 0, 1, 1], [], []>} : vector<8x8xbf16>, vector<8x128xbf16>, vector<8x128xf32> -> vector<8x128xf32>
    %519 = arith.addf %509, %518 : vector<8x128xf32>
    %cst_360 = arith.constant dense<0.000000e+00> : vector<8xf32>
    %520 = vector.multi_reduction <add>, %519, %cst_360 [1] : vector<8x128xf32> to vector<8xf32>
    %521 = vector.shape_cast %520 : vector<8xf32> to vector<8x1xf32>
    %cst_361 = arith.constant 7.812500e-03 : f32
    %522 = vector.broadcast %cst_361 : f32 to vector<8x1xf32>
    %523 = arith.mulf %521, %522 : vector<8x1xf32>
    %524 = vector.broadcast %523 : vector<8x1xf32> to vector<8x128xf32>
    %525 = arith.subf %519, %524 : vector<8x128xf32>
    %526 = arith.mulf %525, %525 : vector<8x128xf32>
    %cst_362 = arith.constant dense<0.000000e+00> : vector<8xf32>
    %527 = vector.multi_reduction <add>, %526, %cst_362 [1] : vector<8x128xf32> to vector<8xf32>
    %528 = vector.shape_cast %527 : vector<8xf32> to vector<8x1xf32>
    %cst_363 = arith.constant 7.812500e-03 : f32
    %529 = vector.broadcast %cst_363 : f32 to vector<8x1xf32>
    %530 = arith.mulf %528, %529 : vector<8x1xf32>
    %cst_364 = arith.constant 9.99999974E-6 : f32
    %531 = vector.broadcast %cst_364 : f32 to vector<8x1xf32>
    %532 = arith.addf %530, %531 : vector<8x1xf32>
    %533 = math.rsqrt %532 : vector<8x1xf32>
    %534 = vector.broadcast %533 : vector<8x1xf32> to vector<8x128xf32>
    %535 = arith.mulf %525, %534 : vector<8x128xf32>
    %c0_365 = arith.constant 0 : index
    %c0_366 = arith.constant 0 : index
    %536 = vector.load %arg21[%c0_365, %c0_366] : memref<8x1xf32, #tpu.memory_space<vmem>>, vector<8x1xf32>
    %537 = vector.broadcast %536 : vector<8x1xf32> to vector<8x128xf32>
    %538 = arith.mulf %535, %537 : vector<8x128xf32>
    %c0_367 = arith.constant 0 : index
    %c0_368 = arith.constant 0 : index
    %539 = vector.load %arg22[%c0_367, %c0_368] : memref<8x1xf32, #tpu.memory_space<vmem>>, vector<8x1xf32>
    %540 = vector.broadcast %539 : vector<8x1xf32> to vector<8x128xf32>
    %541 = arith.addf %538, %540 : vector<8x128xf32>
    %c0_369 = arith.constant 0 : index
    %c0_370 = arith.constant 0 : index
    %542 = vector.load %arg12[%c0_369, %c0_370] : memref<512x128xf32, #tpu.memory_space<vmem>>, vector<512x128xf32>
    %cst_371 = arith.constant dense<0.000000e+00> : vector<4x128xf32>
    %543 = tpu.matmul %325, %542, %cst_371 {dimension_numbers = #tpu.dot_dimension_numbers<[1], [0], [0], [1], [0, 0, 1, 1], [], []>} : vector<4x512xf32>, vector<512x128xf32>, vector<4x128xf32> -> vector<4x128xf32>
    %c0_372 = arith.constant 0 : index
    %c0_373 = arith.constant 0 : index
    %544 = vector.load %arg14[%c0_372, %c0_373] : memref<8x4xbf16, #tpu.memory_space<vmem>>, vector<8x4xbf16>
    %545 = arith.truncf %543 : vector<4x128xf32> to vector<4x128xbf16>
    %cst_374 = arith.constant dense<0.000000e+00> : vector<8x128xf32>
    %546 = tpu.matmul %544, %545, %cst_374 {dimension_numbers = #tpu.dot_dimension_numbers<[1], [0], [0], [1], [0, 0, 1, 1], [], []>} : vector<8x4xbf16>, vector<4x128xbf16>, vector<8x128xf32> -> vector<8x128xf32>
    %cst_375 = arith.constant dense<0.000000e+00> : vector<8xf32>
    %547 = vector.multi_reduction <add>, %546, %cst_375 [1] : vector<8x128xf32> to vector<8xf32>
    %548 = vector.shape_cast %547 : vector<8xf32> to vector<8x1xf32>
    %cst_376 = arith.constant 7.812500e-03 : f32
    %549 = vector.broadcast %cst_376 : f32 to vector<8x1xf32>
    %550 = arith.mulf %548, %549 : vector<8x1xf32>
    %551 = vector.broadcast %550 : vector<8x1xf32> to vector<8x128xf32>
    %552 = arith.subf %546, %551 : vector<8x128xf32>
    %553 = arith.mulf %552, %552 : vector<8x128xf32>
    %cst_377 = arith.constant dense<0.000000e+00> : vector<8xf32>
    %554 = vector.multi_reduction <add>, %553, %cst_377 [1] : vector<8x128xf32> to vector<8xf32>
    %555 = vector.shape_cast %554 : vector<8xf32> to vector<8x1xf32>
    %cst_378 = arith.constant 7.812500e-03 : f32
    %556 = vector.broadcast %cst_378 : f32 to vector<8x1xf32>
    %557 = arith.mulf %555, %556 : vector<8x1xf32>
    %cst_379 = arith.constant 9.99999974E-6 : f32
    %558 = vector.broadcast %cst_379 : f32 to vector<8x1xf32>
    %559 = arith.addf %557, %558 : vector<8x1xf32>
    %560 = math.rsqrt %559 : vector<8x1xf32>
    %561 = vector.broadcast %560 : vector<8x1xf32> to vector<8x128xf32>
    %562 = arith.mulf %552, %561 : vector<8x128xf32>
    %c0_380 = arith.constant 0 : index
    %c0_381 = arith.constant 0 : index
    %563 = vector.load %arg15[%c0_380, %c0_381] : memref<8x1xf32, #tpu.memory_space<vmem>>, vector<8x1xf32>
    %564 = vector.broadcast %563 : vector<8x1xf32> to vector<8x128xf32>
    %565 = arith.mulf %562, %564 : vector<8x128xf32>
    %c0_382 = arith.constant 0 : index
    %c0_383 = arith.constant 0 : index
    %566 = vector.load %arg16[%c0_382, %c0_383] : memref<8x1xf32, #tpu.memory_space<vmem>>, vector<8x1xf32>
    %567 = vector.broadcast %566 : vector<8x1xf32> to vector<8x128xf32>
    %568 = arith.addf %565, %567 : vector<8x128xf32>
    %569 = arith.addf %541, %568 : vector<8x128xf32>
    %cst_384 = arith.constant 0.000000e+00 : f32
    %570 = vector.broadcast %cst_384 : f32 to vector<8x128xf32>
    %571 = arith.maximumf %569, %570 : vector<8x128xf32>
    %c9_i32_385 = arith.constant 9 : i32
    %572 = tpu.dynamic_rotate %571 by %c9_i32_385 dim 1 : vector<8x128xf32>, i32 -> vector<8x128xf32>
    %c0_386 = arith.constant 0 : index
    %c0_387 = arith.constant 0 : index
    %c0_388 = arith.constant 0 : index
    %573 = vector.load %arg13[%c0_386, %c0_387, %c0_388] : memref<9x1x128xf32, #tpu.memory_space<vmem>>, vector<1x1x128xf32>
    %574 = vector.shape_cast %573 : vector<1x1x128xf32> to vector<1x128xf32>
    %575 = vector.broadcast %574 : vector<1x128xf32> to vector<8x128xf32>
    %576 = arith.mulf %572, %575 : vector<8x128xf32>
    %577 = arith.truncf %576 : vector<8x128xf32> to vector<8x128xbf16>
    %c0_389 = arith.constant 0 : index
    %c0_390 = arith.constant 0 : index
    %c0_391 = arith.constant 0 : index
    %578 = vector.load %arg28[%c0_389, %c0_390, %c0_391] : memref<9x16x8xbf16, #tpu.memory_space<vmem>>, vector<1x16x8xbf16>
    %579 = vector.shape_cast %578 : vector<1x16x8xbf16> to vector<16x8xbf16>
    %cst_392 = arith.constant dense<0.000000e+00> : vector<16x128xf32>
    %580 = tpu.matmul %579, %577, %cst_392 {dimension_numbers = #tpu.dot_dimension_numbers<[1], [0], [0], [1], [0, 0, 1, 1], [], []>} : vector<16x8xbf16>, vector<8x128xbf16>, vector<16x128xf32> -> vector<16x128xf32>
    %c8_i32_393 = arith.constant 8 : i32
    %581 = tpu.dynamic_rotate %571 by %c8_i32_393 dim 1 : vector<8x128xf32>, i32 -> vector<8x128xf32>
    %c1_394 = arith.constant 1 : index
    %c0_395 = arith.constant 0 : index
    %c0_396 = arith.constant 0 : index
    %582 = vector.load %arg13[%c1_394, %c0_395, %c0_396] : memref<9x1x128xf32, #tpu.memory_space<vmem>>, vector<1x1x128xf32>
    %583 = vector.shape_cast %582 : vector<1x1x128xf32> to vector<1x128xf32>
    %584 = vector.broadcast %583 : vector<1x128xf32> to vector<8x128xf32>
    %585 = arith.mulf %581, %584 : vector<8x128xf32>
    %586 = arith.truncf %585 : vector<8x128xf32> to vector<8x128xbf16>
    %c1_397 = arith.constant 1 : index
    %c0_398 = arith.constant 0 : index
    %c0_399 = arith.constant 0 : index
    %587 = vector.load %arg28[%c1_397, %c0_398, %c0_399] : memref<9x16x8xbf16, #tpu.memory_space<vmem>>, vector<1x16x8xbf16>
    %588 = vector.shape_cast %587 : vector<1x16x8xbf16> to vector<16x8xbf16>
    %cst_400 = arith.constant dense<0.000000e+00> : vector<16x128xf32>
    %589 = tpu.matmul %588, %586, %cst_400 {dimension_numbers = #tpu.dot_dimension_numbers<[1], [0], [0], [1], [0, 0, 1, 1], [], []>} : vector<16x8xbf16>, vector<8x128xbf16>, vector<16x128xf32> -> vector<16x128xf32>
    %590 = arith.addf %580, %589 : vector<16x128xf32>
    %c7_i32_401 = arith.constant 7 : i32
    %591 = tpu.dynamic_rotate %571 by %c7_i32_401 dim 1 : vector<8x128xf32>, i32 -> vector<8x128xf32>
    %c2_402 = arith.constant 2 : index
    %c0_403 = arith.constant 0 : index
    %c0_404 = arith.constant 0 : index
    %592 = vector.load %arg13[%c2_402, %c0_403, %c0_404] : memref<9x1x128xf32, #tpu.memory_space<vmem>>, vector<1x1x128xf32>
    %593 = vector.shape_cast %592 : vector<1x1x128xf32> to vector<1x128xf32>
    %594 = vector.broadcast %593 : vector<1x128xf32> to vector<8x128xf32>
    %595 = arith.mulf %591, %594 : vector<8x128xf32>
    %596 = arith.truncf %595 : vector<8x128xf32> to vector<8x128xbf16>
    %c2_405 = arith.constant 2 : index
    %c0_406 = arith.constant 0 : index
    %c0_407 = arith.constant 0 : index
    %597 = vector.load %arg28[%c2_405, %c0_406, %c0_407] : memref<9x16x8xbf16, #tpu.memory_space<vmem>>, vector<1x16x8xbf16>
    %598 = vector.shape_cast %597 : vector<1x16x8xbf16> to vector<16x8xbf16>
    %cst_408 = arith.constant dense<0.000000e+00> : vector<16x128xf32>
    %599 = tpu.matmul %598, %596, %cst_408 {dimension_numbers = #tpu.dot_dimension_numbers<[1], [0], [0], [1], [0, 0, 1, 1], [], []>} : vector<16x8xbf16>, vector<8x128xbf16>, vector<16x128xf32> -> vector<16x128xf32>
    %600 = arith.addf %590, %599 : vector<16x128xf32>
    %c1_i32_409 = arith.constant 1 : i32
    %601 = tpu.dynamic_rotate %571 by %c1_i32_409 dim 1 : vector<8x128xf32>, i32 -> vector<8x128xf32>
    %c3_410 = arith.constant 3 : index
    %c0_411 = arith.constant 0 : index
    %c0_412 = arith.constant 0 : index
    %602 = vector.load %arg13[%c3_410, %c0_411, %c0_412] : memref<9x1x128xf32, #tpu.memory_space<vmem>>, vector<1x1x128xf32>
    %603 = vector.shape_cast %602 : vector<1x1x128xf32> to vector<1x128xf32>
    %604 = vector.broadcast %603 : vector<1x128xf32> to vector<8x128xf32>
    %605 = arith.mulf %601, %604 : vector<8x128xf32>
    %606 = arith.truncf %605 : vector<8x128xf32> to vector<8x128xbf16>
    %c3_413 = arith.constant 3 : index
    %c0_414 = arith.constant 0 : index
    %c0_415 = arith.constant 0 : index
    %607 = vector.load %arg28[%c3_413, %c0_414, %c0_415] : memref<9x16x8xbf16, #tpu.memory_space<vmem>>, vector<1x16x8xbf16>
    %608 = vector.shape_cast %607 : vector<1x16x8xbf16> to vector<16x8xbf16>
    %cst_416 = arith.constant dense<0.000000e+00> : vector<16x128xf32>
    %609 = tpu.matmul %608, %606, %cst_416 {dimension_numbers = #tpu.dot_dimension_numbers<[1], [0], [0], [1], [0, 0, 1, 1], [], []>} : vector<16x8xbf16>, vector<8x128xbf16>, vector<16x128xf32> -> vector<16x128xf32>
    %610 = arith.addf %600, %609 : vector<16x128xf32>
    %611 = arith.truncf %571 : vector<8x128xf32> to vector<8x128xbf16>
    %c4_417 = arith.constant 4 : index
    %c0_418 = arith.constant 0 : index
    %c0_419 = arith.constant 0 : index
    %612 = vector.load %arg28[%c4_417, %c0_418, %c0_419] : memref<9x16x8xbf16, #tpu.memory_space<vmem>>, vector<1x16x8xbf16>
    %613 = vector.shape_cast %612 : vector<1x16x8xbf16> to vector<16x8xbf16>
    %cst_420 = arith.constant dense<0.000000e+00> : vector<16x128xf32>
    %614 = tpu.matmul %613, %611, %cst_420 {dimension_numbers = #tpu.dot_dimension_numbers<[1], [0], [0], [1], [0, 0, 1, 1], [], []>} : vector<16x8xbf16>, vector<8x128xbf16>, vector<16x128xf32> -> vector<16x128xf32>
    %615 = arith.addf %610, %614 : vector<16x128xf32>
    %c127_i32_421 = arith.constant 127 : i32
    %616 = tpu.dynamic_rotate %571 by %c127_i32_421 dim 1 : vector<8x128xf32>, i32 -> vector<8x128xf32>
    %c5_422 = arith.constant 5 : index
    %c0_423 = arith.constant 0 : index
    %c0_424 = arith.constant 0 : index
    %617 = vector.load %arg13[%c5_422, %c0_423, %c0_424] : memref<9x1x128xf32, #tpu.memory_space<vmem>>, vector<1x1x128xf32>
    %618 = vector.shape_cast %617 : vector<1x1x128xf32> to vector<1x128xf32>
    %619 = vector.broadcast %618 : vector<1x128xf32> to vector<8x128xf32>
    %620 = arith.mulf %616, %619 : vector<8x128xf32>
    %621 = arith.truncf %620 : vector<8x128xf32> to vector<8x128xbf16>
    %c5_425 = arith.constant 5 : index
    %c0_426 = arith.constant 0 : index
    %c0_427 = arith.constant 0 : index
    %622 = vector.load %arg28[%c5_425, %c0_426, %c0_427] : memref<9x16x8xbf16, #tpu.memory_space<vmem>>, vector<1x16x8xbf16>
    %623 = vector.shape_cast %622 : vector<1x16x8xbf16> to vector<16x8xbf16>
    %cst_428 = arith.constant dense<0.000000e+00> : vector<16x128xf32>
    %624 = tpu.matmul %623, %621, %cst_428 {dimension_numbers = #tpu.dot_dimension_numbers<[1], [0], [0], [1], [0, 0, 1, 1], [], []>} : vector<16x8xbf16>, vector<8x128xbf16>, vector<16x128xf32> -> vector<16x128xf32>
    %625 = arith.addf %615, %624 : vector<16x128xf32>
    %c121_i32_429 = arith.constant 121 : i32
    %626 = tpu.dynamic_rotate %571 by %c121_i32_429 dim 1 : vector<8x128xf32>, i32 -> vector<8x128xf32>
    %c6_430 = arith.constant 6 : index
    %c0_431 = arith.constant 0 : index
    %c0_432 = arith.constant 0 : index
    %627 = vector.load %arg13[%c6_430, %c0_431, %c0_432] : memref<9x1x128xf32, #tpu.memory_space<vmem>>, vector<1x1x128xf32>
    %628 = vector.shape_cast %627 : vector<1x1x128xf32> to vector<1x128xf32>
    %629 = vector.broadcast %628 : vector<1x128xf32> to vector<8x128xf32>
    %630 = arith.mulf %626, %629 : vector<8x128xf32>
    %631 = arith.truncf %630 : vector<8x128xf32> to vector<8x128xbf16>
    %c6_433 = arith.constant 6 : index
    %c0_434 = arith.constant 0 : index
    %c0_435 = arith.constant 0 : index
    %632 = vector.load %arg28[%c6_433, %c0_434, %c0_435] : memref<9x16x8xbf16, #tpu.memory_space<vmem>>, vector<1x16x8xbf16>
    %633 = vector.shape_cast %632 : vector<1x16x8xbf16> to vector<16x8xbf16>
    %cst_436 = arith.constant dense<0.000000e+00> : vector<16x128xf32>
    %634 = tpu.matmul %633, %631, %cst_436 {dimension_numbers = #tpu.dot_dimension_numbers<[1], [0], [0], [1], [0, 0, 1, 1], [], []>} : vector<16x8xbf16>, vector<8x128xbf16>, vector<16x128xf32> -> vector<16x128xf32>
    %635 = arith.addf %625, %634 : vector<16x128xf32>
    %c120_i32_437 = arith.constant 120 : i32
    %636 = tpu.dynamic_rotate %571 by %c120_i32_437 dim 1 : vector<8x128xf32>, i32 -> vector<8x128xf32>
    %c7_438 = arith.constant 7 : index
    %c0_439 = arith.constant 0 : index
    %c0_440 = arith.constant 0 : index
    %637 = vector.load %arg13[%c7_438, %c0_439, %c0_440] : memref<9x1x128xf32, #tpu.memory_space<vmem>>, vector<1x1x128xf32>
    %638 = vector.shape_cast %637 : vector<1x1x128xf32> to vector<1x128xf32>
    %639 = vector.broadcast %638 : vector<1x128xf32> to vector<8x128xf32>
    %640 = arith.mulf %636, %639 : vector<8x128xf32>
    %641 = arith.truncf %640 : vector<8x128xf32> to vector<8x128xbf16>
    %c7_441 = arith.constant 7 : index
    %c0_442 = arith.constant 0 : index
    %c0_443 = arith.constant 0 : index
    %642 = vector.load %arg28[%c7_441, %c0_442, %c0_443] : memref<9x16x8xbf16, #tpu.memory_space<vmem>>, vector<1x16x8xbf16>
    %643 = vector.shape_cast %642 : vector<1x16x8xbf16> to vector<16x8xbf16>
    %cst_444 = arith.constant dense<0.000000e+00> : vector<16x128xf32>
    %644 = tpu.matmul %643, %641, %cst_444 {dimension_numbers = #tpu.dot_dimension_numbers<[1], [0], [0], [1], [0, 0, 1, 1], [], []>} : vector<16x8xbf16>, vector<8x128xbf16>, vector<16x128xf32> -> vector<16x128xf32>
    %645 = arith.addf %635, %644 : vector<16x128xf32>
    %c119_i32_445 = arith.constant 119 : i32
    %646 = tpu.dynamic_rotate %571 by %c119_i32_445 dim 1 : vector<8x128xf32>, i32 -> vector<8x128xf32>
    %c8_446 = arith.constant 8 : index
    %c0_447 = arith.constant 0 : index
    %c0_448 = arith.constant 0 : index
    %647 = vector.load %arg13[%c8_446, %c0_447, %c0_448] : memref<9x1x128xf32, #tpu.memory_space<vmem>>, vector<1x1x128xf32>
    %648 = vector.shape_cast %647 : vector<1x1x128xf32> to vector<1x128xf32>
    %649 = vector.broadcast %648 : vector<1x128xf32> to vector<8x128xf32>
    %650 = arith.mulf %646, %649 : vector<8x128xf32>
    %651 = arith.truncf %650 : vector<8x128xf32> to vector<8x128xbf16>
    %c8_449 = arith.constant 8 : index
    %c0_450 = arith.constant 0 : index
    %c0_451 = arith.constant 0 : index
    %652 = vector.load %arg28[%c8_449, %c0_450, %c0_451] : memref<9x16x8xbf16, #tpu.memory_space<vmem>>, vector<1x16x8xbf16>
    %653 = vector.shape_cast %652 : vector<1x16x8xbf16> to vector<16x8xbf16>
    %cst_452 = arith.constant dense<0.000000e+00> : vector<16x128xf32>
    %654 = tpu.matmul %653, %651, %cst_452 {dimension_numbers = #tpu.dot_dimension_numbers<[1], [0], [0], [1], [0, 0, 1, 1], [], []>} : vector<16x8xbf16>, vector<8x128xbf16>, vector<16x128xf32> -> vector<16x128xf32>
    %655 = arith.addf %645, %654 : vector<16x128xf32>
    %c0_453 = arith.constant 0 : index
    %c0_454 = arith.constant 0 : index
    %656 = vector.load %arg23[%c0_453, %c0_454] : memref<128x32xf32, #tpu.memory_space<vmem>>, vector<128x32xf32>
    %cst_455 = arith.constant dense<0.000000e+00> : vector<16x32xf32>
    %657 = tpu.matmul %655, %656, %cst_455 {dimension_numbers = #tpu.dot_dimension_numbers<[1], [0], [0], [1], [0, 0, 1, 1], [], []>} : vector<16x128xf32>, vector<128x32xf32>, vector<16x32xf32> -> vector<16x32xf32>
    %cst_456 = arith.constant dense<0.000000e+00> : vector<16xf32>
    %658 = vector.multi_reduction <add>, %657, %cst_456 [1] : vector<16x32xf32> to vector<16xf32>
    %659 = vector.shape_cast %658 : vector<16xf32> to vector<16x1xf32>
    %cst_457 = arith.constant 3.125000e-02 : f32
    %660 = vector.broadcast %cst_457 : f32 to vector<16x1xf32>
    %661 = arith.mulf %659, %660 : vector<16x1xf32>
    %662 = vector.broadcast %661 : vector<16x1xf32> to vector<16x32xf32>
    %663 = arith.subf %657, %662 : vector<16x32xf32>
    %664 = arith.mulf %663, %663 : vector<16x32xf32>
    %cst_458 = arith.constant dense<0.000000e+00> : vector<16xf32>
    %665 = vector.multi_reduction <add>, %664, %cst_458 [1] : vector<16x32xf32> to vector<16xf32>
    %666 = vector.shape_cast %665 : vector<16xf32> to vector<16x1xf32>
    %cst_459 = arith.constant 3.125000e-02 : f32
    %667 = vector.broadcast %cst_459 : f32 to vector<16x1xf32>
    %668 = arith.mulf %666, %667 : vector<16x1xf32>
    %cst_460 = arith.constant 9.99999974E-6 : f32
    %669 = vector.broadcast %cst_460 : f32 to vector<16x1xf32>
    %670 = arith.addf %668, %669 : vector<16x1xf32>
    %671 = math.rsqrt %670 : vector<16x1xf32>
    %672 = vector.broadcast %671 : vector<16x1xf32> to vector<16x32xf32>
    %673 = arith.mulf %663, %672 : vector<16x32xf32>
    %c0_461 = arith.constant 0 : index
    %c0_462 = arith.constant 0 : index
    %674 = vector.load %arg29[%c0_461, %c0_462] : memref<16x1xf32, #tpu.memory_space<vmem>>, vector<16x1xf32>
    %675 = vector.broadcast %674 : vector<16x1xf32> to vector<16x32xf32>
    %676 = arith.mulf %673, %675 : vector<16x32xf32>
    %c0_463 = arith.constant 0 : index
    %c0_464 = arith.constant 0 : index
    %677 = vector.load %arg30[%c0_463, %c0_464] : memref<16x1xf32, #tpu.memory_space<vmem>>, vector<16x1xf32>
    %678 = vector.broadcast %677 : vector<16x1xf32> to vector<16x32xf32>
    %679 = arith.addf %676, %678 : vector<16x32xf32>
    %cst_465 = arith.constant 0.000000e+00 : f32
    %680 = vector.broadcast %cst_465 : f32 to vector<16x32xf32>
    %681 = arith.maximumf %679, %680 : vector<16x32xf32>
    %c0_466 = arith.constant 0 : index
    %c0_467 = arith.constant 0 : index
    %c0_468 = arith.constant 0 : index
    %682 = vector.load %arg24[%c0_466, %c0_467, %c0_468] : memref<9x32x32xf32, #tpu.memory_space<vmem>>, vector<1x32x32xf32>
    %683 = vector.shape_cast %682 : vector<1x32x32xf32> to vector<32x32xf32>
    %cst_469 = arith.constant dense<0.000000e+00> : vector<16x32xf32>
    %684 = tpu.matmul %681, %683, %cst_469 {dimension_numbers = #tpu.dot_dimension_numbers<[1], [0], [0], [1], [0, 0, 1, 1], [], []>} : vector<16x32xf32>, vector<32x32xf32>, vector<16x32xf32> -> vector<16x32xf32>
    %685 = arith.truncf %684 : vector<16x32xf32> to vector<16x32xbf16>
    %c0_470 = arith.constant 0 : index
    %c0_471 = arith.constant 0 : index
    %c0_472 = arith.constant 0 : index
    %686 = vector.load %arg31[%c0_470, %c0_471, %c0_472] : memref<9x16x16xbf16, #tpu.memory_space<vmem>>, vector<1x16x16xbf16>
    %687 = vector.shape_cast %686 : vector<1x16x16xbf16> to vector<16x16xbf16>
    %cst_473 = arith.constant dense<0.000000e+00> : vector<16x32xf32>
    %688 = tpu.matmul %687, %685, %cst_473 {dimension_numbers = #tpu.dot_dimension_numbers<[1], [0], [0], [1], [0, 0, 1, 1], [], []>} : vector<16x16xbf16>, vector<16x32xbf16>, vector<16x32xf32> -> vector<16x32xf32>
    %c1_474 = arith.constant 1 : index
    %c0_475 = arith.constant 0 : index
    %c0_476 = arith.constant 0 : index
    %689 = vector.load %arg24[%c1_474, %c0_475, %c0_476] : memref<9x32x32xf32, #tpu.memory_space<vmem>>, vector<1x32x32xf32>
    %690 = vector.shape_cast %689 : vector<1x32x32xf32> to vector<32x32xf32>
    %cst_477 = arith.constant dense<0.000000e+00> : vector<16x32xf32>
    %691 = tpu.matmul %681, %690, %cst_477 {dimension_numbers = #tpu.dot_dimension_numbers<[1], [0], [0], [1], [0, 0, 1, 1], [], []>} : vector<16x32xf32>, vector<32x32xf32>, vector<16x32xf32> -> vector<16x32xf32>
    %692 = arith.truncf %691 : vector<16x32xf32> to vector<16x32xbf16>
    %c1_478 = arith.constant 1 : index
    %c0_479 = arith.constant 0 : index
    %c0_480 = arith.constant 0 : index
    %693 = vector.load %arg31[%c1_478, %c0_479, %c0_480] : memref<9x16x16xbf16, #tpu.memory_space<vmem>>, vector<1x16x16xbf16>
    %694 = vector.shape_cast %693 : vector<1x16x16xbf16> to vector<16x16xbf16>
    %cst_481 = arith.constant dense<0.000000e+00> : vector<16x32xf32>
    %695 = tpu.matmul %694, %692, %cst_481 {dimension_numbers = #tpu.dot_dimension_numbers<[1], [0], [0], [1], [0, 0, 1, 1], [], []>} : vector<16x16xbf16>, vector<16x32xbf16>, vector<16x32xf32> -> vector<16x32xf32>
    %696 = arith.addf %688, %695 : vector<16x32xf32>
    %c2_482 = arith.constant 2 : index
    %c0_483 = arith.constant 0 : index
    %c0_484 = arith.constant 0 : index
    %697 = vector.load %arg24[%c2_482, %c0_483, %c0_484] : memref<9x32x32xf32, #tpu.memory_space<vmem>>, vector<1x32x32xf32>
    %698 = vector.shape_cast %697 : vector<1x32x32xf32> to vector<32x32xf32>
    %cst_485 = arith.constant dense<0.000000e+00> : vector<16x32xf32>
    %699 = tpu.matmul %681, %698, %cst_485 {dimension_numbers = #tpu.dot_dimension_numbers<[1], [0], [0], [1], [0, 0, 1, 1], [], []>} : vector<16x32xf32>, vector<32x32xf32>, vector<16x32xf32> -> vector<16x32xf32>
    %700 = arith.truncf %699 : vector<16x32xf32> to vector<16x32xbf16>
    %c2_486 = arith.constant 2 : index
    %c0_487 = arith.constant 0 : index
    %c0_488 = arith.constant 0 : index
    %701 = vector.load %arg31[%c2_486, %c0_487, %c0_488] : memref<9x16x16xbf16, #tpu.memory_space<vmem>>, vector<1x16x16xbf16>
    %702 = vector.shape_cast %701 : vector<1x16x16xbf16> to vector<16x16xbf16>
    %cst_489 = arith.constant dense<0.000000e+00> : vector<16x32xf32>
    %703 = tpu.matmul %702, %700, %cst_489 {dimension_numbers = #tpu.dot_dimension_numbers<[1], [0], [0], [1], [0, 0, 1, 1], [], []>} : vector<16x16xbf16>, vector<16x32xbf16>, vector<16x32xf32> -> vector<16x32xf32>
    %704 = arith.addf %696, %703 : vector<16x32xf32>
    %c3_490 = arith.constant 3 : index
    %c0_491 = arith.constant 0 : index
    %c0_492 = arith.constant 0 : index
    %705 = vector.load %arg24[%c3_490, %c0_491, %c0_492] : memref<9x32x32xf32, #tpu.memory_space<vmem>>, vector<1x32x32xf32>
    %706 = vector.shape_cast %705 : vector<1x32x32xf32> to vector<32x32xf32>
    %cst_493 = arith.constant dense<0.000000e+00> : vector<16x32xf32>
    %707 = tpu.matmul %681, %706, %cst_493 {dimension_numbers = #tpu.dot_dimension_numbers<[1], [0], [0], [1], [0, 0, 1, 1], [], []>} : vector<16x32xf32>, vector<32x32xf32>, vector<16x32xf32> -> vector<16x32xf32>
    %708 = arith.truncf %707 : vector<16x32xf32> to vector<16x32xbf16>
    %c3_494 = arith.constant 3 : index
    %c0_495 = arith.constant 0 : index
    %c0_496 = arith.constant 0 : index
    %709 = vector.load %arg31[%c3_494, %c0_495, %c0_496] : memref<9x16x16xbf16, #tpu.memory_space<vmem>>, vector<1x16x16xbf16>
    %710 = vector.shape_cast %709 : vector<1x16x16xbf16> to vector<16x16xbf16>
    %cst_497 = arith.constant dense<0.000000e+00> : vector<16x32xf32>
    %711 = tpu.matmul %710, %708, %cst_497 {dimension_numbers = #tpu.dot_dimension_numbers<[1], [0], [0], [1], [0, 0, 1, 1], [], []>} : vector<16x16xbf16>, vector<16x32xbf16>, vector<16x32xf32> -> vector<16x32xf32>
    %712 = arith.addf %704, %711 : vector<16x32xf32>
    %c4_498 = arith.constant 4 : index
    %c0_499 = arith.constant 0 : index
    %c0_500 = arith.constant 0 : index
    %713 = vector.load %arg24[%c4_498, %c0_499, %c0_500] : memref<9x32x32xf32, #tpu.memory_space<vmem>>, vector<1x32x32xf32>
    %714 = vector.shape_cast %713 : vector<1x32x32xf32> to vector<32x32xf32>
    %cst_501 = arith.constant dense<0.000000e+00> : vector<16x32xf32>
    %715 = tpu.matmul %681, %714, %cst_501 {dimension_numbers = #tpu.dot_dimension_numbers<[1], [0], [0], [1], [0, 0, 1, 1], [], []>} : vector<16x32xf32>, vector<32x32xf32>, vector<16x32xf32> -> vector<16x32xf32>
    %716 = arith.truncf %715 : vector<16x32xf32> to vector<16x32xbf16>
    %c4_502 = arith.constant 4 : index
    %c0_503 = arith.constant 0 : index
    %c0_504 = arith.constant 0 : index
    %717 = vector.load %arg31[%c4_502, %c0_503, %c0_504] : memref<9x16x16xbf16, #tpu.memory_space<vmem>>, vector<1x16x16xbf16>
    %718 = vector.shape_cast %717 : vector<1x16x16xbf16> to vector<16x16xbf16>
    %cst_505 = arith.constant dense<0.000000e+00> : vector<16x32xf32>
    %719 = tpu.matmul %718, %716, %cst_505 {dimension_numbers = #tpu.dot_dimension_numbers<[1], [0], [0], [1], [0, 0, 1, 1], [], []>} : vector<16x16xbf16>, vector<16x32xbf16>, vector<16x32xf32> -> vector<16x32xf32>
    %720 = arith.addf %712, %719 : vector<16x32xf32>
    %c5_506 = arith.constant 5 : index
    %c0_507 = arith.constant 0 : index
    %c0_508 = arith.constant 0 : index
    %721 = vector.load %arg24[%c5_506, %c0_507, %c0_508] : memref<9x32x32xf32, #tpu.memory_space<vmem>>, vector<1x32x32xf32>
    %722 = vector.shape_cast %721 : vector<1x32x32xf32> to vector<32x32xf32>
    %cst_509 = arith.constant dense<0.000000e+00> : vector<16x32xf32>
    %723 = tpu.matmul %681, %722, %cst_509 {dimension_numbers = #tpu.dot_dimension_numbers<[1], [0], [0], [1], [0, 0, 1, 1], [], []>} : vector<16x32xf32>, vector<32x32xf32>, vector<16x32xf32> -> vector<16x32xf32>
    %724 = arith.truncf %723 : vector<16x32xf32> to vector<16x32xbf16>
    %c5_510 = arith.constant 5 : index
    %c0_511 = arith.constant 0 : index
    %c0_512 = arith.constant 0 : index
    %725 = vector.load %arg31[%c5_510, %c0_511, %c0_512] : memref<9x16x16xbf16, #tpu.memory_space<vmem>>, vector<1x16x16xbf16>
    %726 = vector.shape_cast %725 : vector<1x16x16xbf16> to vector<16x16xbf16>
    %cst_513 = arith.constant dense<0.000000e+00> : vector<16x32xf32>
    %727 = tpu.matmul %726, %724, %cst_513 {dimension_numbers = #tpu.dot_dimension_numbers<[1], [0], [0], [1], [0, 0, 1, 1], [], []>} : vector<16x16xbf16>, vector<16x32xbf16>, vector<16x32xf32> -> vector<16x32xf32>
    %728 = arith.addf %720, %727 : vector<16x32xf32>
    %c6_514 = arith.constant 6 : index
    %c0_515 = arith.constant 0 : index
    %c0_516 = arith.constant 0 : index
    %729 = vector.load %arg24[%c6_514, %c0_515, %c0_516] : memref<9x32x32xf32, #tpu.memory_space<vmem>>, vector<1x32x32xf32>
    %730 = vector.shape_cast %729 : vector<1x32x32xf32> to vector<32x32xf32>
    %cst_517 = arith.constant dense<0.000000e+00> : vector<16x32xf32>
    %731 = tpu.matmul %681, %730, %cst_517 {dimension_numbers = #tpu.dot_dimension_numbers<[1], [0], [0], [1], [0, 0, 1, 1], [], []>} : vector<16x32xf32>, vector<32x32xf32>, vector<16x32xf32> -> vector<16x32xf32>
    %732 = arith.truncf %731 : vector<16x32xf32> to vector<16x32xbf16>
    %c6_518 = arith.constant 6 : index
    %c0_519 = arith.constant 0 : index
    %c0_520 = arith.constant 0 : index
    %733 = vector.load %arg31[%c6_518, %c0_519, %c0_520] : memref<9x16x16xbf16, #tpu.memory_space<vmem>>, vector<1x16x16xbf16>
    %734 = vector.shape_cast %733 : vector<1x16x16xbf16> to vector<16x16xbf16>
    %cst_521 = arith.constant dense<0.000000e+00> : vector<16x32xf32>
    %735 = tpu.matmul %734, %732, %cst_521 {dimension_numbers = #tpu.dot_dimension_numbers<[1], [0], [0], [1], [0, 0, 1, 1], [], []>} : vector<16x16xbf16>, vector<16x32xbf16>, vector<16x32xf32> -> vector<16x32xf32>
    %736 = arith.addf %728, %735 : vector<16x32xf32>
    %c7_522 = arith.constant 7 : index
    %c0_523 = arith.constant 0 : index
    %c0_524 = arith.constant 0 : index
    %737 = vector.load %arg24[%c7_522, %c0_523, %c0_524] : memref<9x32x32xf32, #tpu.memory_space<vmem>>, vector<1x32x32xf32>
    %738 = vector.shape_cast %737 : vector<1x32x32xf32> to vector<32x32xf32>
    %cst_525 = arith.constant dense<0.000000e+00> : vector<16x32xf32>
    %739 = tpu.matmul %681, %738, %cst_525 {dimension_numbers = #tpu.dot_dimension_numbers<[1], [0], [0], [1], [0, 0, 1, 1], [], []>} : vector<16x32xf32>, vector<32x32xf32>, vector<16x32xf32> -> vector<16x32xf32>
    %740 = arith.truncf %739 : vector<16x32xf32> to vector<16x32xbf16>
    %c7_526 = arith.constant 7 : index
    %c0_527 = arith.constant 0 : index
    %c0_528 = arith.constant 0 : index
    %741 = vector.load %arg31[%c7_526, %c0_527, %c0_528] : memref<9x16x16xbf16, #tpu.memory_space<vmem>>, vector<1x16x16xbf16>
    %742 = vector.shape_cast %741 : vector<1x16x16xbf16> to vector<16x16xbf16>
    %cst_529 = arith.constant dense<0.000000e+00> : vector<16x32xf32>
    %743 = tpu.matmul %742, %740, %cst_529 {dimension_numbers = #tpu.dot_dimension_numbers<[1], [0], [0], [1], [0, 0, 1, 1], [], []>} : vector<16x16xbf16>, vector<16x32xbf16>, vector<16x32xf32> -> vector<16x32xf32>
    %744 = arith.addf %736, %743 : vector<16x32xf32>
    %c8_530 = arith.constant 8 : index
    %c0_531 = arith.constant 0 : index
    %c0_532 = arith.constant 0 : index
    %745 = vector.load %arg24[%c8_530, %c0_531, %c0_532] : memref<9x32x32xf32, #tpu.memory_space<vmem>>, vector<1x32x32xf32>
    %746 = vector.shape_cast %745 : vector<1x32x32xf32> to vector<32x32xf32>
    %cst_533 = arith.constant dense<0.000000e+00> : vector<16x32xf32>
    %747 = tpu.matmul %681, %746, %cst_533 {dimension_numbers = #tpu.dot_dimension_numbers<[1], [0], [0], [1], [0, 0, 1, 1], [], []>} : vector<16x32xf32>, vector<32x32xf32>, vector<16x32xf32> -> vector<16x32xf32>
    %748 = arith.truncf %747 : vector<16x32xf32> to vector<16x32xbf16>
    %c8_534 = arith.constant 8 : index
    %c0_535 = arith.constant 0 : index
    %c0_536 = arith.constant 0 : index
    %749 = vector.load %arg31[%c8_534, %c0_535, %c0_536] : memref<9x16x16xbf16, #tpu.memory_space<vmem>>, vector<1x16x16xbf16>
    %750 = vector.shape_cast %749 : vector<1x16x16xbf16> to vector<16x16xbf16>
    %cst_537 = arith.constant dense<0.000000e+00> : vector<16x32xf32>
    %751 = tpu.matmul %750, %748, %cst_537 {dimension_numbers = #tpu.dot_dimension_numbers<[1], [0], [0], [1], [0, 0, 1, 1], [], []>} : vector<16x16xbf16>, vector<16x32xbf16>, vector<16x32xf32> -> vector<16x32xf32>
    %752 = arith.addf %744, %751 : vector<16x32xf32>
    %cst_538 = arith.constant dense<0.000000e+00> : vector<16xf32>
    %753 = vector.multi_reduction <add>, %752, %cst_538 [1] : vector<16x32xf32> to vector<16xf32>
    %754 = vector.shape_cast %753 : vector<16xf32> to vector<16x1xf32>
    %cst_539 = arith.constant 3.125000e-02 : f32
    %755 = vector.broadcast %cst_539 : f32 to vector<16x1xf32>
    %756 = arith.mulf %754, %755 : vector<16x1xf32>
    %757 = vector.broadcast %756 : vector<16x1xf32> to vector<16x32xf32>
    %758 = arith.subf %752, %757 : vector<16x32xf32>
    %759 = arith.mulf %758, %758 : vector<16x32xf32>
    %cst_540 = arith.constant dense<0.000000e+00> : vector<16xf32>
    %760 = vector.multi_reduction <add>, %759, %cst_540 [1] : vector<16x32xf32> to vector<16xf32>
    %761 = vector.shape_cast %760 : vector<16xf32> to vector<16x1xf32>
    %cst_541 = arith.constant 3.125000e-02 : f32
    %762 = vector.broadcast %cst_541 : f32 to vector<16x1xf32>
    %763 = arith.mulf %761, %762 : vector<16x1xf32>
    %cst_542 = arith.constant 9.99999974E-6 : f32
    %764 = vector.broadcast %cst_542 : f32 to vector<16x1xf32>
    %765 = arith.addf %763, %764 : vector<16x1xf32>
    %766 = math.rsqrt %765 : vector<16x1xf32>
    %767 = vector.broadcast %766 : vector<16x1xf32> to vector<16x32xf32>
    %768 = arith.mulf %758, %767 : vector<16x32xf32>
    %c0_543 = arith.constant 0 : index
    %c0_544 = arith.constant 0 : index
    %769 = vector.load %arg32[%c0_543, %c0_544] : memref<16x1xf32, #tpu.memory_space<vmem>>, vector<16x1xf32>
    %770 = vector.broadcast %769 : vector<16x1xf32> to vector<16x32xf32>
    %771 = arith.mulf %768, %770 : vector<16x32xf32>
    %c0_545 = arith.constant 0 : index
    %c0_546 = arith.constant 0 : index
    %772 = vector.load %arg33[%c0_545, %c0_546] : memref<16x1xf32, #tpu.memory_space<vmem>>, vector<16x1xf32>
    %773 = vector.broadcast %772 : vector<16x1xf32> to vector<16x32xf32>
    %774 = arith.addf %771, %773 : vector<16x32xf32>
    %c0_547 = arith.constant 0 : index
    %c0_548 = arith.constant 0 : index
    %775 = vector.load %arg23[%c0_547, %c0_548] : memref<128x32xf32, #tpu.memory_space<vmem>>, vector<128x32xf32>
    %cst_549 = arith.constant dense<0.000000e+00> : vector<8x32xf32>
    %776 = tpu.matmul %571, %775, %cst_549 {dimension_numbers = #tpu.dot_dimension_numbers<[1], [0], [0], [1], [0, 0, 1, 1], [], []>} : vector<8x128xf32>, vector<128x32xf32>, vector<8x32xf32> -> vector<8x32xf32>
    %c0_550 = arith.constant 0 : index
    %c0_551 = arith.constant 0 : index
    %777 = vector.load %arg25[%c0_550, %c0_551] : memref<16x8xbf16, #tpu.memory_space<vmem>>, vector<16x8xbf16>
    %778 = arith.truncf %776 : vector<8x32xf32> to vector<8x32xbf16>
    %cst_552 = arith.constant dense<0.000000e+00> : vector<16x32xf32>
    %779 = tpu.matmul %777, %778, %cst_552 {dimension_numbers = #tpu.dot_dimension_numbers<[1], [0], [0], [1], [0, 0, 1, 1], [], []>} : vector<16x8xbf16>, vector<8x32xbf16>, vector<16x32xf32> -> vector<16x32xf32>
    %cst_553 = arith.constant dense<0.000000e+00> : vector<16xf32>
    %780 = vector.multi_reduction <add>, %779, %cst_553 [1] : vector<16x32xf32> to vector<16xf32>
    %781 = vector.shape_cast %780 : vector<16xf32> to vector<16x1xf32>
    %cst_554 = arith.constant 3.125000e-02 : f32
    %782 = vector.broadcast %cst_554 : f32 to vector<16x1xf32>
    %783 = arith.mulf %781, %782 : vector<16x1xf32>
    %784 = vector.broadcast %783 : vector<16x1xf32> to vector<16x32xf32>
    %785 = arith.subf %779, %784 : vector<16x32xf32>
    %786 = arith.mulf %785, %785 : vector<16x32xf32>
    %cst_555 = arith.constant dense<0.000000e+00> : vector<16xf32>
    %787 = vector.multi_reduction <add>, %786, %cst_555 [1] : vector<16x32xf32> to vector<16xf32>
    %788 = vector.shape_cast %787 : vector<16xf32> to vector<16x1xf32>
    %cst_556 = arith.constant 3.125000e-02 : f32
    %789 = vector.broadcast %cst_556 : f32 to vector<16x1xf32>
    %790 = arith.mulf %788, %789 : vector<16x1xf32>
    %cst_557 = arith.constant 9.99999974E-6 : f32
    %791 = vector.broadcast %cst_557 : f32 to vector<16x1xf32>
    %792 = arith.addf %790, %791 : vector<16x1xf32>
    %793 = math.rsqrt %792 : vector<16x1xf32>
    %794 = vector.broadcast %793 : vector<16x1xf32> to vector<16x32xf32>
    %795 = arith.mulf %785, %794 : vector<16x32xf32>
    %c0_558 = arith.constant 0 : index
    %c0_559 = arith.constant 0 : index
    %796 = vector.load %arg26[%c0_558, %c0_559] : memref<16x1xf32, #tpu.memory_space<vmem>>, vector<16x1xf32>
    %797 = vector.broadcast %796 : vector<16x1xf32> to vector<16x32xf32>
    %798 = arith.mulf %795, %797 : vector<16x32xf32>
    %c0_560 = arith.constant 0 : index
    %c0_561 = arith.constant 0 : index
    %799 = vector.load %arg27[%c0_560, %c0_561] : memref<16x1xf32, #tpu.memory_space<vmem>>, vector<16x1xf32>
    %800 = vector.broadcast %799 : vector<16x1xf32> to vector<16x32xf32>
    %801 = arith.addf %798, %800 : vector<16x32xf32>
    %802 = arith.addf %774, %801 : vector<16x32xf32>
    %cst_562 = arith.constant 0.000000e+00 : f32
    %803 = vector.broadcast %cst_562 : f32 to vector<16x32xf32>
    %804 = arith.maximumf %802, %803 : vector<16x32xf32>
    %c0_563 = arith.constant 0 : index
    %c0_564 = arith.constant 0 : index
    %805 = vector.load %arg34[%c0_563, %c0_564] : memref<32x2xf32, #tpu.memory_space<vmem>>, vector<32x2xf32>
    %cst_565 = arith.constant dense<0.000000e+00> : vector<16x2xf32>
    %806 = tpu.matmul %804, %805, %cst_565 {dimension_numbers = #tpu.dot_dimension_numbers<[1], [0], [0], [1], [0, 0, 1, 1], [], []>} : vector<16x32xf32>, vector<32x2xf32>, vector<16x2xf32> -> vector<16x2xf32>
    %c0_566 = arith.constant 0 : index
    %c0_567 = arith.constant 0 : index
    %807 = vector.load %arg35[%c0_566, %c0_567] : memref<10x16xf32, #tpu.memory_space<vmem>>, vector<10x16xf32>
    %cst_568 = arith.constant dense<0.000000e+00> : vector<10x2xf32>
    %808 = tpu.matmul %807, %806, %cst_568 {dimension_numbers = #tpu.dot_dimension_numbers<[1], [0], [0], [1], [0, 0, 1, 1], [], []>} : vector<10x16xf32>, vector<16x2xf32>, vector<10x2xf32> -> vector<10x2xf32>
    %c0_569 = arith.constant 0 : index
    %c0_570 = arith.constant 0 : index
    %809 = vector.load %arg36[%c0_569, %c0_570] : memref<10x1xf32, #tpu.memory_space<vmem>>, vector<10x1xf32>
    %810 = vector.broadcast %809 : vector<10x1xf32> to vector<10x2xf32>
    %811 = arith.addf %808, %810 : vector<10x2xf32>
    %c0_571 = arith.constant 0 : index
    %c0_572 = arith.constant 0 : index
    %812 = vector.load %arg37[%c0_571, %c0_572] : memref<10x2xf32, #tpu.memory_space<vmem>>, vector<10x2xf32>
    tpu.vector_store %arg37[%c0_571, %c0_572], %811 {strides = array<i32>} : memref<10x2xf32, #tpu.memory_space<vmem>>, vector<10x2xf32>,
    return
  }
  func.func @transform_0(%arg0: i32) -> (i32, i32) {
    %c0_i32 = arith.constant 0 : i32
    %c0_i32_0 = arith.constant 0 : i32
    %c0_i32_1 = arith.constant 0 : i32
    return %c0_i32, %c0_i32_0 : i32, i32
  }
  func.func @transform_1(%arg0: i32) -> (i32, i32, i32) {
    %c0_i32 = arith.constant 0 : i32
    %c0_i32_0 = arith.constant 0 : i32
    %c0_i32_1 = arith.constant 0 : i32
    %c0_i32_2 = arith.constant 0 : i32
    return %c0_i32, %c0_i32_0, %c0_i32_1 : i32, i32, i32
  }
  func.func @transform_2(%arg0: i32) -> (i32, i32) {
    %c0_i32 = arith.constant 0 : i32
    %c0_i32_0 = arith.constant 0 : i32
    %c0_i32_1 = arith.constant 0 : i32
    return %c0_i32, %c0_i32_0 : i32, i32
  }
  func.func @transform_3(%arg0: i32) -> (i32, i32) {
    %c0_i32 = arith.constant 0 : i32
    %c0_i32_0 = arith.constant 0 : i32
    %c0_i32_1 = arith.constant 0 : i32
    return %c0_i32, %c0_i32_0 : i32, i32
  }
  func.func @transform_4(%arg0: i32) -> (i32, i32, i32) {
    %c0_i32 = arith.constant 0 : i32
    %c0_i32_0 = arith.constant 0 : i32
    %c0_i32_1 = arith.constant 0 : i32
    %c0_i32_2 = arith.constant 0 : i32
    return %c0_i32, %c0_i32_0, %c0_i32_1 : i32, i32, i32
  }
  func.func @transform_5(%arg0: i32) -> (i32, i32, i32) {
    %c0_i32 = arith.constant 0 : i32
    %c0_i32_0 = arith.constant 0 : i32
    %c0_i32_1 = arith.constant 0 : i32
    %c0_i32_2 = arith.constant 0 : i32
    return %c0_i32, %c0_i32_0, %c0_i32_1 : i32, i32, i32
  }
  func.func @transform_6(%arg0: i32) -> (i32, i32) {
    %c0_i32 = arith.constant 0 : i32
    %c0_i32_0 = arith.constant 0 : i32
    %c0_i32_1 = arith.constant 0 : i32
    return %c0_i32, %c0_i32_0 : i32, i32
  }
  func.func @transform_7(%arg0: i32) -> (i32, i32) {
    %c0_i32 = arith.constant 0 : i32
    %c0_i32_0 = arith.constant 0 : i32
    %c0_i32_1 = arith.constant 0 : i32
    return %c0_i32, %c0_i32_0 : i32, i32
  }
  func.func @transform_8(%arg0: i32) -> (i32, i32, i32) {
    %c0_i32 = arith.constant 0 : i32
    %c0_i32_0 = arith.constant 0 : i32
    %c0_i32_1 = arith.constant 0 : i32
    %c0_i32_2 = arith.constant 0 : i32
    return %c0_i32, %c0_i32_0, %c0_i32_1 : i32, i32, i32
  }
  func.func @transform_9(%arg0: i32) -> (i32, i32) {
    %c0_i32 = arith.constant 0 : i32
    %c0_i32_0 = arith.constant 0 : i32
    %c0_i32_1 = arith.constant 0 : i32
    return %c0_i32, %c0_i32_0 : i32, i32
  }
  func.func @transform_10(%arg0: i32) -> (i32, i32) {
    %c0_i32 = arith.constant 0 : i32
    %c0_i32_0 = arith.constant 0 : i32
    %c0_i32_1 = arith.constant 0 : i32
    return %c0_i32, %c0_i32_0 : i32, i32
  }
  func.func @transform_11(%arg0: i32) -> (i32, i32) {
    %c0_i32 = arith.constant 0 : i32
    %c0_i32_0 = arith.constant 0 : i32
    %c0_i32_1 = arith.constant 0 : i32
    return %c0_i32, %c0_i32_0 : i32, i32
  }
  func.func @transform_12(%arg0: i32) -> (i32, i32, i32) {
    %c0_i32 = arith.constant 0 : i32
    %c0_i32_0 = arith.constant 0 : i32
    %c0_i32_1 = arith.constant 0 : i32
    %c0_i32_2 = arith.constant 0 : i32
    return %c0_i32, %c0_i32_0, %c0_i32_1 : i32, i32, i32
  }
  func.func @transform_13(%arg0: i32) -> (i32, i32) {
    %c0_i32 = arith.constant 0 : i32
    %c0_i32_0 = arith.constant 0 : i32
    %c0_i32_1 = arith.constant 0 : i32
    return %c0_i32, %c0_i32_0 : i32, i32
  }
  func.func @transform_14(%arg0: i32) -> (i32, i32) {
    %c0_i32 = arith.constant 0 : i32
    %c0_i32_0 = arith.constant 0 : i32
    %c0_i32_1 = arith.constant 0 : i32
    return %c0_i32, %c0_i32_0 : i32, i32
  }
  func.func @transform_15(%arg0: i32) -> (i32, i32) {
    %c0_i32 = arith.constant 0 : i32
    %c0_i32_0 = arith.constant 0 : i32
    %c0_i32_1 = arith.constant 0 : i32
    return %c0_i32, %c0_i32_0 : i32, i32
  }
  func.func @transform_16(%arg0: i32) -> (i32, i32, i32) {
    %c0_i32 = arith.constant 0 : i32
    %c0_i32_0 = arith.constant 0 : i32
    %c0_i32_1 = arith.constant 0 : i32
    %c0_i32_2 = arith.constant 0 : i32
    return %c0_i32, %c0_i32_0, %c0_i32_1 : i32, i32, i32
  }
  func.func @transform_17(%arg0: i32) -> (i32, i32) {
    %c0_i32 = arith.constant 0 : i32
    %c0_i32_0 = arith.constant 0 : i32
    %c0_i32_1 = arith.constant 0 : i32
    return %c0_i32, %c0_i32_0 : i32, i32
  }
  func.func @transform_18(%arg0: i32) -> (i32, i32) {
    %c0_i32 = arith.constant 0 : i32
    %c0_i32_0 = arith.constant 0 : i32
    %c0_i32_1 = arith.constant 0 : i32
    return %c0_i32, %c0_i32_0 : i32, i32
  }
  func.func @transform_19(%arg0: i32) -> (i32, i32, i32) {
    %c0_i32 = arith.constant 0 : i32
    %c0_i32_0 = arith.constant 0 : i32
    %c0_i32_1 = arith.constant 0 : i32
    %c0_i32_2 = arith.constant 0 : i32
    return %c0_i32, %c0_i32_0, %c0_i32_1 : i32, i32, i32
  }
  func.func @transform_20(%arg0: i32) -> (i32, i32) {
    %c0_i32 = arith.constant 0 : i32
    %c0_i32_0 = arith.constant 0 : i32
    %c0_i32_1 = arith.constant 0 : i32
    return %c0_i32, %c0_i32_0 : i32, i32
  }
  func.func @transform_21(%arg0: i32) -> (i32, i32) {
    %c0_i32 = arith.constant 0 : i32
    %c0_i32_0 = arith.constant 0 : i32
    %c0_i32_1 = arith.constant 0 : i32
    return %c0_i32, %c0_i32_0 : i32, i32
  }
  func.func @transform_22(%arg0: i32) -> (i32, i32) {
    %c0_i32 = arith.constant 0 : i32
    %c0_i32_0 = arith.constant 0 : i32
    %c0_i32_1 = arith.constant 0 : i32
    return %c0_i32, %c0_i32_0 : i32, i32
  }
  func.func @transform_23(%arg0: i32) -> (i32, i32, i32) {
    %c0_i32 = arith.constant 0 : i32
    %c0_i32_0 = arith.constant 0 : i32
    %c0_i32_1 = arith.constant 0 : i32
    %c0_i32_2 = arith.constant 0 : i32
    return %c0_i32, %c0_i32_0, %c0_i32_1 : i32, i32, i32
  }
  func.func @transform_24(%arg0: i32) -> (i32, i32) {
    %c0_i32 = arith.constant 0 : i32
    %c0_i32_0 = arith.constant 0 : i32
    %c0_i32_1 = arith.constant 0 : i32
    return %c0_i32, %c0_i32_0 : i32, i32
  }
  func.func @transform_25(%arg0: i32) -> (i32, i32) {
    %c0_i32 = arith.constant 0 : i32
    %c0_i32_0 = arith.constant 0 : i32
    %c0_i32_1 = arith.constant 0 : i32
    return %c0_i32, %c0_i32_0 : i32, i32
  }
  func.func @transform_26(%arg0: i32) -> (i32, i32) {
    %c0_i32 = arith.constant 0 : i32
    %c0_i32_0 = arith.constant 0 : i32
    %c0_i32_1 = arith.constant 0 : i32
    return %c0_i32, %c0_i32_0 : i32, i32
  }
  func.func @transform_27(%arg0: i32) -> (i32, i32, i32) {
    %c0_i32 = arith.constant 0 : i32
    %c0_i32_0 = arith.constant 0 : i32
    %c0_i32_1 = arith.constant 0 : i32
    %c0_i32_2 = arith.constant 0 : i32
    return %c0_i32, %c0_i32_0, %c0_i32_1 : i32, i32, i32
  }
  func.func @transform_28(%arg0: i32) -> (i32, i32) {
    %c0_i32 = arith.constant 0 : i32
    %c0_i32_0 = arith.constant 0 : i32
    %c0_i32_1 = arith.constant 0 : i32
    return %c0_i32, %c0_i32_0 : i32, i32
  }
  func.func @transform_29(%arg0: i32) -> (i32, i32) {
    %c0_i32 = arith.constant 0 : i32
    %c0_i32_0 = arith.constant 0 : i32
    %c0_i32_1 = arith.constant 0 : i32
    return %c0_i32, %c0_i32_0 : i32, i32
  }
  func.func @transform_30(%arg0: i32) -> (i32, i32, i32) {
    %c0_i32 = arith.constant 0 : i32
    %c0_i32_0 = arith.constant 0 : i32
    %c0_i32_1 = arith.constant 0 : i32
    %c0_i32_2 = arith.constant 0 : i32
    return %c0_i32, %c0_i32_0, %c0_i32_1 : i32, i32, i32
  }
  func.func @transform_31(%arg0: i32) -> (i32, i32) {
    %c0_i32 = arith.constant 0 : i32
    %c0_i32_0 = arith.constant 0 : i32
    %c0_i32_1 = arith.constant 0 : i32
    return %c0_i32, %c0_i32_0 : i32, i32
  }
  func.func @transform_32(%arg0: i32) -> (i32, i32) {
    %c0_i32 = arith.constant 0 : i32
    %c0_i32_0 = arith.constant 0 : i32
    %c0_i32_1 = arith.constant 0 : i32
    return %c0_i32, %c0_i32_0 : i32, i32
  }
  func.func @transform_33(%arg0: i32) -> (i32, i32) {
    %c0_i32 = arith.constant 0 : i32
    %c0_i32_0 = arith.constant 0 : i32
    %c0_i32_1 = arith.constant 0 : i32
    return %c0_i32, %c0_i32_0 : i32, i32
  }
  func.func @transform_34(%arg0: i32) -> (i32, i32) {
    %c0_i32 = arith.constant 0 : i32
    %c0_i32_0 = arith.constant 0 : i32
    %c0_i32_1 = arith.constant 0 : i32
    return %c0_i32, %c0_i32_0 : i32, i32
  }
  func.func @transform_35(%arg0: i32) -> (i32, i32) {
    %c0_i32 = arith.constant 0 : i32
    %c0_i32_0 = arith.constant 0 : i32
    %c0_i32_1 = arith.constant 0 : i32
    return %c0_i32, %c0_i32_0 : i32, i32
  }
  func.func @transform_36(%arg0: i32) -> (i32, i32) {
    %c0_i32 = arith.constant 0 : i32
    %c0_i32_0 = arith.constant 0 : i32
    %c0_i32_1 = arith.constant 0 : i32
    return %c0_i32, %c0_i32_0 : i32, i32
  }
}

</mosaic_0001>

<bundles_post_ra>
// kernel: forward.1
= control target key start
LH: loop header
LB: loop body
LE: loop exit
PB: predicated region body
PF: predicated region fallthrough
CT: control target
= control target key end

     0   :  { %s9735_s6 = smov 1   ;;  %s9736_s10 = smov 2   ;;  %s11948_s0 = inlined_call_operand.smem [shape: u32[37], index: -1, kind: input, shape index: {}] }
   0x1   :  { %s9815_s5 = sld [smem:[%s11948_s0]]   ;;  %s9737_s14 = smov 3  }
   0x2   :  { %s9820_s9 = sld [smem:[%s11948_s0 + %s9735_s6]]   ;;  %s9738_s18 = smov 4  }
   0x3   :  { %s9825_s13 = sld [smem:[%s11948_s0 + %s9736_s10]]   ;;  %s9739_s22 = smov 5  }
   0x4   :  { %s9830_s17 = sld [smem:[%s11948_s0 + %s9737_s14]]   ;;  %s9740_s26 = smov 6  }
   0x5   :  { %s9835_s21 = sld [smem:[%s11948_s0 + %s9738_s18]]   ;;  %s9741_s30 = smov 7  }
   0x6   :  { %s9840_s25 = sld [smem:[%s11948_s0 + %s9739_s22]]   ;;  %s9742_s4 = smov 8  }
   0x7   :  { %s9845_s29 = sld [smem:[%s11948_s0 + %s9740_s26]]   ;;  %s9743_s10 = smov 9  }
   0x8   :  { %s9850_s3 = sld [smem:[%s11948_s0 + %s9741_s30]]   ;;  %s9744_s15 = smov 10  }
   0x9   :  { %s9855_s8 = sld [smem:[%s11948_s0 + %s9742_s4]]   ;;  %s9745_s20 = smov 11  }
   0xa   :  { %s9860_s14 = sld [smem:[%s11948_s0 + %s9743_s10]]   ;;  %s9746_s26 = smov 12  }
   0xb   :  { %s9865_s19 = sld [smem:[%s11948_s0 + %s9744_s15]]   ;;  %s9747_s1 = smov 13  }
   0xc   :  { %s9870_s24 = sld [smem:[%s11948_s0 + %s9745_s20]]   ;;  %s9748_s7 = smov 14  }
   0xd   :  { %12050 = sst [smem:[#allocation29_spill]] %s9845_s29  ;;  %s9749_s15 = smov 15  }
   0xe   :  { %12051 = sst [smem:[#allocation30_spill]] %s9850_s3  ;;  %s9750_s22 = smov 16  }
   0xf   :  { %s9875_s30 = sld [smem:[%s11948_s0 + %s9746_s26]]   ;;  %s9751_s28 = smov 17  }
  0x10   :  { %12052 = sst [smem:[#allocation31_spill]] %s9860_s14 }
  0x11   :  { %12053 = sst [smem:[#allocation32_spill]] %s9865_s19 }
  0x12   :  { %s9880_s6 = sld [smem:[%s11948_s0 + %s9747_s1]]  }
  0x13   :  { %s9885_s12 = sld [smem:[%s11948_s0 + %s9748_s7]]   ;;  %s9752_s7 = smov 18  }
  0x14   :  { %s9890_s20 = sld [smem:[%s11948_s0 + %s9749_s15]]   ;;  %s9753_s15 = smov 19  }
  0x15   :  { %12054 = sst [smem:[#allocation33_spill]] %s9875_s30 }
  0x16   :  { %s9895_s27 = sld [smem:[%s11948_s0 + %s9750_s22]]   ;;  %s9754_s22 = smov 20  }
  0x17   :  { %s9900_s4 = sld [smem:[%s11948_s0 + %s9751_s28]]   ;;  %s9755_s28 = smov 21  }
  0x18   :  { %s9915_s30 = sld [smem:[%s11948_s0 + %s9754_s22]]   ;;  %s9758_s22 = smov 24  }
  0x19   :  { %12055 = sst [smem:[#allocation34_spill]] %s9885_s12 }
  0x1a   :  { %12056 = sst [smem:[#allocation35_spill]] %s9890_s20 }
  0x1b   :  { %s9905_s12 = sld [smem:[%s11948_s0 + %s9752_s7]]   ;;  %s9756_s7 = smov 22  }
  0x1c   :  { %s9910_s20 = sld [smem:[%s11948_s0 + %s9753_s15]]   ;;  %s9757_s15 = smov 23  }
  0x1d   :  { %12057 = sst [smem:[#allocation36_spill]] %s9900_s4 }
  0x1e   :  { %12059 = sst [smem:[#allocation38_spill]] %s9915_s30 }
  0x1f   :  { %s9920_s4 = sld [smem:[%s11948_s0 + %s9755_s28]]   ;;  %s9759_s28 = smov 25  }
  0x20   :  { %s9930_s19 = sld [smem:[%s11948_s0 + %s9757_s15]]   ;;  %s9761_s15 = smov 27  }
  0x21   :  { %12058 = sst [smem:[#allocation37_spill]] %s9905_s12 }
  0x22   :  { %s9925_s12 = sld [smem:[%s11948_s0 + %s9756_s7]]   ;;  %s9760_s7 = smov 26  }
  0x23   :  { %s9935_s30 = sld [smem:[%s11948_s0 + %s9758_s22]]   ;;  %s9762_s22 = smov 28  }
  0x24   :  { %s9945_s14 = sld [smem:[%s11948_s0 + %s9760_s7]]   ;;  %s9764_s7 = smov 30  }
  0x25   :  { %12060 = sst [smem:[#allocation39_spill]] %s9920_s4 }
  0x26   :  { %12061 = sst [smem:[#allocation40_spill]] %s9930_s19 }
  0x27   :  { %s9940_s4 = sld [smem:[%s11948_s0 + %s9759_s28]]   ;;  %s9763_s28 = smov 29  }
  0x28   :  { %s9950_s19 = sld [smem:[%s11948_s0 + %s9761_s15]]   ;;  %s9765_s15 = smov 31  }
  0x29   :  { %s9955_s3 = sld [smem:[%s11948_s0 + %s9762_s22]]   ;;  %s9766_s22 = smov 32  }
  0x2a   :  { %12063 = sst [smem:[#allocation42_spill]] %s9945_s14 }
  0x2b   :  { %s9965_s14 = sld [smem:[%s11948_s0 + %s9764_s7]]   ;;  %s9768_s7 = smov 34  }
  0x2c   :  { %s9985_s29 = sld [smem:[%s11948_s0 + %s9768_s7]]  }
  0x2d   :  { %12062 = sst [smem:[#allocation41_spill]] %s9940_s4 }
  0x2e   :  { %12064 = sst [smem:[#allocation43_spill]] %s9950_s19 }
  0x2f   :  { %12065 = sst [smem:[#allocation44_spill]] %s9955_s3 }
  0x30   :  { %s9960_s4 = sld [smem:[%s11948_s0 + %s9763_s28]]   ;;  %s9767_s28 = smov 33  }
  0x31   :  { %s9970_s19 = sld [smem:[%s11948_s0 + %s9765_s15]]   ;;  %s9769_s15 = smov 35  }
  0x32   :  { %s9975_s3 = sld [smem:[%s11948_s0 + %s9766_s22]]   ;;  %s9770_s22 = smov 36  }
  0x36   :  { %12066 = sst [smem:[#allocation45_spill]] %s9960_s4 }
  0x37   :  { %12067 = sst [smem:[#allocation46_spill]] %s9970_s19 }
  0x38   :  { %12068 = sst [smem:[#allocation47_spill]] %s9975_s3 }
  0x39   :  { %s9980_s4 = sld [smem:[%s11948_s0 + %s9767_s28]]  }
  0x3a   :  { %s9990_s19 = sld [smem:[%s11948_s0 + %s9769_s15]]  }
  0x3b   :  { %s9995_s3 = sld [smem:[%s11948_s0 + %s9770_s22]]  }
  0x3c   :  { %78 = vsyncpa [#allocation3], 0 }
  0x3d   :  { %79 = vsyncpa [#allocation5], 0 }
  0x3e   :  { %80 = vsyncpa [#allocation8], 0 }
  0x3f   :  { %81 = vsyncpa [#allocation11], 0 }
  0x40   :  { %82 = vsyncpa [#allocation14], 0 }
  0x41   :  { %83 = vsyncpa [#allocation17], 0 }
  0x42   :  { %84 = vsyncpa [#allocation20], 0  ;;  %s9771_s28 = smov [#allocation4]  }
  0x43   :  { %s110_s1 = sshll.u32 %s9771_s28, 4  ;;  %s111_s1 = int_to_ptr.vmem [resolvable:$true] %s110_s1 }
  0x44   :  { %s9469_s2 = scalar_lea.vmem %s111_s1, 288  ;;  %p9474_p1 = scmp.lt.s32.totalorder %s111_s1, %s111_s1 }
  0x45   :  { %p9470_p0 = scmp.ne.s32.totalorder %s111_s1, %s9469_s2  ;;  %p9475_p2 = scmp.lt.s32.totalorder %s9469_s2, %s9469_s2 }
  0x47   :  { %p9476_p3 = por %p9475_p2, %p9474_p1 }
  0x49   :  { %p9477_p4 = pnand %p9476_p3, %p9470_p0 }
  0x4b   :  { %9480 = shalt.err (!%p9477_p4)
}
  0x4c   :  { %s9772_s7 = smov 32   ;;  %s9773_s0 = smov 2  }
  0x4d   :  { %116 = dma.hbm_to_vmem [thread:$0]  %s9840_s25, 288, %s111_s1, [#allocation5], %s9772_s7, %s9772_s7, %s9773_s0  }
  0x4e   :  { %s9774_s10 = smov [#allocation7]  }
  0x4f   :  { %s142_s11 = sshll.u32 %s9774_s10, 4  ;;  %s143_s11 = int_to_ptr.vmem [resolvable:$true] %s142_s11 }
  0x50   :  { %s9489_s15 = scalar_lea.vmem %s143_s11, 8192  ;;  %p9494_p6 = scmp.lt.s32.totalorder %s143_s11, %s143_s11 }
  0x51   :  { %p9490_p5 = scmp.ne.s32.totalorder %s143_s11, %s9489_s15  ;;  %p9495_p7 = scmp.lt.s32.totalorder %s9489_s15, %s9489_s15 }
  0x53   :  { %p9496_p8 = por %p9495_p7, %p9494_p6 }
  0x55   :  { %p9497_p9 = pnand %p9496_p8, %p9490_p5 }
  0x57   :  { %9500 = shalt.err (!%p9497_p9)
}
  0x58   :  { %s9775_s16 = smov 128   ;;  %s9776_s18 = smov 8  }
  0x59   :  { %148 = dma.hbm_to_vmem [thread:$0]  %s9870_s24, 8192, %s143_s11, [#allocation8], %s9775_s16, %s9775_s16, %s9776_s18  }
  0x5a   :  { %s9777_s22 = smov [#allocation10]   ;;  %s9778_s25 = smov [#allocation13]  }
  0x5b   :  { %s170_s23 = sshll.u32 %s9777_s22, 4  ;;  %s202_s26 = sshll.u32 %s9778_s25, 4  ;;  %s171_s23 = int_to_ptr.vmem [resolvable:$true] %s170_s23  ;;  %s203_s26 = int_to_ptr.vmem [resolvable:$true] %s202_s26 }
  0x5c   :  { %s9509_s28 = scalar_lea.vmem %s171_s23, 576  ;;  %p9514_p11 = scmp.lt.s32.totalorder %s171_s23, %s171_s23 }
  0x5d   :  { %p9510_p10 = scmp.ne.s32.totalorder %s171_s23, %s9509_s28  ;;  %p9515_p12 = scmp.lt.s32.totalorder %s9509_s28, %s9509_s28 }
  0x5f   :  { %p9516_p13 = por %p9515_p12, %p9514_p11 }
  0x61   :  { %p9517_p0 = pnand %p9516_p13, %p9510_p10 }
  0x63   :  { %9520 = shalt.err (!%p9517_p0)
}
  0x64   :  { %s9779_s1 = smov 64   ;;  %s9780_s2 = smov 4  }
  0x65   :  { %176 = dma.hbm_to_vmem [thread:$0]  %s9895_s27, 576, %s171_s23, [#allocation11], %s9779_s1, %s9779_s1, %s9780_s2  }
  0x66   :  { %s9529_s24 = scalar_lea.vmem %s203_s26, 2048  ;;  %p9534_p2 = scmp.lt.s32.totalorder %s203_s26, %s203_s26 }
  0x67   :  { %p9530_p1 = scmp.ne.s32.totalorder %s203_s26, %s9529_s24  ;;  %p9535_p3 = scmp.lt.s32.totalorder %s9529_s24, %s9529_s24 }
  0x69   :  { %p9536_p4 = por %p9535_p3, %p9534_p2 }
  0x6b   :  { %p9537_p5 = pnand %p9536_p4, %p9530_p1 }
  0x6d   :  { %9540 = shalt.err (!%p9537_p5)
}
  0x6e   :  { %208 = dma.hbm_to_vmem [thread:$0]  %s9925_s12, 2048, %s203_s26, [#allocation14], %s9775_s16, %s9775_s16, %s9776_s18  }
  0x6f   :  { %s9781_s10 = smov [#allocation16]   ;;  %s9782_s15 = smov [#allocation19]  }
  0x70   :  { %s238_s11 = sshll.u32 %s9781_s10, 4  ;;  %s266_s22 = sshll.u32 %s9782_s15, 4  ;;  %s239_s11 = int_to_ptr.vmem [resolvable:$true] %s238_s11  ;;  %s267_s22 = int_to_ptr.vmem [resolvable:$true] %s266_s22 }
  0x71   :  { %s9549_s25 = scalar_lea.vmem %s239_s11, 1152  ;;  %p9554_p7 = scmp.lt.s32.totalorder %s239_s11, %s239_s11 }
  0x72   :  { %p9550_p6 = scmp.ne.s32.totalorder %s239_s11, %s9549_s25  ;;  %p9555_p8 = scmp.lt.s32.totalorder %s9549_s25, %s9549_s25 }
  0x74   :  { %p9556_p9 = por %p9555_p8, %p9554_p7 }
  0x76   :  { %p9557_p10 = pnand %p9556_p9, %p9550_p6 }
  0x78   :  { %9560 = shalt.err (!%p9557_p10)
}
  0x79   :  { %244 = dma.hbm_to_vmem [thread:$0]  %s9965_s14, 1152, %s239_s11, [#allocation17], %s9779_s1, %s9779_s1, %s9780_s2  }
  0x7a   :  { %s9569_s27 = scalar_lea.vmem %s267_s22, 256  ;;  %p9574_p12 = scmp.lt.s32.totalorder %s267_s22, %s267_s22 }
  0x7b   :  { %p9570_p11 = scmp.ne.s32.totalorder %s267_s22, %s9569_s27  ;;  %p9575_p13 = scmp.lt.s32.totalorder %s9569_s27, %s9569_s27 }
  0x7d   :  { %p9576_p0 = por %p9575_p13, %p9574_p12 }
  0x7f   :  { %p9577_p1 = pnand %p9576_p0, %p9570_p11 }
  0x81   :  { %9580 = shalt.err (!%p9577_p1)
}
  0x82   :  { %272 = dma.hbm_to_vmem [thread:$0]  %s9985_s29, 256, %s267_s22, [#allocation20], %s9775_s16, %s9775_s16, %s9776_s18  }
  0x83   :  { %s9783_s12 = smov [#allocation2]   ;;  %s9784_s26 = smov [#allocation6]  }
  0x84   :  { %s98_s23 = sshll.u32 %s9783_s12, 4  ;;  %s126_s28 = sshll.u32 %s9784_s26, 4  ;;  %s99_s23 = int_to_ptr.vmem [resolvable:$true] %s98_s23  ;;  %s127_s28 = int_to_ptr.vmem [resolvable:$true] %s126_s28 }
  0x85   :  { %s9589_s24 = scalar_lea.vmem %s99_s23, 576  ;;  %p9594_p3 = scmp.lt.s32.totalorder %s99_s23, %s99_s23 }
  0x86   :  { %p9590_p2 = scmp.ne.s32.totalorder %s99_s23, %s9589_s24  ;;  %p9595_p4 = scmp.lt.s32.totalorder %s9589_s24, %s9589_s24 }
  0x88   :  { %p9596_p5 = por %p9595_p4, %p9594_p3 }
  0x8a   :  { %p9597_p6 = pnand %p9596_p5, %p9590_p2 }
  0x8c   :  { %9600 = shalt.err (!%p9597_p6)
}
  0x8d   :  { %104 = dma.hbm_to_vmem [thread:$0]  %s9835_s21, 576, %s99_s23, [#allocation3], %s9779_s1, %s9779_s1, %s9780_s2  }
  0x8e   :  { %s9609_s14 = scalar_lea.vmem %s127_s28, 288  ;;  %p9614_p8 = scmp.lt.s32.totalorder %s127_s28, %s127_s28 }
  0x8f   :  { %p9610_p7 = scmp.ne.s32.totalorder %s127_s28, %s9609_s14  ;;  %p9615_p9 = scmp.lt.s32.totalorder %s9609_s14, %s9609_s14 }
  0x91   :  { %p9616_p10 = por %p9615_p9, %p9614_p8 }
  0x93   :  { %p9617_p11 = pnand %p9616_p10, %p9610_p7 }
  0x95   :  { %9620 = shalt.err (!%p9617_p11)
}
  0x96   :  { %132 = dma.hbm_to_vmem [thread:$0]  %s9855_s8, 288, %s127_s28, [#allocation5], %s9772_s7, %s9772_s7, %s9773_s0  }
  0x97   :  { %s9785_s29 = smov [#allocation9]   ;;  %s9786_s11 = smov [#allocation12]  }
  0x98   :  { %s157_s10 = sshll.u32 %s9785_s29, 4  ;;  %s186_s15 = sshll.u32 %s9786_s11, 4  ;;  %s158_s10 = int_to_ptr.vmem [resolvable:$true] %s157_s10  ;;  %s187_s15 = int_to_ptr.vmem [resolvable:$true] %s186_s15 }
  0x99   :  { %s9629_s22 = scalar_lea.vmem %s158_s10, 64  ;;  %p9634_p13 = scmp.lt.s32.totalorder %s158_s10, %s158_s10 }
  0x9a   :  { %p9630_p12 = scmp.ne.s32.totalorder %s158_s10, %s9629_s22  ;;  %p9635_p0 = scmp.lt.s32.totalorder %s9629_s22, %s9629_s22 }
  0x9c   :  { %p9636_p1 = por %p9635_p0, %p9634_p13 }
  0x9e   :  { %p9637_p2 = pnand %p9636_p1, %p9630_p12 }
  0xa0   :  { %9640 = shalt.err (!%p9637_p2)
}
  0xa1   :  { %160 = dma.hbm_to_vmem [thread:$0]  %s9880_s6, 64, %s158_s10, [#allocation8]  }
  0xa2   :  { %s9649_s21 = scalar_lea.vmem %s187_s15, 576  ;;  %p9654_p4 = scmp.lt.s32.totalorder %s187_s15, %s187_s15 }
  0xa3   :  { %p9650_p3 = scmp.ne.s32.totalorder %s187_s15, %s9649_s21  ;;  %p9655_p5 = scmp.lt.s32.totalorder %s9649_s21, %s9649_s21 }
  0xa5   :  { %p9656_p6 = por %p9655_p5, %p9654_p4 }
  0xa7   :  { %p9657_p7 = pnand %p9656_p6, %p9650_p3 }
  0xa9   :  { %9660 = shalt.err (!%p9657_p7)
}
  0xaa   :  { %192 = dma.hbm_to_vmem [thread:$0]  %s9910_s20, 576, %s187_s15, [#allocation11], %s9779_s1, %s9779_s1, %s9780_s2  }
  0xab   :  { %s9787_s8 = smov [#allocation15]   ;;  %s9788_s0 = smov [#allocation18]  }
  0xac   :  { %s216_s7 = sshll.u32 %s9787_s8, 4  ;;  %s254_s25 = sshll.u32 %s9788_s0, 4  ;;  %s217_s7 = int_to_ptr.vmem [resolvable:$true] %s216_s7  ;;  %s255_s25 = int_to_ptr.vmem [resolvable:$true] %s254_s25 }
  0xad   :  { %s9669_s27 = scalar_lea.vmem %s217_s7, 128  ;;  %p9674_p9 = scmp.lt.s32.totalorder %s217_s7, %s217_s7 }
  0xae   :  { %p9670_p8 = scmp.ne.s32.totalorder %s217_s7, %s9669_s27  ;;  %p9675_p10 = scmp.lt.s32.totalorder %s9669_s27, %s9669_s27 }
  0xb0   :  { %p9676_p11 = por %p9675_p10, %p9674_p9 }
  0xb2   :  { %p9677_p12 = pnand %p9676_p11, %p9670_p8 }
  0xb4   :  { %9680 = shalt.err (!%p9677_p12)
}
  0xb5   :  { %222 = dma.hbm_to_vmem [thread:$0]  %s9935_s30, 128, %s217_s7, [#allocation14], %s9779_s1, %s9779_s1, %s9780_s2  }
  0xb6   :  { %s9689_s6 = scalar_lea.vmem %s255_s25, 512  ;;  %p9694_p0 = scmp.lt.s32.totalorder %s255_s25, %s255_s25 }
  0xb7   :  { %p9690_p13 = scmp.ne.s32.totalorder %s255_s25, %s9689_s6  ;;  %p9695_p1 = scmp.lt.s32.totalorder %s9689_s6, %s9689_s6 }
  0xb9   :  { %p9696_p2 = por %p9695_p1, %p9694_p0 }
  0xbb   :  { %p9697_p3 = pnand %p9696_p2, %p9690_p13 }
  0xbd   :  { %9700 = shalt.err (!%p9697_p3)
}
  0xbe   :  { %260 = dma.hbm_to_vmem [thread:$0]  %s9980_s4, 512, %s255_s25, [#allocation17], %s9775_s16, %s9775_s16, %s9776_s18  }
  0xbf   :  { %s9789_s20 = smov [#allocation21]  }
  0xc0   :  { %s278_s12 = sshll.u32 %s9789_s20, 4  ;;  %s279_s12 = int_to_ptr.vmem [resolvable:$true] %s278_s12 }
  0xc1   :  { %s9709_s23 = scalar_lea.vmem %s279_s12, 256  ;;  %p9714_p5 = scmp.lt.s32.totalorder %s279_s12, %s279_s12 }
  0xc2   :  { %p9710_p4 = scmp.ne.s32.totalorder %s279_s12, %s9709_s23  ;;  %p9715_p6 = scmp.lt.s32.totalorder %s9709_s23, %s9709_s23 }
  0xc4   :  { %p9716_p7 = por %p9715_p6, %p9714_p5 }
  0xc6   :  { %p9717_p8 = pnand %p9716_p7, %p9710_p4 }
  0xc8   :  { %9720 = shalt.err (!%p9717_p8)
}
  0xc9   :  { %284 = dma.hbm_to_vmem [thread:$0]  %s9990_s19, 256, %s279_s12, [#allocation20], %s9775_s16, %s9775_s16, %s9776_s18  }
  0xca   :  { %9721 = dma.done.wait [#allocation3], 576  }
  0xcb   :  { %9722 = vsyncadd [#allocation3], 4294966720 }
  0xcc   :  { %9723 = dma.done.wait [#allocation5], 576  }
  0xcd   :  { %9724 = vsyncadd [#allocation5], 4294966720 }
  0xce   :  { %9725 = dma.done.wait [#allocation8], 8256  }
  0xcf   :  { %9726 = vsyncadd [#allocation8], 4294959040 }
  0xd0   :  { %9727 = dma.done.wait [#allocation11], 1152  }
  0xd1   :  { %9728 = vsyncadd [#allocation11], 4294966144 }
  0xd2   :  { %9729 = dma.done.wait [#allocation14], 2176  }
  0xd3   :  { %9730 = vsyncadd [#allocation14], 4294965120 }
  0xd4   :  { %9731 = dma.done.wait [#allocation17], 1664  }
  0xd5   :  { %9732 = vsyncadd [#allocation17], 4294965632 }
  0xd6   :  { %9733 = dma.done.wait [#allocation20], 512  }
  0xd7   :  { %9734 = vsyncadd [#allocation20], 4294966784  ;;  %v10047_v0 = vld [vmem:[%s9815_s5] sm:$0x77]  ;;  %v10050_v1 = vld [vmem:[%s9815_s5 + $0x8] sm:$0x77]  ;;  %v341_v5 = vlaneseq }
  0xd8   :  { %s9790_s19 = smov 16   ;;  %v10056_v2 = vcombine.high %v10050_v1, %v10050_v1  ;;  %v10060_v3 = vcombine.high %v10047_v0, %v10047_v0  ;;  %v11958_v4 = vmov 0   ;;  %s9792_s5 = smov 17   ;;  %v393_v9 = vld [vmem:[#allocation2 + $0x4] sm:$0xf]  ;;  %vm429_vm0 = vcmask 1040384  }
  0xd9   :  { %379 = vrot.lane.b32.xlu0 %v10047_v0, %s9790_s19  ;;  %477 = vmatprep.mubr.bf16.mxu0 %v11958_v4  ;;  %s9793_s30 = smov 15   ;;  %s9794_s4 = smov 1   ;;  %v351_v6 = vshrl.u32 %v341_v5, 7  ;;  %v10128_v7 = vand.u32 127, %v341_v5  ;;  %vm430_vm2 = vcmask 1041408   ;;  %v9799_v18 = vmov 65535  }
  0xda   :  { %385 = vrot.lane.b32.xlu1 %v10056_v2, %s9790_s19  ;;  %518 = vmatprep.mubr.bf16.mxu1 %v11958_v4  ;;  %s9795_s16 = smov 127   ;;  %s9796_s1 = smov 113   ;;  %v431_v19 = vsel %vm429_vm0, 4294967295, %v9799_v18  ;;  %v348_v24 = vld [vmem:[#allocation2] sm:$0xf]  ;;  %vm425_vm4 = vcmask 23552  }
  0xdb   :  { %9415 = vset.pattern.permute.xlu1 %v11958_v4  ;;  %9414 = vset.pattern.permute.xlu0 %v11958_v4  ;;  %s9797_s2 = smov 112   ;;  %s9798_s26 = smov 111   ;;  %v10130_v8 = vsub.s32 0, %v351_v6  ;;  %v10132_v10 = vsub.s32 1, %v351_v6  ;;  %vm387_vm1 = vcmp.lt.s32.totalorder %v10128_v7, 16  ;;  %v10138_v13 = vsub.s32 3, %v351_v6 }
  0xdc   :  { %v10140_v14 = vsub.s32 2, %v351_v6  ;;  %v10158_v28 = vsel %vm430_vm2, %v431_v19, 0  ;;  %vm343_vm3 = vcmp.lt.s32.totalorder %v10128_v7, 17  ;;  %v638_v50 = vld [vmem:[#allocation2 + $0x8] sm:$0xf]  ;;  %vm632_vm5 = vcmp.lt.s32.totalorder %v10128_v7, 15 }
  0xdd   :  { %381 = vrot.lane.b32.xlu0 %v10060_v3, %s9790_s19  ;;  %v10136_v12 = vrot.slane %v393_v9, %v10130_v8  ;;  %v10143_v16 = vrot.slane %v393_v9, %v10132_v10  ;;  %v10149_v22 = vrot.slane %v393_v9, %v10138_v13  ;;  %v10166_v33 = vrot.slane %v348_v24, %v10132_v10  ;;  %v8417_v52 = vld [vmem:[%s9820_s9 + $0x2] sm:$0x3]  ;;  %s12127_s28 = sld [smem:[#allocation32_spill]]  ;;  %s9802_s10 = smov 9  }
  0xde   :  { %383 = vrot.lane.b32.xlu1 %v10050_v1, %s9790_s19  ;;  %v10152_v23 = vrot.slane %v393_v9, %v10140_v14  ;;  %v10172_v39 = vrot.slane %v348_v24, %v10130_v8  ;;  %v10178_v44 = vrot.slane %v348_v24, %v10140_v14  ;;  %v10183_v48 = vrot.slane %v348_v24, %v10138_v13  ;;  %s12202_s24 = sld [smem:[#allocation36_spill]]  ;;  %s9803_s11 = smov 7  }
  0xdf   :  { %v10196_v58 = vrot.slane %v638_v50, %v10132_v10  ;;  %v10203_v5 = vrot.slane %v638_v50, %v10130_v8  ;;  %v10211_v18 = vrot.slane %v638_v50, %v10140_v14  ;;  %v10217_v24 = vrot.slane %v638_v50, %v10138_v13  ;;  %s12203_s14 = sld [smem:[#allocation37_spill]]  ;;  %s9804_s15 = smov 121  }
  0xe0   :  { %vm779_vm6 = vcmp.lt.s32.totalorder %v10128_v7, 1  ;;  %vm1033_vm7 = vcmp.lt.s32.totalorder %v10128_v7, 127  ;;  %vm1180_vm8 = vcmp.lt.s32.totalorder %v10128_v7, 113  ;;  %vm1327_vm9 = vcmp.lt.s32.totalorder %v10128_v7, 112  ;;  %s12204_s29 = sld [smem:[#allocation33_spill]]  ;;  %s9805_s22 = smov 119  }
  0xe1   :  { %333 = vrot.lane.b32.xlu0 %v10047_v0, %s9792_s5  ;;  %vm1474_vm10 = vcmp.lt.s32.totalorder %v10128_v7, 111  ;;  %vm1613_vm11 = vcmask 1043456   ;;  %vm1715_vm12 = vcmask 31744   ;;  %vm9801_vm13 = vmmov 0   ;;  %s9806_s21 = smov 120   ;;  %s12257_s8 = sld [smem:[#allocation38_spill]] }
  0xe2   :  { %335 = vrot.lane.b32.xlu1 %v10060_v3, %s9792_s5  ;;  %vm5295_vm14 = vcmask 64512   ;;  %s12258_s7 = sld [smem:[#allocation39_spill]]  ;;  %vm6676_vm15 = vcmask 261120   ;;  %vm6910_vm0 = vcmask 130048  }
  0xe3   :  { %s12259_s0 = sld [smem:[#allocation35_spill]] }
  0xe4   :  { %s12260_s25 = sld [smem:[#allocation34_spill]] }
  0xe5   :  { %339 = vrot.lane.b32.xlu0 %v10056_v2, %s9792_s5  ;;  %s12261_s27 = sld [smem:[#allocation43_spill]] }
  0xe6   :  { %337 = vrot.lane.b32.xlu1 %v10050_v1, %s9792_s5  ;;  %s12263_s6 = sld [smem:[#allocation45_spill]] }
  0xe7   :  { %s12264_s20 = sld [smem:[#allocation40_spill]] }
  0xe8   :  { %s12265_s12 = sld [smem:[#allocation46_spill]] }
  0xe9   :  { %624 = vrot.lane.b32.xlu0 %v10047_v0, %s9793_s30  ;;  %s12266_s23 = sld [smem:[#allocation41_spill]] }
  0xea   :  { %626 = vrot.lane.b32.xlu1 %v10060_v3, %s9793_s30 }
  0xed   :  { %630 = vrot.lane.b32.xlu0 %v10056_v2, %s9793_s30 }
  0xee   :  { %628 = vrot.lane.b32.xlu1 %v10050_v1, %s9793_s30 }
  0xf1   :  { %771 = vrot.lane.b32.xlu0 %v10047_v0, %s9794_s4 }
  0xf2   :  { %773 = vrot.lane.b32.xlu1 %v10060_v3, %s9794_s4 }
  0xf5   :  { %777 = vrot.lane.b32.xlu0 %v10056_v2, %s9794_s4 }
  0xf6   :  { %775 = vrot.lane.b32.xlu1 %v10050_v1, %s9794_s4 }
  0xf9   :  { %1027 = vrot.lane.b32.xlu0 %v10060_v3, %s9795_s16 }
  0xfa   :  { %1029 = vrot.lane.b32.xlu1 %v10050_v1, %s9795_s16 }
  0xfd   :  { %1025 = vrot.lane.b32.xlu0 %v10047_v0, %s9795_s16 }
  0xfe   :  { %1031 = vrot.lane.b32.xlu1 %v10056_v2, %s9795_s16 }
 0x101   :  { %1174 = vrot.lane.b32.xlu0 %v10060_v3, %s9796_s1 }
 0x102   :  { %1176 = vrot.lane.b32.xlu1 %v10050_v1, %s9796_s1 }
 0x105   :  { %1172 = vrot.lane.b32.xlu0 %v10047_v0, %s9796_s1 }
 0x106   :  { %1178 = vrot.lane.b32.xlu1 %v10056_v2, %s9796_s1 }
 0x109   :  { %1321 = vrot.lane.b32.xlu0 %v10060_v3, %s9797_s2 }
 0x10a   :  { %1323 = vrot.lane.b32.xlu1 %v10050_v1, %s9797_s2 }
 0x10d   :  { %1319 = vrot.lane.b32.xlu0 %v10047_v0, %s9797_s2 }
 0x10e   :  { %1325 = vrot.lane.b32.xlu1 %v10056_v2, %s9797_s2 }
 0x111   :  { %1468 = vrot.lane.b32.xlu0 %v10060_v3, %s9798_s26 }
 0x112   :  { %1470 = vrot.lane.b32.xlu1 %v10050_v1, %s9798_s26 }
 0x115   :  { %1466 = vrot.lane.b32.xlu0 %v10047_v0, %s9798_s26 }
 0x116   :  { %1472 = vrot.lane.b32.xlu1 %v10056_v2, %s9798_s26 }
 0x14b   :  { %v380_v11 = vpop.permute.xlu0 %379 }
 0x14c   :  { %v386_v15 = vpop.permute.xlu1 %385 }
 0x14d   :  { %v391_v17 = vsel %vm387_vm1, %v386_v15, %v380_v11 }
 0x14e   :  { %v415_v21 = vmul.f32 %v10136_v12, %v391_v17 }
 0x14f   :  { %v382_v20 = vpop.permute.xlu0 %381 }
 0x150   :  { %v390_v25 = vsel %vm387_vm1, %v380_v11, %v382_v20  ;;  %v384_v26 = vpop.permute.xlu1 %383  ;;  %v419_v30 = vpack.c.bf16 %v415_v21, %v415_v21 }
 0x151   :  { %v416_v27 = vmul.f32 %v10143_v16, %v390_v25  ;;  %v389_v29 = vsel %vm387_vm1, %v382_v20, %v384_v26  ;;  %v388_v31 = vsel %vm387_vm1, %v384_v26, %v386_v15  ;;  %v785_v26 = vld [vmem:[#allocation2 + $0xc] sm:$0xf] }
 0x152   :  { %v418_v35 = vmul.f32 %v10149_v22, %v388_v31  ;;  %v417_v36 = vmul.f32 %v10152_v23, %v389_v29  ;;  %v434_v43 = vand.u32 %v10158_v28, %v419_v30  ;;  %v378_v29 = vld [vmem:[%s9820_s9] sm:$0x3] }
 0x153   :  { %v334_v32 = vpop.permute.xlu0 %333  ;;  %v420_v34 = vpack.c.bf16 %v416_v27, %v416_v27 }
 0x154   :  { %v336_v37 = vpop.permute.xlu1 %335  ;;  %v422_v40 = vpack.c.bf16 %v418_v35, %v418_v35  ;;  %v421_v41 = vpack.c.bf16 %v417_v36, %v417_v36  ;;  %v10230_v36 = vrot.slane %v785_v26, %v10132_v10 }
 0x155   :  { %v437_v38 = vand.u32 %v10158_v28, %v420_v34  ;;  %v346_v42 = vsel %vm343_vm3, %v334_v32, %v336_v37 }
 0x156   :  { %v371_v45 = vmul.f32 %v10166_v33, %v346_v42  ;;  %v443_v47 = vand.u32 %v10158_v28, %v422_v40  ;;  %v440_v49 = vand.u32 %v10158_v28, %v421_v41 }
 0x157   :  { %459 = vmatprep.subr.bf16.mxu0 %v437_v38  ;;  %v340_v46 = vpop.permute.xlu0 %339 }
 0x158   :  { %v347_v51 = vsel %vm343_vm3, %v340_v46, %v334_v32  ;;  %460 = vmatpush1.bf16.msra.mxu0 %v434_v43  ;;  %v375_v53 = vpack.c.bf16 %v371_v45, %v371_v45  ;;  %500 = vmatprep.subr.bf16.mxu1 %v443_v47  ;;  %v338_v55 = vpop.permute.xlu1 %337  ;;  %v10237_v43 = vrot.slane %v785_v26, %v10130_v8 }
 0x159   :  { %v370_v54 = vmul.f32 %v10172_v39, %v347_v51  ;;  %v344_v56 = vsel %vm343_vm3, %v338_v55, %v340_v46  ;;  %v345_v57 = vsel %vm343_vm3, %v336_v37, %v338_v55  ;;  %501 = vmatpush1.bf16.msra.mxu1 %v440_v49  ;;  %v10245_v51 = vrot.slane %v785_v26, %v10140_v14 }
 0x15a   :  { %v372_v60 = vmul.f32 %v10178_v44, %v345_v57  ;;  %v373_v61 = vmul.f32 %v10183_v48, %v344_v56  ;;  %v534_v63 = vand.u32 %v10158_v28, %v375_v53  ;;  %v10251_v55 = vrot.slane %v785_v26, %v10138_v13  ;;  %v1039_v57 = vld [vmem:[#allocation2 + $0x14] sm:$0xf] }
 0x15b   :  { %v374_v59 = vpack.c.bf16 %v370_v54, %v370_v54  ;;  %8418 = vmatmul.mubr.msk.bf16.vlgmr.msra.gmra.mxu0 %vm425_vm4, %v8417_v52  ;;  %v625_v62 = vpop.permute.xlu0 %624  ;;  %12069 = vst [vmem:[#allocation48_spill] sm:$0xff] %v10245_v51  ;;  %v10276_v26 = vrot.slane %v1039_v57, %v10130_v8 }
 0x15c   :  { %574 = vmatprep.mubr.bf16.mxu0 %v11958_v4  ;;  %v376_v9 = vpack.c.bf16 %v372_v60, %v372_v60  ;;  %v377_v11 = vpack.c.bf16 %v373_v61, %v373_v61  ;;  %v627_v15 = vpop.permute.xlu1 %626  ;;  %8419 = vmatmul.mubr.msk.bf16.vlgmr.msra.gmra.mxu1 %vm425_vm4, %v8417_v52  ;;  %12070 = vst [vmem:[#allocation49_spill] sm:$0xff] %v10251_v55  ;;  %v8422_v60 = vld [vmem:[%s9820_s9 + $0x4] sm:$0x3] }
 0x15d   :  { %v531_v6 = vand.u32 %v10158_v28, %v374_v59  ;;  %556 = vmatprep.subr.bf16.mxu0 %v534_v63  ;;  %v635_v17 = vsel %vm632_vm5, %v625_v62, %v627_v15  ;;  %615 = vmatprep.mubr.bf16.mxu1 %v11958_v4  ;;  %v919_v61 = vpack.c.bf16 %v10060_v3, %v10060_v3 }
 0x15e   :  { %v537_v19 = vand.u32 %v10158_v28, %v376_v9  ;;  %v661_v20 = vmul.f32 %v10196_v58, %v635_v17  ;;  %v540_v25 = vand.u32 %v10158_v28, %v377_v11  ;;  %v921_v3 = vpack.c.bf16 %v10056_v2, %v10056_v2  ;;  %12072 = vst [vmem:[#allocation51_spill] sm:$0xff] %v10276_v26 }
 0x15f   :  { %557 = vmatpush1.bf16.msra.mxu0 %v531_v6  ;;  %v631_v21 = vpop.permute.xlu0 %630  ;;  %v918_v2 = vpack.c.bf16 %v10047_v0, %v10047_v0  ;;  %v920_v0 = vpack.c.bf16 %v10050_v1, %v10050_v1 }
 0x160   :  { %v636_v27 = vsel %vm632_vm5, %v631_v21, %v625_v62  ;;  %v665_v30 = vpack.c.bf16 %v661_v20, %v661_v20  ;;  %v629_v32 = vpop.permute.xlu1 %628  ;;  %597 = vmatprep.subr.bf16.mxu1 %v540_v25 }
 0x161   :  { %v660_v31 = vmul.f32 %v10203_v5, %v636_v27  ;;  %v633_v34 = vsel %vm632_vm5, %v629_v32, %v631_v21  ;;  %v634_v35 = vsel %vm632_vm5, %v627_v15, %v629_v32  ;;  %598 = vmatpush1.bf16.msra.mxu1 %v537_v19  ;;  %v10266_v15 = vrot.slane %v1039_v57, %v10132_v10 }
 0x162   :  { %v662_v38 = vmul.f32 %v10211_v18, %v634_v35  ;;  %v663_v40 = vmul.f32 %v10217_v24, %v633_v34  ;;  %v677_v42 = vand.u32 %v665_v30, %v10158_v28  ;;  %v931_v27 = vand.u32 %v919_v61, %v10158_v28 }
 0x163   :  { %v664_v37 = vpack.c.bf16 %v660_v31, %v660_v31  ;;  %8420 = vmatmul.mubr.msk.bf16.vlgmr.msra.gmra.mxu0 %vm425_vm4, %v378_v29  ;;  %v772_v41 = vpop.permute.xlu0 %771  ;;  %12071 = vst [vmem:[#allocation50_spill] sm:$0xff] %v10266_v15  ;;  %v10287_v35 = vrot.slane %v1039_v57, %v10140_v14 }
 0x164   :  { %717 = vmatprep.mubr.bf16.mxu0 %v11958_v4  ;;  %v666_v46 = vpack.c.bf16 %v662_v38, %v662_v38  ;;  %v667_v47 = vpack.c.bf16 %v663_v40, %v663_v40  ;;  %v774_v49 = vpop.permute.xlu1 %773  ;;  %8421 = vmatmul.mubr.msk.bf16.vlgmr.msra.gmra.mxu1 %vm425_vm4, %v378_v29 }
 0x165   :  { %v674_v45 = vand.u32 %v664_v37, %v10158_v28  ;;  %699 = vmatprep.subr.bf16.mxu0 %v677_v42  ;;  %v782_v50 = vsel %vm779_vm6, %v772_v41, %v774_v49  ;;  %758 = vmatprep.mubr.bf16.mxu1 %v11958_v4  ;;  %12073 = vst [vmem:[#allocation52_spill] sm:$0xff] %v10287_v35 }
 0x166   :  { %v680_v52 = vand.u32 %v666_v46, %v10158_v28  ;;  %v808_v53 = vmul.f32 %v10230_v36, %v782_v50  ;;  %v683_v56 = vand.u32 %v667_v47, %v10158_v28  ;;  %v10290_v37 = vrot.slane %v1039_v57, %v10138_v13  ;;  %v8425_v46 = vld [vmem:[%s9820_s9 + $0x6] sm:$0x3]  ;;  %v1186_v50 = vld [vmem:[#allocation2 + $0x18] sm:$0xf] }
 0x167   :  { %700 = vmatpush1.bf16.msra.mxu0 %v674_v45  ;;  %v778_v54 = vpop.permute.xlu0 %777  ;;  %v937_v45 = vand.u32 %v921_v3, %v10158_v28  ;;  %v934_v57 = vand.u32 %v920_v0, %v10158_v28  ;;  %v10319_v3 = vrot.slane %v1186_v50, %v10130_v8 }
 0x168   :  { %v783_v59 = vsel %vm779_vm6, %v778_v54, %v772_v41  ;;  %v812_v62 = vpack.c.bf16 %v808_v53, %v808_v53  ;;  %v776_v6 = vpop.permute.xlu1 %775  ;;  %740 = vmatprep.subr.bf16.mxu1 %v683_v56  ;;  %12074 = vst [vmem:[#allocation53_spill] sm:$0xff] %v10290_v37 }
 0x169   :  { %v807_v63 = vmul.f32 %v10237_v43, %v783_v59  ;;  %v780_v9 = vsel %vm779_vm6, %v776_v6, %v778_v54  ;;  %v781_v11 = vsel %vm779_vm6, %v774_v49, %v776_v6  ;;  %741 = vmatpush1.bf16.msra.mxu1 %v680_v52  ;;  %v928_v49 = vand.u32 %v918_v2, %v10158_v28 }
 0x16a   :  { %v809_v19 = vmul.f32 %v10245_v51, %v781_v11  ;;  %v810_v20 = vmul.f32 %v10251_v55, %v780_v9  ;;  %v824_v21 = vand.u32 %v812_v62, %v10158_v28  ;;  %v10313_v62 = vrot.slane %v1186_v50, %v10132_v10  ;;  %12076 = vst [vmem:[#allocation55_spill] sm:$0xff] %v10319_v3 }
 0x16b   :  { %v811_v17 = vpack.c.bf16 %v807_v63, %v807_v63  ;;  %8423 = vmatmul.mubr.msk.bf16.vlgmr.msra.gmra.mxu0 %vm425_vm4, %v8422_v60  ;;  %v1028_v25 = vpop.permute.xlu0 %1027 }
 0x16c   :  { %864 = vmatprep.mubr.bf16.mxu0 %v11958_v4  ;;  %v813_v30 = vpack.c.bf16 %v809_v19, %v809_v19  ;;  %v814_v31 = vpack.c.bf16 %v810_v20, %v810_v20  ;;  %8424 = vmatmul.mubr.msk.bf16.vlgmr.msra.gmra.mxu1 %vm425_vm4, %v8422_v60  ;;  %v1030_v32 = vpop.permute.xlu1 %1029  ;;  %12075 = vst [vmem:[#allocation54_spill] sm:$0xff] %v10313_v62 }
 0x16d   :  { %v821_v29 = vand.u32 %v811_v17, %v10158_v28  ;;  %846 = vmatprep.subr.bf16.mxu0 %v824_v21  ;;  %v1035_v34 = vsel %vm1033_vm7, %v1028_v25, %v1030_v32  ;;  %905 = vmatprep.mubr.bf16.mxu1 %v11958_v4 }
 0x16e   :  { %v827_v38 = vand.u32 %v813_v30, %v10158_v28  ;;  %v830_v40 = vand.u32 %v814_v31, %v10158_v28  ;;  %v1062_v41 = vmul.f32 %v10266_v15, %v1035_v34  ;;  %v8428_v30 = vld [vmem:[%s9820_s9 + $0x8] sm:$0x3] }
 0x16f   :  { %847 = vmatpush1.bf16.msra.mxu0 %v821_v29  ;;  %v1026_v42 = vpop.permute.xlu0 %1025 }
 0x170   :  { %v1036_v47 = vsel %vm1033_vm7, %v1026_v42, %v1028_v25  ;;  %953 = vmatprep.subr.bf16.mxu0 %v931_v27  ;;  %887 = vmatprep.subr.bf16.mxu1 %v830_v40  ;;  %v1066_v1 = vpack.c.bf16 %v1062_v41, %v1062_v41  ;;  %v1032_v53 = vpop.permute.xlu1 %1031  ;;  %v10326_v25 = vrot.slane %v1186_v50, %v10140_v14 }
 0x171   :  { %v1061_v52 = vmul.f32 %v10276_v26, %v1036_v47  ;;  %888 = vmatpush1.bf16.msra.mxu1 %v827_v38  ;;  %v1034_v54 = vsel %vm1033_vm7, %v1030_v32, %v1032_v53  ;;  %v1037_v56 = vsel %vm1033_vm7, %v1032_v53, %v1026_v42  ;;  %v10329_v27 = vrot.slane %v1186_v50, %v10138_v13  ;;  %v1333_v32 = vld [vmem:[#allocation2 + $0x1c] sm:$0xf] }
 0x172   :  { %v1063_v59 = vmul.f32 %v10287_v35, %v1034_v54  ;;  %v1064_v60 = vmul.f32 %v10290_v37, %v1037_v56  ;;  %994 = vmatprep.subr.bf16.mxu1 %v937_v45  ;;  %v1078_v6 = vand.u32 %v1066_v1, %v10158_v28  ;;  %12077 = vst [vmem:[#allocation56_spill] sm:$0xff] %v10326_v25 }
 0x173   :  { %8426 = vmatmul.mubr.msk.bf16.vlgmr.msra.gmra.mxu0 %vm425_vm4, %v8425_v46  ;;  %v1175_v61 = vpop.permute.xlu0 %1174  ;;  %v1065_v63 = vpack.c.bf16 %v1061_v52, %v1061_v52  ;;  %12078 = vst [vmem:[#allocation57_spill] sm:$0xff] %v10329_v27  ;;  %v10353_v54 = vrot.slane %v1333_v32, %v10130_v8 }
 0x174   :  { %954 = vmatpush1.bf16.msra.mxu0 %v928_v49  ;;  %971 = vmatprep.mubr.bf16.mxu0 %v11958_v4  ;;  %v1068_v9 = vpack.c.bf16 %v1064_v60, %v1064_v60  ;;  %v1177_v11 = vpop.permute.xlu1 %1176  ;;  %v1067_v17 = vpack.c.bf16 %v1063_v59, %v1063_v59  ;;  %v10347_v49 = vrot.slane %v1333_v32, %v10132_v10 }
 0x175   :  { %8427 = vmatmul.mubr.msk.bf16.vlgmr.msra.gmra.mxu1 %vm425_vm4, %v8425_v46  ;;  %v1182_v19 = vsel %vm1180_vm8, %v1175_v61, %v1177_v11  ;;  %1100 = vmatprep.subr.bf16.mxu0 %v1078_v6  ;;  %v1075_v29 = vand.u32 %v1065_v63, %v10158_v28  ;;  %12080 = vst [vmem:[#allocation59_spill] sm:$0xff] %v10353_v54 }
 0x176   :  { %995 = vmatpush1.bf16.msra.mxu1 %v934_v57  ;;  %v1209_v20 = vmul.f32 %v10313_v62, %v1182_v19  ;;  %1012 = vmatprep.mubr.bf16.mxu1 %v11958_v4  ;;  %v1084_v2 = vand.u32 %v1068_v9, %v10158_v28  ;;  %v1081_v40 = vand.u32 %v1067_v17, %v10158_v28  ;;  %v1480_v19 = vld [vmem:[#allocation2 + $0x20] sm:$0xf] }
 0x177   :  { %v1173_v21 = vpop.permute.xlu0 %1172  ;;  %12079 = vst [vmem:[#allocation58_spill] sm:$0xff] %v10347_v49  ;;  %v10363_v63 = vrot.slane %v1333_v32, %v10138_v13 }
 0x178   :  { %v1183_v31 = vsel %vm1180_vm8, %v1173_v21, %v1175_v61  ;;  %v1213_v34 = vpack.c.bf16 %v1209_v20, %v1209_v20  ;;  %v1179_v38 = vpop.permute.xlu1 %1178  ;;  %1141 = vmatprep.subr.bf16.mxu1 %v1084_v2  ;;  %v10360_v61 = vrot.slane %v1333_v32, %v10140_v14 }
 0x179   :  { %v1208_v0 = vmul.f32 %v10319_v3, %v1183_v31  ;;  %v1181_v41 = vsel %vm1180_vm8, %v1177_v11, %v1179_v38  ;;  %v1184_v42 = vsel %vm1180_vm8, %v1179_v38, %v1173_v21  ;;  %12082 = vst [vmem:[#allocation61_spill] sm:$0xff] %v10363_v63  ;;  %v8431_v11 = vld [vmem:[%s9820_s9 + $0xa] sm:$0x3]  ;;  %v10381_v38 = vrot.slane %v1480_v19, %v10132_v10 }
 0x17a   :  { %v1210_v45 = vmul.f32 %v10326_v25, %v1181_v41  ;;  %v1211_v46 = vmul.f32 %v10329_v27, %v1184_v42  ;;  %v1225_v50 = vand.u32 %v1213_v34, %v10158_v28  ;;  %12081 = vst [vmem:[#allocation60_spill] sm:$0xff] %v10360_v61 }
 0x17b   :  { %8429 = vmatmul.mubr.msk.bf16.vlgmr.msra.gmra.mxu0 %vm425_vm4, %v8428_v30  ;;  %v1322_v47 = vpop.permute.xlu0 %1321  ;;  %v1212_v1 = vpack.c.bf16 %v1208_v0, %v1208_v0  ;;  %12083 = vst [vmem:[#allocation62_spill] sm:$0xff] %v10381_v38 }
 0x17c   :  { %1101 = vmatpush1.bf16.msra.mxu0 %v1075_v29  ;;  %1118 = vmatprep.mubr.bf16.mxu0 %v11958_v4  ;;  %v1215_v52 = vpack.c.bf16 %v1211_v46, %v1211_v46  ;;  %v1324_v53 = vpop.permute.xlu1 %1323  ;;  %v1214_v56 = vpack.c.bf16 %v1210_v45, %v1210_v45  ;;  %v10387_v46 = vrot.slane %v1480_v19, %v10130_v8 }
 0x17d   :  { %8430 = vmatmul.mubr.msk.bf16.vlgmr.msra.gmra.mxu1 %vm425_vm4, %v8428_v30  ;;  %1247 = vmatprep.subr.bf16.mxu0 %v1225_v50  ;;  %v1329_v57 = vsel %vm1327_vm9, %v1322_v47, %v1324_v53  ;;  %v1222_v9 = vand.u32 %v1212_v1, %v10158_v28 }
 0x17e   :  { %1142 = vmatpush1.bf16.msra.mxu1 %v1081_v40  ;;  %1159 = vmatprep.mubr.bf16.mxu1 %v11958_v4  ;;  %v1356_v59 = vmul.f32 %v10347_v49, %v1329_v57  ;;  %v1231_v6 = vand.u32 %v1215_v52, %v10158_v28  ;;  %v1228_v29 = vand.u32 %v1214_v56, %v10158_v28  ;;  %v8434_v57 = vld [vmem:[%s9820_s9 + $0xc] sm:$0x3] }
 0x17f   :  { %v1320_v60 = vpop.permute.xlu0 %1319  ;;  %12084 = vst [vmem:[#allocation63_spill] sm:$0xff] %v10387_v46  ;;  %v10394_v52 = vrot.slane %v1480_v19, %v10140_v14 }
 0x180   :  { %v1330_v17 = vsel %vm1327_vm9, %v1320_v60, %v1322_v47  ;;  %v1360_v20 = vpack.c.bf16 %v1356_v59, %v1356_v59  ;;  %v1326_v2 = vpop.permute.xlu1 %1325  ;;  %1288 = vmatprep.subr.bf16.mxu1 %v1231_v6 }
 0x181   :  { %v1355_v21 = vmul.f32 %v10353_v54, %v1330_v17  ;;  %v1328_v30 = vsel %vm1327_vm9, %v1324_v53, %v1326_v2  ;;  %v1331_v31 = vsel %vm1327_vm9, %v1326_v2, %v1320_v60  ;;  %12085 = vst [vmem:[#allocation64_spill] sm:$0xff] %v10394_v52  ;;  %v10397_v53 = vrot.slane %v1480_v19, %v10138_v13 }
 0x182   :  { %v1357_v32 = vmul.f32 %v10360_v61, %v1328_v30  ;;  %v1358_v34 = vmul.f32 %v10363_v63, %v1331_v31  ;;  %v1372_v40 = vand.u32 %v1360_v20, %v10158_v28 }
 0x183   :  { %8432 = vmatmul.mubr.msk.bf16.vlgmr.msra.gmra.mxu0 %vm425_vm4, %v8431_v11  ;;  %v1469_v0 = vpop.permute.xlu0 %1468  ;;  %v1359_v41 = vpack.c.bf16 %v1355_v21, %v1355_v21  ;;  %12086 = vst [vmem:[#allocation65_spill] sm:$0xff] %v10397_v53 }
 0x184   :  { %1248 = vmatpush1.bf16.msra.mxu0 %v1222_v9  ;;  %1265 = vmatprep.mubr.bf16.mxu0 %v11958_v4  ;;  %v1362_v42 = vpack.c.bf16 %v1358_v34, %v1358_v34  ;;  %v1471_v45 = vpop.permute.xlu1 %1470  ;;  %v1361_v47 = vpack.c.bf16 %v1357_v32, %v1357_v32  ;;  %v8437_v32 = vld [vmem:[%s9820_s9 + $0xe] sm:$0x3] }
 0x185   :  { %8433 = vmatmul.mubr.msk.bf16.vlgmr.msra.gmra.mxu1 %vm425_vm4, %v8431_v11  ;;  %1394 = vmatprep.subr.bf16.mxu0 %v1372_v40  ;;  %v1476_v10 = vsel %vm1474_vm10, %v1469_v0, %v1471_v45  ;;  %v1369_v8 = vand.u32 %v1359_v41, %v10158_v28 }
 0x186   :  { %1289 = vmatpush1.bf16.msra.mxu1 %v1228_v29  ;;  %1306 = vmatprep.mubr.bf16.mxu1 %v11958_v4  ;;  %v1503_v50 = vmul.f32 %v10381_v38, %v1476_v10  ;;  %v1378_v56 = vand.u32 %v1362_v42, %v10158_v28  ;;  %v1375_v11 = vand.u32 %v1361_v47, %v10158_v28 }
 0x187   :  { %v1467_v1 = vpop.permute.xlu0 %1466 }
 0x188   :  { %v1477_v59 = vsel %vm1474_vm10, %v1467_v1, %v1469_v0  ;;  %v1507_v60 = vpack.c.bf16 %v1503_v50, %v1503_v50  ;;  %v1473_v9 = vpop.permute.xlu1 %1472  ;;  %1435 = vmatprep.subr.bf16.mxu1 %v1378_v56  ;;  %v8440_v0 = vld [vmem:[%s9820_s9 + $0x10] sm:$0x3]  ;;  %s12108_s9 = sld [smem:[#allocation29_spill]] }
 0x189   :  { %v1502_v6 = vmul.f32 %v10387_v46, %v1477_v59  ;;  %v1475_v14 = vsel %vm1474_vm10, %v1471_v45, %v1473_v9  ;;  %v1478_v13 = vsel %vm1474_vm10, %v1473_v9, %v1467_v1 }
 0x18a   :  { %v1504_v17 = vmul.f32 %v10394_v52, %v1475_v14  ;;  %v1505_v19 = vmul.f32 %v10397_v53, %v1478_v13  ;;  %v1519_v20 = vand.u32 %v1507_v60, %v10158_v28 }
 0x18b   :  { %8435 = vmatmul.mubr.msk.bf16.vlgmr.msra.gmra.mxu0 %vm425_vm4, %v8434_v57  ;;  %v1506_v21 = vpack.c.bf16 %v1502_v6, %v1502_v6 }
 0x18c   :  { %1395 = vmatpush1.bf16.msra.mxu0 %v1369_v8  ;;  %1412 = vmatprep.mubr.bf16.mxu0 %v11958_v4  ;;  %v1509_v2 = vpack.c.bf16 %v1505_v19, %v1505_v19  ;;  %v1508_v29 = vpack.c.bf16 %v1504_v17, %v1504_v17 }
 0x18d   :  { %8436 = vmatmul.mubr.msk.bf16.vlgmr.msra.gmra.mxu1 %vm425_vm4, %v8434_v57  ;;  %1541 = vmatprep.subr.bf16.mxu0 %v1519_v20  ;;  %v1516_v31 = vand.u32 %v1506_v21, %v10158_v28 }
 0x18e   :  { %1436 = vmatpush1.bf16.msra.mxu1 %v1375_v11  ;;  %1453 = vmatprep.mubr.bf16.mxu1 %v11958_v4  ;;  %v1525_v30 = vand.u32 %v1509_v2, %v10158_v28  ;;  %v1522_v34 = vand.u32 %v1508_v29, %v10158_v28 }
 0x190   :  { %1582 = vmatprep.subr.bf16.mxu1 %v1525_v30 }
 0x193   :  { %8438 = vmatmul.mubr.msk.bf16.vlgmr.msra.gmra.mxu0 %vm425_vm4, %v8437_v32 }
 0x194   :  { %1542 = vmatpush1.bf16.msra.mxu0 %v1516_v31  ;;  %1559 = vmatprep.mubr.bf16.mxu0 %v11958_v4 }
 0x195   :  { %8439 = vmatmul.mubr.msk.bf16.vlgmr.msra.gmra.mxu1 %vm425_vm4, %v8437_v32 }
 0x196   :  { %1583 = vmatpush1.bf16.msra.mxu1 %v1522_v34  ;;  %1600 = vmatprep.mubr.bf16.mxu1 %v11958_v4 }
 0x19b   :  { %8441 = vmatmul.mubr.msk.bf16.vlgmr.msra.gmra.mxu0 %vm425_vm4, %v8440_v0 }
 0x19c   :  { %1763 = vmatprep.mubr.bf16.mxu0 %v11958_v4 }
 0x19d   :  { %8442 = vmatmul.mubr.msk.bf16.vlgmr.msra.gmra.mxu1 %vm425_vm4, %v8440_v0 }
 0x19e   :  { %1804 = vmatprep.mubr.bf16.mxu1 %v11958_v4 }
 0x21b   :  { %v479_v28 = vpop.f32.mrf.mxu0 }
 0x21c   :  { %v520_v41 = vpop.f32.mrf.mxu1 }
 0x21d   :  { %v481_v40 = vpop.f32.mrf.mxu0 }
 0x21e   :  { %v522_v45 = vpop.f32.mrf.mxu1 }
 0x21f   :  { %v483_v42 = vpop.f32.mrf.mxu0 }
 0x220   :  { %v524_v10 = vpop.f32.mrf.mxu1 }
 0x221   :  { %v484_v47 = vpop.f32.mrf.mxu0 }
 0x222   :  { %v525_v50 = vpop.f32.mrf.mxu1 }
 0x223   :  { %v576_v1 = vpop.f32.mrf.mxu0 }
 0x224   :  { %v617_v8 = vpop.f32.mrf.mxu1 }
 0x225   :  { %v578_v56 = vpop.f32.mrf.mxu0 }
 0x226   :  { %v619_v59 = vpop.f32.mrf.mxu1  ;;  %v579_v54 = vadd.f32 %v578_v56, %v481_v40 }
 0x227   :  { %v580_v57 = vpop.f32.mrf.mxu0 }
 0x228   :  { %v621_v6 = vpop.f32.mrf.mxu1 }
 0x229   :  { %v581_v60 = vpop.f32.mrf.mxu0 }
 0x22a   :  { %v622_v9 = vpop.f32.mrf.mxu1 }
 0x22b   :  { %v719_v11 = vpop.f32.mrf.mxu0 }
 0x22c   :  { %v760_v13 = vpop.f32.mrf.mxu1 }
 0x22d   :  { %v721_v14 = vpop.f32.mrf.mxu0 }
 0x22e   :  { %v762_v19 = vpop.f32.mrf.mxu1  ;;  %v768_v25 = vadd.f32 %v721_v14, %v579_v54 }
 0x22f   :  { %v723_v17 = vpop.f32.mrf.mxu0 }
 0x230   :  { %v764_v21 = vpop.f32.mrf.mxu1 }
 0x231   :  { %v724_v20 = vpop.f32.mrf.mxu0 }
 0x232   :  { %v765_v2 = vpop.f32.mrf.mxu1 }
 0x233   :  { %v866_v29 = vpop.f32.mrf.mxu0 }
 0x235   :  { %v868_v30 = vpop.f32.mrf.mxu0  ;;  %v907_v31 = vpop.f32.mrf.mxu1 }
 0x237   :  { %v870_v32 = vpop.f32.mrf.mxu0  ;;  %v909_v34 = vpop.f32.mrf.mxu1 }
 0x239   :  { %v871_v0 = vpop.f32.mrf.mxu0  ;;  %v911_v42 = vpop.f32.mrf.mxu1 }
 0x23b   :  { %v912_v47 = vpop.f32.mrf.mxu1  ;;  %v973_v10 = vpop.f32.mrf.mxu0 }
 0x23c   :  { %v577_v47 = vadd.f32 %v576_v1, %v479_v28 }
 0x23d   :  { %v975_v50 = vpop.f32.mrf.mxu0  ;;  %v1014_v57 = vpop.f32.mrf.mxu1 }
 0x23e   :  { %v767_v27 = vadd.f32 %v719_v11, %v577_v47 }
 0x23f   :  { %v977_v60 = vpop.f32.mrf.mxu0  ;;  %v1016_v6 = vpop.f32.mrf.mxu1 }
 0x240   :  { %v618_v60 = vadd.f32 %v617_v8, %v520_v41  ;;  %v914_v3 = vadd.f32 %v866_v29, %v767_v27 }
 0x241   :  { %v978_v9 = vpop.f32.mrf.mxu0  ;;  %v1018_v4 = vpop.f32.mrf.mxu1 }
 0x242   :  { %v769_v62 = vadd.f32 %v760_v13, %v618_v60  ;;  %v1021_v35 = vadd.f32 %v973_v10, %v914_v3 }
 0x243   :  { %v1019_v17 = vpop.f32.mrf.mxu1  ;;  %v1120_v53 = vpop.f32.mrf.mxu0 }
 0x244   :  { %v620_v17 = vadd.f32 %v619_v59, %v522_v45  ;;  %v1168_v40 = vadd.f32 %v1120_v53, %v1021_v35 }
 0x245   :  { %v1122_v20 = vpop.f32.mrf.mxu0  ;;  %v1161_v21 = vpop.f32.mrf.mxu1 }
 0x247   :  { %v1124_v2 = vpop.f32.mrf.mxu0  ;;  %v1163_v52 = vpop.f32.mrf.mxu1 }
 0x249   :  { %v1125_v38 = vpop.f32.mrf.mxu0  ;;  %v1165_v46 = vpop.f32.mrf.mxu1 }
 0x24a   :  { %v770_v38 = vadd.f32 %v762_v19, %v620_v17  ;;  %v915_v46 = vadd.f32 %v868_v30, %v768_v25 }
 0x24b   :  { %v1166_v32 = vpop.f32.mrf.mxu1  ;;  %v1267_v63 = vpop.f32.mrf.mxu0 }
 0x24c   :  { %v916_v32 = vadd.f32 %v907_v31, %v769_v62  ;;  %v917_v28 = vadd.f32 %v909_v34, %v770_v38  ;;  %v1315_v54 = vadd.f32 %v1267_v63, %v1168_v40 }
 0x24d   :  { %v1269_v0 = vpop.f32.mrf.mxu0  ;;  %v1308_v42 = vpop.f32.mrf.mxu1 }
 0x24e   :  { %v1023_v1 = vadd.f32 %v1014_v57, %v916_v32  ;;  %v1024_v8 = vadd.f32 %v1016_v6, %v917_v28 }
 0x24f   :  { %v1271_v61 = vpop.f32.mrf.mxu0  ;;  %v1310_v49 = vpop.f32.mrf.mxu1 }
 0x250   :  { %v1022_v61 = vadd.f32 %v975_v50, %v915_v46  ;;  %v1170_v45 = vadd.f32 %v1161_v21, %v1023_v1  ;;  %v1171_v14 = vadd.f32 %v1163_v52, %v1024_v8 }
 0x251   :  { %v1272_v9 = vpop.f32.mrf.mxu0  ;;  %v1312_v4 = vpop.f32.mrf.mxu1 }
 0x252   :  { %v1169_v11 = vadd.f32 %v1122_v20, %v1022_v61  ;;  %v1317_v19 = vadd.f32 %v1308_v42, %v1170_v45  ;;  %v1318_v29 = vadd.f32 %v1310_v49, %v1171_v14  ;;  %v1648_v9 = vld [vmem:[%s9825_s13] sm:$0xf]  ;;  %s12109_s13 = sld [smem:[#allocation30_spill]] }
 0x253   :  { %v1313_v2 = vpop.f32.mrf.mxu1  ;;  %v1414_v37 = vpop.f32.mrf.mxu0 }
 0x254   :  { %v1316_v13 = vadd.f32 %v1269_v0, %v1169_v11  ;;  %v1462_v25 = vadd.f32 %v1414_v37, %v1315_v54 }
 0x255   :  { %v1416_v15 = vpop.f32.mrf.mxu0  ;;  %v1455_v26 = vpop.f32.mrf.mxu1 }
 0x256   :  { %v1463_v30 = vadd.f32 %v1416_v15, %v1316_v13  ;;  %v1464_v31 = vadd.f32 %v1455_v26, %v1317_v19 }
 0x257   :  { %v1418_v41 = vpop.f32.mrf.mxu0  ;;  %v1457_v56 = vpop.f32.mrf.mxu1 }
 0x258   :  { %v1465_v10 = vadd.f32 %v1457_v56, %v1318_v29 }
 0x259   :  { %v1419_v59 = vpop.f32.mrf.mxu0  ;;  %v1459_v27 = vpop.f32.mrf.mxu1 }
 0x25a   :  { %v1658_v27 = vld [vmem:[%s9830_s17] sm:$0xf]  ;;  %s12126_s17 = sld [smem:[#allocation31_spill]] }
 0x25b   :  { %v1460_v62 = vpop.f32.mrf.mxu1  ;;  %v1561_v3 = vpop.f32.mrf.mxu0 }
 0x25c   :  { %v1609_v34 = vadd.f32 %v1561_v3, %v1462_v25 }
 0x25d   :  { %v1563_v35 = vpop.f32.mrf.mxu0  ;;  %v1602_v53 = vpop.f32.mrf.mxu1 }
 0x25e   :  { %v1610_v50 = vadd.f32 %v1563_v35, %v1463_v30  ;;  %v1611_v57 = vadd.f32 %v1602_v53, %v1464_v31  ;;  %v1614_v52 = vsel %vm1613_vm11, %v1609_v34, 0.0 }
 0x25f   :  { %v1565_v63 = vpop.f32.mrf.mxu0  ;;  %v1604_v6 = vpop.f32.mrf.mxu1 }
 0x260   :  { %v1615_v20 = vsel %vm1613_vm11, %v1610_v50, 0.0  ;;  %v1612_v37 = vadd.f32 %v1604_v6, %v1465_v10  ;;  %v1617_v15 = vsel %vm1613_vm11, %v1611_v57, 0.0 }
 0x261   :  { %v1616_v21 = vadd.f32 %v1615_v20, %v1614_v52  ;;  %v1566_v0 = vpop.f32.mrf.mxu0  ;;  %v1606_v49 = vpop.f32.mrf.mxu1 }
 0x262   :  { %v1619_v47 = vsel %vm1613_vm11, %v1612_v37, 0.0 }
 0x263   :  { %v1607_v26 = vpop.f32.mrf.mxu1  ;;  %v1618_v42 = vadd.f32 %v1617_v15, %v1616_v21 }
 0x265   :  { %v1620_v60 = vadd.f32 %v1619_v47, %v1618_v42 }
 0x267   :  { %1621 = vadd.xlane.f32.xlu0 %v1620_v60 }
 0x27d   :  { %1651 = vperm.xlu0 %9414, %v1648_v9  }
 0x2f0   :  { %v1622_v4 = vpop.xlane.xlu0 %1621 }
 0x2f1   :  { %v1623_v17 = vmul.f32 0.001953125, %v1622_v4 }
 0x2f3   :  { %v1624_v2 = vsub.f32 %v1609_v34, %v1623_v17  ;;  %v1625_v38 = vsub.f32 %v1610_v50, %v1623_v17  ;;  %v1626_v46 = vsub.f32 %v1611_v57, %v1623_v17  ;;  %v1627_v32 = vsub.f32 %v1612_v37, %v1623_v17 }
 0x2f5   :  { %v1628_v28 = vmul.f32 %v1624_v2, %v1624_v2  ;;  %v1629_v61 = vmul.f32 %v1625_v38, %v1625_v38  ;;  %v1630_v1 = vmul.f32 %v1626_v46, %v1626_v46  ;;  %v1631_v40 = vmul.f32 %v1627_v32, %v1627_v32 }
 0x2f7   :  { %v1632_v41 = vsel %vm1613_vm11, %v1628_v28, 0.0  ;;  %v1633_v56 = vsel %vm1613_vm11, %v1629_v61, 0.0  ;;  %v1635_v11 = vsel %vm1613_vm11, %v1630_v1, 0.0  ;;  %v1637_v54 = vsel %vm1613_vm11, %v1631_v40, 0.0 }
 0x2f8   :  { %v1634_v8 = vadd.f32 %v1633_v56, %v1632_v41  ;;  %v1652_v62 = vpop.permute.xlu0 %1651 }
 0x2fa   :  { %v1636_v45 = vadd.f32 %v1635_v11, %v1634_v8  ;;  %v1714_v8 = vld [vmem:[#allocation4 + $0x2] sm:$0x3] }
 0x2fc   :  { %v1638_v59 = vadd.f32 %v1637_v54, %v1636_v45 }
 0x2fe   :  { %1639 = vadd.xlane.f32.xlu1 %v1638_v59 }
 0x30f   :  { %1661 = vperm.xlu1 %9415, %v1658_v27  }
 0x387   :  { %v1640_v14 = vpop.xlane.xlu1 %1639 }
 0x388   :  { %v1641_v13 = vmul.f32 0.001953125, %v1640_v14 }
 0x38a   :  { %v1642_v19 = vadd.f32 1e-05, %v1641_v13  ;;  %v12091_v13 = vmov 0  }
 0x38b   :  { %v1662_v31 = vpop.permute.xlu1 %1661 }
 0x38c   :  { %9437 = vrsqrt.f32 %v1642_v19 }
 0x399   :  { %v9438_v25 = vpop.eup %9437 }
 0x39a   :  { %v1644_v3 = vmul.f32 %v9438_v25, %v1624_v2  ;;  %v1645_v29 = vmul.f32 %v9438_v25, %v1625_v38  ;;  %v1647_v30 = vmul.f32 %v9438_v25, %v1627_v32  ;;  %v1646_v57 = vmul.f32 %v9438_v25, %v1626_v46 }
 0x39c   :  { %v1654_v34 = vmul.f32 %v1652_v62, %v1644_v3  ;;  %v1655_v35 = vmul.f32 %v1652_v62, %v1645_v29  ;;  %v1657_v53 = vmul.f32 %v1652_v62, %v1647_v30  ;;  %v1656_v20 = vmul.f32 %v1652_v62, %v1646_v57 }
 0x39e   :  { %v1664_v10 = vadd.f32 %v1662_v31, %v1654_v34  ;;  %v1667_v50 = vadd.f32 %v1662_v31, %v1657_v53  ;;  %v1665_v63 = vadd.f32 %v1662_v31, %v1655_v35  ;;  %v1666_v21 = vadd.f32 %v1662_v31, %v1656_v20 }
 0x3a0   :  { %v10440_v6 = vmax.f32 %v1664_v10, 0.0  ;;  %v10442_v52 = vmax.f32 %v1667_v50, 0.0  ;;  %v10448_v37 = vmax.f32 %v1665_v63, 0.0  ;;  %v10458_v0 = vmax.f32 %v1666_v21, 0.0  ;;  %v1692_v21 = vld [vmem:[#allocation4] sm:$0x3] }
 0x3a2   :  { %12087 = vst [vmem:[#allocation66_spill] sm:$0xff] %v10440_v6  ;;  %12088 = vst [vmem:[#allocation67_spill] sm:$0xff] %v10442_v52  ;;  %1678 = vrot.lane.b32.xlu0 %v10442_v52, %s9792_s5  ;;  %1693 = vrot.lane.b32.xlu1 %v10440_v6, %s9790_s19 }
 0x3a3   :  { %12089 = vst [vmem:[#allocation68_spill] sm:$0xff] %v10448_v37  ;;  %12090 = vst [vmem:[#allocation69_spill] sm:$0xff] %v10458_v0 }
 0x3a6   :  { %1910 = vrot.lane.b32.xlu0 %v10440_v6, %s9793_s30  ;;  %1695 = vrot.lane.b32.xlu1 %v10448_v37, %s9790_s19 }
 0x3aa   :  { %1916 = vrot.lane.b32.xlu0 %v10442_v52, %s9793_s30  ;;  %1699 = vrot.lane.b32.xlu1 %v10442_v52, %s9790_s19 }
 0x3ae   :  { %2033 = vrot.lane.b32.xlu0 %v10440_v6, %s9794_s4  ;;  %1697 = vrot.lane.b32.xlu1 %v10458_v0, %s9790_s19 }
 0x3b2   :  { %2039 = vrot.lane.b32.xlu0 %v10442_v52, %s9794_s4  ;;  %1672 = vrot.lane.b32.xlu1 %v10440_v6, %s9792_s5 }
 0x3b6   :  { %2263 = vrot.lane.b32.xlu0 %v10440_v6, %s9795_s16  ;;  %1674 = vrot.lane.b32.xlu1 %v10448_v37, %s9792_s5 }
 0x3ba   :  { %2267 = vrot.lane.b32.xlu0 %v10458_v0, %s9795_s16  ;;  %1676 = vrot.lane.b32.xlu1 %v10458_v0, %s9792_s5 }
 0x3be   :  { %2386 = vrot.lane.b32.xlu0 %v10440_v6, %s9796_s1  ;;  %1912 = vrot.lane.b32.xlu1 %v10448_v37, %s9793_s30 }
 0x3c2   :  { %2390 = vrot.lane.b32.xlu0 %v10458_v0, %s9796_s1  ;;  %1914 = vrot.lane.b32.xlu1 %v10458_v0, %s9793_s30 }
 0x3c6   :  { %2509 = vrot.lane.b32.xlu0 %v10440_v6, %s9797_s2  ;;  %2035 = vrot.lane.b32.xlu1 %v10448_v37, %s9794_s4 }
 0x3ca   :  { %2513 = vrot.lane.b32.xlu0 %v10458_v0, %s9797_s2  ;;  %2037 = vrot.lane.b32.xlu1 %v10458_v0, %s9794_s4 }
 0x3ce   :  { %2632 = vrot.lane.b32.xlu0 %v10440_v6, %s9798_s26  ;;  %2265 = vrot.lane.b32.xlu1 %v10448_v37, %s9795_s16 }
 0x3d2   :  { %2636 = vrot.lane.b32.xlu0 %v10458_v0, %s9798_s26  ;;  %2269 = vrot.lane.b32.xlu1 %v10442_v52, %s9795_s16 }
 0x3d6   :  { %2388 = vrot.lane.b32.xlu1 %v10448_v37, %s9796_s1 }
 0x3da   :  { %2392 = vrot.lane.b32.xlu1 %v10442_v52, %s9796_s1 }
 0x3de   :  { %2511 = vrot.lane.b32.xlu1 %v10448_v37, %s9797_s2 }
 0x3e2   :  { %2515 = vrot.lane.b32.xlu1 %v10442_v52, %s9797_s2 }
 0x3e6   :  { %2634 = vrot.lane.b32.xlu1 %v10448_v37, %s9798_s26 }
 0x3ea   :  { %2638 = vrot.lane.b32.xlu1 %v10442_v52, %s9798_s26 }
 0x414   :  { %v1679_v49 = vpop.permute.xlu0 %1678  ;;  %v1694_v15 = vpop.permute.xlu1 %1693 }
 0x418   :  { %v1911_v26 = vpop.permute.xlu0 %1910  ;;  %v1696_v42 = vpop.permute.xlu1 %1695 }
 0x419   :  { %v1703_v47 = vsel %vm387_vm1, %v1694_v15, %v1696_v42 }
 0x41a   :  { %v1706_v60 = vmul.f32 %v1703_v47, %v10143_v16 }
 0x41c   :  { %v1710_v9 = vpack.c.bf16 %v1706_v60, %v1706_v60  ;;  %v1917_v4 = vpop.permute.xlu0 %1916  ;;  %v1700_v17 = vpop.permute.xlu1 %1699 }
 0x41d   :  { %v1704_v2 = vsel %vm387_vm1, %v1700_v17, %v1694_v15  ;;  %v1921_v30 = vsel %vm632_vm5, %v1917_v4, %v1911_v26 }
 0x41e   :  { %v1705_v38 = vmul.f32 %v1704_v2, %v10136_v12  ;;  %8443 = vmatprep.subr.msk.bf16.mxu0 %vm430_vm2, %v1710_v9  ;;  %v1922_v10 = vmul.f32 %v1921_v30, %v10203_v5  ;;  %v2157_v30 = vpack.c.bf16 %v10448_v37, %v10448_v37 }
 0x420   :  { %v1709_v46 = vpack.c.bf16 %v1705_v38, %v1705_v38  ;;  %v1698_v32 = vpop.permute.xlu1 %1697  ;;  %v10523_v1 = vpop.permute.xlu0 %2033  ;;  %v1926_v60 = vpack.c.bf16 %v1922_v10, %v1922_v10 }
 0x421   :  { %v1701_v28 = vsel %vm387_vm1, %v1698_v32, %v1700_v17  ;;  %v1702_v61 = vsel %vm387_vm1, %v1696_v42, %v1698_v32 }
 0x422   :  { %v1707_v40 = vmul.f32 %v1702_v61, %v10152_v23  ;;  %v1708_v41 = vmul.f32 %v1701_v28, %v10149_v22  ;;  %v1720_v56 = vsel %vm430_vm2, %v1709_v46, 0 }
 0x423   :  { %1746 = vmatpush1.bf16.msra.mxu0 %v1720_v56  ;;  %v1936_v56 = vsel %vm430_vm2, %v1926_v60, 0 }
 0x424   :  { %v1711_v11 = vpack.c.bf16 %v1707_v40, %v1707_v40  ;;  %v1712_v45 = vpack.c.bf16 %v1708_v41, %v1708_v41  ;;  %v1673_v54 = vpop.permute.xlu1 %1672  ;;  %v2040_v19 = vpop.permute.xlu0 %2039 }
 0x425   :  { %v1683_v59 = vsel %vm343_vm3, %v1679_v49, %v1673_v54  ;;  %v2044_v2 = vsel %vm779_vm6, %v2040_v19, %v10523_v1 }
 0x426   :  { %v1684_v27 = vmul.f32 %v1683_v59, %v10172_v39  ;;  %8444 = vmatmul.mubr.msk.bf16.vlgmr.msra.gmra.mxu0 %vm1715_vm12, %v1714_v8  ;;  %8445 = vmatprep.subr.msk.bf16.mxu1 %vm430_vm2, %v1712_v45  ;;  %v1726_v14 = vsel %vm430_vm2, %v1711_v11, 0  ;;  %v2045_v61 = vmul.f32 %v2044_v2, %v10237_v43 }
 0x427   :  { %1787 = vmatpush1.bf16.msra.mxu1 %v1726_v14  ;;  %1860 = vmatprep.mubr.bf16.mxu0 %v12091_v13 }
 0x428   :  { %v1675_v25 = vpop.permute.xlu1 %1674  ;;  %v1688_v3 = vpack.c.bf16 %v1684_v27, %v1684_v27  ;;  %v10547_v50 = vpop.permute.xlu0 %2263  ;;  %v2049_v59 = vpack.c.bf16 %v2045_v61, %v2045_v61 }
 0x429   :  { %v1682_v62 = vsel %vm343_vm3, %v1673_v54, %v1675_v25 }
 0x42a   :  { %v1685_v29 = vmul.f32 %v1682_v62, %v10166_v33  ;;  %8446 = vmatmul.mubr.msk.bf16.vlgmr.msra.gmra.mxu1 %vm1715_vm12, %v1714_v8  ;;  %v1817_v20 = vsel %vm430_vm2, %v1688_v3, 0  ;;  %v1931_v8 = vld [vmem:[#allocation4 + $0x4] sm:$0x3] }
 0x42b   :  { %1901 = vmatprep.mubr.bf16.mxu1 %v12091_v13 }
 0x42c   :  { %v1689_v31 = vpack.c.bf16 %v1685_v29, %v1685_v29  ;;  %v1677_v34 = vpop.permute.xlu1 %1676  ;;  %v2268_v38 = vpop.permute.xlu0 %2267 }
 0x42d   :  { %v1680_v35 = vsel %vm343_vm3, %v1677_v34, %v1679_v49  ;;  %v1681_v53 = vsel %vm343_vm3, %v1675_v25, %v1677_v34 }
 0x42e   :  { %v1686_v57 = vmul.f32 %v1681_v53, %v10178_v44  ;;  %v1687_v63 = vmul.f32 %v1680_v35, %v10183_v48  ;;  %8447 = vmatprep.subr.msk.bf16.mxu0 %vm430_vm2, %v1689_v31  ;;  %v2059_v35 = vsel %vm430_vm2, %v2049_v59, 0  ;;  %v2156_v53 = vpack.c.bf16 %v10440_v6, %v10440_v6 }
 0x42f   :  { %1843 = vmatpush1.bf16.msra.mxu0 %v1817_v20 }
 0x430   :  { %v1690_v15 = vpack.c.bf16 %v1686_v57, %v1686_v57  ;;  %v1691_v42 = vpack.c.bf16 %v1687_v63, %v1687_v63  ;;  %v1913_v49 = vpop.permute.xlu1 %1912  ;;  %v10577_v27 = vpop.permute.xlu0 %2386 }
 0x431   :  { %v1920_v47 = vsel %vm632_vm5, %v1911_v26, %v1913_v49 }
 0x432   :  { %v1923_v9 = vmul.f32 %v1920_v47, %v10196_v58  ;;  %8448 = vmatmul.mubr.msk.bf16.vlgmr.msra.gmra.mxu0 %vm1715_vm12, %v1692_v21  ;;  %8449 = vmatprep.subr.msk.bf16.mxu1 %vm430_vm2, %v1691_v42  ;;  %v1823_v17 = vsel %vm430_vm2, %v1690_v15, 0  ;;  %v2159_v42 = vpack.c.bf16 %v10442_v52, %v10442_v52  ;;  %v12092_v47 = vld [vmem:[#allocation51_spill] sm:$0xff] }
 0x433   :  { %1884 = vmatpush1.bf16.msra.mxu1 %v1823_v17  ;;  %1979 = vmatprep.mubr.bf16.mxu0 %v12091_v13 }
 0x434   :  { %v1927_v46 = vpack.c.bf16 %v1923_v9, %v1923_v9  ;;  %v1915_v32 = vpop.permute.xlu1 %1914  ;;  %v2391_v10 = vpop.permute.xlu0 %2390  ;;  %v12093_v9 = vld [vmem:[#allocation50_spill] sm:$0xff] }
 0x435   :  { %v1918_v26 = vsel %vm632_vm5, %v1915_v32, %v1917_v4  ;;  %v1919_v28 = vsel %vm632_vm5, %v1913_v49, %v1915_v32  ;;  %v2158_v49 = vpack.c.bf16 %v10458_v0, %v10458_v0 }
 0x436   :  { %v1924_v40 = vmul.f32 %v1919_v28, %v10211_v18  ;;  %v1925_v41 = vmul.f32 %v1918_v26, %v10217_v24  ;;  %8450 = vmatmul.mubr.msk.bf16.vlgmr.msra.gmra.mxu1 %vm1715_vm12, %v1692_v21  ;;  %8451 = vmatprep.subr.msk.bf16.mxu0 %vm430_vm2, %v1927_v46  ;;  %v2166_v46 = vsel %vm430_vm2, %v2156_v53, 0 }
 0x437   :  { %1962 = vmatpush1.bf16.msra.mxu0 %v1936_v56  ;;  %2020 = vmatprep.mubr.bf16.mxu1 %v12091_v13  ;;  %v12094_v56 = vld [vmem:[#allocation52_spill] sm:$0xff] }
 0x438   :  { %v1928_v4 = vpack.c.bf16 %v1924_v40, %v1924_v40  ;;  %v1929_v11 = vpack.c.bf16 %v1925_v41, %v1925_v41  ;;  %v2036_v45 = vpop.permute.xlu1 %2035  ;;  %v2510_v40 = vpop.permute.xlu0 %2509 }
 0x439   :  { %v2043_v54 = vsel %vm779_vm6, %v10523_v1, %v2036_v45 }
 0x43a   :  { %v2046_v14 = vmul.f32 %v2043_v54, %v10230_v36  ;;  %8452 = vmatmul.mubr.msk.bf16.vlgmr.msra.gmra.mxu0 %vm1715_vm12, %v1931_v8  ;;  %8453 = vmatprep.subr.msk.bf16.mxu1 %vm430_vm2, %v1929_v11  ;;  %v1942_v25 = vsel %vm430_vm2, %v1928_v4, 0  ;;  %v12095_v4 = vld [vmem:[#allocation53_spill] sm:$0xff] }
 0x43b   :  { %2003 = vmatpush1.bf16.msra.mxu1 %v1942_v25  ;;  %2102 = vmatprep.mubr.bf16.mxu0 %v12091_v13  ;;  %v2161_v54 = vld [vmem:[#allocation4 + $0x8] sm:$0x3] }
 0x43c   :  { %v2050_v62 = vpack.c.bf16 %v2046_v14, %v2046_v14  ;;  %v2038_v3 = vpop.permute.xlu1 %2037 }
 0x43d   :  { %v2041_v29 = vsel %vm779_vm6, %v2038_v3, %v2040_v19  ;;  %v2042_v1 = vsel %vm779_vm6, %v2036_v45, %v2038_v3  ;;  %v2054_v19 = vld [vmem:[#allocation4 + $0x6] sm:$0x3]  ;;  %v2172_v45 = vsel %vm430_vm2, %v2158_v49, 0  ;;  %v2284_v49 = vld [vmem:[#allocation4 + $0xa] sm:$0x3] }
 0x43e   :  { %v2047_v31 = vmul.f32 %v2042_v1, %v10245_v51  ;;  %v2048_v34 = vmul.f32 %v2041_v29, %v10251_v55  ;;  %8454 = vmatmul.mubr.msk.bf16.vlgmr.msra.gmra.mxu1 %vm1715_vm12, %v1931_v8  ;;  %8455 = vmatprep.subr.msk.bf16.mxu0 %vm430_vm2, %v2050_v62  ;;  %v12096_v62 = vld [vmem:[#allocation55_spill] sm:$0xff]  ;;  %v12097_v29 = vld [vmem:[#allocation54_spill] sm:$0xff] }
 0x43f   :  { %2085 = vmatpush1.bf16.msra.mxu0 %v2059_v35  ;;  %2143 = vmatprep.mubr.bf16.mxu1 %v12091_v13 }
 0x440   :  { %v2051_v57 = vpack.c.bf16 %v2047_v31, %v2047_v31  ;;  %v2052_v63 = vpack.c.bf16 %v2048_v34, %v2048_v34  ;;  %8459 = vmatprep.subr.msk.bf16.mxu0 %vm430_vm2, %v2157_v30  ;;  %v2266_v20 = vpop.permute.xlu1 %2265  ;;  %v2514_v31 = vpop.permute.xlu0 %2513 }
 0x441   :  { %v2272_v21 = vsel %vm1033_vm7, %v2266_v20, %v2268_v38  ;;  %v2273_v15 = vsel %vm1033_vm7, %v10547_v50, %v2266_v20 }
 0x442   :  { %v2275_v60 = vmul.f32 %v2273_v15, %v12092_v47  ;;  %v2276_v17 = vmul.f32 %v2272_v21, %v12093_v9  ;;  %8456 = vmatmul.mubr.msk.bf16.vlgmr.msra.gmra.mxu0 %vm1715_vm12, %v2054_v19  ;;  %8457 = vmatprep.subr.msk.bf16.mxu1 %vm430_vm2, %v2052_v63  ;;  %v2065_v2 = vsel %vm430_vm2, %v2051_v57, 0  ;;  %v12098_v63 = vld [vmem:[#allocation56_spill] sm:$0xff]  ;;  %v12099_v21 = vld [vmem:[#allocation57_spill] sm:$0xff] }
 0x443   :  { %2126 = vmatpush1.bf16.msra.mxu1 %v2065_v2  ;;  %2192 = vmatpush1.bf16.msra.mxu0 %v2166_v46 }
 0x444   :  { %v2280_v32 = vpack.c.bf16 %v2276_v17, %v2276_v17  ;;  %8461 = vmatprep.subr.msk.bf16.mxu1 %vm430_vm2, %v2159_v42  ;;  %v2270_v26 = vpop.permute.xlu1 %2269  ;;  %2209 = vmatprep.mubr.bf16.mxu0 %v12091_v13  ;;  %v2279_v41 = vpack.c.bf16 %v2275_v60, %v2275_v60  ;;  %v2633_v2 = vpop.permute.xlu0 %2632 }
 0x445   :  { %v2271_v28 = vsel %vm1033_vm7, %v2268_v38, %v2270_v26  ;;  %v2274_v61 = vsel %vm1033_vm7, %v2270_v26, %v10547_v50 }
 0x446   :  { %v2277_v8 = vmul.f32 %v2271_v28, %v12094_v56  ;;  %v2278_v11 = vmul.f32 %v2274_v61, %v12095_v4  ;;  %8458 = vmatmul.mubr.msk.bf16.vlgmr.msra.gmra.mxu1 %vm1715_vm12, %v2054_v19  ;;  %8463 = vmatprep.subr.msk.bf16.mxu0 %vm430_vm2, %v2280_v32  ;;  %v2289_v30 = vsel %vm430_vm2, %v2279_v41, 0  ;;  %v12100_v32 = vld [vmem:[#allocation59_spill] sm:$0xff]  ;;  %v12101_v28 = vld [vmem:[#allocation58_spill] sm:$0xff] }
 0x447   :  { %2233 = vmatpush1.bf16.msra.mxu1 %v2172_v45  ;;  %2250 = vmatprep.mubr.bf16.mxu1 %v12091_v13 }
 0x448   :  { %v2282_v38 = vpack.c.bf16 %v2278_v11, %v2278_v11  ;;  %v2389_v59 = vpop.permute.xlu1 %2388  ;;  %v2281_v25 = vpack.c.bf16 %v2277_v8, %v2277_v8 }
 0x449   :  { %v2395_v50 = vsel %vm1180_vm8, %v2389_v59, %v2391_v10  ;;  %v2396_v14 = vsel %vm1180_vm8, %v10577_v27, %v2389_v59  ;;  %v12102_v59 = vld [vmem:[#allocation60_spill] sm:$0xff] }
 0x44a   :  { %v2398_v3 = vmul.f32 %v2396_v14, %v12096_v62  ;;  %v2399_v1 = vmul.f32 %v2395_v50, %v12097_v29  ;;  %8460 = vmatmul.mubr.msk.bf16.vlgmr.msra.gmra.mxu0 %vm1715_vm12, %v2161_v54  ;;  %8465 = vmatprep.subr.msk.bf16.mxu1 %vm430_vm2, %v2282_v38  ;;  %v2295_v42 = vsel %vm430_vm2, %v2281_v25, 0  ;;  %v12103_v14 = vld [vmem:[#allocation61_spill] sm:$0xff] }
 0x44b   :  { %2315 = vmatpush1.bf16.msra.mxu0 %v2289_v30  ;;  %2332 = vmatprep.mubr.bf16.mxu0 %v12091_v13  ;;  %v2637_v30 = vpop.permute.xlu0 %2636 }
 0x44c   :  { %v2403_v34 = vpack.c.bf16 %v2399_v1, %v2399_v1  ;;  %v2393_v35 = vpop.permute.xlu1 %2392  ;;  %v2402_v57 = vpack.c.bf16 %v2398_v3, %v2398_v3  ;;  %v2407_v1 = vld [vmem:[#allocation4 + $0xc] sm:$0x3] }
 0x44d   :  { %v2394_v53 = vsel %vm1180_vm8, %v2391_v10, %v2393_v35  ;;  %v2397_v19 = vsel %vm1180_vm8, %v2393_v35, %v10577_v27 }
 0x44e   :  { %v2400_v20 = vmul.f32 %v2394_v53, %v12098_v63  ;;  %v2401_v15 = vmul.f32 %v2397_v19, %v12099_v21  ;;  %8462 = vmatmul.mubr.msk.bf16.vlgmr.msra.gmra.mxu1 %vm1715_vm12, %v2161_v54  ;;  %8467 = vmatprep.subr.msk.bf16.mxu0 %vm430_vm2, %v2403_v34  ;;  %v2412_v41 = vsel %vm430_vm2, %v2402_v57, 0  ;;  %v12104_v19 = vld [vmem:[#allocation63_spill] sm:$0xff] }
 0x44f   :  { %2356 = vmatpush1.bf16.msra.mxu1 %v2295_v42  ;;  %2373 = vmatprep.mubr.bf16.mxu1 %v12091_v13 }
 0x450   :  { %v2405_v10 = vpack.c.bf16 %v2401_v15, %v2401_v15  ;;  %v2512_v60 = vpop.permute.xlu1 %2511  ;;  %v2404_v46 = vpack.c.bf16 %v2400_v20, %v2400_v20  ;;  %v12105_v20 = vld [vmem:[#allocation62_spill] sm:$0xff] }
 0x451   :  { %v2518_v27 = vsel %vm1327_vm9, %v2512_v60, %v2514_v31  ;;  %v2519_v17 = vsel %vm1327_vm9, %v2510_v40, %v2512_v60 }
 0x452   :  { %v2521_v26 = vmul.f32 %v2519_v17, %v12100_v32  ;;  %v2522_v61 = vmul.f32 %v2518_v27, %v12101_v28  ;;  %8464 = vmatmul.mubr.msk.bf16.vlgmr.msra.gmra.mxu0 %vm1715_vm12, %v2284_v49  ;;  %8469 = vmatprep.subr.msk.bf16.mxu1 %vm430_vm2, %v2405_v10  ;;  %v2418_v3 = vsel %vm430_vm2, %v2404_v46, 0  ;;  %v12106_v46 = vld [vmem:[#allocation64_spill] sm:$0xff] }
 0x453   :  { %2438 = vmatpush1.bf16.msra.mxu0 %v2412_v41  ;;  %2455 = vmatprep.mubr.bf16.mxu0 %v12091_v13 }
 0x454   :  { %v2526_v8 = vpack.c.bf16 %v2522_v61, %v2522_v61  ;;  %v2516_v11 = vpop.permute.xlu1 %2515  ;;  %v2525_v38 = vpack.c.bf16 %v2521_v26, %v2521_v26  ;;  %v12107_v61 = vld [vmem:[#allocation65_spill] sm:$0xff] }
 0x455   :  { %v2517_v45 = vsel %vm1327_vm9, %v2514_v31, %v2516_v11  ;;  %v2520_v54 = vsel %vm1327_vm9, %v2516_v11, %v2510_v40  ;;  %v2530_v11 = vld [vmem:[#allocation4 + $0xe] sm:$0x3] }
 0x456   :  { %v2523_v50 = vmul.f32 %v2517_v45, %v12102_v59  ;;  %v2524_v25 = vmul.f32 %v2520_v54, %v12103_v14  ;;  %8466 = vmatmul.mubr.msk.bf16.vlgmr.msra.gmra.mxu1 %vm1715_vm12, %v2284_v49  ;;  %8471 = vmatprep.subr.msk.bf16.mxu0 %vm430_vm2, %v2526_v8  ;;  %v2535_v42 = vsel %vm430_vm2, %v2525_v38, 0 }
 0x457   :  { %2479 = vmatpush1.bf16.msra.mxu1 %v2418_v3  ;;  %2496 = vmatprep.mubr.bf16.mxu1 %v12091_v13 }
 0x458   :  { %v2528_v31 = vpack.c.bf16 %v2524_v25, %v2524_v25  ;;  %v2635_v34 = vpop.permute.xlu1 %2634  ;;  %v2527_v53 = vpack.c.bf16 %v2523_v50, %v2523_v50  ;;  %v2653_v50 = vld [vmem:[#allocation4 + $0x10] sm:$0x3] }
 0x459   :  { %v2641_v40 = vsel %vm1474_vm10, %v2635_v34, %v2637_v30  ;;  %v2642_v35 = vsel %vm1474_vm10, %v2633_v2, %v2635_v34 }
 0x45a   :  { %v2644_v57 = vmul.f32 %v2642_v35, %v12104_v19  ;;  %v2645_v15 = vmul.f32 %v2641_v40, %v12105_v20  ;;  %8468 = vmatmul.mubr.msk.bf16.vlgmr.msra.gmra.mxu0 %vm1715_vm12, %v2407_v1  ;;  %8473 = vmatprep.subr.msk.bf16.mxu1 %vm430_vm2, %v2528_v31  ;;  %v2541_v8 = vsel %vm430_vm2, %v2527_v53, 0 }
 0x45b   :  { %2561 = vmatpush1.bf16.msra.mxu0 %v2535_v42  ;;  %2578 = vmatprep.mubr.bf16.mxu0 %v12091_v13 }
 0x45c   :  { %v2649_v49 = vpack.c.bf16 %v2645_v15, %v2645_v15  ;;  %v2639_v10 = vpop.permute.xlu1 %2638  ;;  %v2648_v17 = vpack.c.bf16 %v2644_v57, %v2644_v57 }
 0x45d   :  { %v2640_v60 = vsel %vm1474_vm10, %v2637_v30, %v2639_v10  ;;  %v2643_v27 = vsel %vm1474_vm10, %v2639_v10, %v2633_v2 }
 0x45e   :  { %v2646_v26 = vmul.f32 %v2640_v60, %v12106_v46  ;;  %v2647_v41 = vmul.f32 %v2643_v27, %v12107_v61  ;;  %8470 = vmatmul.mubr.msk.bf16.vlgmr.msra.gmra.mxu1 %vm1715_vm12, %v2407_v1  ;;  %8475 = vmatprep.subr.msk.bf16.mxu0 %vm430_vm2, %v2649_v49  ;;  %v2658_v2 = vsel %vm430_vm2, %v2648_v17, 0 }
 0x45f   :  { %2602 = vmatpush1.bf16.msra.mxu1 %v2541_v8  ;;  %2619 = vmatprep.mubr.bf16.mxu1 %v12091_v13 }
 0x460   :  { %v2651_v45 = vpack.c.bf16 %v2647_v41, %v2647_v41  ;;  %v2650_v54 = vpack.c.bf16 %v2646_v26, %v2646_v26 }
 0x462   :  { %8472 = vmatmul.mubr.msk.bf16.vlgmr.msra.gmra.mxu0 %vm1715_vm12, %v2530_v11  ;;  %8477 = vmatprep.subr.msk.bf16.mxu1 %vm430_vm2, %v2651_v45  ;;  %v2664_v38 = vsel %vm430_vm2, %v2650_v54, 0 }
 0x463   :  { %2684 = vmatpush1.bf16.msra.mxu0 %v2658_v2  ;;  %2701 = vmatprep.mubr.bf16.mxu0 %v12091_v13 }
 0x466   :  { %8474 = vmatmul.mubr.msk.bf16.vlgmr.msra.gmra.mxu1 %vm1715_vm12, %v2530_v11 }
 0x467   :  { %2725 = vmatpush1.bf16.msra.mxu1 %v2664_v38  ;;  %2742 = vmatprep.mubr.bf16.mxu1 %v12091_v13 }
 0x46a   :  { %8476 = vmatmul.mubr.msk.bf16.vlgmr.msra.gmra.mxu0 %vm1715_vm12, %v2653_v50 }
 0x46b   :  { %2903 = vmatprep.mubr.bf16.mxu0 %v12091_v13 }
 0x46e   :  { %8478 = vmatmul.mubr.msk.bf16.vlgmr.msra.gmra.mxu1 %vm1715_vm12, %v2653_v50 }
 0x46f   :  { %2944 = vmatprep.mubr.bf16.mxu1 %v12091_v13 }
 0x4e6   :  { %v1765_v25 = vpop.f32.mrf.mxu0 }
 0x4e8   :  { %v1767_v3 = vpop.f32.mrf.mxu0 }
 0x4ea   :  { %v1769_v1 = vpop.f32.mrf.mxu0  ;;  %v1806_v30 = vpop.f32.mrf.mxu1 }
 0x4ec   :  { %v1770_v31 = vpop.f32.mrf.mxu0  ;;  %v1808_v34 = vpop.f32.mrf.mxu1 }
 0x4ee   :  { %v1810_v40 = vpop.f32.mrf.mxu1 }
 0x4f0   :  { %v1811_v35 = vpop.f32.mrf.mxu1 }
 0x4f2   :  { %v1862_v53 = vpop.f32.mrf.mxu0 }
 0x4f4   :  { %v1864_v57 = vpop.f32.mrf.mxu0 }
 0x4f5   :  { %v1865_v32 = vadd.f32 %v1864_v57, %v1767_v3 }
 0x4f6   :  { %v1866_v15 = vpop.f32.mrf.mxu0  ;;  %v1903_v42 = vpop.f32.mrf.mxu1 }
 0x4f7   :  { %v1904_v29 = vadd.f32 %v1903_v42, %v1806_v30 }
 0x4f8   :  { %v1867_v49 = vpop.f32.mrf.mxu0  ;;  %v1905_v10 = vpop.f32.mrf.mxu1 }
 0x4fa   :  { %v1907_v60 = vpop.f32.mrf.mxu1  ;;  %v1981_v27 = vpop.f32.mrf.mxu0 }
 0x4fc   :  { %v1908_v17 = vpop.f32.mrf.mxu1  ;;  %v1983_v26 = vpop.f32.mrf.mxu0 }
 0x4fe   :  { %v1985_v41 = vpop.f32.mrf.mxu0  ;;  %v2022_v8 = vpop.f32.mrf.mxu1 }
 0x4ff   :  { %v2031_v56 = vadd.f32 %v2022_v8, %v1904_v29 }
 0x500   :  { %v1986_v11 = vpop.f32.mrf.mxu0  ;;  %v2024_v45 = vpop.f32.mrf.mxu1 }
 0x502   :  { %v2026_v54 = vpop.f32.mrf.mxu1  ;;  %v2104_v2 = vpop.f32.mrf.mxu0 }
 0x504   :  { %v2027_v38 = vpop.f32.mrf.mxu1  ;;  %v2106_v50 = vpop.f32.mrf.mxu0 }
 0x506   :  { %v2108_v1 = vpop.f32.mrf.mxu0  ;;  %v2145_v31 = vpop.f32.mrf.mxu1 }
 0x507   :  { %v2154_v47 = vadd.f32 %v2145_v31, %v2031_v56 }
 0x508   :  { %v2109_v40 = vpop.f32.mrf.mxu0  ;;  %v2147_v35 = vpop.f32.mrf.mxu1 }
 0x50a   :  { %v2149_v15 = vpop.f32.mrf.mxu1  ;;  %v2211_v52 = vpop.f32.mrf.mxu0 }
 0x50b   :  { %v1863_v15 = vadd.f32 %v1862_v53, %v1765_v25 }
 0x50c   :  { %v2150_v49 = vpop.f32.mrf.mxu1  ;;  %v2213_v0 = vpop.f32.mrf.mxu0 }
 0x50e   :  { %v2215_v60 = vpop.f32.mrf.mxu0  ;;  %v2252_v37 = vpop.f32.mrf.mxu1 }
 0x50f   :  { %v2029_v60 = vadd.f32 %v1981_v27, %v1863_v15 }
 0x510   :  { %v2216_v17 = vpop.f32.mrf.mxu0  ;;  %v2254_v6 = vpop.f32.mrf.mxu1 }
 0x511   :  { %v2152_v21 = vadd.f32 %v2104_v2, %v2029_v60 }
 0x512   :  { %v2256_v41 = vpop.f32.mrf.mxu1  ;;  %v2334_v46 = vpop.f32.mrf.mxu0 }
 0x513   :  { %v2030_v41 = vadd.f32 %v1983_v26, %v1865_v32  ;;  %v2259_v9 = vadd.f32 %v2211_v52, %v2152_v21 }
 0x514   :  { %v2257_v11 = vpop.f32.mrf.mxu1  ;;  %v2336_v20 = vpop.f32.mrf.mxu0 }
 0x516   :  { %v2338_v54 = vpop.f32.mrf.mxu0  ;;  %v2375_v61 = vpop.f32.mrf.mxu1 }
 0x517   :  { %v1906_v54 = vadd.f32 %v1905_v10, %v1808_v34 }
 0x518   :  { %v2339_v38 = vpop.f32.mrf.mxu0  ;;  %v2377_v19 = vpop.f32.mrf.mxu1 }
 0x519   :  { %v2153_v38 = vadd.f32 %v2106_v50, %v2030_v41 }
 0x51a   :  { %v2379_v1 = vpop.f32.mrf.mxu1  ;;  %v2457_v59 = vpop.f32.mrf.mxu0 }
 0x51b   :  { %v2260_v25 = vadd.f32 %v2213_v0, %v2153_v38 }
 0x51c   :  { %v2380_v40 = vpop.f32.mrf.mxu1  ;;  %v2459_v28 = vpop.f32.mrf.mxu0 }
 0x51d   :  { %v2032_v40 = vadd.f32 %v2024_v45, %v1906_v54  ;;  %v2383_v27 = vadd.f32 %v2336_v20, %v2260_v25 }
 0x51e   :  { %v2461_v14 = vpop.f32.mrf.mxu0  ;;  %v2498_v49 = vpop.f32.mrf.mxu1 }
 0x51f   :  { %v2382_v14 = vadd.f32 %v2334_v46, %v2259_v9  ;;  %v2155_v57 = vadd.f32 %v2147_v35, %v2032_v40  ;;  %v2506_v34 = vadd.f32 %v2459_v28, %v2383_v27 }
 0x520   :  { %v2462_v63 = vpop.f32.mrf.mxu0  ;;  %v2500_v17 = vpop.f32.mrf.mxu1 }
 0x521   :  { %v2261_v63 = vadd.f32 %v2252_v37, %v2154_v47  ;;  %v2505_v30 = vadd.f32 %v2457_v59, %v2382_v14  ;;  %v2262_v26 = vadd.f32 %v2254_v6, %v2155_v57 }
 0x522   :  { %v2502_v11 = vpop.f32.mrf.mxu1  ;;  %v2580_v62 = vpop.f32.mrf.mxu0 }
 0x523   :  { %v2384_v2 = vadd.f32 %v2375_v61, %v2261_v63  ;;  %v2628_v29 = vadd.f32 %v2580_v62, %v2505_v30  ;;  %v2385_v21 = vadd.f32 %v2377_v19, %v2262_v26  ;;  %v2789_v11 = vld [vmem:[%s12108_s9] sm:$0xf] }
 0x524   :  { %v2503_v1 = vpop.f32.mrf.mxu1  ;;  %v2582_v4 = vpop.f32.mrf.mxu0 }
 0x525   :  { %v2507_v8 = vadd.f32 %v2498_v49, %v2384_v2  ;;  %v2629_v45 = vadd.f32 %v2582_v4, %v2506_v34  ;;  %v2508_v46 = vadd.f32 %v2500_v17, %v2385_v21 }
 0x526   :  { %v2584_v53 = vpop.f32.mrf.mxu0  ;;  %v2621_v3 = vpop.f32.mrf.mxu1 }
 0x527   :  { %v2630_v50 = vadd.f32 %v2621_v3, %v2507_v8 }
 0x528   :  { %v2585_v32 = vpop.f32.mrf.mxu0  ;;  %v2623_v42 = vpop.f32.mrf.mxu1 }
 0x529   :  { %v2631_v59 = vadd.f32 %v2623_v42, %v2508_v46 }
 0x52a   :  { %v2625_v10 = vpop.f32.mrf.mxu1  ;;  %v2703_v52 = vpop.f32.mrf.mxu0 }
 0x52b   :  { %v2751_v56 = vadd.f32 %v2703_v52, %v2628_v29  ;;  %v2799_v29 = vld [vmem:[%s12109_s13] sm:$0xf] }
 0x52c   :  { %v2626_v0 = vpop.f32.mrf.mxu1  ;;  %v2705_v9 = vpop.f32.mrf.mxu0 }
 0x52d   :  { %v2752_v31 = vadd.f32 %v2705_v9, %v2629_v45  ;;  %v2755_v6 = vsel %vm1613_vm11, %v2751_v56, 0.0 }
 0x52e   :  { %v2707_v37 = vpop.f32.mrf.mxu0  ;;  %v2744_v47 = vpop.f32.mrf.mxu1 }
 0x52f   :  { %v2756_v28 = vsel %vm1613_vm11, %v2752_v31, 0.0  ;;  %v2753_v62 = vadd.f32 %v2744_v47, %v2630_v50 }
 0x530   :  { %v2757_v20 = vadd.f32 %v2756_v28, %v2755_v6  ;;  %v2708_v61 = vpop.f32.mrf.mxu0  ;;  %v2746_v19 = vpop.f32.mrf.mxu1 }
 0x531   :  { %v2758_v4 = vsel %vm1613_vm11, %v2753_v62, 0.0  ;;  %v2754_v35 = vadd.f32 %v2746_v19, %v2631_v59 }
 0x532   :  { %v2748_v15 = vpop.f32.mrf.mxu1  ;;  %v2759_v49 = vadd.f32 %v2758_v4, %v2757_v20 }
 0x533   :  { %v2760_v60 = vsel %vm1613_vm11, %v2754_v35, 0.0 }
 0x534   :  { %v2749_v17 = vpop.f32.mrf.mxu1  ;;  %v2761_v41 = vadd.f32 %v2760_v60, %v2759_v49 }
 0x536   :  { %2762 = vadd.xlane.f32.xlu0 %v2761_v41 }
 0x54c   :  { %2792 = vperm.xlu0 %9414, %v2789_v11  }
 0x5bf   :  { %v2763_v54 = vpop.xlane.xlu0 %2762 }
 0x5c0   :  { %v2764_v38 = vmul.f32 0.001953125, %v2763_v54 }
 0x5c2   :  { %v2765_v1 = vsub.f32 %v2751_v56, %v2764_v38  ;;  %v2766_v40 = vsub.f32 %v2752_v31, %v2764_v38  ;;  %v2767_v25 = vsub.f32 %v2753_v62, %v2764_v38  ;;  %v2768_v14 = vsub.f32 %v2754_v35, %v2764_v38 }
 0x5c4   :  { %v2769_v53 = vmul.f32 %v2765_v1, %v2765_v1  ;;  %v2770_v3 = vmul.f32 %v2766_v40, %v2766_v40  ;;  %v2771_v57 = vmul.f32 %v2767_v25, %v2767_v25  ;;  %v2772_v63 = vmul.f32 %v2768_v14, %v2768_v14 }
 0x5c6   :  { %v2773_v27 = vsel %vm1613_vm11, %v2769_v53, 0.0  ;;  %v2774_v30 = vsel %vm1613_vm11, %v2770_v3, 0.0  ;;  %v2776_v42 = vsel %vm1613_vm11, %v2771_v57, 0.0  ;;  %v2778_v2 = vsel %vm1613_vm11, %v2772_v63, 0.0 }
 0x5c7   :  { %v2775_v32 = vadd.f32 %v2774_v30, %v2773_v27  ;;  %v2793_v46 = vpop.permute.xlu0 %2792 }
 0x5c9   :  { %v2777_v26 = vadd.f32 %v2776_v42, %v2775_v32 }
 0x5cb   :  { %v2779_v34 = vadd.f32 %v2778_v2, %v2777_v26 }
 0x5cd   :  { %2780 = vadd.xlane.f32.xlu1 %v2779_v34  ;;  %v2855_v34 = vld [vmem:[#allocation6 + $0x2] sm:$0x3] }
 0x5de   :  { %2802 = vperm.xlu1 %9415, %v2799_v29  }
 0x656   :  { %v2781_v10 = vpop.xlane.xlu1 %2780 }
 0x657   :  { %v2782_v52 = vmul.f32 0.001953125, %v2781_v10 }
 0x659   :  { %v2783_v21 = vadd.f32 1e-05, %v2782_v52 }
 0x65a   :  { %v2803_v59 = vpop.permute.xlu1 %2802 }
 0x65b   :  { %9439 = vrsqrt.f32 %v2783_v21 }
 0x668   :  { %v9440_v8 = vpop.eup %9439 }
 0x669   :  { %v2785_v45 = vmul.f32 %v9440_v8, %v2765_v1  ;;  %v2786_v56 = vmul.f32 %v9440_v8, %v2766_v40  ;;  %v2787_v0 = vmul.f32 %v9440_v8, %v2767_v25  ;;  %v2788_v9 = vmul.f32 %v9440_v8, %v2768_v14 }
 0x66b   :  { %v2795_v50 = vmul.f32 %v2793_v46, %v2785_v45  ;;  %v2796_v31 = vmul.f32 %v2793_v46, %v2786_v56  ;;  %v2797_v37 = vmul.f32 %v2793_v46, %v2787_v0  ;;  %v2798_v47 = vmul.f32 %v2793_v46, %v2788_v9 }
 0x66d   :  { %v2805_v6 = vadd.f32 %v2803_v59, %v2795_v50  ;;  %v2806_v28 = vadd.f32 %v2803_v59, %v2796_v31  ;;  %v2807_v62 = vadd.f32 %v2803_v59, %v2797_v37  ;;  %v2808_v20 = vadd.f32 %v2803_v59, %v2798_v47 }
 0x66f   :  { %v10710_v61 = vmax.f32 %v2805_v6, 0.0  ;;  %v10712_v19 = vmax.f32 %v2806_v28, 0.0  ;;  %v10718_v4 = vmax.f32 %v2807_v62, 0.0  ;;  %v10720_v35 = vmax.f32 %v2808_v20, 0.0  ;;  %v2833_v20 = vld [vmem:[#allocation6] sm:$0x3] }
 0x671   :  { %2836 = vrot.lane.b32.xlu1 %v10712_v19, %s9790_s19  ;;  %2834 = vrot.lane.b32.xlu0 %v10710_v61, %s9790_s19 }
 0x675   :  { %2838 = vrot.lane.b32.xlu1 %v10718_v4, %s9790_s19  ;;  %2840 = vrot.lane.b32.xlu0 %v10720_v35, %s9790_s19 }
 0x679   :  { %2815 = vrot.lane.b32.xlu1 %v10712_v19, %s9792_s5  ;;  %2813 = vrot.lane.b32.xlu0 %v10710_v61, %s9792_s5 }
 0x67d   :  { %2817 = vrot.lane.b32.xlu1 %v10718_v4, %s9792_s5  ;;  %2819 = vrot.lane.b32.xlu0 %v10720_v35, %s9792_s5 }
 0x681   :  { %3052 = vrot.lane.b32.xlu1 %v10712_v19, %s9793_s30  ;;  %3050 = vrot.lane.b32.xlu0 %v10710_v61, %s9793_s30 }
 0x685   :  { %3054 = vrot.lane.b32.xlu1 %v10718_v4, %s9793_s30  ;;  %3056 = vrot.lane.b32.xlu0 %v10720_v35, %s9793_s30 }
 0x689   :  { %3175 = vrot.lane.b32.xlu1 %v10712_v19, %s9794_s4  ;;  %3173 = vrot.lane.b32.xlu0 %v10710_v61, %s9794_s4 }
 0x68d   :  { %3177 = vrot.lane.b32.xlu1 %v10718_v4, %s9794_s4  ;;  %3179 = vrot.lane.b32.xlu0 %v10720_v35, %s9794_s4 }
 0x691   :  { %3405 = vrot.lane.b32.xlu1 %v10712_v19, %s9795_s16  ;;  %3403 = vrot.lane.b32.xlu0 %v10710_v61, %s9795_s16 }
 0x695   :  { %3409 = vrot.lane.b32.xlu1 %v10720_v35, %s9795_s16  ;;  %3407 = vrot.lane.b32.xlu0 %v10718_v4, %s9795_s16 }
 0x699   :  { %3528 = vrot.lane.b32.xlu1 %v10712_v19, %s9796_s1  ;;  %3526 = vrot.lane.b32.xlu0 %v10710_v61, %s9796_s1 }
 0x69d   :  { %3532 = vrot.lane.b32.xlu1 %v10720_v35, %s9796_s1  ;;  %3530 = vrot.lane.b32.xlu0 %v10718_v4, %s9796_s1 }
 0x6a1   :  { %3651 = vrot.lane.b32.xlu1 %v10712_v19, %s9797_s2  ;;  %3649 = vrot.lane.b32.xlu0 %v10710_v61, %s9797_s2 }
 0x6a5   :  { %3655 = vrot.lane.b32.xlu1 %v10720_v35, %s9797_s2  ;;  %3653 = vrot.lane.b32.xlu0 %v10718_v4, %s9797_s2 }
 0x6a9   :  { %3774 = vrot.lane.b32.xlu1 %v10712_v19, %s9798_s26  ;;  %3772 = vrot.lane.b32.xlu0 %v10710_v61, %s9798_s26 }
 0x6ad   :  { %3778 = vrot.lane.b32.xlu1 %v10720_v35, %s9798_s26  ;;  %3776 = vrot.lane.b32.xlu0 %v10718_v4, %s9798_s26 }
 0x6e3   :  { %v2837_v15 = vpop.permute.xlu1 %2836  ;;  %v2835_v49 = vpop.permute.xlu0 %2834 }
 0x6e4   :  { %v2844_v60 = vsel %vm387_vm1, %v2835_v49, %v2837_v15 }
 0x6e5   :  { %v2847_v17 = vmul.f32 %v2844_v60, %v10143_v16 }
 0x6e7   :  { %v2851_v41 = vpack.c.bf16 %v2847_v17, %v2847_v17  ;;  %v2839_v11 = vpop.permute.xlu1 %2838  ;;  %v2841_v54 = vpop.permute.xlu0 %2840 }
 0x6e8   :  { %v2843_v38 = vsel %vm387_vm1, %v2837_v15, %v2839_v11  ;;  %v2842_v1 = vsel %vm387_vm1, %v2839_v11, %v2841_v54  ;;  %v2845_v40 = vsel %vm387_vm1, %v2841_v54, %v2835_v49 }
 0x6e9   :  { %v2848_v25 = vmul.f32 %v2843_v38, %v10152_v23  ;;  %v2846_v14 = vmul.f32 %v2845_v40, %v10136_v12  ;;  %v2849_v53 = vmul.f32 %v2842_v1, %v10149_v22  ;;  %8479 = vmatprep.subr.msk.bf16.mxu0 %vm430_vm2, %v2851_v41 }
 0x6eb   :  { %v2852_v3 = vpack.c.bf16 %v2848_v25, %v2848_v25  ;;  %v2850_v57 = vpack.c.bf16 %v2846_v14, %v2846_v14  ;;  %v2853_v63 = vpack.c.bf16 %v2849_v53, %v2849_v53  ;;  %v2816_v27 = vpop.permute.xlu1 %2815  ;;  %v2814_v30 = vpop.permute.xlu0 %2813 }
 0x6ec   :  { %v2823_v32 = vsel %vm343_vm3, %v2814_v30, %v2816_v27 }
 0x6ed   :  { %v2826_v42 = vmul.f32 %v2823_v32, %v10166_v33  ;;  %8481 = vmatprep.subr.msk.bf16.mxu1 %vm430_vm2, %v2853_v63  ;;  %v2860_v26 = vsel %vm430_vm2, %v2850_v57, 0  ;;  %v2866_v2 = vsel %vm430_vm2, %v2852_v3, 0  ;;  %v3071_v32 = vld [vmem:[#allocation6 + $0x4] sm:$0x3] }
 0x6ee   :  { %2886 = vmatpush1.bf16.msra.mxu0 %v2860_v26  ;;  %2927 = vmatpush1.bf16.msra.mxu1 %v2866_v2 }
 0x6ef   :  { %v2830_v29 = vpack.c.bf16 %v2826_v42, %v2826_v42  ;;  %v2818_v10 = vpop.permute.xlu1 %2817  ;;  %v2820_v52 = vpop.permute.xlu0 %2819 }
 0x6f0   :  { %v2822_v21 = vsel %vm343_vm3, %v2816_v27, %v2818_v10  ;;  %v2821_v8 = vsel %vm343_vm3, %v2818_v10, %v2820_v52  ;;  %v2824_v45 = vsel %vm343_vm3, %v2820_v52, %v2814_v30 }
 0x6f1   :  { %v2827_v56 = vmul.f32 %v2822_v21, %v10178_v44  ;;  %v2825_v0 = vmul.f32 %v2824_v45, %v10172_v39  ;;  %v2828_v9 = vmul.f32 %v2821_v8, %v10183_v48  ;;  %8480 = vmatmul.mubr.msk.bf16.vlgmr.msra.gmra.mxu0 %vm1715_vm12, %v2855_v34  ;;  %8482 = vmatmul.mubr.msk.bf16.vlgmr.msra.gmra.mxu1 %vm1715_vm12, %v2855_v34 }
 0x6f2   :  { %8483 = vmatprep.subr.msk.bf16.mxu0 %vm430_vm2, %v2830_v29  ;;  %3000 = vmatprep.mubr.bf16.mxu0 %v12091_v13 }
 0x6f3   :  { %v2831_v46 = vpack.c.bf16 %v2827_v56, %v2827_v56  ;;  %v2829_v50 = vpack.c.bf16 %v2825_v0, %v2825_v0  ;;  %v2832_v31 = vpack.c.bf16 %v2828_v9, %v2828_v9  ;;  %v3053_v37 = vpop.permute.xlu1 %3052  ;;  %v3051_v47 = vpop.permute.xlu0 %3050  ;;  %3041 = vmatprep.mubr.bf16.mxu1 %v12091_v13 }
 0x6f4   :  { %v3060_v59 = vsel %vm632_vm5, %v3051_v47, %v3053_v37 }
 0x6f5   :  { %v3063_v6 = vmul.f32 %v3060_v59, %v10196_v58  ;;  %8485 = vmatprep.subr.msk.bf16.mxu1 %vm430_vm2, %v2832_v31  ;;  %v2957_v28 = vsel %vm430_vm2, %v2829_v50, 0  ;;  %v2963_v62 = vsel %vm430_vm2, %v2831_v46, 0  ;;  %v3297_v31 = vpack.c.bf16 %v10712_v19, %v10712_v19 }
 0x6f6   :  { %2983 = vmatpush1.bf16.msra.mxu0 %v2957_v28  ;;  %3024 = vmatpush1.bf16.msra.mxu1 %v2963_v62  ;;  %v3298_v28 = vpack.c.bf16 %v10718_v4, %v10718_v4  ;;  %v3194_v62 = vld [vmem:[#allocation6 + $0x6] sm:$0x3] }
 0x6f7   :  { %v3067_v15 = vpack.c.bf16 %v3063_v6, %v3063_v6  ;;  %v3055_v49 = vpop.permute.xlu1 %3054  ;;  %v3057_v60 = vpop.permute.xlu0 %3056  ;;  %v3299_v6 = vpack.c.bf16 %v10720_v35, %v10720_v35 }
 0x6f8   :  { %v3059_v17 = vsel %vm632_vm5, %v3053_v37, %v3055_v49  ;;  %v3058_v41 = vsel %vm632_vm5, %v3055_v49, %v3057_v60  ;;  %v3061_v11 = vsel %vm632_vm5, %v3057_v60, %v3051_v47  ;;  %v3296_v37 = vpack.c.bf16 %v10710_v61, %v10710_v61 }
 0x6f9   :  { %v3064_v54 = vmul.f32 %v3059_v17, %v10211_v18  ;;  %v3062_v38 = vmul.f32 %v3061_v11, %v10203_v5  ;;  %v3065_v1 = vmul.f32 %v3058_v41, %v10217_v24  ;;  %8484 = vmatmul.mubr.msk.bf16.vlgmr.msra.gmra.mxu0 %vm1715_vm12, %v2833_v20  ;;  %8486 = vmatmul.mubr.msk.bf16.vlgmr.msra.gmra.mxu1 %vm1715_vm12, %v2833_v20  ;;  %v12110_v20 = vld [vmem:[#allocation51_spill] sm:$0xff]  ;;  %v12111_v17 = vld [vmem:[#allocation53_spill] sm:$0xff]  ;;  %v12112_v11 = vld [vmem:[#allocation50_spill] sm:$0xff] }
 0x6fa   :  { %8487 = vmatprep.subr.msk.bf16.mxu0 %vm430_vm2, %v3067_v15  ;;  %3119 = vmatprep.mubr.bf16.mxu0 %v12091_v13  ;;  %v3306_v60 = vsel %vm430_vm2, %v3296_v37, 0 }
 0x6fb   :  { %v3068_v40 = vpack.c.bf16 %v3064_v54, %v3064_v54  ;;  %v3066_v25 = vpack.c.bf16 %v3062_v38, %v3062_v38  ;;  %v3069_v14 = vpack.c.bf16 %v3065_v1, %v3065_v1  ;;  %v3176_v53 = vpop.permute.xlu1 %3175  ;;  %v3174_v3 = vpop.permute.xlu0 %3173  ;;  %3160 = vmatprep.mubr.bf16.mxu1 %v12091_v13  ;;  %v12113_v38 = vld [vmem:[#allocation52_spill] sm:$0xff] }
 0x6fc   :  { %v3183_v57 = vsel %vm779_vm6, %v3174_v3, %v3176_v53 }
 0x6fd   :  { %v3186_v63 = vmul.f32 %v3183_v57, %v10230_v36  ;;  %8489 = vmatprep.subr.msk.bf16.mxu1 %vm430_vm2, %v3069_v14  ;;  %v3076_v27 = vsel %vm430_vm2, %v3066_v25, 0  ;;  %v3082_v30 = vsel %vm430_vm2, %v3068_v40, 0  ;;  %v3312_v40 = vsel %vm430_vm2, %v3298_v28, 0 }
 0x6fe   :  { %3102 = vmatpush1.bf16.msra.mxu0 %v3076_v27  ;;  %3143 = vmatpush1.bf16.msra.mxu1 %v3082_v30  ;;  %v3301_v30 = vld [vmem:[#allocation6 + $0x8] sm:$0x3] }
 0x6ff   :  { %v3190_v42 = vpack.c.bf16 %v3186_v63, %v3186_v63  ;;  %v3178_v26 = vpop.permute.xlu1 %3177  ;;  %v3180_v2 = vpop.permute.xlu0 %3179 }
 0x700   :  { %v3182_v34 = vsel %vm779_vm6, %v3176_v53, %v3178_v26  ;;  %v3181_v29 = vsel %vm779_vm6, %v3178_v26, %v3180_v2  ;;  %v3184_v10 = vsel %vm779_vm6, %v3180_v2, %v3174_v3  ;;  %v12114_v2 = vld [vmem:[#allocation55_spill] sm:$0xff] }
 0x701   :  { %v3187_v52 = vmul.f32 %v3182_v34, %v10245_v51  ;;  %v3185_v21 = vmul.f32 %v3184_v10, %v10237_v43  ;;  %v3188_v8 = vmul.f32 %v3181_v29, %v10251_v55  ;;  %8488 = vmatmul.mubr.msk.bf16.vlgmr.msra.gmra.mxu0 %vm1715_vm12, %v3071_v32  ;;  %8490 = vmatmul.mubr.msk.bf16.vlgmr.msra.gmra.mxu1 %vm1715_vm12, %v3071_v32 }
 0x702   :  { %8491 = vmatprep.subr.msk.bf16.mxu0 %vm430_vm2, %v3190_v42  ;;  %3242 = vmatprep.mubr.bf16.mxu0 %v12091_v13 }
 0x703   :  { %v3191_v45 = vpack.c.bf16 %v3187_v52, %v3187_v52  ;;  %v3189_v56 = vpack.c.bf16 %v3185_v21, %v3185_v21  ;;  %v3192_v0 = vpack.c.bf16 %v3188_v8, %v3188_v8  ;;  %v3406_v9 = vpop.permute.xlu1 %3405  ;;  %v3404_v46 = vpop.permute.xlu0 %3403  ;;  %3283 = vmatprep.mubr.bf16.mxu1 %v12091_v13  ;;  %v12115_v21 = vld [vmem:[#allocation57_spill] sm:$0xff] }
 0x704   :  { %v3413_v50 = vsel %vm1033_vm7, %v3404_v46, %v3406_v9 }
 0x705   :  { %8493 = vmatprep.subr.msk.bf16.mxu1 %vm430_vm2, %v3192_v0  ;;  %v3199_v47 = vsel %vm430_vm2, %v3189_v56, 0  ;;  %v3205_v59 = vsel %vm430_vm2, %v3191_v45, 0  ;;  %v3415_v19 = vmul.f32 %v3413_v50, %v12110_v20  ;;  %v12116_v45 = vld [vmem:[#allocation54_spill] sm:$0xff]  ;;  %v12117_v0 = vld [vmem:[#allocation56_spill] sm:$0xff] }
 0x706   :  { %3225 = vmatpush1.bf16.msra.mxu0 %v3199_v47  ;;  %3266 = vmatpush1.bf16.msra.mxu1 %v3205_v59 }
 0x707   :  { %v3410_v15 = vpop.permute.xlu1 %3409  ;;  %8495 = vmatprep.subr.msk.bf16.mxu0 %vm430_vm2, %v3297_v31  ;;  %8497 = vmatprep.subr.msk.bf16.mxu1 %vm430_vm2, %v3299_v6  ;;  %v3408_v61 = vpop.permute.xlu0 %3407  ;;  %v3419_v25 = vpack.c.bf16 %v3415_v19, %v3415_v19  ;;  %v12118_v19 = vld [vmem:[#allocation59_spill] sm:$0xff] }
 0x708   :  { %v3414_v49 = vsel %vm1033_vm7, %v3410_v15, %v3404_v46  ;;  %v3411_v35 = vsel %vm1033_vm7, %v3408_v61, %v3410_v15  ;;  %v3412_v4 = vsel %vm1033_vm7, %v3406_v9, %v3408_v61 }
 0x709   :  { %v3418_v41 = vmul.f32 %v3414_v49, %v12111_v17  ;;  %v3416_v54 = vmul.f32 %v3412_v4, %v12112_v11  ;;  %v3417_v1 = vmul.f32 %v3411_v35, %v12113_v38  ;;  %8492 = vmatmul.mubr.msk.bf16.vlgmr.msra.gmra.mxu0 %vm1715_vm12, %v3194_v62  ;;  %8494 = vmatmul.mubr.msk.bf16.vlgmr.msra.gmra.mxu1 %vm1715_vm12, %v3194_v62  ;;  %v3429_v26 = vsel %vm430_vm2, %v3419_v25, 0  ;;  %v3424_v62 = vld [vmem:[#allocation6 + $0xa] sm:$0x3] }
 0x70a   :  { %3332 = vmatpush1.bf16.msra.mxu0 %v3306_v60  ;;  %3373 = vmatpush1.bf16.msra.mxu1 %v3312_v40  ;;  %v12120_v40 = vld [vmem:[#allocation58_spill] sm:$0xff] }
 0x70b   :  { %v3422_v14 = vpack.c.bf16 %v3418_v41, %v3418_v41  ;;  %v3420_v53 = vpack.c.bf16 %v3416_v54, %v3416_v54  ;;  %v3529_v3 = vpop.permute.xlu1 %3528  ;;  %v3527_v57 = vpop.permute.xlu0 %3526  ;;  %3349 = vmatprep.mubr.bf16.mxu0 %v12091_v13  ;;  %3390 = vmatprep.mubr.bf16.mxu1 %v12091_v13  ;;  %v3421_v63 = vpack.c.bf16 %v3417_v1, %v3417_v1  ;;  %v12119_v54 = vld [vmem:[#allocation61_spill] sm:$0xff] }
 0x70c   :  { %v3536_v27 = vsel %vm1180_vm8, %v3527_v57, %v3529_v3 }
 0x70d   :  { %8499 = vmatprep.subr.msk.bf16.mxu0 %vm430_vm2, %v3420_v53  ;;  %8501 = vmatprep.subr.msk.bf16.mxu1 %vm430_vm2, %v3422_v14  ;;  %v3538_v34 = vmul.f32 %v3536_v27, %v12114_v2  ;;  %v3435_v46 = vsel %vm430_vm2, %v3421_v63, 0  ;;  %v12121_v14 = vld [vmem:[#allocation60_spill] sm:$0xff] }
 0x70f   :  { %v3533_v32 = vpop.permute.xlu1 %3532  ;;  %v3531_v42 = vpop.permute.xlu0 %3530  ;;  %v3542_v59 = vpack.c.bf16 %v3538_v34, %v3538_v34  ;;  %v3547_v34 = vld [vmem:[#allocation6 + $0xc] sm:$0x3] }
 0x710   :  { %v3537_v29 = vsel %vm1180_vm8, %v3533_v32, %v3527_v57  ;;  %v3534_v10 = vsel %vm1180_vm8, %v3531_v42, %v3533_v32  ;;  %v3535_v52 = vsel %vm1180_vm8, %v3529_v3, %v3531_v42 }
 0x711   :  { %v3541_v8 = vmul.f32 %v3537_v29, %v12115_v21  ;;  %v3539_v56 = vmul.f32 %v3535_v52, %v12116_v45  ;;  %v3540_v9 = vmul.f32 %v3534_v10, %v12117_v0  ;;  %8496 = vmatmul.mubr.msk.bf16.vlgmr.msra.gmra.mxu0 %vm1715_vm12, %v3301_v30  ;;  %8498 = vmatmul.mubr.msk.bf16.vlgmr.msra.gmra.mxu1 %vm1715_vm12, %v3301_v30  ;;  %v3552_v41 = vsel %vm430_vm2, %v3542_v59, 0 }
 0x712   :  { %3455 = vmatpush1.bf16.msra.mxu0 %v3429_v26  ;;  %3496 = vmatpush1.bf16.msra.mxu1 %v3435_v46 }
 0x713   :  { %v3545_v50 = vpack.c.bf16 %v3541_v8, %v3541_v8  ;;  %v3543_v31 = vpack.c.bf16 %v3539_v56, %v3539_v56  ;;  %v3652_v37 = vpop.permute.xlu1 %3651  ;;  %v3650_v47 = vpop.permute.xlu0 %3649  ;;  %3472 = vmatprep.mubr.bf16.mxu0 %v12091_v13  ;;  %3513 = vmatprep.mubr.bf16.mxu1 %v12091_v13  ;;  %v3544_v28 = vpack.c.bf16 %v3540_v9, %v3540_v9  ;;  %v12122_v8 = vld [vmem:[#allocation63_spill] sm:$0xff] }
 0x714   :  { %v3659_v6 = vsel %vm1327_vm9, %v3650_v47, %v3652_v37 }
 0x715   :  { %8503 = vmatprep.subr.msk.bf16.mxu0 %vm430_vm2, %v3543_v31  ;;  %8505 = vmatprep.subr.msk.bf16.mxu1 %vm430_vm2, %v3545_v50  ;;  %v3661_v15 = vmul.f32 %v3659_v6, %v12118_v19  ;;  %v3558_v3 = vsel %vm430_vm2, %v3544_v28, 0  ;;  %v12123_v31 = vld [vmem:[#allocation65_spill] sm:$0xff]  ;;  %v12125_v6 = vld [vmem:[#allocation64_spill] sm:$0xff] }
 0x717   :  { %v3656_v61 = vpop.permute.xlu1 %3655  ;;  %v3654_v49 = vpop.permute.xlu0 %3653  ;;  %v3665_v57 = vpack.c.bf16 %v3661_v15, %v3661_v15 }
 0x718   :  { %v3660_v35 = vsel %vm1327_vm9, %v3656_v61, %v3650_v47  ;;  %v3657_v4 = vsel %vm1327_vm9, %v3654_v49, %v3656_v61  ;;  %v3658_v60 = vsel %vm1327_vm9, %v3652_v37, %v3654_v49  ;;  %v12124_v47 = vld [vmem:[#allocation62_spill] sm:$0xff] }
 0x719   :  { %v3664_v1 = vmul.f32 %v3660_v35, %v12119_v54  ;;  %v3662_v25 = vmul.f32 %v3658_v60, %v12120_v40  ;;  %v3663_v53 = vmul.f32 %v3657_v4, %v12121_v14  ;;  %8500 = vmatmul.mubr.msk.bf16.vlgmr.msra.gmra.mxu0 %vm1715_vm12, %v3424_v62  ;;  %8502 = vmatmul.mubr.msk.bf16.vlgmr.msra.gmra.mxu1 %vm1715_vm12, %v3424_v62  ;;  %v3675_v52 = vsel %vm430_vm2, %v3665_v57, 0  ;;  %v3670_v4 = vld [vmem:[#allocation6 + $0xe] sm:$0x3] }
 0x71a   :  { %3578 = vmatpush1.bf16.msra.mxu0 %v3552_v41  ;;  %3619 = vmatpush1.bf16.msra.mxu1 %v3558_v3 }
 0x71b   :  { %v3668_v63 = vpack.c.bf16 %v3664_v1, %v3664_v1  ;;  %v3666_v27 = vpack.c.bf16 %v3662_v25, %v3662_v25  ;;  %v3775_v30 = vpop.permute.xlu1 %3774  ;;  %v3773_v32 = vpop.permute.xlu0 %3772  ;;  %3595 = vmatprep.mubr.bf16.mxu0 %v12091_v13  ;;  %3636 = vmatprep.mubr.bf16.mxu1 %v12091_v13  ;;  %v3667_v42 = vpack.c.bf16 %v3663_v53, %v3663_v53  ;;  %v3793_v1 = vld [vmem:[#allocation6 + $0x10] sm:$0x3] }
 0x71c   :  { %v3782_v26 = vsel %vm1474_vm10, %v3773_v32, %v3775_v30 }
 0x71d   :  { %8507 = vmatprep.subr.msk.bf16.mxu0 %vm430_vm2, %v3666_v27  ;;  %8509 = vmatprep.subr.msk.bf16.mxu1 %vm430_vm2, %v3668_v63  ;;  %v3784_v56 = vmul.f32 %v3782_v26, %v12122_v8  ;;  %v3681_v62 = vsel %vm430_vm2, %v3667_v42, 0 }
 0x71f   :  { %v3779_v29 = vpop.permute.xlu1 %3778  ;;  %v3777_v10 = vpop.permute.xlu0 %3776  ;;  %v3788_v49 = vpack.c.bf16 %v3784_v56, %v3784_v56 }
 0x720   :  { %v3783_v9 = vsel %vm1474_vm10, %v3779_v29, %v3773_v32  ;;  %v3780_v46 = vsel %vm1474_vm10, %v3777_v10, %v3779_v29  ;;  %v3781_v50 = vsel %vm1474_vm10, %v3775_v30, %v3777_v10 }
 0x721   :  { %v3787_v37 = vmul.f32 %v3783_v9, %v12123_v31  ;;  %v3785_v59 = vmul.f32 %v3781_v50, %v12124_v47  ;;  %v3786_v28 = vmul.f32 %v3780_v46, %v12125_v6  ;;  %8504 = vmatmul.mubr.msk.bf16.vlgmr.msra.gmra.mxu0 %vm1715_vm12, %v3547_v34  ;;  %8506 = vmatmul.mubr.msk.bf16.vlgmr.msra.gmra.mxu1 %vm1715_vm12, %v3547_v34  ;;  %v3798_v60 = vsel %vm430_vm2, %v3788_v49, 0 }
 0x722   :  { %3701 = vmatpush1.bf16.msra.mxu0 %v3675_v52  ;;  %3742 = vmatpush1.bf16.msra.mxu1 %v3681_v62 }
 0x723   :  { %v3791_v15 = vpack.c.bf16 %v3787_v37, %v3787_v37  ;;  %v3789_v61 = vpack.c.bf16 %v3785_v59, %v3785_v59  ;;  %3718 = vmatprep.mubr.bf16.mxu0 %v12091_v13  ;;  %3759 = vmatprep.mubr.bf16.mxu1 %v12091_v13  ;;  %v3790_v35 = vpack.c.bf16 %v3786_v28, %v3786_v28 }
 0x725   :  { %8511 = vmatprep.subr.msk.bf16.mxu0 %vm430_vm2, %v3789_v61  ;;  %8513 = vmatprep.subr.msk.bf16.mxu1 %vm430_vm2, %v3791_v15  ;;  %v3804_v41 = vsel %vm430_vm2, %v3790_v35, 0 }
 0x729   :  { %8508 = vmatmul.mubr.msk.bf16.vlgmr.msra.gmra.mxu0 %vm1715_vm12, %v3670_v4  ;;  %8510 = vmatmul.mubr.msk.bf16.vlgmr.msra.gmra.mxu1 %vm1715_vm12, %v3670_v4 }
 0x72a   :  { %3824 = vmatpush1.bf16.msra.mxu0 %v3798_v60  ;;  %3865 = vmatpush1.bf16.msra.mxu1 %v3804_v41 }
 0x72b   :  { %3841 = vmatprep.mubr.bf16.mxu0 %v12091_v13  ;;  %3882 = vmatprep.mubr.bf16.mxu1 %v12091_v13 }
 0x731   :  { %8512 = vmatmul.mubr.msk.bf16.vlgmr.msra.gmra.mxu0 %vm1715_vm12, %v3793_v1  ;;  %8514 = vmatmul.mubr.msk.bf16.vlgmr.msra.gmra.mxu1 %vm1715_vm12, %v3793_v1 }
 0x732   :  { %4047 = vmatprep.mubr.bf16.mxu0 %v12091_v13  ;;  %4088 = vmatprep.mubr.bf16.mxu1 %v12091_v13 }
 0x7b1   :  { %v2905_v25 = vpop.f32.mrf.mxu0  ;;  %v2946_v53 = vpop.f32.mrf.mxu1 }
 0x7b3   :  { %v2907_v3 = vpop.f32.mrf.mxu0  ;;  %v2948_v57 = vpop.f32.mrf.mxu1 }
 0x7b5   :  { %v2909_v63 = vpop.f32.mrf.mxu0  ;;  %v2950_v27 = vpop.f32.mrf.mxu1 }
 0x7b7   :  { %v2910_v30 = vpop.f32.mrf.mxu0  ;;  %v2951_v32 = vpop.f32.mrf.mxu1 }
 0x7b9   :  { %v3002_v42 = vpop.f32.mrf.mxu0  ;;  %v3043_v26 = vpop.f32.mrf.mxu1 }
 0x7ba   :  { %v3003_v54 = vadd.f32 %v3002_v42, %v2905_v25  ;;  %v3044_v45 = vadd.f32 %v3043_v26, %v2946_v53 }
 0x7bb   :  { %v3004_v34 = vpop.f32.mrf.mxu0  ;;  %v3045_v29 = vpop.f32.mrf.mxu1 }
 0x7bc   :  { %v3046_v21 = vadd.f32 %v3045_v29, %v2948_v57 }
 0x7bd   :  { %v3006_v10 = vpop.f32.mrf.mxu0  ;;  %v3047_v52 = vpop.f32.mrf.mxu1 }
 0x7bf   :  { %v3007_v56 = vpop.f32.mrf.mxu0  ;;  %v3048_v9 = vpop.f32.mrf.mxu1 }
 0x7c1   :  { %v3121_v46 = vpop.f32.mrf.mxu0  ;;  %v3162_v50 = vpop.f32.mrf.mxu1 }
 0x7c2   :  { %v3171_v2 = vadd.f32 %v3162_v50, %v3044_v45 }
 0x7c3   :  { %v3123_v37 = vpop.f32.mrf.mxu0  ;;  %v3164_v59 = vpop.f32.mrf.mxu1 }
 0x7c5   :  { %v3125_v28 = vpop.f32.mrf.mxu0  ;;  %v3166_v62 = vpop.f32.mrf.mxu1 }
 0x7c7   :  { %v3126_v15 = vpop.f32.mrf.mxu0  ;;  %v3167_v61 = vpop.f32.mrf.mxu1 }
 0x7c9   :  { %v3244_v49 = vpop.f32.mrf.mxu0  ;;  %v3285_v35 = vpop.f32.mrf.mxu1 }
 0x7cb   :  { %v3246_v4 = vpop.f32.mrf.mxu0  ;;  %v3287_v60 = vpop.f32.mrf.mxu1 }
 0x7cd   :  { %v3248_v41 = vpop.f32.mrf.mxu0  ;;  %v3289_v1 = vpop.f32.mrf.mxu1 }
 0x7cf   :  { %v3249_v63 = vpop.f32.mrf.mxu0  ;;  %v3290_v27 = vpop.f32.mrf.mxu1 }
 0x7d1   :  { %v3351_v30 = vpop.f32.mrf.mxu0  ;;  %v3392_v32 = vpop.f32.mrf.mxu1 }
 0x7d3   :  { %v3353_v10 = vpop.f32.mrf.mxu0  ;;  %v3394_v52 = vpop.f32.mrf.mxu1 }
 0x7d5   :  { %v3355_v56 = vpop.f32.mrf.mxu0  ;;  %v3396_v9 = vpop.f32.mrf.mxu1 }
 0x7d6   :  { %v3005_v56 = vadd.f32 %v3004_v34, %v2907_v3  ;;  %v3169_v9 = vadd.f32 %v3121_v46, %v3003_v54 }
 0x7d7   :  { %v3356_v6 = vpop.f32.mrf.mxu0  ;;  %v3397_v47 = vpop.f32.mrf.mxu1 }
 0x7d8   :  { %v3170_v38 = vadd.f32 %v3123_v37, %v3005_v56  ;;  %v3292_v11 = vadd.f32 %v3244_v49, %v3169_v9 }
 0x7d9   :  { %v3474_v28 = vpop.f32.mrf.mxu0  ;;  %v3515_v62 = vpop.f32.mrf.mxu1 }
 0x7da   :  { %v3293_v17 = vadd.f32 %v3246_v4, %v3170_v38  ;;  %v3399_v20 = vadd.f32 %v3351_v30, %v3292_v11 }
 0x7db   :  { %v3476_v15 = vpop.f32.mrf.mxu0  ;;  %v3517_v61 = vpop.f32.mrf.mxu1 }
 0x7dc   :  { %v3522_v53 = vadd.f32 %v3474_v28, %v3399_v20 }
 0x7dd   :  { %v3478_v31 = vpop.f32.mrf.mxu0  ;;  %v3519_v8 = vpop.f32.mrf.mxu1 }
 0x7df   :  { %v3479_v14 = vpop.f32.mrf.mxu0  ;;  %v3520_v40 = vpop.f32.mrf.mxu1 }
 0x7e0   :  { %v3172_v14 = vadd.f32 %v3164_v59, %v3046_v21  ;;  %v3294_v40 = vadd.f32 %v3285_v35, %v3171_v2 }
 0x7e1   :  { %v3597_v41 = vpop.f32.mrf.mxu0  ;;  %v3638_v1 = vpop.f32.mrf.mxu1 }
 0x7e2   :  { %v3295_v25 = vadd.f32 %v3287_v60, %v3172_v14  ;;  %v3645_v45 = vadd.f32 %v3597_v41, %v3522_v53 }
 0x7e3   :  { %v3599_v63 = vpop.f32.mrf.mxu0  ;;  %v3640_v27 = vpop.f32.mrf.mxu1 }
 0x7e4   :  { %v3402_v42 = vadd.f32 %v3394_v52, %v3295_v25 }
 0x7e5   :  { %v3601_v19 = vpop.f32.mrf.mxu0  ;;  %v3642_v0 = vpop.f32.mrf.mxu1 }
 0x7e6   :  { %v3401_v19 = vadd.f32 %v3392_v32, %v3294_v40  ;;  %v3400_v0 = vadd.f32 %v3353_v10, %v3293_v17  ;;  %v3525_v46 = vadd.f32 %v3517_v61, %v3402_v42 }
 0x7e7   :  { %v3602_v6 = vpop.f32.mrf.mxu0  ;;  %v3643_v47 = vpop.f32.mrf.mxu1 }
 0x7e8   :  { %v3524_v26 = vadd.f32 %v3515_v62, %v3401_v19  ;;  %v3523_v57 = vadd.f32 %v3476_v15, %v3400_v0  ;;  %v3648_v37 = vadd.f32 %v3640_v27, %v3525_v46 }
 0x7e9   :  { %v3720_v31 = vpop.f32.mrf.mxu0  ;;  %v3761_v8 = vpop.f32.mrf.mxu1 }
 0x7ea   :  { %v3647_v50 = vadd.f32 %v3638_v1, %v3524_v26  ;;  %v3646_v21 = vadd.f32 %v3599_v63, %v3523_v57  ;;  %v3768_v2 = vadd.f32 %v3720_v31, %v3645_v45  ;;  %v3939_v45 = vld [vmem:[%s12127_s28] sm:$0xf] }
 0x7eb   :  { %v3722_v55 = vpop.f32.mrf.mxu0  ;;  %v3763_v51 = vpop.f32.mrf.mxu1 }
 0x7ec   :  { %v3770_v59 = vadd.f32 %v3761_v8, %v3647_v50  ;;  %v3769_v49 = vadd.f32 %v3722_v55, %v3646_v21  ;;  %v3771_v4 = vadd.f32 %v3763_v51, %v3648_v37  ;;  %v3929_v51 = vld [vmem:[%s12126_s17] sm:$0xf] }
 0x7ed   :  { %v3724_v3 = vpop.f32.mrf.mxu0  ;;  %v3765_v54 = vpop.f32.mrf.mxu1 }
 0x7ef   :  { %v3725_v34 = vpop.f32.mrf.mxu0  ;;  %v3766_v29 = vpop.f32.mrf.mxu1 }
 0x7f1   :  { %v3843_v38 = vpop.f32.mrf.mxu0  ;;  %v3884_v11 = vpop.f32.mrf.mxu1 }
 0x7f2   :  { %v3891_v35 = vadd.f32 %v3843_v38, %v3768_v2  ;;  %v3893_v60 = vadd.f32 %v3884_v11, %v3770_v59 }
 0x7f3   :  { %v3845_v17 = vpop.f32.mrf.mxu0  ;;  %v3886_v20 = vpop.f32.mrf.mxu1 }
 0x7f4   :  { %v3892_v30 = vadd.f32 %v3845_v17, %v3769_v49  ;;  %v3895_v52 = vsel %vm1613_vm11, %v3891_v35, 0.0  ;;  %v3894_v62 = vadd.f32 %v3886_v20, %v3771_v4  ;;  %v3898_v1 = vsel %vm1613_vm11, %v3893_v60, 0.0 }
 0x7f5   :  { %v3847_v32 = vpop.f32.mrf.mxu0  ;;  %v3888_v10 = vpop.f32.mrf.mxu1 }
 0x7f6   :  { %v3896_v28 = vsel %vm1613_vm11, %v3892_v30, 0.0  ;;  %v3900_v63 = vsel %vm1613_vm11, %v3894_v62, 0.0  ;;  %v12128_v10 = vld [vmem:[#allocation66_spill] sm:$0xff] }
 0x7f7   :  { %v3897_v15 = vadd.f32 %v3896_v28, %v3895_v52  ;;  %v3848_v61 = vpop.f32.mrf.mxu0  ;;  %v3889_v41 = vpop.f32.mrf.mxu1  ;;  %v12129_v28 = vld [vmem:[#allocation68_spill] sm:$0xff] }
 0x7f8   :  { %v12131_v41 = vld [vmem:[#allocation67_spill] sm:$0xff] }
 0x7f9   :  { %v3899_v55 = vadd.f32 %v3898_v1, %v3897_v15  ;;  %v12130_v15 = vld [vmem:[#allocation69_spill] sm:$0xff] }
 0x7fb   :  { %v3901_v27 = vadd.f32 %v3900_v63, %v3899_v55 }
 0x7fd   :  { %3902 = vadd.xlane.f32.xlu0 %v3901_v27 }
 0x813   :  { %3932 = vperm.xlu0 %9414, %v3929_v51  }
 0x886   :  { %v3903_v56 = vpop.xlane.xlu0 %3902 }
 0x887   :  { %v3904_v9 = vmul.f32 0.001953125, %v3903_v56 }
 0x889   :  { %v3905_v6 = vsub.f32 %v3891_v35, %v3904_v9  ;;  %v3906_v47 = vsub.f32 %v3892_v30, %v3904_v9  ;;  %v3907_v31 = vsub.f32 %v3893_v60, %v3904_v9  ;;  %v3908_v8 = vsub.f32 %v3894_v62, %v3904_v9 }
 0x88b   :  { %v3909_v14 = vmul.f32 %v3905_v6, %v3905_v6  ;;  %v3910_v40 = vmul.f32 %v3906_v47, %v3906_v47  ;;  %v3911_v25 = vmul.f32 %v3907_v31, %v3907_v31  ;;  %v3912_v19 = vmul.f32 %v3908_v8, %v3908_v8 }
 0x88d   :  { %v3913_v0 = vsel %vm1613_vm11, %v3909_v14, 0.0  ;;  %v3914_v53 = vsel %vm1613_vm11, %v3910_v40, 0.0  ;;  %v3916_v54 = vsel %vm1613_vm11, %v3911_v25, 0.0  ;;  %v3918_v26 = vsel %vm1613_vm11, %v3912_v19, 0.0 }
 0x88e   :  { %v3915_v3 = vadd.f32 %v3914_v53, %v3913_v0  ;;  %v3933_v37 = vpop.permute.xlu0 %3932 }
 0x890   :  { %v3917_v42 = vadd.f32 %v3916_v54, %v3915_v3 }
 0x892   :  { %v3919_v57 = vadd.f32 %v3918_v26, %v3917_v42 }
 0x894   :  { %3920 = vadd.xlane.f32.xlu1 %v3919_v57 }
 0x8a5   :  { %3942 = vperm.xlu1 %9415, %v3939_v45  }
 0x91d   :  { %v3921_v34 = vpop.xlane.xlu1 %3920 }
 0x91e   :  { %v3922_v29 = vmul.f32 0.001953125, %v3921_v34 }
 0x920   :  { %v3923_v46 = vadd.f32 1e-05, %v3922_v29 }
 0x921   :  { %v3943_v20 = vpop.permute.xlu1 %3942 }
 0x922   :  { %9441 = vrsqrt.f32 %v3923_v46 }
 0x92f   :  { %v9442_v50 = vpop.eup %9441 }
 0x930   :  { %v3925_v21 = vmul.f32 %v9442_v50, %v3905_v6  ;;  %v3926_v2 = vmul.f32 %v9442_v50, %v3906_v47  ;;  %v3927_v38 = vmul.f32 %v9442_v50, %v3907_v31  ;;  %v3928_v11 = vmul.f32 %v9442_v50, %v3908_v8 }
 0x932   :  { %v3935_v59 = vmul.f32 %v3933_v37, %v3925_v21  ;;  %v3936_v49 = vmul.f32 %v3933_v37, %v3926_v2  ;;  %v3937_v35 = vmul.f32 %v3933_v37, %v3927_v38  ;;  %v3938_v17 = vmul.f32 %v3933_v37, %v3928_v11 }
 0x934   :  { %v3945_v4 = vadd.f32 %v3943_v20, %v3935_v59  ;;  %v3946_v60 = vadd.f32 %v3943_v20, %v3936_v49  ;;  %v3947_v30 = vadd.f32 %v3943_v20, %v3937_v35  ;;  %v3948_v32 = vadd.f32 %v3943_v20, %v3938_v17 }
 0x936   :  { %v3949_v52 = vadd.f32 %v3945_v4, %v12128_v10  ;;  %v3950_v62 = vadd.f32 %v3946_v60, %v12129_v28  ;;  %v3951_v61 = vadd.f32 %v3947_v30, %v12130_v15  ;;  %v3952_v1 = vadd.f32 %v3948_v32, %v12131_v41  ;;  %v3977_v60 = vld [vmem:[#allocation10] sm:$0xf] }
 0x938   :  { %v10972_v55 = vmax.f32 %v3949_v52, 0.0  ;;  %v10974_v63 = vmax.f32 %v3950_v62, 0.0  ;;  %v10980_v27 = vmax.f32 %v3951_v61, 0.0  ;;  %v10982_v51 = vmax.f32 %v3952_v1, 0.0 }
 0x93a   :  { %12132 = vst [vmem:[#allocation66_spill] sm:$0xff] %v10972_v55  ;;  %3980 = vrot.lane.b32.xlu1 %v10974_v63, %s9790_s19  ;;  %3978 = vrot.lane.b32.xlu0 %v10972_v55, %s9790_s19  ;;  %12133 = vst [vmem:[#allocation68_spill] sm:$0xff] %v10980_v27 }
 0x93e   :  { %3984 = vrot.lane.b32.xlu1 %v10982_v51, %s9790_s19  ;;  %3982 = vrot.lane.b32.xlu0 %v10980_v27, %s9790_s19  ;;  %s12267_s19 = sld [smem:[#allocation42_spill]] }
 0x942   :  { %3959 = vrot.lane.b32.xlu1 %v10974_v63, %s9792_s5  ;;  %3957 = vrot.lane.b32.xlu0 %v10972_v55, %s9792_s5 }
 0x946   :  { %3963 = vrot.lane.b32.xlu1 %v10982_v51, %s9792_s5  ;;  %3961 = vrot.lane.b32.xlu0 %v10980_v27, %s9792_s5  ;;  %s12268_s5 = sld [smem:[#allocation47_spill]] }
 0x94a   :  { %4196 = vrot.lane.b32.xlu1 %v10974_v63, %s9793_s30  ;;  %4194 = vrot.lane.b32.xlu0 %v10972_v55, %s9793_s30 }
 0x94e   :  { %4200 = vrot.lane.b32.xlu1 %v10982_v51, %s9793_s30  ;;  %4198 = vrot.lane.b32.xlu0 %v10980_v27, %s9793_s30 }
 0x952   :  { %4319 = vrot.lane.b32.xlu1 %v10974_v63, %s9794_s4  ;;  %4317 = vrot.lane.b32.xlu0 %v10972_v55, %s9794_s4 }
 0x956   :  { %4323 = vrot.lane.b32.xlu1 %v10982_v51, %s9794_s4  ;;  %4321 = vrot.lane.b32.xlu0 %v10980_v27, %s9794_s4 }
 0x95a   :  { %4549 = vrot.lane.b32.xlu1 %v10974_v63, %s9795_s16  ;;  %4547 = vrot.lane.b32.xlu0 %v10972_v55, %s9795_s16 }
 0x95e   :  { %4553 = vrot.lane.b32.xlu1 %v10982_v51, %s9795_s16  ;;  %4551 = vrot.lane.b32.xlu0 %v10980_v27, %s9795_s16 }
 0x962   :  { %4672 = vrot.lane.b32.xlu1 %v10974_v63, %s9796_s1  ;;  %4670 = vrot.lane.b32.xlu0 %v10972_v55, %s9796_s1 }
 0x966   :  { %4676 = vrot.lane.b32.xlu1 %v10982_v51, %s9796_s1  ;;  %4674 = vrot.lane.b32.xlu0 %v10980_v27, %s9796_s1 }
 0x96a   :  { %4795 = vrot.lane.b32.xlu1 %v10974_v63, %s9797_s2  ;;  %4793 = vrot.lane.b32.xlu0 %v10972_v55, %s9797_s2 }
 0x96e   :  { %4799 = vrot.lane.b32.xlu1 %v10982_v51, %s9797_s2  ;;  %4797 = vrot.lane.b32.xlu0 %v10980_v27, %s9797_s2 }
 0x972   :  { %4918 = vrot.lane.b32.xlu1 %v10974_v63, %s9798_s26  ;;  %4916 = vrot.lane.b32.xlu0 %v10972_v55, %s9798_s26 }
 0x976   :  { %4922 = vrot.lane.b32.xlu1 %v10982_v51, %s9798_s26  ;;  %4920 = vrot.lane.b32.xlu0 %v10980_v27, %s9798_s26 }
 0x9ac   :  { %v3981_v56 = vpop.permute.xlu1 %3980  ;;  %v3979_v9 = vpop.permute.xlu0 %3978 }
 0x9ad   :  { %v3988_v6 = vsel %vm387_vm1, %v3979_v9, %v3981_v56 }
 0x9ae   :  { %v3991_v47 = vmul.f32 %v3988_v6, %v10143_v16 }
 0x9b0   :  { %v3995_v31 = vpack.c.bf16 %v3991_v47, %v3991_v47  ;;  %v3985_v8 = vpop.permute.xlu1 %3984  ;;  %v3983_v14 = vpop.permute.xlu0 %3982 }
 0x9b1   :  { %v3989_v40 = vsel %vm387_vm1, %v3985_v8, %v3979_v9  ;;  %v3986_v25 = vsel %vm387_vm1, %v3983_v14, %v3985_v8  ;;  %v3987_v19 = vsel %vm387_vm1, %v3981_v56, %v3983_v14  ;;  %vm8368_vm1 = vcmask 9216  }
 0x9b2   :  { %v3990_v0 = vmul.f32 %v3989_v40, %v10136_v12  ;;  %v3992_v53 = vmul.f32 %v3987_v19, %v10152_v23  ;;  %v3993_v3 = vmul.f32 %v3986_v25, %v10149_v22  ;;  %8515 = vmatprep.subr.msk.bf16.mxu0 %vm430_vm2, %v3995_v31  ;;  %v3999_v22 = vld [vmem:[#allocation10 + $0x4] sm:$0xf]  ;;  %v4215_v31 = vld [vmem:[#allocation10 + $0x8] sm:$0xf] }
 0x9b4   :  { %v3994_v16 = vpack.c.bf16 %v3990_v0, %v3990_v0  ;;  %v3996_v54 = vpack.c.bf16 %v3992_v53, %v3992_v53  ;;  %v3997_v42 = vpack.c.bf16 %v3993_v3, %v3993_v3  ;;  %v3960_v26 = vpop.permute.xlu1 %3959  ;;  %v3958_v57 = vpop.permute.xlu0 %3957  ;;  %v12134_v53 = vld [vmem:[#allocation48_spill] sm:$0xff] }
 0x9b5   :  { %v3967_v45 = vsel %vm343_vm3, %v3958_v57, %v3960_v26 }
 0x9b6   :  { %v3970_v34 = vmul.f32 %v3967_v45, %v10166_v33  ;;  %8517 = vmatprep.subr.msk.bf16.mxu1 %vm430_vm2, %v3997_v42  ;;  %v4004_v12 = vsel %vm430_vm2, %v3994_v16, 0  ;;  %v4010_v23 = vsel %vm430_vm2, %v3996_v54, 0  ;;  %v12135_v16 = vld [vmem:[#allocation49_spill] sm:$0xff] }
 0x9b7   :  { %4030 = vmatpush1.bf16.msra.mxu0 %v4004_v12  ;;  %4071 = vmatpush1.bf16.msra.mxu1 %v4010_v23  ;;  %v4441_v12 = vpack.c.bf16 %v10974_v63, %v10974_v63  ;;  %v4440_v23 = vpack.c.bf16 %v10972_v55, %v10972_v55 }
 0x9b8   :  { %v3974_v29 = vpack.c.bf16 %v3970_v34, %v3970_v34  ;;  %v3964_v46 = vpop.permute.xlu1 %3963  ;;  %v3962_v50 = vpop.permute.xlu0 %3961 }
 0x9b9   :  { %v3968_v21 = vsel %vm343_vm3, %v3964_v46, %v3958_v57  ;;  %v3965_v2 = vsel %vm343_vm3, %v3962_v50, %v3964_v46  ;;  %v3966_v33 = vsel %vm343_vm3, %v3960_v26, %v3962_v50  ;;  %v4443_v46 = vpack.c.bf16 %v10982_v51, %v10982_v51 }
 0x9ba   :  { %v3969_v38 = vmul.f32 %v3968_v21, %v10172_v39  ;;  %v3971_v11 = vmul.f32 %v3966_v33, %v10178_v44  ;;  %v3972_v37 = vmul.f32 %v3965_v2, %v10183_v48  ;;  %8516 = vmatmul.mubr.msk.bf16.vlgmr.msra.gmra.mxu0 %vm1715_vm12, %v3999_v22  ;;  %8518 = vmatmul.mubr.msk.bf16.vlgmr.msra.gmra.mxu1 %vm1715_vm12, %v3999_v22  ;;  %v4338_v21 = vld [vmem:[#allocation10 + $0xc] sm:$0xf]  ;;  %v12136_v2 = vld [vmem:[#allocation51_spill] sm:$0xff] }
 0x9bb   :  { %8519 = vmatprep.subr.msk.bf16.mxu0 %vm430_vm2, %v3974_v29  ;;  %4144 = vmatprep.mubr.bf16.mxu0 %v12091_v13  ;;  %v4442_v50 = vpack.c.bf16 %v10980_v27, %v10980_v27  ;;  %v11398_v27 = vld [vmem:[#allocation7 + $0x80] sm:$0xff] }
 0x9bc   :  { %v3973_v59 = vpack.c.bf16 %v3969_v38, %v3969_v38  ;;  %v3975_v49 = vpack.c.bf16 %v3971_v11, %v3971_v11  ;;  %v3976_v35 = vpack.c.bf16 %v3972_v37, %v3972_v37  ;;  %v4197_v17 = vpop.permute.xlu1 %4196  ;;  %v4195_v20 = vpop.permute.xlu0 %4194  ;;  %4185 = vmatprep.mubr.bf16.mxu1 %v12091_v13  ;;  %12198 = vst [vmem:[#allocation96_spill] sm:$0xff] %v11398_v27 }
 0x9bd   :  { %v4204_v39 = vsel %vm632_vm5, %v4195_v20, %v4197_v17 }
 0x9be   :  { %v4207_v44 = vmul.f32 %v4204_v39, %v10196_v58  ;;  %8521 = vmatprep.subr.msk.bf16.mxu1 %vm430_vm2, %v3976_v35  ;;  %v4101_v48 = vsel %vm430_vm2, %v3973_v59, 0  ;;  %v4107_v4 = vsel %vm430_vm2, %v3975_v49, 0  ;;  %v4450_v35 = vsel %vm430_vm2, %v4440_v23, 0  ;;  %v12138_v39 = vld [vmem:[#allocation50_spill] sm:$0xff] }
 0x9bf   :  { %4127 = vmatpush1.bf16.msra.mxu0 %v4101_v48  ;;  %4168 = vmatpush1.bf16.msra.mxu1 %v4107_v4  ;;  %v12139_v48 = vld [vmem:[#allocation52_spill] sm:$0xff] }
 0x9c0   :  { %v4211_v30 = vpack.c.bf16 %v4207_v44, %v4207_v44  ;;  %v4201_v32 = vpop.permute.xlu1 %4200  ;;  %v4199_v10 = vpop.permute.xlu0 %4198 }
 0x9c1   :  { %v4205_v52 = vsel %vm632_vm5, %v4201_v32, %v4195_v20  ;;  %v4202_v28 = vsel %vm632_vm5, %v4199_v10, %v4201_v32  ;;  %v4203_v58 = vsel %vm632_vm5, %v4197_v17, %v4199_v10  ;;  %v12137_v17 = vld [vmem:[#allocation53_spill] sm:$0xff] }
 0x9c2   :  { %v4206_v62 = vmul.f32 %v4205_v52, %v10203_v5  ;;  %v4208_v15 = vmul.f32 %v4203_v58, %v10211_v18  ;;  %v4209_v61 = vmul.f32 %v4202_v28, %v10217_v24  ;;  %8520 = vmatmul.mubr.msk.bf16.vlgmr.msra.gmra.mxu0 %vm1715_vm12, %v3977_v60  ;;  %8522 = vmatmul.mubr.msk.bf16.vlgmr.msra.gmra.mxu1 %vm1715_vm12, %v3977_v60  ;;  %v4456_v60 = vsel %vm430_vm2, %v4442_v50, 0  ;;  %v12146_v50 = vld [vmem:[#allocation58_spill] sm:$0xff] }
 0x9c3   :  { %8523 = vmatprep.subr.msk.bf16.mxu0 %vm430_vm2, %v4211_v30  ;;  %4263 = vmatprep.mubr.bf16.mxu0 %v12091_v13 }
 0x9c4   :  { %v4210_v41 = vpack.c.bf16 %v4206_v62, %v4206_v62  ;;  %v4212_v1 = vpack.c.bf16 %v4208_v15, %v4208_v15  ;;  %v4213_v56 = vpack.c.bf16 %v4209_v61, %v4209_v61  ;;  %v4320_v9 = vpop.permute.xlu1 %4319  ;;  %v4318_v6 = vpop.permute.xlu0 %4317  ;;  %4304 = vmatprep.mubr.bf16.mxu1 %v12091_v13  ;;  %v4445_v15 = vld [vmem:[#allocation10 + $0x10] sm:$0xf] }
 0x9c5   :  { %v4327_v5 = vsel %vm779_vm6, %v4318_v6, %v4320_v9 }
 0x9c6   :  { %v4330_v18 = vmul.f32 %v4327_v5, %v10230_v36  ;;  %8525 = vmatprep.subr.msk.bf16.mxu1 %vm430_vm2, %v4213_v56  ;;  %v4220_v24 = vsel %vm430_vm2, %v4210_v41, 0  ;;  %v4226_v47 = vsel %vm430_vm2, %v4212_v1, 0  ;;  %v12140_v56 = vld [vmem:[#allocation55_spill] sm:$0xff] }
 0x9c7   :  { %4246 = vmatpush1.bf16.msra.mxu0 %v4220_v24  ;;  %4287 = vmatpush1.bf16.msra.mxu1 %v4226_v47  ;;  %v12141_v24 = vld [vmem:[#allocation57_spill] sm:$0xff] }
 0x9c8   :  { %v4334_v8 = vpack.c.bf16 %v4330_v18, %v4330_v18  ;;  %v4324_v14 = vpop.permute.xlu1 %4323  ;;  %v4322_v40 = vpop.permute.xlu0 %4321 }
 0x9c9   :  { %v4328_v25 = vsel %vm779_vm6, %v4324_v14, %v4318_v6  ;;  %v4325_v19 = vsel %vm779_vm6, %v4322_v40, %v4324_v14  ;;  %v4326_v36 = vsel %vm779_vm6, %v4320_v9, %v4322_v40  ;;  %v12143_v14 = vld [vmem:[#allocation56_spill] sm:$0xff] }
 0x9ca   :  { %v4329_v0 = vmul.f32 %v4328_v25, %v10237_v43  ;;  %v4331_v3 = vmul.f32 %v4326_v36, %v12134_v53  ;;  %v4332_v54 = vmul.f32 %v4325_v19, %v12135_v16  ;;  %8524 = vmatmul.mubr.msk.bf16.vlgmr.msra.gmra.mxu0 %vm1715_vm12, %v4215_v31  ;;  %8526 = vmatmul.mubr.msk.bf16.vlgmr.msra.gmra.mxu1 %vm1715_vm12, %v4215_v31  ;;  %v12142_v31 = vld [vmem:[#allocation54_spill] sm:$0xff] }
 0x9cb   :  { %8527 = vmatprep.subr.msk.bf16.mxu0 %vm430_vm2, %v4334_v8  ;;  %4386 = vmatprep.mubr.bf16.mxu0 %v12091_v13 }
 0x9cc   :  { %v4333_v42 = vpack.c.bf16 %v4329_v0, %v4329_v0  ;;  %v4335_v26 = vpack.c.bf16 %v4331_v3, %v4331_v3  ;;  %v4336_v57 = vpack.c.bf16 %v4332_v54, %v4332_v54  ;;  %v4550_v45 = vpop.permute.xlu1 %4549  ;;  %v4548_v34 = vpop.permute.xlu0 %4547  ;;  %4427 = vmatprep.mubr.bf16.mxu1 %v12091_v13 }
 0x9cd   :  { %v4557_v43 = vsel %vm1033_vm7, %v4548_v34, %v4550_v45 }
 0x9ce   :  { %8529 = vmatprep.subr.msk.bf16.mxu1 %vm430_vm2, %v4336_v57  ;;  %v4343_v22 = vsel %vm430_vm2, %v4333_v42, 0  ;;  %v4349_v29 = vsel %vm430_vm2, %v4335_v26, 0  ;;  %v4559_v33 = vmul.f32 %v4557_v43, %v12136_v2  ;;  %v4568_v42 = vld [vmem:[#allocation10 + $0x14] sm:$0xf]  ;;  %v12147_v2 = vld [vmem:[#allocation60_spill] sm:$0xff] }
 0x9cf   :  { %4369 = vmatpush1.bf16.msra.mxu0 %v4343_v22  ;;  %4410 = vmatpush1.bf16.msra.mxu1 %v4349_v29  ;;  %v12144_v26 = vld [vmem:[#allocation59_spill] sm:$0xff]  ;;  %v12145_v29 = vld [vmem:[#allocation61_spill] sm:$0xff] }
 0x9d0   :  { %v4554_v38 = vpop.permute.xlu1 %4553  ;;  %8531 = vmatprep.subr.msk.bf16.mxu0 %vm430_vm2, %v4441_v12  ;;  %8533 = vmatprep.subr.msk.bf16.mxu1 %vm430_vm2, %v4443_v46  ;;  %v4552_v11 = vpop.permute.xlu0 %4551  ;;  %v4563_v30 = vpack.c.bf16 %v4559_v33, %v4559_v33 }
 0x9d1   :  { %v4558_v37 = vsel %vm1033_vm7, %v4554_v38, %v4548_v34  ;;  %v4555_v59 = vsel %vm1033_vm7, %v4552_v11, %v4554_v38  ;;  %v4556_v49 = vsel %vm1033_vm7, %v4550_v45, %v4552_v11 }
 0x9d2   :  { %v4562_v20 = vmul.f32 %v4558_v37, %v12137_v17  ;;  %v4560_v44 = vmul.f32 %v4556_v49, %v12138_v39  ;;  %v4561_v4 = vmul.f32 %v4555_v59, %v12139_v48  ;;  %8528 = vmatmul.mubr.msk.bf16.vlgmr.msra.gmra.mxu0 %vm1715_vm12, %v4338_v21  ;;  %8530 = vmatmul.mubr.msk.bf16.vlgmr.msra.gmra.mxu1 %vm1715_vm12, %v4338_v21  ;;  %v4573_v1 = vsel %vm430_vm2, %v4563_v30, 0  ;;  %v4691_v39 = vld [vmem:[#allocation10 + $0x18] sm:$0xf] }
 0x9d3   :  { %4476 = vmatpush1.bf16.msra.mxu0 %v4450_v35  ;;  %4517 = vmatpush1.bf16.msra.mxu1 %v4456_v60  ;;  %v12148_v60 = vld [vmem:[#allocation63_spill] sm:$0xff] }
 0x9d4   :  { %v4566_v32 = vpack.c.bf16 %v4562_v20, %v4562_v20  ;;  %v4564_v10 = vpack.c.bf16 %v4560_v44, %v4560_v44  ;;  %v4673_v52 = vpop.permute.xlu1 %4672  ;;  %v4671_v28 = vpop.permute.xlu0 %4670  ;;  %4493 = vmatprep.mubr.bf16.mxu0 %v12091_v13  ;;  %4534 = vmatprep.mubr.bf16.mxu1 %v12091_v13  ;;  %v4565_v58 = vpack.c.bf16 %v4561_v4, %v4561_v4 }
 0x9d5   :  { %v4680_v62 = vsel %vm1180_vm8, %v4671_v28, %v4673_v52 }
 0x9d6   :  { %8535 = vmatprep.subr.msk.bf16.mxu0 %vm430_vm2, %v4564_v10  ;;  %8537 = vmatprep.subr.msk.bf16.mxu1 %vm430_vm2, %v4566_v32  ;;  %v4682_v9 = vmul.f32 %v4680_v62, %v12140_v56  ;;  %v4579_v25 = vsel %vm430_vm2, %v4565_v58, 0  ;;  %v12150_v62 = vld [vmem:[#allocation62_spill] sm:$0xff] }
 0x9d8   :  { %v4677_v61 = vpop.permute.xlu1 %4676  ;;  %v4675_v41 = vpop.permute.xlu0 %4674  ;;  %v4686_v3 = vpack.c.bf16 %v4682_v9, %v4682_v9 }
 0x9d9   :  { %v4681_v6 = vsel %vm1180_vm8, %v4677_v61, %v4671_v28  ;;  %v4678_v5 = vsel %vm1180_vm8, %v4675_v41, %v4677_v61  ;;  %v4679_v18 = vsel %vm1180_vm8, %v4673_v52, %v4675_v41  ;;  %v12149_v28 = vld [vmem:[#allocation65_spill] sm:$0xff]  ;;  %v12151_v61 = vld [vmem:[#allocation64_spill] sm:$0xff] }
 0x9da   :  { %v4685_v47 = vmul.f32 %v4681_v6, %v12141_v24  ;;  %v4683_v8 = vmul.f32 %v4679_v18, %v12142_v31  ;;  %v4684_v40 = vmul.f32 %v4678_v5, %v12143_v14  ;;  %8532 = vmatmul.mubr.msk.bf16.vlgmr.msra.gmra.mxu0 %vm1715_vm12, %v4445_v15  ;;  %8534 = vmatmul.mubr.msk.bf16.vlgmr.msra.gmra.mxu1 %vm1715_vm12, %v4445_v15  ;;  %v4696_v22 = vsel %vm430_vm2, %v4686_v3, 0  ;;  %v4814_v5 = vld [vmem:[#allocation10 + $0x1c] sm:$0xf]  ;;  %v11218_v31 = vld [vmem:[#allocation7 + $0xf8] sm:$0xff]  ;;  %v11248_v3 = vld [vmem:[#allocation7 + $0x68] sm:$0xff] }
 0x9db   :  { %4599 = vmatpush1.bf16.msra.mxu0 %v4573_v1  ;;  %4640 = vmatpush1.bf16.msra.mxu1 %v4579_v25  ;;  %v11222_v14 = vld [vmem:[#allocation7 + $0x78] sm:$0xff]  ;;  %v11232_v25 = vld [vmem:[#allocation7 + $0x1f0] sm:$0xff] }
 0x9dc   :  { %v4689_v19 = vpack.c.bf16 %v4685_v47, %v4685_v47  ;;  %v4687_v36 = vpack.c.bf16 %v4683_v8, %v4683_v8  ;;  %v4796_v0 = vpop.permute.xlu1 %4795  ;;  %v4794_v53 = vpop.permute.xlu0 %4793  ;;  %4616 = vmatprep.mubr.bf16.mxu0 %v12091_v13  ;;  %4657 = vmatprep.mubr.bf16.mxu1 %v12091_v13  ;;  %v4688_v54 = vpack.c.bf16 %v4684_v40, %v4684_v40  ;;  %v4937_v47 = vld [vmem:[#allocation10 + $0x20] sm:$0xf]  ;;  %v11220_v8 = vld [vmem:[#allocation7 + $0x1f8] sm:$0xff] }
 0x9dd   :  { %v4803_v16 = vsel %vm1327_vm9, %v4794_v53, %v4796_v0  ;;  %v11226_v40 = vld [vmem:[#allocation7 + $0x178] sm:$0xff] }
 0x9de   :  { %8539 = vmatprep.subr.msk.bf16.mxu0 %vm430_vm2, %v4687_v36  ;;  %8541 = vmatprep.subr.msk.bf16.mxu1 %vm430_vm2, %v4689_v19  ;;  %v4805_v57 = vmul.f32 %v4803_v16, %v12144_v26  ;;  %v4702_v38 = vsel %vm430_vm2, %v4688_v54, 0  ;;  %v11236_v19 = vld [vmem:[#allocation7 + $0x70] sm:$0xff]  ;;  %v11250_v16 = vld [vmem:[#allocation7 + $0x168] sm:$0xff]  ;;  %v11254_v54 = vld [vmem:[#allocation7 + $0xe0] sm:$0xff] }
 0x9df   :  { %v11238_v36 = vld [vmem:[#allocation7 + $0x170] sm:$0xff]  ;;  %12154 = vst [vmem:[#allocation48_spill] sm:$0xff] %v11250_v16  ;;  %v11258_v26 = vld [vmem:[#allocation7 + $0x60] sm:$0xff] }
 0x9e0   :  { %v4800_v45 = vpop.permute.xlu1 %4799  ;;  %v4798_v34 = vpop.permute.xlu0 %4797  ;;  %v4809_v11 = vpack.c.bf16 %v4805_v57, %v4805_v57  ;;  %12152 = vst [vmem:[#allocation69_spill] sm:$0xff] %v11238_v36  ;;  %v11262_v57 = vld [vmem:[#allocation7 + $0x160] sm:$0xff] }
 0x9e1   :  { %v4804_v43 = vsel %vm1327_vm9, %v4800_v45, %v4794_v53  ;;  %v4801_v12 = vsel %vm1327_vm9, %v4798_v34, %v4800_v45  ;;  %v4802_v23 = vsel %vm1327_vm9, %v4796_v0, %v4798_v34  ;;  %v11242_v0 = vld [vmem:[#allocation7 + $0xe8] sm:$0xff]  ;;  %12156 = vst [vmem:[#allocation51_spill] sm:$0xff] %v11262_v57  ;;  %v11266_v45 = vld [vmem:[#allocation7 + $0xd8] sm:$0xff] }
 0x9e2   :  { %v4808_v46 = vmul.f32 %v4804_v43, %v12145_v29  ;;  %v4806_v21 = vmul.f32 %v4802_v23, %v12146_v50  ;;  %v4807_v33 = vmul.f32 %v4801_v12, %v12147_v2  ;;  %8536 = vmatmul.mubr.msk.bf16.vlgmr.msra.gmra.mxu0 %vm1715_vm12, %v4568_v42  ;;  %8538 = vmatmul.mubr.msk.bf16.vlgmr.msra.gmra.mxu1 %vm1715_vm12, %v4568_v42  ;;  %v4819_v4 = vsel %vm430_vm2, %v4809_v11, 0  ;;  %v11244_v53 = vld [vmem:[#allocation7 + $0x1e8] sm:$0xff]  ;;  %v11256_v42 = vld [vmem:[#allocation7 + $0x1e0] sm:$0xff]  ;;  %v11268_v34 = vld [vmem:[#allocation7 + $0x1d8] sm:$0xff] }
 0x9e3   :  { %4722 = vmatpush1.bf16.msra.mxu0 %v4696_v22  ;;  %4763 = vmatpush1.bf16.msra.mxu1 %v4702_v38  ;;  %12153 = vst [vmem:[#allocation67_spill] sm:$0xff] %v11244_v53  ;;  %12155 = vst [vmem:[#allocation49_spill] sm:$0xff] %v11256_v42  ;;  %v11270_v43 = vld [vmem:[#allocation7 + $0x58] sm:$0xff]  ;;  %v11278_v23 = vld [vmem:[#allocation7 + $0xd0] sm:$0xff] }
 0x9e4   :  { %v4812_v37 = vpack.c.bf16 %v4808_v46, %v4808_v46  ;;  %v4810_v59 = vpack.c.bf16 %v4806_v21, %v4806_v21  ;;  %v4919_v49 = vpop.permute.xlu1 %4918  ;;  %v4917_v35 = vpop.permute.xlu0 %4916  ;;  %4739 = vmatprep.mubr.bf16.mxu0 %v12091_v13  ;;  %4780 = vmatprep.mubr.bf16.mxu1 %v12091_v13  ;;  %v4811_v17 = vpack.c.bf16 %v4807_v33, %v4807_v33  ;;  %v11274_v12 = vld [vmem:[#allocation7 + $0x158] sm:$0xff]  ;;  %v11280_v22 = vld [vmem:[#allocation7 + $0x1d0] sm:$0xff]  ;;  %v11290_v50 = vld [vmem:[#allocation7 + $0xc8] sm:$0xff] }
 0x9e5   :  { %v4926_v20 = vsel %vm1474_vm10, %v4917_v35, %v4919_v49  ;;  %12157 = vst [vmem:[#allocation53_spill] sm:$0xff] %v11268_v34  ;;  %12158 = vst [vmem:[#allocation50_spill] sm:$0xff] %v11274_v12  ;;  %v11284_v29 = vld [vmem:[#allocation7 + $0x50] sm:$0xff]  ;;  %v11292_v21 = vld [vmem:[#allocation7 + $0x1c8] sm:$0xff] }
 0x9e6   :  { %8543 = vmatprep.subr.msk.bf16.mxu0 %vm430_vm2, %v4810_v59  ;;  %8545 = vmatprep.subr.msk.bf16.mxu1 %vm430_vm2, %v4812_v37  ;;  %v4928_v30 = vmul.f32 %v4926_v20, %v12148_v60  ;;  %v4825_v1 = vsel %vm430_vm2, %v4811_v17, 0  ;;  %12159 = vst [vmem:[#allocation52_spill] sm:$0xff] %v11280_v22  ;;  %12160 = vst [vmem:[#allocation55_spill] sm:$0xff] %v11284_v29  ;;  %v11286_v46 = vld [vmem:[#allocation7 + $0x150] sm:$0xff]  ;;  %v11296_v2 = vld [vmem:[#allocation7 + $0x48] sm:$0xff] }
 0x9e7   :  { %12161 = vst [vmem:[#allocation57_spill] sm:$0xff] %v11286_v46  ;;  %12162 = vst [vmem:[#allocation54_spill] sm:$0xff] %v11290_v50  ;;  %v11298_v33 = vld [vmem:[#allocation7 + $0x148] sm:$0xff]  ;;  %v11302_v38 = vld [vmem:[#allocation7 + $0xc0] sm:$0xff] }
 0x9e8   :  { %v4923_v44 = vpop.permute.xlu1 %4922  ;;  %v4921_v48 = vpop.permute.xlu0 %4920  ;;  %v4932_v7 = vpack.c.bf16 %v4928_v30, %v4928_v30  ;;  %12163 = vst [vmem:[#allocation56_spill] sm:$0xff] %v11292_v21  ;;  %12164 = vst [vmem:[#allocation59_spill] sm:$0xff] %v11296_v2  ;;  %v11304_v11 = vld [vmem:[#allocation7 + $0x1c0] sm:$0xff]  ;;  %v11318_v17 = vld [vmem:[#allocation7 + $0x38] sm:$0xff] }
 0x9e9   :  { %v4927_v32 = vsel %vm1474_vm10, %v4923_v44, %v4917_v35  ;;  %v4924_v10 = vsel %vm1474_vm10, %v4921_v48, %v4923_v44  ;;  %v4925_v52 = vsel %vm1474_vm10, %v4919_v49, %v4921_v48  ;;  %12165 = vst [vmem:[#allocation61_spill] sm:$0xff] %v11298_v33  ;;  %12166 = vst [vmem:[#allocation58_spill] sm:$0xff] %v11302_v38  ;;  %v11306_v37 = vld [vmem:[#allocation7 + $0x40] sm:$0xff]  ;;  %v11314_v49 = vld [vmem:[#allocation7 + $0xb8] sm:$0xff] }
 0x9ea   :  { %v4931_v58 = vmul.f32 %v4927_v32, %v12149_v28  ;;  %v4929_v15 = vmul.f32 %v4925_v52, %v12150_v62  ;;  %v4930_v41 = vmul.f32 %v4924_v10, %v12151_v61  ;;  %8540 = vmatmul.mubr.msk.bf16.vlgmr.msra.gmra.mxu0 %vm1715_vm12, %v4691_v39  ;;  %8542 = vmatmul.mubr.msk.bf16.vlgmr.msra.gmra.mxu1 %vm1715_vm12, %v4691_v39  ;;  %v4942_v18 = vsel %vm430_vm2, %v4932_v7, 0  ;;  %v11310_v59 = vld [vmem:[#allocation7 + $0x140] sm:$0xff]  ;;  %v11316_v35 = vld [vmem:[#allocation7 + $0x1b8] sm:$0xff]  ;;  %v11326_v39 = vld [vmem:[#allocation7 + $0xb0] sm:$0xff] }
 0x9eb   :  { %4845 = vmatpush1.bf16.msra.mxu0 %v4819_v4  ;;  %4886 = vmatpush1.bf16.msra.mxu1 %v4825_v1  ;;  %12167 = vst [vmem:[#allocation60_spill] sm:$0xff] %v11304_v11  ;;  %12168 = vst [vmem:[#allocation63_spill] sm:$0xff] %v11306_v37  ;;  %v11322_v20 = vld [vmem:[#allocation7 + $0x138] sm:$0xff]  ;;  %v11328_v44 = vld [vmem:[#allocation7 + $0x1b0] sm:$0xff] }
 0x9ec   :  { %v4935_v56 = vpack.c.bf16 %v4931_v58, %v4931_v58  ;;  %v4933_v9 = vpack.c.bf16 %v4929_v15, %v4929_v15  ;;  %4862 = vmatprep.mubr.bf16.mxu0 %v12091_v13  ;;  %4903 = vmatprep.mubr.bf16.mxu1 %v12091_v13  ;;  %v4934_v6 = vpack.c.bf16 %v4930_v41, %v4930_v41  ;;  %v11332_v48 = vld [vmem:[#allocation7 + $0x30] sm:$0xff]  ;;  %v11338_v60 = vld [vmem:[#allocation7 + $0xa8] sm:$0xff]  ;;  %v11350_v52 = vld [vmem:[#allocation7 + $0xa0] sm:$0xff] }
 0x9ed   :  { %12169 = vst [vmem:[#allocation65_spill] sm:$0xff] %v11310_v59  ;;  %12170 = vst [vmem:[#allocation62_spill] sm:$0xff] %v11314_v49  ;;  %v11334_v4 = vld [vmem:[#allocation7 + $0x130] sm:$0xff]  ;;  %v11340_v30 = vld [vmem:[#allocation7 + $0x1a8] sm:$0xff] }
 0x9ee   :  { %8547 = vmatprep.subr.msk.bf16.mxu0 %vm430_vm2, %v4933_v9  ;;  %8549 = vmatprep.subr.msk.bf16.mxu1 %vm430_vm2, %v4935_v56  ;;  %v4948_v24 = vsel %vm430_vm2, %v4934_v6, 0  ;;  %12171 = vst [vmem:[#allocation64_spill] sm:$0xff] %v11316_v35  ;;  %12172 = vst [vmem:[#allocation70_spill] sm:$0xff] %v11318_v17  ;;  %v11344_v32 = vld [vmem:[#allocation7 + $0x28] sm:$0xff]  ;;  %v11352_v28 = vld [vmem:[#allocation7 + $0x1a0] sm:$0xff] }
 0x9ef   :  { %12173 = vst [vmem:[#allocation71_spill] sm:$0xff] %v11322_v20  ;;  %12174 = vst [vmem:[#allocation72_spill] sm:$0xff] %v11326_v39  ;;  %v11346_v10 = vld [vmem:[#allocation7 + $0x128] sm:$0xff]  ;;  %v11354_v58 = vld [vmem:[#allocation7 + $0x20] sm:$0xff] }
 0x9f0   :  { %12175 = vst [vmem:[#allocation73_spill] sm:$0xff] %v11328_v44  ;;  %12176 = vst [vmem:[#allocation74_spill] sm:$0xff] %v11332_v48  ;;  %v11358_v62 = vld [vmem:[#allocation7 + $0x120] sm:$0xff]  ;;  %v11362_v15 = vld [vmem:[#allocation7 + $0x98] sm:$0xff] }
 0x9f1   :  { %12177 = vst [vmem:[#allocation75_spill] sm:$0xff] %v11334_v4  ;;  %12178 = vst [vmem:[#allocation76_spill] sm:$0xff] %v11338_v60  ;;  %v11364_v61 = vld [vmem:[#allocation7 + $0x198] sm:$0xff]  ;;  %v11374_v56 = vld [vmem:[#allocation7 + $0x90] sm:$0xff] }
 0x9f2   :  { %8544 = vmatmul.mubr.msk.bf16.vlgmr.msra.gmra.mxu0 %vm1715_vm12, %v4814_v5  ;;  %8546 = vmatmul.mubr.msk.bf16.vlgmr.msra.gmra.mxu1 %vm1715_vm12, %v4814_v5  ;;  %12179 = vst [vmem:[#allocation77_spill] sm:$0xff] %v11340_v30  ;;  %12180 = vst [vmem:[#allocation78_spill] sm:$0xff] %v11344_v32  ;;  %v11366_v41 = vld [vmem:[#allocation7 + $0x18] sm:$0xff]  ;;  %v11376_v9 = vld [vmem:[#allocation7 + $0x190] sm:$0xff] }
 0x9f3   :  { %4968 = vmatpush1.bf16.msra.mxu0 %v4942_v18  ;;  %5009 = vmatpush1.bf16.msra.mxu1 %v4948_v24  ;;  %12181 = vst [vmem:[#allocation79_spill] sm:$0xff] %v11346_v10  ;;  %12182 = vst [vmem:[#allocation80_spill] sm:$0xff] %v11350_v52  ;;  %v11370_v1 = vld [vmem:[#allocation7 + $0x118] sm:$0xff]  ;;  %v11380_v7 = vld [vmem:[#allocation7 + $0x10] sm:$0xff] }
 0x9f4   :  { %4985 = vmatprep.mubr.bf16.mxu0 %v12091_v13  ;;  %5026 = vmatprep.mubr.bf16.mxu1 %v12091_v13  ;;  %v11230_v13 = vld [vmem:[#allocation7 + $0xf0] sm:$0xff]  ;;  %12183 = vst [vmem:[#allocation81_spill] sm:$0xff] %v11352_v28  ;;  %12184 = vst [vmem:[#allocation82_spill] sm:$0xff] %v11354_v58  ;;  %v11386_v5 = vld [vmem:[#allocation7 + $0x88] sm:$0xff] }
 0x9f5   :  { %8684 = vmatprep.subr.mxu0 %v11218_v31  ;;  %8719 = vmatprep.subr.mxu1 %v11220_v8  ;;  %12185 = vst [vmem:[#allocation83_spill] sm:$0xff] %v11358_v62  ;;  %12186 = vst [vmem:[#allocation84_spill] sm:$0xff] %v11362_v15  ;;  %v11382_v6 = vld [vmem:[#allocation7 + $0x110] sm:$0xff]  ;;  %v11388_v18 = vld [vmem:[#allocation7 + $0x188] sm:$0xff] }
 0x9f6   :  { %12187 = vst [vmem:[#allocation85_spill] sm:$0xff] %v11364_v61  ;;  %12188 = vst [vmem:[#allocation86_spill] sm:$0xff] %v11366_v41  ;;  %v11392_v24 = vld [vmem:[#allocation7 + $0x8] sm:$0xff] }
 0x9f7   :  { %12189 = vst [vmem:[#allocation87_spill] sm:$0xff] %v11370_v1  ;;  %12190 = vst [vmem:[#allocation88_spill] sm:$0xff] %v11374_v56 }
 0x9f8   :  { %12191 = vst [vmem:[#allocation89_spill] sm:$0xff] %v11376_v9  ;;  %12192 = vst [vmem:[#allocation90_spill] sm:$0xff] %v11380_v7 }
 0x9f9   :  { %12193 = vst [vmem:[#allocation91_spill] sm:$0xff] %v11382_v6  ;;  %12194 = vst [vmem:[#allocation92_spill] sm:$0xff] %v11386_v5 }
 0x9fa   :  { %8548 = vmatmul.mubr.msk.bf16.vlgmr.msra.gmra.mxu0 %vm1715_vm12, %v4937_v47  ;;  %8550 = vmatmul.mubr.msk.bf16.vlgmr.msra.gmra.mxu1 %vm1715_vm12, %v4937_v47  ;;  %12195 = vst [vmem:[#allocation93_spill] sm:$0xff] %v11388_v18  ;;  %12196 = vst [vmem:[#allocation94_spill] sm:$0xff] %v11392_v24  ;;  %v11394_v47 = vld [vmem:[#allocation7 + $0x108] sm:$0xff] }
 0x9fb   :  { %8685 = vmatpush3.msra.mxu0 %v11222_v14  ;;  %8720 = vmatpush3.msra.mxu1 %v11226_v40  ;;  %12197 = vst [vmem:[#allocation95_spill] sm:$0xff] %v11394_v47 }
 0x9fc   :  { %8686 = vmatprep.subr.mxu0 %v11230_v13  ;;  %8721 = vmatprep.subr.mxu1 %v11232_v25 }
 0x9fd   :  { %8687 = vmatpush3.msra.mxu0 %v11236_v19  ;;  %8722 = vmatpush3.msra.mxu1 %v11238_v36 }
 0x9fe   :  { %8688 = vmatprep.subr.mxu0 %v11242_v0  ;;  %8723 = vmatprep.subr.mxu1 %v11244_v53 }
 0x9ff   :  { %8689 = vmatpush3.msra.mxu0 %v11248_v3  ;;  %8724 = vmatpush3.msra.mxu1 %v11250_v16 }
 0xa00   :  { %8690 = vmatprep.subr.mxu0 %v11254_v54  ;;  %8725 = vmatprep.subr.mxu1 %v11256_v42 }
 0xa01   :  { %8691 = vmatpush3.msra.mxu0 %v11258_v26  ;;  %8726 = vmatpush3.msra.mxu1 %v11262_v57 }
 0xa02   :  { %8692 = vmatprep.subr.mxu0 %v11266_v45  ;;  %8727 = vmatprep.subr.mxu1 %v11268_v34 }
 0xa03   :  { %8693 = vmatpush3.msra.mxu0 %v11270_v43  ;;  %8728 = vmatpush3.msra.mxu1 %v11274_v12 }
 0xa04   :  { %8694 = vmatprep.subr.mxu0 %v11278_v23  ;;  %8729 = vmatprep.subr.mxu1 %v11280_v22 }
 0xa05   :  { %8695 = vmatpush3.msra.mxu0 %v11284_v29  ;;  %8730 = vmatpush3.msra.mxu1 %v11286_v46 }
 0xa06   :  { %8696 = vmatprep.subr.mxu0 %v11290_v50  ;;  %8731 = vmatprep.subr.mxu1 %v11292_v21 }
 0xa07   :  { %8697 = vmatpush3.msra.mxu0 %v11296_v2  ;;  %8732 = vmatpush3.msra.mxu1 %v11298_v33 }
 0xa08   :  { %8698 = vmatprep.subr.mxu0 %v11302_v38  ;;  %8733 = vmatprep.subr.mxu1 %v11304_v11 }
 0xa09   :  { %8699 = vmatpush3.msra.mxu0 %v11306_v37  ;;  %8734 = vmatpush3.msra.mxu1 %v11310_v59 }
 0xa0a   :  { %8700 = vmatprep.subr.mxu0 %v11314_v49  ;;  %8735 = vmatprep.subr.mxu1 %v11316_v35 }
 0xa0b   :  { %8701 = vmatpush3.msra.mxu0 %v11318_v17  ;;  %8736 = vmatpush3.msra.mxu1 %v11322_v20 }
 0xa0c   :  { %8702 = vmatprep.subr.mxu0 %v11326_v39  ;;  %8737 = vmatprep.subr.mxu1 %v11328_v44 }
 0xa0d   :  { %8703 = vmatpush3.msra.mxu0 %v11332_v48  ;;  %8738 = vmatpush3.msra.mxu1 %v11334_v4 }
 0xa0e   :  { %8704 = vmatprep.subr.mxu0 %v11338_v60  ;;  %8739 = vmatprep.subr.mxu1 %v11340_v30 }
 0xa0f   :  { %8705 = vmatpush3.msra.mxu0 %v11344_v32  ;;  %8740 = vmatpush3.msra.mxu1 %v11346_v10 }
 0xa10   :  { %8706 = vmatprep.subr.mxu0 %v11350_v52  ;;  %8741 = vmatprep.subr.mxu1 %v11352_v28 }
 0xa11   :  { %8707 = vmatpush3.msra.mxu0 %v11354_v58  ;;  %8742 = vmatpush3.msra.mxu1 %v11358_v62 }
 0xa12   :  { %8708 = vmatprep.subr.mxu0 %v11362_v15  ;;  %8743 = vmatprep.subr.mxu1 %v11364_v61 }
 0xa13   :  { %8709 = vmatpush3.msra.mxu0 %v11366_v41  ;;  %8744 = vmatpush3.msra.mxu1 %v11370_v1  ;;  %v11406_v1 = vld [vmem:[#allocation7 + $0x100] sm:$0xff] }
 0xa14   :  { %8710 = vmatprep.subr.mxu0 %v11374_v56  ;;  %8745 = vmatprep.subr.mxu1 %v11376_v9  ;;  %v11400_v9 = vld [vmem:[#allocation7 + $0x180] sm:$0xff]  ;;  %12201 = vst [vmem:[#allocation99_spill] sm:$0xff] %v11406_v1 }
 0xa15   :  { %8711 = vmatpush3.msra.mxu0 %v11380_v7  ;;  %8746 = vmatpush3.msra.mxu1 %v11382_v6  ;;  %12199 = vst [vmem:[#allocation97_spill] sm:$0xff] %v11400_v9  ;;  %v11402_v6 = vld [vmem:[#allocation7] sm:$0xff] }
 0xa16   :  { %8712 = vmatprep.subr.mxu0 %v11386_v5  ;;  %8747 = vmatprep.subr.mxu1 %v11388_v18  ;;  %12200 = vst [vmem:[#allocation98_spill] sm:$0xff] %v11402_v6 }
 0xa17   :  { %8713 = vmatpush3.msra.mxu0 %v11392_v24  ;;  %8748 = vmatpush3.msra.mxu1 %v11394_v47 }
 0xa18   :  { %8714 = vmatprep.subr.mxu0 %v11398_v27  ;;  %8749 = vmatprep.subr.mxu1 %v11400_v9 }
 0xa19   :  { %8715 = vmatpush3.msra.mxu0 %v11402_v6  ;;  %8750 = vmatpush3.msra.mxu1 %v11406_v1 }
 0xa7a   :  { %v4049_v18 = vpop.f32.mrf.mxu0  ;;  %v4090_v61 = vpop.f32.mrf.mxu1 }
 0xa7c   :  { %v4051_v55 = vpop.f32.mrf.mxu0  ;;  %v4092_v47 = vpop.f32.mrf.mxu1 }
 0xa7e   :  { %v4053_v62 = vpop.f32.mrf.mxu0  ;;  %v4094_v28 = vpop.f32.mrf.mxu1 }
 0xa80   :  { %v4054_v10 = vpop.f32.mrf.mxu0  ;;  %v4095_v24 = vpop.f32.mrf.mxu1 }
 0xa82   :  { %v4146_v30 = vpop.f32.mrf.mxu0  ;;  %v4187_v5 = vpop.f32.mrf.mxu1 }
 0xa84   :  { %v4148_v4 = vpop.f32.mrf.mxu0  ;;  %v4189_v27 = vpop.f32.mrf.mxu1 }
 0xa85   :  { %v4149_v57 = vadd.f32 %v4148_v4, %v4051_v55  ;;  %v4190_v37 = vadd.f32 %v4189_v27, %v4092_v47 }
 0xa86   :  { %v4150_v7 = vpop.f32.mrf.mxu0  ;;  %v4191_v9 = vpop.f32.mrf.mxu1 }
 0xa88   :  { %v4151_v44 = vpop.f32.mrf.mxu0  ;;  %v4192_v56 = vpop.f32.mrf.mxu1 }
 0xa8a   :  { %v4265_v20 = vpop.f32.mrf.mxu0  ;;  %v4306_v6 = vpop.f32.mrf.mxu1 }
 0xa8c   :  { %v4267_v41 = vpop.f32.mrf.mxu0  ;;  %v4308_v1 = vpop.f32.mrf.mxu1 }
 0xa8d   :  { %v4314_v42 = vadd.f32 %v4267_v41, %v4149_v57  ;;  %v4316_v38 = vadd.f32 %v4308_v1, %v4190_v37 }
 0xa8e   :  { %v4269_v35 = vpop.f32.mrf.mxu0  ;;  %v4310_v15 = vpop.f32.mrf.mxu1 }
 0xa90   :  { %v4270_v59 = vpop.f32.mrf.mxu0  ;;  %v4311_v58 = vpop.f32.mrf.mxu1 }
 0xa92   :  { %v4388_v62 = vpop.f32.mrf.mxu0  ;;  %v4429_v28 = vpop.f32.mrf.mxu1 }
 0xa94   :  { %v4390_v10 = vpop.f32.mrf.mxu0  ;;  %v4431_v24 = vpop.f32.mrf.mxu1 }
 0xa96   :  { %v4392_v11 = vpop.f32.mrf.mxu0  ;;  %v4433_v52 = vpop.f32.mrf.mxu1 }
 0xa98   :  { %v4393_v33 = vpop.f32.mrf.mxu0  ;;  %v4434_v32 = vpop.f32.mrf.mxu1 }
 0xa9a   :  { %v4495_v7 = vpop.f32.mrf.mxu0  ;;  %v4536_v9 = vpop.f32.mrf.mxu1 }
 0xa9c   :  { %v4497_v44 = vpop.f32.mrf.mxu0  ;;  %v4538_v56 = vpop.f32.mrf.mxu1 }
 0xa9e   :  { %v4499_v21 = vpop.f32.mrf.mxu0  ;;  %v4540_v60 = vpop.f32.mrf.mxu1 }
 0xa9f   :  { %v4147_v21 = vadd.f32 %v4146_v30, %v4049_v18  ;;  %v4188_v60 = vadd.f32 %v4187_v5, %v4090_v61 }
 0xaa0   :  { %v4500_v46 = vpop.f32.mrf.mxu0  ;;  %v4541_v48 = vpop.f32.mrf.mxu1 }
 0xaa1   :  { %v4313_v16 = vadd.f32 %v4265_v20, %v4147_v21  ;;  %v4315_v2 = vadd.f32 %v4306_v6, %v4188_v60 }
 0xaa2   :  { %v4618_v35 = vpop.f32.mrf.mxu0  ;;  %v4659_v15 = vpop.f32.mrf.mxu1 }
 0xaa3   :  { %v4436_v53 = vadd.f32 %v4388_v62, %v4313_v16  ;;  %v4438_v50 = vadd.f32 %v4429_v28, %v4315_v2 }
 0xaa4   :  { %v4620_v59 = vpop.f32.mrf.mxu0  ;;  %v4661_v58 = vpop.f32.mrf.mxu1 }
 0xaa5   :  { %v4543_v55 = vadd.f32 %v4495_v7, %v4436_v53  ;;  %v4545_v27 = vadd.f32 %v4536_v9, %v4438_v50 }
 0xaa6   :  { %v4622_v22 = vpop.f32.mrf.mxu0  ;;  %v4663_v39 = vpop.f32.mrf.mxu1 }
 0xaa7   :  { %v4666_v57 = vadd.f32 %v4618_v35, %v4543_v55  ;;  %v4668_v37 = vadd.f32 %v4659_v15, %v4545_v27  ;;  %v9800_v55 = vmov 0.0  }
 0xaa8   :  { %v4623_v12 = vpop.f32.mrf.mxu0  ;;  %v4664_v17 = vpop.f32.mrf.mxu1  ;;  %8981 = vmatprep.subr.bf16.mxu0 %v9800_v55  ;;  %8987 = vmatprep.subr.bf16.mxu1 %v9800_v55 }
 0xaa9   :  { %v4437_v12 = vadd.f32 %v4390_v10, %v4314_v42  ;;  %v4439_v17 = vadd.f32 %v4431_v24, %v4316_v38 }
 0xaaa   :  { %v4741_v11 = vpop.f32.mrf.mxu0  ;;  %v4782_v52 = vpop.f32.mrf.mxu1 }
 0xaab   :  { %v4789_v42 = vadd.f32 %v4741_v11, %v4666_v57  ;;  %v4791_v38 = vadd.f32 %v4782_v52, %v4668_v37  ;;  %v11437_v57 = vld [vmem:[%s12204_s29] ss:$0 sm:$0xff]  ;;  %v11440_v37 = vld [vmem:[%s12204_s29 + $0x1] ss:$0 sm:$0xff] }
 0xaac   :  { %v4743_v33 = vpop.f32.mrf.mxu0  ;;  %v4784_v32 = vpop.f32.mrf.mxu1 }
 0xaae   :  { %v4745_v34 = vpop.f32.mrf.mxu0  ;;  %v4786_v49 = vpop.f32.mrf.mxu1 }
 0xaaf   :  { %v4544_v34 = vadd.f32 %v4497_v44, %v4437_v12  ;;  %v4546_v49 = vadd.f32 %v4538_v56, %v4439_v17 }
 0xab0   :  { %v4746_v46 = vpop.f32.mrf.mxu0  ;;  %v4787_v48 = vpop.f32.mrf.mxu1 }
 0xab1   :  { %v4667_v61 = vadd.f32 %v4620_v59, %v4544_v34  ;;  %v4669_v5 = vadd.f32 %v4661_v58, %v4546_v49 }
 0xab2   :  { %v4864_v22 = vpop.f32.mrf.mxu0  ;;  %v4905_v39 = vpop.f32.mrf.mxu1 }
 0xab3   :  { %v4790_v1 = vadd.f32 %v4743_v33, %v4667_v61  ;;  %v4792_v6 = vadd.f32 %v4784_v32, %v4669_v5  ;;  %v4912_v62 = vadd.f32 %v4864_v22, %v4789_v42  ;;  %v4914_v28 = vadd.f32 %v4905_v39, %v4791_v38  ;;  %v5254_v32 = vld [vmem:[%s12202_s24] sm:$0xff] }
 0xab4   :  { %v4866_v36 = vpop.f32.mrf.mxu0  ;;  %v4907_v29 = vpop.f32.mrf.mxu1  ;;  %v5261_v22 = vld [vmem:[%s12203_s14] sm:$0xff] }
 0xab5   :  { %v4913_v18 = vadd.f32 %v4866_v36, %v4790_v1  ;;  %v4915_v47 = vadd.f32 %v4907_v29, %v4792_v6  ;;  %v11445_v42 = vld [vmem:[%s12204_s29 + $0x3] ss:$0 sm:$0xff]  ;;  %v11448_v38 = vld [vmem:[%s12204_s29 + $0x2] ss:$0 sm:$0xff] }
 0xab6   :  { %v4868_v4 = vpop.f32.mrf.mxu0  ;;  %v4909_v30 = vpop.f32.mrf.mxu1 }
 0xab8   :  { %v4869_v20 = vpop.f32.mrf.mxu0  ;;  %v4910_v41 = vpop.f32.mrf.mxu1 }
 0xaba   :  { %v4987_v16 = vpop.f32.mrf.mxu0  ;;  %v5028_v2 = vpop.f32.mrf.mxu1 }
 0xabb   :  { %v5035_v7 = vadd.f32 %v4987_v16, %v4912_v62  ;;  %v5037_v9 = vadd.f32 %v5028_v2, %v4914_v28 }
 0xabc   :  { %v4989_v53 = vpop.f32.mrf.mxu0  ;;  %v5030_v50 = vpop.f32.mrf.mxu1 }
 0xabd   :  { %v5036_v10 = vadd.f32 %v4989_v53, %v4913_v18  ;;  %v5038_v24 = vadd.f32 %v5030_v50, %v4915_v47 }
 0xabe   :  { %v4991_v44 = vpop.f32.mrf.mxu0  ;;  %v5032_v56 = vpop.f32.mrf.mxu1 }
 0xabf   :  { %5167 = vmatprep.mubr.f32.mxu0 %v5036_v10  ;;  %5237 = vmatprep.mubr.f32.mxu1 %v5038_v24  ;;  %v11455_v10 = vld [vmem:[%s12204_s29 + $0x5] ss:$0 sm:$0xff]  ;;  %v5294_v24 = vld [vmem:[#allocation12 + $0x4] sm:$0xf] }
 0xac0   :  { %v4992_v35 = vpop.f32.mrf.mxu0  ;;  %v5033_v15 = vpop.f32.mrf.mxu1  ;;  %5168 = vmatmul.mubr.f32.vlgmr.msra.gmra.mxu0 %v5035_v7  ;;  %5238 = vmatmul.mubr.f32.vlgmr.msra.gmra.mxu1 %v5037_v9  ;;  %v5280_v7 = vld [vmem:[#allocation12] sm:$0xf] }
 0xac1   :  { %8983 = vmatprep.mubr.msk.bf16.mxu0 %vm9801_vm13, %v9800_v55  ;;  %8989 = vmatprep.mubr.msk.bf16.mxu1 %vm9801_vm13, %v9800_v55 }
 0xb80   :  { %v8716_v36 = vpop.f32.mrf.mxu0  ;;  %v8751_v29 = vpop.f32.mrf.mxu1 }
 0xb82   :  { %v8717_v59 = vpop.f32.mrf.mxu0  ;;  %v8752_v58 = vpop.f32.mrf.mxu1 }
 0xb83   :  { %v8718_v11 = vadd.f32 %v8717_v59, %v8716_v36  ;;  %v8753_v52 = vadd.f32 %v8752_v58, %v8751_v29  ;;  %v11471_v29 = vld [vmem:[%s12204_s29 + $0x6] ss:$0 sm:$0xff] }
 0xb85   :  { %v5240_v33 = vadd.f32 %v8753_v52, %v8718_v11  ;;  %v11476_v52 = vld [vmem:[%s12204_s29 + $0x7] ss:$0 sm:$0xff] }
 0xb87   :  { %5243 = vadd.xlane.f32.xlu0 %v5240_v33 }
 0xb9d   :  { %5257 = vperm.xlu0 %9414, %v5254_v32   ;;  %v5401_v32 = vld [vmem:[#allocation12 + $0x8] sm:$0xf] }
 0xc10   :  { %v5244_v21 = vpop.xlane.xlu0 %5243 }
 0xc11   :  { %v5245_v60 = vmul.f32 0.0078125, %v5244_v21  ;;  %v5462_v21 = vld [vmem:[#allocation12 + $0xc] sm:$0xf] }
 0xc13   :  { %v5246_v46 = vsub.f32 %v5240_v33, %v5245_v60 }
 0xc15   :  { %v5247_v48 = vmul.f32 %v5246_v46, %v5246_v46 }
 0xc17   :  { %5248 = vadd.xlane.f32.xlu1 %v5247_v48 }
 0xc18   :  { %v5258_v27 = vpop.permute.xlu0 %5257 }
 0xc28   :  { %5264 = vperm.xlu1 %9415, %v5261_v22  }
 0xca0   :  { %v5249_v39 = vpop.xlane.xlu1 %5248 }
 0xca1   :  { %v5250_v12 = vmul.f32 0.0078125, %v5249_v39 }
 0xca3   :  { %v5251_v17 = vadd.f32 1e-05, %v5250_v12 }
 0xca4   :  { %v5265_v30 = vpop.permute.xlu1 %5264 }
 0xca5   :  { %9443 = vrsqrt.f32 %v5251_v17  ;;  %v11491_v17 = vld [vmem:[%s12204_s29 + $0x8] ss:$0 sm:$0xff] }
 0xcb2   :  { %v9444_v34 = vpop.eup %9443 }
 0xcb3   :  { %v5253_v49 = vmul.f32 %v9444_v34, %v5246_v46 }
 0xcb5   :  { %v5260_v4 = vmul.f32 %v5258_v27, %v5253_v49  ;;  %v5512_v49 = vld [vmem:[#allocation12 + $0x10] sm:$0xf]  ;;  %v5573_v27 = vld [vmem:[#allocation12 + $0x14] sm:$0xf] }
 0xcb7   :  { %v5267_v61 = vadd.f32 %v5265_v30, %v5260_v4 }
 0xcb9   :  { %v11418_v5 = vmax.f32 %v5267_v61, 0.0 }
 0xcbb   :  { %5269 = vrot.lane.b32.xlu1 %v11418_v5, %s9802_s10  ;;  %5281 = vrot.lane.b32.xlu0 %v11418_v5, %s9776_s18  ;;  %v5510_v58 = vpack.c.bf16 %v11418_v5, %v11418_v5 }
 0xcbd   :  { %v5517_v22 = vsel %vm1613_vm11, %v5510_v58, 0  ;;  %v12238_v58 = vld [vmem:[#allocation75_spill] sm:$0xff] }
 0xcbf   :  { %5449 = vrot.lane.b32.xlu1 %v11418_v5, %s9794_s4  ;;  %5388 = vrot.lane.b32.xlu0 %v11418_v5, %s9803_s11 }
 0xcc3   :  { %5621 = vrot.lane.b32.xlu1 %v11418_v5, %s9804_s15  ;;  %5560 = vrot.lane.b32.xlu0 %v11418_v5, %s9795_s16 }
 0xcc7   :  { %5743 = vrot.lane.b32.xlu1 %v11418_v5, %s9805_s22  ;;  %5682 = vrot.lane.b32.xlu0 %v11418_v5, %s9806_s21 }
 0xd2d   :  { %v5270_v20 = vpop.permute.xlu1 %5269  ;;  %v5282_v41 = vpop.permute.xlu0 %5281 }
 0xd2e   :  { %v5278_v1 = vmul.f32 %v11437_v57, %v5270_v20  ;;  %v5291_v6 = vmul.f32 %v11440_v37, %v5282_v41  ;;  %v5634_v20 = vld [vmem:[#allocation12 + $0x18] sm:$0xf]  ;;  %v5695_v41 = vld [vmem:[#allocation12 + $0x1c] sm:$0xf] }
 0xd30   :  { %v5279_v16 = vpack.c.bf16 %v5278_v1, %v5278_v1  ;;  %v5292_v2 = vpack.c.bf16 %v5291_v6, %v5291_v6  ;;  %v12220_v6 = vld [vmem:[#allocation52_spill] sm:$0xff] }
 0xd31   :  { %v5450_v18 = vpop.permute.xlu1 %5449  ;;  %v5389_v47 = vpop.permute.xlu0 %5388 }
 0xd32   :  { %v5346_v62 = vsel %vm1613_vm11, %v5279_v16, 0  ;;  %v5300_v28 = vsel %vm1613_vm11, %v5292_v2, 0  ;;  %v5459_v53 = vmul.f32 %v11445_v42, %v5450_v18  ;;  %v5398_v50 = vmul.f32 %v11448_v38, %v5389_v47  ;;  %v12221_v16 = vld [vmem:[#allocation74_spill] sm:$0xff]  ;;  %v12222_v2 = vld [vmem:[#allocation57_spill] sm:$0xff]  ;;  %v12223_v18 = vld [vmem:[#allocation76_spill] sm:$0xff] }
 0xd33   :  { %8982 = vmatpush3.bf16.msra.mxu0 %v5300_v28  ;;  %8988 = vmatpush3.bf16.msra.mxu1 %v5346_v62  ;;  %v12224_v47 = vld [vmem:[#allocation56_spill] sm:$0xff]  ;;  %v12225_v62 = vld [vmem:[#allocation78_spill] sm:$0xff]  ;;  %v12226_v28 = vld [vmem:[#allocation61_spill] sm:$0xff] }
 0xd34   :  { %v5460_v9 = vpack.c.bf16 %v5459_v53, %v5459_v53  ;;  %v5399_v44 = vpack.c.bf16 %v5398_v50, %v5398_v50  ;;  %8993 = vmatprep.subr.bf16.mxu0 %v9800_v55  ;;  %8999 = vmatprep.subr.bf16.mxu1 %v9800_v55  ;;  %v12227_v53 = vld [vmem:[#allocation80_spill] sm:$0xff] }
 0xd35   :  { %v5561_v56 = vpop.permute.xlu0 %5560  ;;  %v5622_v11 = vpop.permute.xlu1 %5621  ;;  %v12228_v50 = vld [vmem:[#allocation60_spill] sm:$0xff] }
 0xd36   :  { %v5467_v35 = vsel %vm1613_vm11, %v5460_v9, 0  ;;  %v5406_v15 = vsel %vm1613_vm11, %v5399_v44, 0  ;;  %v5570_v36 = vmul.f32 %v11455_v10, %v5561_v56  ;;  %8984 = vmatmul.mubr.msk.bf16.vlgmr.msra.gmra.mxu0 %vm5295_vm14, %v5294_v24  ;;  %8990 = vmatmul.mubr.msk.bf16.vlgmr.msra.gmra.mxu1 %vm5295_vm14, %v5280_v7  ;;  %v5631_v60 = vmul.f32 %v11471_v29, %v5622_v11  ;;  %v12229_v24 = vld [vmem:[#allocation82_spill] sm:$0xff]  ;;  %v12230_v7 = vld [vmem:[#allocation65_spill] sm:$0xff]  ;;  %v12231_v9 = vld [vmem:[#allocation84_spill] sm:$0xff] }
 0xd37   :  { %8994 = vmatpush3.bf16.msra.mxu0 %v5406_v15  ;;  %9000 = vmatpush3.bf16.msra.mxu1 %v5467_v35  ;;  %v12232_v44 = vld [vmem:[#allocation64_spill] sm:$0xff]  ;;  %v12233_v56 = vld [vmem:[#allocation86_spill] sm:$0xff]  ;;  %v12234_v35 = vld [vmem:[#allocation71_spill] sm:$0xff] }
 0xd38   :  { %8995 = vmatprep.mubr.msk.bf16.mxu0 %vm9801_vm13, %v9800_v55  ;;  %9001 = vmatprep.mubr.msk.bf16.mxu1 %vm9801_vm13, %v9800_v55  ;;  %v5571_v59 = vpack.c.bf16 %v5570_v36, %v5570_v36  ;;  %v5632_v39 = vpack.c.bf16 %v5631_v60, %v5631_v60  ;;  %v12235_v15 = vld [vmem:[#allocation88_spill] sm:$0xff]  ;;  %v12236_v36 = vld [vmem:[#allocation73_spill] sm:$0xff] }
 0xd39   :  { %9005 = vmatprep.subr.bf16.mxu0 %v9800_v55  ;;  %9011 = vmatprep.subr.bf16.mxu1 %v9800_v55  ;;  %v5683_v33 = vpop.permute.xlu0 %5682  ;;  %v5744_v34 = vpop.permute.xlu1 %5743  ;;  %v12239_v11 = vld [vmem:[#allocation92_spill] sm:$0xff] }
 0xd3a   :  { %v5578_v46 = vsel %vm1613_vm11, %v5571_v59, 0  ;;  %v5692_v48 = vmul.f32 %v11476_v52, %v5683_v33  ;;  %v5639_v4 = vsel %vm1613_vm11, %v5632_v39, 0  ;;  %v5753_v30 = vmul.f32 %v11491_v17, %v5744_v34  ;;  %v12237_v59 = vld [vmem:[#allocation90_spill] sm:$0xff]  ;;  %v12240_v33 = vld [vmem:[#allocation77_spill] sm:$0xff]  ;;  %v12243_v60 = vld [vmem:[#allocation96_spill] sm:$0xff] }
 0xd3b   :  { %v12247_v39 = vld [vmem:[#allocation66_spill] sm:$0xff]  ;;  %v12249_v34 = vld [vmem:[#allocation87_spill] sm:$0xff] }
 0xd3c   :  { %v5693_v12 = vpack.c.bf16 %v5692_v48, %v5692_v48  ;;  %v5754_v5 = vpack.c.bf16 %v5753_v30, %v5753_v30  ;;  %v12245_v48 = vld [vmem:[#allocation98_spill] sm:$0xff]  ;;  %v12253_v30 = vld [vmem:[#allocation95_spill] sm:$0xff] }
 0xd3e   :  { %8996 = vmatmul.mubr.msk.bf16.vlgmr.msra.gmra.mxu0 %vm5295_vm14, %v5401_v32  ;;  %9002 = vmatmul.mubr.msk.bf16.vlgmr.msra.gmra.mxu1 %vm5295_vm14, %v5462_v21  ;;  %v5700_v61 = vsel %vm1613_vm11, %v5693_v12, 0  ;;  %v5761_v1 = vsel %vm1613_vm11, %v5754_v5, 0  ;;  %v12241_v32 = vld [vmem:[#allocation94_spill] sm:$0xff]  ;;  %v12242_v21 = vld [vmem:[#allocation79_spill] sm:$0xff]  ;;  %v12248_v12 = vld [vmem:[#allocation85_spill] sm:$0xff] }
 0xd3f   :  { %9006 = vmatpush3.bf16.msra.mxu0 %v5517_v22  ;;  %9012 = vmatpush3.bf16.msra.mxu1 %v5578_v46  ;;  %v12244_v46 = vld [vmem:[#allocation81_spill] sm:$0xff]  ;;  %v12246_v22 = vld [vmem:[#allocation83_spill] sm:$0xff] }
 0xd40   :  { %9007 = vmatprep.mubr.msk.bf16.mxu0 %vm9801_vm13, %v9800_v55  ;;  %9013 = vmatprep.mubr.msk.bf16.mxu1 %vm9801_vm13, %v9800_v55  ;;  %v12255_v5 = vld [vmem:[#allocation99_spill] sm:$0xff] }
 0xd41   :  { %9017 = vmatprep.subr.bf16.mxu0 %v9800_v55  ;;  %9023 = vmatprep.subr.bf16.mxu1 %v9800_v55 }
 0xd46   :  { %9008 = vmatmul.mubr.msk.bf16.vlgmr.msra.gmra.mxu0 %vm5295_vm14, %v5512_v49  ;;  %9014 = vmatmul.mubr.msk.bf16.vlgmr.msra.gmra.mxu1 %vm5295_vm14, %v5573_v27  ;;  %v12250_v49 = vld [vmem:[#allocation89_spill] sm:$0xff]  ;;  %v12251_v27 = vld [vmem:[#allocation91_spill] sm:$0xff] }
 0xd47   :  { %9018 = vmatpush3.bf16.msra.mxu0 %v5639_v4  ;;  %9024 = vmatpush3.bf16.msra.mxu1 %v5700_v61  ;;  %v12252_v4 = vld [vmem:[#allocation93_spill] sm:$0xff] }
 0xd48   :  { %9019 = vmatprep.mubr.msk.bf16.mxu0 %vm9801_vm13, %v9800_v55  ;;  %9025 = vmatprep.mubr.msk.bf16.mxu1 %vm9801_vm13, %v9800_v55  ;;  %v12254_v61 = vld [vmem:[#allocation97_spill] sm:$0xff] }
 0xd49   :  { %9029 = vmatprep.subr.bf16.mxu0 %v9800_v55  ;;  %8772 = vmatprep.subr.mxu1 %v11218_v31  ;;  %v5756_v31 = vld [vmem:[#allocation12 + $0x20] sm:$0xf] }
 0xd4e   :  { %9020 = vmatmul.mubr.msk.bf16.vlgmr.msra.gmra.mxu0 %vm5295_vm14, %v5634_v20  ;;  %9026 = vmatmul.mubr.msk.bf16.vlgmr.msra.gmra.mxu1 %vm5295_vm14, %v5695_v41  ;;  %v12256_v20 = vld [vmem:[#allocation68_spill] sm:$0xff] }
 0xd4f   :  { %9030 = vmatpush3.bf16.msra.mxu0 %v5761_v1  ;;  %8773 = vmatpush3.msra.mxu1 %v11222_v14  ;;  %v12207_v14 = vld [vmem:[#allocation54_spill] sm:$0xff] }
 0xd50   :  { %8774 = vmatprep.subr.mxu1 %v11230_v13  ;;  %5893 = vmatprep.mubr.f32.mxu1 %v10974_v63  ;;  %v12205_v63 = vld [vmem:[#allocation55_spill] sm:$0xff] }
 0xd51   :  { %8775 = vmatpush3.msra.mxu1 %v11236_v19  ;;  %9031 = vmatprep.mubr.msk.bf16.mxu0 %vm9801_vm13, %v9800_v55  ;;  %v12208_v13 = vld [vmem:[#allocation67_spill] sm:$0xff] }
 0xd52   :  { %8776 = vmatprep.subr.mxu1 %v11242_v0  ;;  %8807 = vmatprep.subr.mxu0 %v11220_v8  ;;  %v12206_v8 = vld [vmem:[#allocation69_spill] sm:$0xff]  ;;  %v12209_v19 = vld [vmem:[#allocation59_spill] sm:$0xff]  ;;  %v12210_v0 = vld [vmem:[#allocation48_spill] sm:$0xff] }
 0xd53   :  { %8777 = vmatpush3.msra.mxu1 %v11248_v3  ;;  %v12211_v3 = vld [vmem:[#allocation58_spill] sm:$0xff] }
 0xd54   :  { %8778 = vmatprep.subr.mxu1 %v11254_v54  ;;  %v12213_v54 = vld [vmem:[#allocation63_spill] sm:$0xff] }
 0xd55   :  { %8779 = vmatpush3.msra.mxu1 %v11258_v26  ;;  %v12216_v26 = vld [vmem:[#allocation53_spill] sm:$0xff] }
 0xd56   :  { %8780 = vmatprep.subr.mxu1 %v11266_v45  ;;  %9032 = vmatmul.mubr.msk.bf16.vlgmr.msra.gmra.mxu0 %vm5295_vm14, %v5756_v31  ;;  %v12217_v45 = vld [vmem:[#allocation70_spill] sm:$0xff] }
 0xd57   :  { %8781 = vmatpush3.msra.mxu1 %v11270_v43  ;;  %8808 = vmatpush3.msra.mxu0 %v11226_v40  ;;  %v12212_v40 = vld [vmem:[#allocation49_spill] sm:$0xff]  ;;  %v12218_v43 = vld [vmem:[#allocation50_spill] sm:$0xff] }
 0xd58   :  { %8782 = vmatprep.subr.mxu1 %v11278_v23  ;;  %8809 = vmatprep.subr.mxu0 %v11232_v25  ;;  %v12214_v25 = vld [vmem:[#allocation51_spill] sm:$0xff]  ;;  %v12219_v23 = vld [vmem:[#allocation72_spill] sm:$0xff] }
 0xd59   :  { %5963 = vmatprep.mubr.f32.mxu0 %v10982_v51  ;;  %8783 = vmatpush3.msra.mxu1 %v12205_v63  ;;  %v12215_v51 = vld [vmem:[#allocation62_spill] sm:$0xff] }
 0xd5a   :  { %8810 = vmatpush3.msra.mxu0 %v12206_v8  ;;  %8784 = vmatprep.subr.mxu1 %v12207_v14 }
 0xd5b   :  { %8811 = vmatprep.subr.mxu0 %v12208_v13  ;;  %8785 = vmatpush3.msra.mxu1 %v12209_v19 }
 0xd5c   :  { %8812 = vmatpush3.msra.mxu0 %v12210_v0  ;;  %8786 = vmatprep.subr.mxu1 %v12211_v3 }
 0xd5d   :  { %8813 = vmatprep.subr.mxu0 %v12212_v40  ;;  %8787 = vmatpush3.msra.mxu1 %v12213_v54 }
 0xd5e   :  { %8814 = vmatpush3.msra.mxu0 %v12214_v25  ;;  %8788 = vmatprep.subr.mxu1 %v12215_v51 }
 0xd5f   :  { %8815 = vmatprep.subr.mxu0 %v12216_v26  ;;  %8789 = vmatpush3.msra.mxu1 %v12217_v45 }
 0xd60   :  { %8816 = vmatpush3.msra.mxu0 %v12218_v43  ;;  %8790 = vmatprep.subr.mxu1 %v12219_v23 }
 0xd61   :  { %8817 = vmatprep.subr.mxu0 %v12220_v6  ;;  %8791 = vmatpush3.msra.mxu1 %v12221_v16 }
 0xd62   :  { %8818 = vmatpush3.msra.mxu0 %v12222_v2  ;;  %8792 = vmatprep.subr.mxu1 %v12223_v18 }
 0xd63   :  { %8819 = vmatprep.subr.mxu0 %v12224_v47  ;;  %8793 = vmatpush3.msra.mxu1 %v12225_v62 }
 0xd64   :  { %8820 = vmatpush3.msra.mxu0 %v12226_v28  ;;  %8794 = vmatprep.subr.mxu1 %v12227_v53 }
 0xd65   :  { %8821 = vmatprep.subr.mxu0 %v12228_v50  ;;  %8795 = vmatpush3.msra.mxu1 %v12229_v24 }
 0xd66   :  { %8822 = vmatpush3.msra.mxu0 %v12230_v7  ;;  %8796 = vmatprep.subr.mxu1 %v12231_v9 }
 0xd67   :  { %8823 = vmatprep.subr.mxu0 %v12232_v44  ;;  %8797 = vmatpush3.msra.mxu1 %v12233_v56 }
 0xd68   :  { %8824 = vmatpush3.msra.mxu0 %v12234_v35  ;;  %8798 = vmatprep.subr.mxu1 %v12235_v15 }
 0xd69   :  { %8825 = vmatprep.subr.mxu0 %v12236_v36  ;;  %8799 = vmatpush3.msra.mxu1 %v12237_v59 }
 0xd6a   :  { %8826 = vmatpush3.msra.mxu0 %v12238_v58  ;;  %8800 = vmatprep.subr.mxu1 %v12239_v11 }
 0xd6b   :  { %8827 = vmatprep.subr.mxu0 %v12240_v33  ;;  %8801 = vmatpush3.msra.mxu1 %v12241_v32 }
 0xd6c   :  { %8828 = vmatpush3.msra.mxu0 %v12242_v21  ;;  %8802 = vmatprep.subr.mxu1 %v12243_v60 }
 0xd6d   :  { %8829 = vmatprep.subr.mxu0 %v12244_v46  ;;  %8803 = vmatpush3.msra.mxu1 %v12245_v48 }
 0xd6e   :  { %8830 = vmatpush3.msra.mxu0 %v12246_v22  ;;  %5894 = vmatmul.mubr.f32.vlgmr.msra.gmra.mxu1 %v12247_v39 }
 0xd6f   :  { %8831 = vmatprep.subr.mxu0 %v12248_v12  ;;  %9035 = vmatprep.subr.bf16.mxu1 %v9800_v55 }
 0xd70   :  { %8832 = vmatpush3.msra.mxu0 %v12249_v34  ;;  %9037 = vmatprep.mubr.msk.bf16.mxu1 %vm9801_vm13, %v9800_v55 }
 0xd71   :  { %8833 = vmatprep.subr.mxu0 %v12250_v49 }
 0xd72   :  { %8834 = vmatpush3.msra.mxu0 %v12251_v27 }
 0xd73   :  { %8835 = vmatprep.subr.mxu0 %v12252_v4 }
 0xd74   :  { %8836 = vmatpush3.msra.mxu0 %v12253_v30 }
 0xd75   :  { %8837 = vmatprep.subr.mxu0 %v12254_v61 }
 0xd76   :  { %8838 = vmatpush3.msra.mxu0 %v12255_v5  ;;  %v5969_v5 = vld [vmem:[#allocation9] sm:$0xf] }
 0xd77   :  { %5964 = vmatmul.mubr.f32.vlgmr.msra.gmra.mxu0 %v12256_v20  ;;  %9041 = vmatprep.subr.bf16.mxu0 %v9800_v55 }
 0xd78   :  { %9043 = vmatprep.mubr.msk.bf16.mxu0 %vm9801_vm13, %v9800_v55 }
 0xdf6   :  { %v5336_v41 = vpop.f32.mrf.mxu0  ;;  %v5382_v1 = vpop.f32.mrf.mxu1 }
 0xdf7   :  { %v5383_v26 = vadd.f32 %v5382_v1, %v5336_v41 }
 0xdf8   :  { %v8985_v31 = vpop.f32.mrf.mxu0  ;;  %v8991_v63 = vpop.f32.mrf.mxu1 }
 0xdfa   :  { %v5339_v8 = vpop.f32.mrf.mxu0  ;;  %v5385_v14 = vpop.f32.mrf.mxu1 }
 0xdfc   :  { %v8986_v13 = vpop.f32.mrf.mxu0  ;;  %v8992_v19 = vpop.f32.mrf.mxu1 }
 0xdfd   :  { %v5815_v19 = vld [vmem:[%s12257_s8] sm:$0xff] }
 0xdfe   :  { %v5442_v0 = vpop.f32.mrf.mxu0  ;;  %v5503_v3 = vpop.f32.mrf.mxu1 }
 0xdff   :  { %v5448_v23 = vadd.f32 %v5442_v0, %v5383_v26  ;;  %v5822_v0 = vld [vmem:[%s12258_s7] sm:$0xff] }
 0xe00   :  { %v8997_v40 = vpop.f32.mrf.mxu0  ;;  %v9003_v54 = vpop.f32.mrf.mxu1  ;;  %v6028_v26 = vld [vmem:[%s12260_s25] sm:$0xff] }
 0xe01   :  { %v5509_v47 = vadd.f32 %v5503_v3, %v5448_v23  ;;  %v6035_v3 = vld [vmem:[%s12259_s0] sm:$0xff] }
 0xe02   :  { %v5445_v25 = vpop.f32.mrf.mxu0  ;;  %v5506_v51 = vpop.f32.mrf.mxu1 }
 0xe04   :  { %v8998_v45 = vpop.f32.mrf.mxu0  ;;  %v9004_v43 = vpop.f32.mrf.mxu1 }
 0xe06   :  { %v5553_v6 = vpop.f32.mrf.mxu0  ;;  %v5614_v16 = vpop.f32.mrf.mxu1 }
 0xe07   :  { %v5559_v53 = vadd.f32 %v5553_v6, %v5509_v47 }
 0xe08   :  { %v9009_v2 = vpop.f32.mrf.mxu0  ;;  %v9015_v18 = vpop.f32.mrf.mxu1 }
 0xe09   :  { %v5620_v44 = vadd.f32 %v5614_v16, %v5559_v53 }
 0xe0a   :  { %v5556_v62 = vpop.f32.mrf.mxu0  ;;  %v5617_v28 = vpop.f32.mrf.mxu1 }
 0xe0c   :  { %v9010_v50 = vpop.f32.mrf.mxu0  ;;  %v9016_v24 = vpop.f32.mrf.mxu1 }
 0xe0e   :  { %v5675_v7 = vpop.f32.mrf.mxu0  ;;  %v5736_v9 = vpop.f32.mrf.mxu1 }
 0xe0f   :  { %v5681_v15 = vadd.f32 %v5675_v7, %v5620_v44 }
 0xe10   :  { %v9021_v56 = vpop.f32.mrf.mxu0  ;;  %v9027_v35 = vpop.f32.mrf.mxu1 }
 0xe11   :  { %v5742_v33 = vadd.f32 %v5736_v9, %v5681_v15 }
 0xe12   :  { %v5678_v36 = vpop.f32.mrf.mxu0  ;;  %v5739_v59 = vpop.f32.mrf.mxu1 }
 0xe14   :  { %v9022_v58 = vpop.f32.mrf.mxu0  ;;  %v9028_v11 = vpop.f32.mrf.mxu1 }
 0xe16   :  { %v5797_v32 = vpop.f32.mrf.mxu0 }
 0xe17   :  { %v5803_v21 = vadd.f32 %v5797_v32, %v5742_v33 }
 0xe18   :  { %v9033_v60 = vpop.f32.mrf.mxu0 }
 0xe19   :  { %5804 = vadd.xlane.f32.xlu0 %v5803_v21 }
 0xe1a   :  { %v5800_v46 = vpop.f32.mrf.mxu0 }
 0xe1c   :  { %v9034_v48 = vpop.f32.mrf.mxu0 }
 0xe2e   :  { %v8804_v22 = vpop.f32.mrf.mxu1 }
 0xe30   :  { %v8805_v39 = vpop.f32.mrf.mxu1 }
 0xe31   :  { %v8806_v49 = vadd.f32 %v8805_v39, %v8804_v22 }
 0xe37   :  { %v8839_v12 = vpop.f32.mrf.mxu0 }
 0xe39   :  { %v8840_v34 = vpop.f32.mrf.mxu0 }
 0xe3a   :  { %v8841_v27 = vadd.f32 %v8840_v34, %v8839_v12  ;;  %v9418_v34 = vld [vmem:[%s12261_s27 + $0x8] sm:$0xff]  }
 0xe3c   :  { %v5966_v4 = vadd.f32 %v8841_v27, %v8806_v49  ;;  %v9419_v49 = vld [vmem:[%s12261_s27] sm:$0xff]  }
 0xe3e   :  { %v5970_v30 = vpack.c.bf16 %v5966_v4, %v5966_v4 }
 0xe40   :  { %v5975_v61 = vsel %vm430_vm2, %v5970_v30, 0  ;;  %vm8366_vm2 = vcmask 15360  }
 0xe41   :  { %9036 = vmatpush3.bf16.msra.mxu1 %v5975_v61  ;;  %v9420_v61 = vld [vmem:[%s12261_s27 + $0x10] sm:$0xff]  }
 0xe42   :  { %9047 = vmatprep.subr.bf16.mxu1 %v9800_v55 }
 0xe44   :  { %9038 = vmatmul.mubr.msk.bf16.vlgmr.msra.gmra.mxu1 %vm1715_vm12, %v5969_v5  ;;  %v9421_v5 = vld [vmem:[%s12261_s27 + $0x18] sm:$0xff]  }
 0xe45   :  { %9049 = vmatprep.mubr.msk.bf16.mxu1 %vm9801_vm13, %v9800_v55 }
 0xea2   :  { %v5805_v20 = vpop.xlane.xlu0 %5804 }
 0xea3   :  { %v5806_v41 = vmul.f32 0.0078125, %v5805_v20 }
 0xea5   :  { %v5807_v1 = vsub.f32 %v5803_v21, %v5806_v41 }
 0xea7   :  { %v5808_v31 = vmul.f32 %v5807_v1, %v5807_v1 }
 0xea9   :  { %5809 = vadd.xlane.f32.xlu0 %v5808_v31 }
 0xf04   :  { %v6011_v63 = vpop.f32.mrf.mxu1 }
 0xf05   :  { %6017 = vadd.xlane.f32.xlu1 %v6011_v63 }
 0xf06   :  { %v9039_v8 = vpop.f32.mrf.mxu1 }
 0xf08   :  { %v6014_v14 = vpop.f32.mrf.mxu1 }
 0xf09   :  { %v9422_v14 = vld [vmem:[%s12261_s27 + $0x20] sm:$0xff]  }
 0xf0a   :  { %v9040_v13 = vpop.f32.mrf.mxu1 }
 0xf0b   :  { %v9423_v13 = vld [vmem:[%s12261_s27 + $0x28] sm:$0xff]  }
 0xf16   :  { %5818 = vperm.xlu1 %9415, %v5815_v19  }
 0xf1a   :  { %5825 = vperm.xlu1 %9415, %v5822_v0  }
 0xf1e   :  { %6038 = vperm.xlu1 %9415, %v6035_v3  }
 0xf32   :  { %v5810_v45 = vpop.xlane.xlu0 %5809 }
 0xf33   :  { %v5811_v43 = vmul.f32 0.0078125, %v5810_v45  ;;  %v11668_v45 = vld [vmem:[#allocation13 + $0x78] sm:$0xff] }
 0xf35   :  { %v5812_v23 = vadd.f32 1e-05, %v5811_v43  ;;  %v11672_v43 = vld [vmem:[#allocation13 + $0x70] sm:$0xff] }
 0xf37   :  { %9445 = vrsqrt.f32 %v5812_v23  ;;  %v11676_v23 = vld [vmem:[#allocation13 + $0x68] sm:$0xff] }
 0xf44   :  { %v9446_v47 = vpop.eup %9445 }
 0xf45   :  { %v5814_v53 = vmul.f32 %v9446_v47, %v5807_v1  ;;  %v11696_v47 = vld [vmem:[#allocation13 + $0x40] sm:$0xff] }
 0xf8e   :  { %v6018_v40 = vpop.xlane.xlu1 %6017 }
 0xf8f   :  { %v6019_v54 = vmul.f32 0.0078125, %v6018_v40 }
 0xf91   :  { %v6020_v25 = vsub.f32 %v6011_v63, %v6019_v54 }
 0xf92   :  { %v5819_v18 = vpop.permute.xlu1 %5818 }
 0xf93   :  { %v6021_v51 = vmul.f32 %v6020_v25, %v6020_v25  ;;  %v5821_v7 = vmul.f32 %v5819_v18, %v5814_v53  ;;  %v11692_v18 = vld [vmem:[#allocation13 + $0x48] sm:$0xff] }
 0xf94   :  { %v11708_v53 = vld [vmem:[#allocation13 + $0x28] sm:$0xff] }
 0xf95   :  { %6022 = vadd.xlane.f32.xlu0 %v6021_v51 }
 0xf96   :  { %v5826_v62 = vpop.permute.xlu1 %5825 }
 0xf97   :  { %v5828_v56 = vadd.f32 %v5826_v62, %v5821_v7  ;;  %v11700_v62 = vld [vmem:[#allocation13 + $0x38] sm:$0xff]  ;;  %v11720_v7 = vld [vmem:[#allocation13 + $0x10] sm:$0xff] }
 0xf9a   :  { %v6039_v44 = vpop.permute.xlu1 %6038 }
 0xfab   :  { %6031 = vperm.xlu0 %9414, %v6028_v26   ;;  %v9426_v26 = vld [vmem:[%s12261_s27 + $0x40] sm:$0xff]  }
0x101e   :  { %v6023_v6 = vpop.xlane.xlu0 %6022 }
0x101f   :  { %v6024_v16 = vmul.f32 0.0078125, %v6023_v6  ;;  %v11680_v6 = vld [vmem:[#allocation13 + $0x60] sm:$0xff] }
0x1021   :  { %v6025_v2 = vadd.f32 1e-05, %v6024_v16  ;;  %v11684_v16 = vld [vmem:[#allocation13 + $0x58] sm:$0xff] }
0x1023   :  { %9447 = vrsqrt.f32 %v6025_v2  ;;  %v11688_v2 = vld [vmem:[#allocation13 + $0x50] sm:$0xff] }
0x1026   :  { %v6032_v24 = vpop.permute.xlu0 %6031 }
0x1030   :  { %v9448_v28 = vpop.eup %9447 }
0x1031   :  { %v6027_v50 = vmul.f32 %v9448_v28, %v6020_v25  ;;  %v9424_v25 = vld [vmem:[%s12261_s27 + $0x30] sm:$0xff]   ;;  %v11704_v28 = vld [vmem:[#allocation13 + $0x30] sm:$0xff] }
0x1033   :  { %v6034_v9 = vmul.f32 %v6032_v24, %v6027_v50  ;;  %v11712_v50 = vld [vmem:[#allocation13 + $0x20] sm:$0xff]  ;;  %v11716_v24 = vld [vmem:[#allocation13 + $0x18] sm:$0xff] }
0x1035   :  { %v6041_v35 = vadd.f32 %v6039_v44, %v6034_v9  ;;  %v11723_v9 = vld [vmem:[#allocation13 + $0x8] sm:$0xff]  ;;  %v11728_v44 = vld [vmem:[#allocation13] sm:$0xff] }
0x1037   :  { %v6042_v15 = vadd.f32 %v6041_v35, %v5828_v56 }
0x1039   :  { %v11592_v36 = vmax.f32 %v6042_v15, 0.0 }
0x103b   :  { %6044 = vrot.lane.b32.xlu1 %v11592_v36, %s9802_s10  ;;  %6050 = vrot.lane.b32.xlu0 %v11592_v36, %s9776_s18  ;;  %s12262_s18 = sld [smem:[#allocation44_spill]] }
0x103f   :  { %6222 = vrot.lane.b32.xlu1 %v11592_v36, %s9794_s4  ;;  %6161 = vrot.lane.b32.xlu0 %v11592_v36, %s9803_s11 }
0x1043   :  { %6402 = vrot.lane.b32.xlu1 %v11592_v36, %s9804_s15  ;;  %6341 = vrot.lane.b32.xlu0 %v11592_v36, %s9795_s16 }
0x1047   :  { %6524 = vrot.lane.b32.xlu1 %v11592_v36, %s9805_s22  ;;  %6463 = vrot.lane.b32.xlu0 %v11592_v36, %s9806_s21 }
0x10ad   :  { %v6045_v59 = vpop.permute.xlu1 %6044  ;;  %v6051_v58 = vpop.permute.xlu0 %6050 }
0x10ae   :  { %v6046_v11 = vmul.f32 %v11437_v57, %v6045_v59  ;;  %v6052_v33 = vmul.f32 %v11440_v37, %v6051_v58 }
0x10b0   :  { %v6047_v32 = vpack.c.bf16 %v6046_v11, %v6046_v11  ;;  %v6053_v21 = vpack.c.bf16 %v6052_v33, %v6052_v33 }
0x10b1   :  { %v6223_v60 = vpop.permute.xlu1 %6222  ;;  %v6162_v46 = vpop.permute.xlu0 %6161 }
0x10b2   :  { %v6118_v48 = vsel %vm1613_vm11, %v6047_v32, 0  ;;  %v6066_v22 = vsel %vm1613_vm11, %v6053_v21, 0  ;;  %v6224_v39 = vmul.f32 %v11445_v42, %v6223_v60  ;;  %v6163_v12 = vmul.f32 %v11448_v38, %v6162_v46 }
0x10b3   :  { %9042 = vmatpush3.bf16.msra.mxu0 %v6066_v22  ;;  %9048 = vmatpush3.bf16.msra.mxu1 %v6118_v48 }
0x10b4   :  { %v6225_v27 = vpack.c.bf16 %v6224_v39, %v6224_v39  ;;  %v6164_v57 = vpack.c.bf16 %v6163_v12, %v6163_v12  ;;  %9053 = vmatprep.subr.bf16.mxu0 %v9800_v55  ;;  %9059 = vmatprep.subr.bf16.mxu1 %v9800_v55 }
0x10b5   :  { %v6342_v37 = vpop.permute.xlu0 %6341  ;;  %v6403_v20 = vpop.permute.xlu1 %6402 }
0x10b6   :  { %v6238_v4 = vsel %vm1613_vm11, %v6225_v27, 0  ;;  %v6177_v30 = vsel %vm1613_vm11, %v6164_v57, 0  ;;  %v6343_v42 = vmul.f32 %v11455_v10, %v6342_v37  ;;  %9044 = vmatmul.mubr.msk.bf16.vlgmr.msra.gmra.mxu0 %vm5295_vm14, %v9418_v34  ;;  %9050 = vmatmul.mubr.msk.bf16.vlgmr.msra.gmra.mxu1 %vm5295_vm14, %v9419_v49  ;;  %v6283_v10 = vpack.c.bf16 %v11592_v36, %v11592_v36 }
0x10b7   :  { %9054 = vmatpush3.bf16.msra.mxu0 %v6177_v30  ;;  %9060 = vmatpush3.bf16.msra.mxu1 %v6238_v4  ;;  %v6404_v1 = vmul.f32 %v11471_v29, %v6403_v20 }
0x10b8   :  { %9055 = vmatprep.mubr.msk.bf16.mxu0 %vm9801_vm13, %v9800_v55  ;;  %9061 = vmatprep.mubr.msk.bf16.mxu1 %vm9801_vm13, %v9800_v55  ;;  %v6344_v38 = vpack.c.bf16 %v6343_v42, %v6343_v42  ;;  %v6296_v8 = vsel %vm1613_vm11, %v6283_v10, 0 }
0x10b9   :  { %9065 = vmatprep.subr.bf16.mxu0 %v9800_v55  ;;  %9071 = vmatprep.subr.bf16.mxu1 %v9800_v55  ;;  %v6464_v41 = vpop.permute.xlu0 %6463  ;;  %v6405_v29 = vpack.c.bf16 %v6404_v1, %v6404_v1  ;;  %v6525_v19 = vpop.permute.xlu1 %6524 }
0x10ba   :  { %v6357_v31 = vsel %vm1613_vm11, %v6344_v38, 0  ;;  %v6465_v63 = vmul.f32 %v11476_v52, %v6464_v41  ;;  %v6526_v3 = vmul.f32 %v11491_v17, %v6525_v19  ;;  %v9425_v17 = vld [vmem:[%s12261_s27 + $0x38] sm:$0xff]  }
0x10bb   :  { %v6418_v0 = vsel %vm1613_vm11, %v6405_v29, 0 }
0x10bc   :  { %v6466_v52 = vpack.c.bf16 %v6465_v63, %v6465_v63  ;;  %v6527_v54 = vpack.c.bf16 %v6526_v3, %v6526_v3 }
0x10be   :  { %9056 = vmatmul.mubr.msk.bf16.vlgmr.msra.gmra.mxu0 %vm5295_vm14, %v9420_v61  ;;  %9062 = vmatmul.mubr.msk.bf16.vlgmr.msra.gmra.mxu1 %vm5295_vm14, %v9421_v5  ;;  %v6479_v40 = vsel %vm1613_vm11, %v6466_v52, 0  ;;  %v6540_v51 = vsel %vm1613_vm11, %v6527_v54, 0 }
0x10bf   :  { %9066 = vmatpush3.bf16.msra.mxu0 %v6296_v8  ;;  %9072 = vmatpush3.bf16.msra.mxu1 %v6357_v31 }
0x10c0   :  { %9067 = vmatprep.mubr.msk.bf16.mxu0 %vm9801_vm13, %v9800_v55  ;;  %9073 = vmatprep.mubr.msk.bf16.mxu1 %vm9801_vm13, %v9800_v55 }
0x10c1   :  { %9077 = vmatprep.subr.bf16.mxu0 %v9800_v55  ;;  %9083 = vmatprep.subr.bf16.mxu1 %v9800_v55 }
0x10c6   :  { %9068 = vmatmul.mubr.msk.bf16.vlgmr.msra.gmra.mxu0 %vm5295_vm14, %v9422_v14  ;;  %9074 = vmatmul.mubr.msk.bf16.vlgmr.msra.gmra.mxu1 %vm5295_vm14, %v9423_v13 }
0x10c7   :  { %9078 = vmatpush3.bf16.msra.mxu0 %v6418_v0  ;;  %9084 = vmatpush3.bf16.msra.mxu1 %v6479_v40 }
0x10c8   :  { %9079 = vmatprep.mubr.msk.bf16.mxu0 %vm9801_vm13, %v9800_v55  ;;  %9089 = vmatprep.subr.bf16.mxu0 %v9800_v55 }
0x10c9   :  { %9085 = vmatprep.mubr.msk.bf16.mxu1 %vm9801_vm13, %v9800_v55  ;;  %9095 = vmatprep.subr.mxu1 %v11668_v45 }
0x10ce   :  { %9080 = vmatmul.mubr.msk.bf16.vlgmr.msra.gmra.mxu0 %vm5295_vm14, %v9424_v25  ;;  %9086 = vmatmul.mubr.msk.bf16.vlgmr.msra.gmra.mxu1 %vm5295_vm14, %v9425_v17 }
0x10cf   :  { %9090 = vmatpush3.bf16.msra.mxu0 %v6540_v51  ;;  %9091 = vmatprep.mubr.msk.bf16.mxu0 %vm9801_vm13, %v9800_v55 }
0x10d0   :  { %9096 = vmatpush3.msra.mxu1 %v11668_v45 }
0x10d1   :  { %9097 = vmatprep.subr.mxu1 %v11672_v43 }
0x10d2   :  { %9098 = vmatpush3.msra.mxu1 %v11672_v43 }
0x10d3   :  { %9099 = vmatprep.subr.mxu1 %v11676_v23 }
0x10d4   :  { %9100 = vmatpush3.msra.mxu1 %v11676_v23 }
0x10d5   :  { %9101 = vmatprep.subr.mxu1 %v11680_v6 }
0x10d6   :  { %9092 = vmatmul.mubr.msk.bf16.vlgmr.msra.gmra.mxu0 %vm5295_vm14, %v9426_v26  ;;  %9102 = vmatpush3.msra.mxu1 %v11680_v6 }
0x10d7   :  { %9103 = vmatprep.subr.mxu1 %v11684_v16 }
0x10d8   :  { %9104 = vmatpush3.msra.mxu1 %v11684_v16 }
0x10d9   :  { %9105 = vmatprep.subr.mxu1 %v11688_v2 }
0x10da   :  { %9106 = vmatpush3.msra.mxu1 %v11688_v2 }
0x10db   :  { %9107 = vmatprep.subr.mxu1 %v11692_v18 }
0x10dc   :  { %9108 = vmatpush3.msra.mxu1 %v11692_v18 }
0x10dd   :  { %9109 = vmatprep.subr.mxu1 %v11696_v47 }
0x10de   :  { %9110 = vmatpush3.msra.mxu1 %v11696_v47 }
0x10df   :  { %9111 = vmatprep.subr.mxu1 %v11700_v62 }
0x10e0   :  { %9112 = vmatpush3.msra.mxu1 %v11700_v62 }
0x10e1   :  { %9113 = vmatprep.subr.mxu1 %v11704_v28 }
0x10e2   :  { %9114 = vmatpush3.msra.mxu1 %v11704_v28 }
0x10e3   :  { %9115 = vmatprep.subr.mxu1 %v11708_v53 }
0x10e4   :  { %9116 = vmatpush3.msra.mxu1 %v11708_v53 }
0x10e5   :  { %9117 = vmatprep.subr.mxu1 %v11712_v50 }
0x10e6   :  { %9118 = vmatpush3.msra.mxu1 %v11712_v50 }
0x10e7   :  { %9119 = vmatprep.subr.mxu1 %v11716_v24 }
0x10e8   :  { %9120 = vmatpush3.msra.mxu1 %v11716_v24 }
0x10e9   :  { %9121 = vmatprep.subr.mxu1 %v11720_v7 }
0x10ea   :  { %9122 = vmatpush3.msra.mxu1 %v11720_v7 }
0x10eb   :  { %9123 = vmatprep.subr.mxu1 %v11723_v9 }
0x10ec   :  { %9124 = vmatpush3.msra.mxu1 %v11723_v9 }
0x10ed   :  { %9125 = vmatprep.subr.mxu1 %v11728_v44 }
0x10ee   :  { %9126 = vmatpush3.msra.mxu1 %v11728_v44 }
0x1176   :  { %v6102_v56 = vpop.f32.mrf.mxu0  ;;  %v6154_v35 = vpop.f32.mrf.mxu1 }
0x1177   :  { %v6155_v12 = vadd.f32 %v6154_v35, %v6102_v56 }
0x1178   :  { %v9045_v15 = vpop.f32.mrf.mxu0  ;;  %v9051_v59 = vpop.f32.mrf.mxu1 }
0x117a   :  { %v6105_v58 = vpop.f32.mrf.mxu0  ;;  %v6157_v11 = vpop.f32.mrf.mxu1 }
0x117b   :  { %v6158_v4 = vadd.f32 %v6157_v11, %v6105_v58 }
0x117c   :  { %v9046_v33 = vpop.f32.mrf.mxu0  ;;  %v9052_v32 = vpop.f32.mrf.mxu1 }
0x117e   :  { %v6213_v21 = vpop.f32.mrf.mxu0  ;;  %v6274_v60 = vpop.f32.mrf.mxu1 }
0x117f   :  { %v6220_v27 = vadd.f32 %v6213_v21, %v6155_v12 }
0x1180   :  { %v9057_v46 = vpop.f32.mrf.mxu0  ;;  %v9063_v48 = vpop.f32.mrf.mxu1 }
0x1181   :  { %v6281_v38 = vadd.f32 %v6274_v60, %v6220_v27  ;;  %v6703_v46 = vld [vmem:[%s12262_s18] sm:$0xff] }
0x1182   :  { %v6216_v22 = vpop.f32.mrf.mxu0  ;;  %v6277_v39 = vpop.f32.mrf.mxu1  ;;  %v6717_v48 = vld [vmem:[%s12263_s6] sm:$0xff] }
0x1183   :  { %v6221_v61 = vadd.f32 %v6216_v22, %v6158_v4  ;;  %v6718_v22 = vld [vmem:[%s12263_s6 + $0x8] sm:$0xff] }
0x1184   :  { %v9058_v34 = vpop.f32.mrf.mxu0  ;;  %v9064_v49 = vpop.f32.mrf.mxu1 }
0x1185   :  { %v6282_v31 = vadd.f32 %v6277_v39, %v6221_v61  ;;  %v6736_v61 = vld [vmem:[%s12264_s20 + $0x18] sm:$0xff] }
0x1186   :  { %v6332_v57 = vpop.f32.mrf.mxu0  ;;  %v6393_v37 = vpop.f32.mrf.mxu1  ;;  %9130 = vmatprep.subr.mxu0 %v6736_v61 }
0x1187   :  { %v6339_v20 = vadd.f32 %v6332_v57, %v6281_v38  ;;  %v6704_v38 = vld [vmem:[%s12262_s18 + $0x8] sm:$0xff]  ;;  %9131 = vmatpush3.msra.mxu0 %v6736_v61 }
0x1188   :  { %v9069_v30 = vpop.f32.mrf.mxu0  ;;  %v9075_v42 = vpop.f32.mrf.mxu1  ;;  %v8663_v61 = vld [vmem:[%s12264_s20 + $0xe8] sm:$0xff] }
0x1189   :  { %v6400_v29 = vadd.f32 %v6393_v37, %v6339_v20  ;;  %v8632_v20 = vld [vmem:[%s12264_s20 + $0x70] sm:$0xff] }
0x118a   :  { %v6335_v5 = vpop.f32.mrf.mxu0  ;;  %v6396_v10 = vpop.f32.mrf.mxu1 }
0x118b   :  { %v6340_v52 = vadd.f32 %v6335_v5, %v6282_v31  ;;  %v8633_v5 = vld [vmem:[%s12264_s20 + $0x78] sm:$0xff]  ;;  %v6733_v31 = vld [vmem:[%s12264_s20] sm:$0xff] }
0x118c   :  { %v9070_v41 = vpop.f32.mrf.mxu0  ;;  %v9076_v1 = vpop.f32.mrf.mxu1  ;;  %9181 = vmatprep.subr.mxu1 %v8633_v5 }
0x118d   :  { %v6401_v40 = vadd.f32 %v6396_v10, %v6340_v52  ;;  %v6735_v10 = vld [vmem:[%s12264_s20 + $0x10] sm:$0xff]  ;;  %v6734_v41 = vld [vmem:[%s12264_s20 + $0x8] sm:$0xff] }
0x118e   :  { %v6454_v63 = vpop.f32.mrf.mxu0  ;;  %v6515_v8 = vpop.f32.mrf.mxu1  ;;  %9132 = vmatprep.subr.mxu0 %v6735_v10  ;;  %v8631_v1 = vld [vmem:[%s12264_s20 + $0x68] sm:$0xff] }
0x118f   :  { %v6461_v19 = vadd.f32 %v6454_v63, %v6400_v29  ;;  %9133 = vmatpush3.msra.mxu0 %v6735_v10  ;;  %v8630_v63 = vld [vmem:[%s12264_s20 + $0x60] sm:$0xff]  ;;  %v8641_v29 = vld [vmem:[%s12264_s20 + $0x98] sm:$0xff] }
0x1190   :  { %v9081_v14 = vpop.f32.mrf.mxu0  ;;  %v9087_v13 = vpop.f32.mrf.mxu1  ;;  %9134 = vmatprep.subr.mxu0 %v6734_v41  ;;  %v8673_v10 = vld [vmem:[%s12264_s20 + $0x118] sm:$0xff] }
0x1191   :  { %v6522_v17 = vadd.f32 %v6515_v8, %v6461_v19  ;;  %9135 = vmatpush3.msra.mxu0 %v6734_v41  ;;  %v8615_v8 = vld [vmem:[%s12264_s20 + $0x38] sm:$0xff]  ;;  %v8671_v41 = vld [vmem:[%s12264_s20 + $0x108] sm:$0xff] }
0x1192   :  { %v6457_v0 = vpop.f32.mrf.mxu0  ;;  %v6518_v3 = vpop.f32.mrf.mxu1  ;;  %9136 = vmatprep.subr.mxu0 %v6733_v31 }
0x1193   :  { %v6462_v51 = vadd.f32 %v6457_v0, %v6401_v40  ;;  %9137 = vmatpush3.msra.mxu0 %v6733_v31  ;;  %v9428_v31 = vld [vmem:[#allocation16] sm:$0xff]  }
0x1194   :  { %v9082_v54 = vpop.f32.mrf.mxu0  ;;  %v9088_v25 = vpop.f32.mrf.mxu1  ;;  %9141 = vmatprep.subr.mxu0 %v8615_v8 }
0x1195   :  { %v6523_v15 = vadd.f32 %v6518_v3, %v6462_v51 }
0x1196   :  { %v6576_v26 = vpop.f32.mrf.mxu0 }
0x1197   :  { %v6583_v56 = vadd.f32 %v6576_v26, %v6522_v17 }
0x1198   :  { %v9093_v35 = vpop.f32.mrf.mxu0 }
0x1199   :  { %9127 = vmatprep.mubr.f32.mxu1 %v6583_v56 }
0x119a   :  { %v6579_v59 = vpop.f32.mrf.mxu0 }
0x119b   :  { %v6584_v58 = vadd.f32 %v6579_v59, %v6523_v15 }
0x119c   :  { %v9094_v11 = vpop.f32.mrf.mxu0 }
0x119d   :  { %9128 = vmatmul.mubr.f32.vlgmr.msra.gmra.mxu1 %v6584_v58 }
0x119e   :  { %9182 = vmatpush3.msra.mxu1 %v8633_v5  ;;  %v8662_v5 = vld [vmem:[%s12264_s20 + $0xe0] sm:$0xff] }
0x119f   :  { %9183 = vmatprep.subr.mxu1 %v8632_v20 }
0x11a0   :  { %9184 = vmatpush3.msra.mxu1 %v8632_v20  ;;  %v8672_v20 = vld [vmem:[%s12264_s20 + $0x110] sm:$0xff] }
0x11a1   :  { %9185 = vmatprep.subr.mxu1 %v8631_v1 }
0x11a2   :  { %9186 = vmatpush3.msra.mxu1 %v8631_v1  ;;  %v8670_v1 = vld [vmem:[%s12264_s20 + $0x100] sm:$0xff] }
0x11a3   :  { %9187 = vmatprep.subr.mxu1 %v8630_v63 }
0x11a4   :  { %9188 = vmatpush3.msra.mxu1 %v8630_v63  ;;  %v8624_v63 = vld [vmem:[%s12264_s20 + $0x50] sm:$0xff] }
0x11a5   :  { %9198 = vmatprep.subr.mxu1 %v8641_v29 }
0x125d   :  { %v9129_v33 = vpop.f32.mrf.mxu1 }
0x125e   :  { %v6680_v32 = vsel %vm6676_vm15, %v9129_v33, 0.0 }
0x125f   :  { %6681 = vadd.xlane.f32.xlu1 %v6680_v32  ;;  %v6667_v21 = vpop.f32.mrf.mxu1 }
0x1260   :  { %v6677_v60 = vsel %vm6676_vm15, %v6667_v21, 0.0 }
0x1261   :  { %6678 = vadd.xlane.f32.xlu0 %v6677_v60  ;;  %v8640_v60 = vld [vmem:[%s12264_s20 + $0x90] sm:$0xff] }
0x1270   :  { %6707 = vperm.xlu1 %9415, %v6703_v46   ;;  %v8613_v46 = vld [vmem:[%s12264_s20 + $0x28] sm:$0xff] }
0x1274   :  { %6721 = vperm.xlu1 %9415, %v6717_v48   ;;  %v8639_v48 = vld [vmem:[%s12264_s20 + $0x88] sm:$0xff] }
0x1278   :  { %6726 = vperm.xlu1 %9415, %v6718_v22   ;;  %v8612_v22 = vld [vmem:[%s12264_s20 + $0x20] sm:$0xff] }
0x12e8   :  { %v6682_v39 = vpop.xlane.xlu1 %6681 }
0x12e9   :  { %v6684_v12 = vmul.f32 0.03125, %v6682_v39  ;;  %v8638_v39 = vld [vmem:[%s12264_s20 + $0x80] sm:$0xff] }
0x12ea   :  { %v6679_v34 = vpop.xlane.xlu0 %6678 }
0x12eb   :  { %v6686_v49 = vsub.f32 %v9129_v33, %v6684_v12  ;;  %v6683_v27 = vmul.f32 0.03125, %v6679_v34  ;;  %v8649_v12 = vld [vmem:[%s12264_s20 + $0xb8] sm:$0xff]  ;;  %v8648_v34 = vld [vmem:[%s12264_s20 + $0xb0] sm:$0xff] }
0x12ec   :  { %v6708_v40 = vpop.permute.xlu1 %6707 }
0x12ed   :  { %v6685_v57 = vsub.f32 %v6667_v21, %v6683_v27  ;;  %v6688_v37 = vmul.f32 %v6686_v49, %v6686_v49  ;;  %v8614_v21 = vld [vmem:[%s12264_s20 + $0x30] sm:$0xff]  ;;  %v8646_v27 = vld [vmem:[%s12264_s20 + $0xa0] sm:$0xff] }
0x12ef   :  { %v6692_v4 = vsel %vm6676_vm15, %v6688_v37, 0.0  ;;  %v6687_v30 = vmul.f32 %v6685_v57, %v6685_v57  ;;  %v8656_v37 = vld [vmem:[%s12264_s20 + $0xd0] sm:$0xff] }
0x12f0   :  { %6693 = vadd.xlane.f32.xlu0 %v6692_v4  ;;  %v6722_v25 = vpop.permute.xlu1 %6721  ;;  %v8655_v4 = vld [vmem:[%s12264_s20 + $0xc8] sm:$0xff] }
0x12f1   :  { %v6689_v42 = vsel %vm6676_vm15, %v6687_v30, 0.0  ;;  %v8654_v30 = vld [vmem:[%s12264_s20 + $0xc0] sm:$0xff] }
0x12f4   :  { %6690 = vadd.xlane.f32.xlu0 %v6689_v42  ;;  %v6727_v15 = vpop.permute.xlu1 %6726  ;;  %v8665_v42 = vld [vmem:[%s12264_s20 + $0xf8] sm:$0xff] }
0x130a   :  { %6712 = vperm.xlu0 %9414, %v6704_v38   ;;  %v8664_v38 = vld [vmem:[%s12264_s20 + $0xf0] sm:$0xff] }
0x1379   :  { %v6694_v52 = vpop.xlane.xlu0 %6693 }
0x137a   :  { %v6696_v14 = vmul.f32 0.03125, %v6694_v52 }
0x137c   :  { %v6698_v13 = vadd.f32 1e-05, %v6696_v14  ;;  %v8622_v14 = vld [vmem:[%s12264_s20 + $0x40] sm:$0xff] }
0x137d   :  { %v6691_v19 = vpop.xlane.xlu0 %6690 }
0x137e   :  { %9449 = vrsqrt.f32 %v6698_v13  ;;  %v6695_v0 = vmul.f32 0.03125, %v6691_v19 }
0x1380   :  { %v6697_v3 = vadd.f32 1e-05, %v6695_v0 }
0x1382   :  { %9451 = vrsqrt.f32 %v6697_v3 }
0x1385   :  { %v6713_v51 = vpop.permute.xlu0 %6712 }
0x138b   :  { %v9450_v54 = vpop.eup %9449 }
0x138c   :  { %v6702_v17 = vmul.f32 %v9450_v54, %v6686_v49  ;;  %v8647_v49 = vld [vmem:[%s12264_s20 + $0xa8] sm:$0xff] }
0x138e   :  { %v6716_v56 = vmul.f32 %v6713_v51, %v6702_v17 }
0x138f   :  { %v9452_v26 = vpop.eup %9451 }
0x1390   :  { %v6701_v35 = vmul.f32 %v9452_v26, %v6685_v57  ;;  %v6730_v58 = vadd.f32 %v6727_v15, %v6716_v56  ;;  %v8657_v57 = vld [vmem:[%s12264_s20 + $0xd8] sm:$0xff] }
0x1392   :  { %v6715_v59 = vmul.f32 %v6708_v40, %v6701_v35  ;;  %v11752_v32 = vmax.f32 %v6730_v58, 0.0 }
0x1394   :  { %v6729_v11 = vadd.f32 %v6722_v25, %v6715_v59 }
0x1396   :  { %v11750_v33 = vmax.f32 %v6729_v11, 0.0 }
0x1398   :  { %9138 = vmatprep.mubr.msk.f32.mxu0 %vm6676_vm15, %v11750_v33  ;;  %9189 = vmatprep.mubr.msk.f32.mxu1 %vm6676_vm15, %v11750_v33 }
0x1399   :  { %9139 = vmatmul.mubr.msk.f32.vlgmr.msra.gmra.mxu0 %vm6676_vm15, %v11752_v32  ;;  %9190 = vmatmul.mubr.msk.f32.vlgmr.msra.gmra.mxu1 %vm6676_vm15, %v11752_v32 }
0x139a   :  { %9142 = vmatpush3.msra.mxu0 %v8615_v8  ;;  %9199 = vmatpush3.msra.mxu1 %v8641_v29  ;;  %v8623_v29 = vld [vmem:[%s12264_s20 + $0x48] sm:$0xff] }
0x139b   :  { %9143 = vmatprep.subr.mxu0 %v8614_v21  ;;  %9149 = vmatprep.mubr.msk.f32.mxu0 %vm6676_vm15, %v11750_v33 }
0x139c   :  { %9200 = vmatprep.subr.mxu1 %v8640_v60  ;;  %9206 = vmatprep.mubr.msk.f32.mxu1 %vm6676_vm15, %v11750_v33 }
0x139d   :  { %9144 = vmatpush3.msra.mxu0 %v8614_v21  ;;  %9201 = vmatpush3.msra.mxu1 %v8640_v60 }
0x139e   :  { %9145 = vmatprep.subr.mxu0 %v8613_v46  ;;  %9202 = vmatprep.subr.mxu1 %v8639_v48 }
0x139f   :  { %9146 = vmatpush3.msra.mxu0 %v8613_v46  ;;  %9203 = vmatpush3.msra.mxu1 %v8639_v48 }
0x13a0   :  { %9147 = vmatprep.subr.mxu0 %v8612_v22  ;;  %9204 = vmatprep.subr.mxu1 %v8638_v39 }
0x13a1   :  { %9148 = vmatpush3.msra.mxu0 %v8612_v22  ;;  %9205 = vmatpush3.msra.mxu1 %v8638_v39  ;;  %v9429_v22 = vld [vmem:[#allocation16 + $0x10] sm:$0xff]   ;;  %v9430_v39 = vld [vmem:[#allocation16 + $0x18] sm:$0xff]  }
0x13a2   :  { %9150 = vmatmul.mubr.msk.f32.vlgmr.msra.gmra.mxu0 %vm6676_vm15, %v11752_v32  ;;  %9207 = vmatmul.mubr.msk.f32.vlgmr.msra.gmra.mxu1 %vm6676_vm15, %v11752_v32 }
0x13a3   :  { %9215 = vmatprep.subr.mxu1 %v8649_v12  ;;  %9223 = vmatprep.mubr.msk.f32.mxu1 %vm6676_vm15, %v11750_v33 }
0x13a4   :  { %9216 = vmatpush3.msra.mxu1 %v8649_v12  ;;  %9152 = vmatprep.subr.bf16.mxu0 %v9800_v55  ;;  %v9431_v12 = vld [vmem:[#allocation16 + $0x20] sm:$0xff]  }
0x13a5   :  { %9217 = vmatprep.subr.mxu1 %v8648_v34  ;;  %9154 = vmatprep.mubr.msk.bf16.mxu0 %vm9801_vm13, %v9800_v55 }
0x13a6   :  { %9218 = vmatpush3.msra.mxu1 %v8648_v34  ;;  %v9432_v34 = vld [vmem:[#allocation16 + $0x28] sm:$0xff]  }
0x13a7   :  { %9219 = vmatprep.subr.mxu1 %v8647_v49 }
0x13a8   :  { %9220 = vmatpush3.msra.mxu1 %v8647_v49  ;;  %v9433_v49 = vld [vmem:[#allocation16 + $0x30] sm:$0xff]  }
0x13a9   :  { %9221 = vmatprep.subr.mxu1 %v8646_v27 }
0x13aa   :  { %9222 = vmatpush3.msra.mxu1 %v8646_v27  ;;  %v9434_v27 = vld [vmem:[#allocation16 + $0x38] sm:$0xff]  }
0x13ab   :  { %9224 = vmatmul.mubr.msk.f32.vlgmr.msra.gmra.mxu1 %vm6676_vm15, %v11752_v32  ;;  %9232 = vmatprep.subr.mxu1 %v8657_v57 }
0x13ac   :  { %9233 = vmatpush3.msra.mxu1 %v8657_v57  ;;  %9240 = vmatprep.mubr.msk.f32.mxu1 %vm6676_vm15, %v11750_v33 }
0x13ad   :  { %9234 = vmatprep.subr.mxu1 %v8656_v37 }
0x13ae   :  { %9235 = vmatpush3.msra.mxu1 %v8656_v37  ;;  %v9435_v37 = vld [vmem:[#allocation16 + $0x40] sm:$0xff]  }
0x13af   :  { %9236 = vmatprep.subr.mxu1 %v8655_v4 }
0x13b0   :  { %9237 = vmatpush3.msra.mxu1 %v8655_v4 }
0x13b1   :  { %9238 = vmatprep.subr.mxu1 %v8654_v30 }
0x13b2   :  { %9239 = vmatpush3.msra.mxu1 %v8654_v30  ;;  %v9436_v30 = vld [vmem:[#allocation15] sm:$0xff]  }
0x13b3   :  { %9241 = vmatmul.mubr.msk.f32.vlgmr.msra.gmra.mxu1 %vm6676_vm15, %v11752_v32  ;;  %9249 = vmatprep.subr.mxu1 %v8665_v42 }
0x13b4   :  { %9250 = vmatpush3.msra.mxu1 %v8665_v42  ;;  %9257 = vmatprep.mubr.msk.f32.mxu1 %vm6676_vm15, %v11750_v33 }
0x13b5   :  { %9251 = vmatprep.subr.mxu1 %v8664_v38 }
0x13b6   :  { %9252 = vmatpush3.msra.mxu1 %v8664_v38 }
0x13b7   :  { %9253 = vmatprep.subr.mxu1 %v8663_v61 }
0x13b8   :  { %9254 = vmatpush3.msra.mxu1 %v8663_v61 }
0x13b9   :  { %9255 = vmatprep.subr.mxu1 %v8662_v5 }
0x13ba   :  { %9256 = vmatpush3.msra.mxu1 %v8662_v5 }
0x13bb   :  { %9258 = vmatmul.mubr.msk.f32.vlgmr.msra.gmra.mxu1 %vm6676_vm15, %v11752_v32  ;;  %9266 = vmatprep.subr.mxu1 %v8673_v10 }
0x13bc   :  { %9267 = vmatpush3.msra.mxu1 %v8673_v10  ;;  %9274 = vmatprep.mubr.msk.f32.mxu1 %vm6676_vm15, %v11750_v33 }
0x13bd   :  { %9268 = vmatprep.subr.mxu1 %v8672_v20 }
0x13be   :  { %9269 = vmatpush3.msra.mxu1 %v8672_v20 }
0x13bf   :  { %9270 = vmatprep.subr.mxu1 %v8671_v41 }
0x13c0   :  { %9271 = vmatpush3.msra.mxu1 %v8671_v41 }
0x13c1   :  { %9272 = vmatprep.subr.mxu1 %v8670_v1 }
0x13c2   :  { %9273 = vmatpush3.msra.mxu1 %v8670_v1 }
0x13c3   :  { %9275 = vmatmul.mubr.msk.f32.vlgmr.msra.gmra.mxu1 %vm6676_vm15, %v11752_v32  ;;  %9283 = vmatprep.subr.mxu1 %v9800_v55 }
0x13c4   :  { %9284 = vmatpush3.msra.mxu1 %v11668_v45  ;;  %9315 = vmatprep.mubr.msk.f32.mxu1 %vm9801_vm13, %v9800_v55 }
0x13c5   :  { %9285 = vmatprep.subr.mxu1 %v9800_v55 }
0x13c6   :  { %9286 = vmatpush3.msra.mxu1 %v11672_v43 }
0x13c7   :  { %9287 = vmatprep.subr.mxu1 %v9800_v55 }
0x13c8   :  { %9288 = vmatpush3.msra.mxu1 %v11676_v23 }
0x13c9   :  { %9289 = vmatprep.subr.mxu1 %v9800_v55 }
0x13ca   :  { %9290 = vmatpush3.msra.mxu1 %v11680_v6 }
0x13cb   :  { %9291 = vmatprep.subr.mxu1 %v9800_v55 }
0x13cc   :  { %9292 = vmatpush3.msra.mxu1 %v11684_v16 }
0x13cd   :  { %9293 = vmatprep.subr.mxu1 %v9800_v55 }
0x13ce   :  { %9294 = vmatpush3.msra.mxu1 %v11688_v2 }
0x13cf   :  { %9295 = vmatprep.subr.mxu1 %v9800_v55 }
0x13d0   :  { %9296 = vmatpush3.msra.mxu1 %v11692_v18 }
0x13d1   :  { %9297 = vmatprep.subr.mxu1 %v9800_v55 }
0x13d2   :  { %9298 = vmatpush3.msra.mxu1 %v11696_v47 }
0x13d3   :  { %9299 = vmatprep.subr.mxu1 %v9800_v55 }
0x13d4   :  { %9300 = vmatpush3.msra.mxu1 %v11700_v62 }
0x13d5   :  { %9301 = vmatprep.subr.mxu1 %v9800_v55 }
0x13d6   :  { %9302 = vmatpush3.msra.mxu1 %v11704_v28 }
0x13d7   :  { %9303 = vmatprep.subr.mxu1 %v9800_v55 }
0x13d8   :  { %9304 = vmatpush3.msra.mxu1 %v11708_v53  ;;  %v9427_v53 = vld [vmem:[#allocation16 + $0x8] sm:$0xff]  }
0x13d9   :  { %9305 = vmatprep.subr.mxu1 %v9800_v55 }
0x13da   :  { %9306 = vmatpush3.msra.mxu1 %v11712_v50 }
0x13db   :  { %9307 = vmatprep.subr.mxu1 %v9800_v55 }
0x13dc   :  { %9308 = vmatpush3.msra.mxu1 %v11716_v24  ;;  %v8625_v24 = vld [vmem:[%s12264_s20 + $0x58] sm:$0xff] }
0x13dd   :  { %9309 = vmatprep.subr.mxu1 %v9800_v55 }
0x13de   :  { %9310 = vmatpush3.msra.mxu1 %v11720_v7 }
0x13df   :  { %9311 = vmatprep.subr.mxu1 %v9800_v55 }
0x13e0   :  { %9312 = vmatpush3.msra.mxu1 %v11723_v9 }
0x13e1   :  { %9313 = vmatprep.subr.mxu1 %v9800_v55 }
0x13e2   :  { %9314 = vmatpush3.msra.mxu1 %v11728_v44 }
0x13e3   :  { %9316 = vmatmul.mubr.f32.vlgmr.msra.gmra.mxu1 %v11592_v36 }
0x1459   :  { %v11846_v45 = vpop.f32.mrf.mxu1  ;;  %v9140_v23 = vpop.f32.mrf.mxu0 }
0x145b   :  { %v11848_v43 = vpop.f32.mrf.mxu1  ;;  %v6809_v16 = vpop.f32.mrf.mxu0 }
0x145c   :  { %v7219_v6 = vpack.c.bf16 %v11846_v45, %v11848_v43  ;;  %v6818_v50 = vpack.c.bf16 %v9140_v23, %v6809_v16 }
0x1462   :  { %v9151_v2 = vpop.f32.mrf.mxu0  ;;  %v11852_v18 = vpop.f32.mrf.mxu1 }
0x1464   :  { %v6892_v47 = vpop.f32.mrf.mxu0  ;;  %v11854_v62 = vpop.f32.mrf.mxu1 }
0x1465   :  { %v6901_v28 = vpack.c.bf16 %v9151_v2, %v6892_v47  ;;  %v7354_v36 = vpack.c.bf16 %v11852_v18, %v11854_v62 }
0x1467   :  { %9153 = vmatpush3.bf16.msra.mxu0 %v6901_v28 }
0x1468   :  { %9158 = vmatprep.subr.bf16.mxu0 %v9800_v55 }
0x146a   :  { %9155 = vmatmul.mubr.msk.bf16.vlgmr.msra.gmra.mxu0 %vm6910_vm0, %v9427_v53 }
0x146b   :  { %v9225_v7 = vpop.f32.mrf.mxu1  ;;  %9159 = vmatpush3.bf16.msra.mxu0 %v6818_v50  ;;  %9160 = vmatprep.mubr.msk.bf16.mxu0 %vm9801_vm13, %v9800_v55 }
0x146c   :  { %9164 = vmatprep.subr.mxu0 %v8625_v24 }
0x146d   :  { %v7480_v9 = vpop.f32.mrf.mxu1 }
0x146e   :  { %v7489_v44 = vpack.c.bf16 %v9225_v7, %v7480_v9 }
0x1472   :  { %9161 = vmatmul.mubr.msk.bf16.vlgmr.msra.gmra.mxu0 %vm6910_vm0, %v9428_v31 }
0x1473   :  { %v9242_v8 = vpop.f32.mrf.mxu1  ;;  %9165 = vmatpush3.msra.mxu0 %v8625_v24  ;;  %9172 = vmatprep.mubr.msk.f32.mxu0 %vm6676_vm15, %v11750_v33 }
0x1474   :  { %9166 = vmatprep.subr.mxu0 %v8624_v63 }
0x1475   :  { %v7615_v52 = vpop.f32.mrf.mxu1  ;;  %9167 = vmatpush3.msra.mxu0 %v8624_v63 }
0x1476   :  { %v7624_v13 = vpack.c.bf16 %v9242_v8, %v7615_v52  ;;  %9168 = vmatprep.subr.mxu0 %v8623_v29 }
0x1477   :  { %9169 = vmatpush3.msra.mxu0 %v8623_v29 }
0x1478   :  { %9170 = vmatprep.subr.mxu0 %v8622_v14 }
0x1479   :  { %9171 = vmatpush3.msra.mxu0 %v8622_v14 }
0x147a   :  { %9173 = vmatmul.mubr.msk.f32.vlgmr.msra.gmra.mxu0 %vm6676_vm15, %v11752_v32  ;;  %9175 = vmatprep.subr.bf16.mxu0 %v9800_v55 }
0x147b   :  { %v9259_v19 = vpop.f32.mrf.mxu1  ;;  %9177 = vmatprep.mubr.msk.bf16.mxu0 %vm9801_vm13, %v9800_v55 }
0x147d   :  { %v7750_v0 = vpop.f32.mrf.mxu1 }
0x147e   :  { %v7759_v3 = vpack.c.bf16 %v9259_v19, %v7750_v0 }
0x1483   :  { %v9276_v40 = vpop.f32.mrf.mxu1 }
0x1485   :  { %v7885_v54 = vpop.f32.mrf.mxu1 }
0x1486   :  { %v7894_v25 = vpack.c.bf16 %v9276_v40, %v7885_v54 }
0x14a3   :  { %v8069_v17 = vpop.f32.mrf.mxu1 }
0x14a4   :  { %v8075_v57 = vpack.c.bf16 %v8069_v17, %v8069_v17 }
0x14a5   :  { %v9317_v51 = vpop.f32.mrf.mxu1 }
0x14a6   :  { %v8085_v4 = vsel %vm1613_vm11, %v8075_v57, 0 }
0x152a   :  { %v6948_v26 = vpop.f32.mrf.mxu0 }
0x152c   :  { %v9156_v56 = vpop.f32.mrf.mxu0 }
0x152e   :  { %v6951_v35 = vpop.f32.mrf.mxu0 }
0x1530   :  { %v9157_v15 = vpop.f32.mrf.mxu0 }
0x1532   :  { %v6997_v59 = vpop.f32.mrf.mxu0 }
0x1533   :  { %v11874_v58 = vadd.f32 %v6997_v59, %v6948_v26 }
0x1534   :  { %v9162_v11 = vpop.f32.mrf.mxu0 }
0x1536   :  { %v7000_v33 = vpop.f32.mrf.mxu0 }
0x1537   :  { %v11876_v32 = vadd.f32 %v7000_v33, %v6951_v35 }
0x1538   :  { %v9163_v21 = vpop.f32.mrf.mxu0 }
0x1539   :  { %v7975_v21 = vld [vmem:[%s12265_s12] sm:$0xff] }
0x153a   :  { %v9174_v60 = vpop.f32.mrf.mxu0 }
0x153c   :  { %v7075_v46 = vpop.f32.mrf.mxu0 }
0x153d   :  { %v7084_v48 = vpack.c.bf16 %v9174_v60, %v7075_v46  ;;  %v7976_v60 = vld [vmem:[%s12265_s12 + $0x8] sm:$0xff] }
0x153e   :  { %v8155_v46 = vld [vmem:[%s12266_s23 + $0x8] sm:$0xff] }
0x153f   :  { %9176 = vmatpush3.bf16.msra.mxu0 %v7084_v48  ;;  %v8154_v48 = vld [vmem:[%s12266_s23] sm:$0xff] }
0x1540   :  { %9192 = vmatprep.subr.bf16.mxu0 %v9800_v55 }
0x1542   :  { %9178 = vmatmul.mubr.msk.bf16.vlgmr.msra.gmra.mxu0 %vm6910_vm0, %v9429_v22  ;;  %v8168_v22 = vld [vmem:[%s12267_s19] sm:$0xff] }
0x1543   :  { %9193 = vmatpush3.bf16.msra.mxu0 %v7219_v6  ;;  %9194 = vmatprep.mubr.msk.bf16.mxu0 %vm9801_vm13, %v9800_v55 }
0x1544   :  { %9209 = vmatprep.subr.bf16.mxu0 %v9800_v55 }
0x154a   :  { %9195 = vmatmul.mubr.msk.bf16.vlgmr.msra.gmra.mxu0 %vm6910_vm0, %v9430_v39  ;;  %v7989_v39 = vld [vmem:[%s12268_s5] sm:$0xff] }
0x154b   :  { %9210 = vmatpush3.bf16.msra.mxu0 %v7354_v36  ;;  %9211 = vmatprep.mubr.msk.bf16.mxu0 %vm9801_vm13, %v9800_v55 }
0x154c   :  { %9226 = vmatprep.subr.bf16.mxu0 %v9800_v55 }
0x1552   :  { %9212 = vmatmul.mubr.msk.bf16.vlgmr.msra.gmra.mxu0 %vm6910_vm0, %v9431_v12 }
0x1553   :  { %9227 = vmatpush3.bf16.msra.mxu0 %v7489_v44  ;;  %9228 = vmatprep.mubr.msk.bf16.mxu0 %vm9801_vm13, %v9800_v55 }
0x1554   :  { %9243 = vmatprep.subr.bf16.mxu0 %v9800_v55 }
0x155a   :  { %9229 = vmatmul.mubr.msk.bf16.vlgmr.msra.gmra.mxu0 %vm6910_vm0, %v9432_v34 }
0x155b   :  { %9244 = vmatpush3.bf16.msra.mxu0 %v7624_v13  ;;  %9245 = vmatprep.mubr.msk.bf16.mxu0 %vm9801_vm13, %v9800_v55 }
0x155c   :  { %9260 = vmatprep.subr.bf16.mxu0 %v9800_v55 }
0x1562   :  { %9246 = vmatmul.mubr.msk.bf16.vlgmr.msra.gmra.mxu0 %vm6910_vm0, %v9433_v49 }
0x1563   :  { %9261 = vmatpush3.bf16.msra.mxu0 %v7759_v3  ;;  %9262 = vmatprep.mubr.msk.bf16.mxu0 %vm9801_vm13, %v9800_v55 }
0x1564   :  { %9277 = vmatprep.subr.bf16.mxu0 %v9800_v55 }
0x156a   :  { %9263 = vmatmul.mubr.msk.bf16.vlgmr.msra.gmra.mxu0 %vm6910_vm0, %v9434_v27 }
0x156b   :  { %9278 = vmatpush3.bf16.msra.mxu0 %v7894_v25  ;;  %9279 = vmatprep.mubr.msk.bf16.mxu0 %vm9801_vm13, %v9800_v55 }
0x156c   :  { %9318 = vmatprep.subr.bf16.mxu0 %v9800_v55 }
0x1572   :  { %9280 = vmatmul.mubr.msk.bf16.vlgmr.msra.gmra.mxu0 %vm6910_vm0, %v9435_v37 }
0x1573   :  { %9319 = vmatpush3.bf16.msra.mxu0 %v8085_v4  ;;  %9320 = vmatprep.mubr.msk.bf16.mxu0 %vm9801_vm13, %v9800_v55 }
0x157a   :  { %9321 = vmatmul.mubr.msk.bf16.vlgmr.msra.gmra.mxu0 %vm5295_vm14, %v9436_v30 }
0x1602   :  { %v7130_v42 = vpop.f32.mrf.mxu0 }
0x1603   :  { %v7137_v36 = vadd.f32 %v7130_v42, %v11874_v58 }
0x1604   :  { %v9179_v38 = vpop.f32.mrf.mxu0 }
0x1606   :  { %v7133_v61 = vpop.f32.mrf.mxu0 }
0x1607   :  { %v7138_v7 = vadd.f32 %v7133_v61, %v11876_v32 }
0x1608   :  { %v9180_v5 = vpop.f32.mrf.mxu0 }
0x160a   :  { %v7265_v10 = vpop.f32.mrf.mxu0 }
0x160b   :  { %v7272_v50 = vadd.f32 %v7265_v10, %v7137_v36  ;;  %v8186_v36 = vld [vmem:[#allocation18] sm:$0xff] }
0x160c   :  { %v9196_v20 = vpop.f32.mrf.mxu0 }
0x160e   :  { %v7268_v41 = vpop.f32.mrf.mxu0 }
0x160f   :  { %v7273_v31 = vadd.f32 %v7268_v41, %v7138_v7 }
0x1610   :  { %v9197_v1 = vpop.f32.mrf.mxu0 }
0x1612   :  { %v7400_v45 = vpop.f32.mrf.mxu0 }
0x1613   :  { %v7407_v9 = vadd.f32 %v7400_v45, %v7272_v50 }
0x1614   :  { %v9213_v43 = vpop.f32.mrf.mxu0 }
0x1616   :  { %v7403_v23 = vpop.f32.mrf.mxu0 }
0x1617   :  { %v7408_v29 = vadd.f32 %v7403_v23, %v7273_v31 }
0x1618   :  { %v9214_v6 = vpop.f32.mrf.mxu0 }
0x161a   :  { %v7535_v16 = vpop.f32.mrf.mxu0 }
0x161b   :  { %v7542_v63 = vadd.f32 %v7535_v16, %v7407_v9  ;;  %v8169_v16 = vld [vmem:[%s12267_s19 + $0x8] sm:$0xff] }
0x161c   :  { %v9230_v2 = vpop.f32.mrf.mxu0 }
0x161d   :  { %v8274_v2 = vld [vmem:[#allocation21 + $0x8] sm:$0x3] }
0x161e   :  { %v7538_v18 = vpop.f32.mrf.mxu0 }
0x161f   :  { %v7543_v13 = vadd.f32 %v7538_v18, %v7408_v29  ;;  %v7990_v18 = vld [vmem:[%s12268_s5 + $0x8] sm:$0xff] }
0x1620   :  { %v9231_v47 = vpop.f32.mrf.mxu0 }
0x1621   :  { %v8273_v47 = vld [vmem:[#allocation21] sm:$0xff] }
0x1622   :  { %v7670_v55 = vpop.f32.mrf.mxu0 }
0x1623   :  { %v7677_v52 = vadd.f32 %v7670_v55, %v7542_v63  ;;  %v8189_v55 = vld [vmem:[#allocation18 + $0x18] sm:$0xff] }
0x1624   :  { %v9247_v62 = vpop.f32.mrf.mxu0  ;;  %9324 = vmatprep.subr.mxu0 %v8189_v55 }
0x1625   :  { %9325 = vmatpush3.msra.mxu0 %v8189_v55  ;;  %v8188_v62 = vld [vmem:[#allocation18 + $0x10] sm:$0xff] }
0x1626   :  { %v7673_v28 = vpop.f32.mrf.mxu0  ;;  %9326 = vmatprep.subr.mxu0 %v8188_v62 }
0x1627   :  { %v7678_v3 = vadd.f32 %v7673_v28, %v7543_v13  ;;  %9327 = vmatpush3.msra.mxu0 %v8188_v62  ;;  %v8187_v28 = vld [vmem:[#allocation18 + $0x8] sm:$0xff] }
0x1628   :  { %v9248_v53 = vpop.f32.mrf.mxu0  ;;  %9328 = vmatprep.subr.mxu0 %v8187_v28 }
0x1629   :  { %9329 = vmatpush3.msra.mxu0 %v8187_v28 }
0x162a   :  { %v7805_v24 = vpop.f32.mrf.mxu0  ;;  %9330 = vmatprep.subr.mxu0 %v8186_v36 }
0x162b   :  { %v7812_v19 = vadd.f32 %v7805_v24, %v7677_v52  ;;  %9331 = vmatpush3.msra.mxu0 %v8186_v36 }
0x162c   :  { %v9264_v44 = vpop.f32.mrf.mxu0 }
0x162e   :  { %v7808_v8 = vpop.f32.mrf.mxu0 }
0x162f   :  { %v7813_v25 = vadd.f32 %v7808_v8, %v7678_v3 }
0x1630   :  { %v9265_v14 = vpop.f32.mrf.mxu0 }
0x1632   :  { %v7940_v0 = vpop.f32.mrf.mxu0 }
0x1633   :  { %v7947_v40 = vadd.f32 %v7940_v0, %v7812_v19 }
0x1634   :  { %v9281_v54 = vpop.f32.mrf.mxu0 }
0x1635   :  { %v7949_v17 = vsel %vm6676_vm15, %v7947_v40, 0.0 }
0x1636   :  { %7950 = vadd.xlane.f32.xlu0 %v7949_v17  ;;  %v7943_v51 = vpop.f32.mrf.mxu0 }
0x1637   :  { %v7948_v26 = vadd.f32 %v7943_v51, %v7813_v25 }
0x1638   :  { %v9282_v56 = vpop.f32.mrf.mxu0 }
0x1639   :  { %v7952_v35 = vsel %vm6676_vm15, %v7948_v26, 0.0 }
0x163a   :  { %7953 = vadd.xlane.f32.xlu0 %v7952_v35  ;;  %v8121_v15 = vpop.f32.mrf.mxu0 }
0x163b   :  { %v8128_v59 = vsel %vm6676_vm15, %v8121_v15, 0.0 }
0x163c   :  { %8129 = vadd.xlane.f32.xlu1 %v8128_v59  ;;  %v9322_v58 = vpop.f32.mrf.mxu0 }
0x163e   :  { %v8124_v11 = vpop.f32.mrf.mxu0 }
0x163f   :  { %v8131_v33 = vsel %vm6676_vm15, %v8124_v11, 0.0 }
0x1640   :  { %8132 = vadd.xlane.f32.xlu0 %v8131_v33  ;;  %v9323_v32 = vpop.f32.mrf.mxu0 }
0x164d   :  { %7979 = vperm.xlu1 %9415, %v7975_v21  }
0x1651   :  { %7984 = vperm.xlu1 %9415, %v7976_v60  }
0x1655   :  { %8163 = vperm.xlu1 %9415, %v8155_v46  }
0x1656   :  { %8158 = vperm.xlu0 %9414, %v8154_v48  }
0x1659   :  { %8172 = vperm.xlu1 %9415, %v8168_v22  }
0x165a   :  { %7993 = vperm.xlu0 %9414, %v7989_v39  }
0x16bf   :  { %v7951_v12 = vpop.xlane.xlu0 %7950 }
0x16c0   :  { %v7955_v34 = vmul.f32 0.03125, %v7951_v12 }
0x16c2   :  { %v11926_v49 = vsub.f32 %v7947_v40, %v7955_v34 }
0x16c3   :  { %v7954_v27 = vpop.xlane.xlu0 %7953 }
0x16c4   :  { %v7956_v57 = vmul.f32 0.03125, %v7954_v27  ;;  %v7959_v37 = vmul.f32 %v11926_v49, %v11926_v49 }
0x16c5   :  { %v8130_v4 = vpop.xlane.xlu1 %8129 }
0x16c6   :  { %v11930_v30 = vsub.f32 %v7948_v26, %v7956_v57  ;;  %v8134_v42 = vmul.f32 0.03125, %v8130_v4  ;;  %v7961_v38 = vsel %vm6676_vm15, %v7959_v37, 0.0  ;;  %v8271_v57 = vld [vmem:[#allocation19] sm:$0xff] }
0x16c7   :  { %7962 = vadd.xlane.f32.xlu1 %v7961_v38 }
0x16c8   :  { %v8136_v61 = vsub.f32 %v8121_v15, %v8134_v42  ;;  %v7960_v5 = vmul.f32 %v11930_v30, %v11930_v30 }
0x16c9   :  { %v8133_v10 = vpop.xlane.xlu0 %8132  ;;  %v7980_v53 = vpop.permute.xlu1 %7979 }
0x16ca   :  { %v8135_v20 = vmul.f32 0.03125, %v8133_v10  ;;  %v7964_v41 = vsel %vm6676_vm15, %v7960_v5, 0.0  ;;  %v8138_v1 = vmul.f32 %v8136_v61, %v8136_v61 }
0x16cb   :  { %7965 = vadd.xlane.f32.xlu1 %v7964_v41 }
0x16cc   :  { %v8137_v45 = vsub.f32 %v8124_v11, %v8135_v20  ;;  %v8140_v43 = vsel %vm6676_vm15, %v8138_v1, 0.0 }
0x16cd   :  { %8141 = vadd.xlane.f32.xlu0 %v8140_v43  ;;  %v7985_v50 = vpop.permute.xlu1 %7984 }
0x16ce   :  { %v8139_v23 = vmul.f32 %v8137_v45, %v8137_v45 }
0x16d0   :  { %v8143_v6 = vsel %vm6676_vm15, %v8139_v23, 0.0 }
0x16d1   :  { %8144 = vadd.xlane.f32.xlu0 %v8143_v6  ;;  %v8164_v24 = vpop.permute.xlu1 %8163  ;;  %v8159_v7 = vpop.permute.xlu0 %8158 }
0x16d5   :  { %v8173_v9 = vpop.permute.xlu1 %8172  ;;  %v7994_v63 = vpop.permute.xlu0 %7993 }
0x16dc   :  { %8177 = vperm.xlu1 %9415, %v8169_v16  }
0x16e0   :  { %8282 = vperm.xlu1 %9415, %v8274_v2  }
0x16e7   :  { %7998 = vperm.xlu0 %9414, %v7990_v18  }
0x16eb   :  { %8277 = vperm.xlu0 %9414, %v8273_v47  }
0x1750   :  { %v7963_v44 = vpop.xlane.xlu1 %7962 }
0x1751   :  { %v7967_v31 = vmul.f32 0.03125, %v7963_v44 }
0x1753   :  { %v7969_v8 = vadd.f32 1e-05, %v7967_v31 }
0x1754   :  { %v7966_v29 = vpop.xlane.xlu1 %7965 }
0x1755   :  { %9453 = vrsqrt.f32 %v7969_v8  ;;  %v7968_v52 = vmul.f32 0.03125, %v7966_v29 }
0x1756   :  { %v8142_v14 = vpop.xlane.xlu0 %8141 }
0x1757   :  { %v7970_v13 = vadd.f32 1e-05, %v7968_v52  ;;  %v8146_v19 = vmul.f32 0.03125, %v8142_v14 }
0x1758   :  { %v8178_v48 = vpop.permute.xlu1 %8177 }
0x1759   :  { %9455 = vrsqrt.f32 %v7970_v13  ;;  %v8148_v0 = vadd.f32 1e-05, %v8146_v19 }
0x175a   :  { %v8145_v3 = vpop.xlane.xlu0 %8144 }
0x175b   :  { %9457 = vrsqrt.f32 %v8148_v0  ;;  %v8147_v40 = vmul.f32 0.03125, %v8145_v3 }
0x175c   :  { %v8283_v42 = vpop.permute.xlu1 %8282 }
0x175d   :  { %v8149_v54 = vadd.f32 1e-05, %v8147_v40 }
0x175f   :  { %9459 = vrsqrt.f32 %v8149_v54 }
0x1762   :  { %v9454_v25 = vpop.eup %9453  ;;  %v7999_v22 = vpop.permute.xlu0 %7998 }
0x1763   :  { %v7973_v17 = vmul.f32 %v9454_v25, %v11926_v49 }
0x1765   :  { %v7987_v35 = vmul.f32 %v7980_v53, %v7973_v17 }
0x1766   :  { %v9456_v51 = vpop.eup %9455  ;;  %v8278_v5 = vpop.permute.xlu0 %8277 }
0x1767   :  { %v7974_v56 = vmul.f32 %v9456_v51, %v11930_v30  ;;  %v8001_v32 = vadd.f32 %v7994_v63, %v7987_v35  ;;  %v8272_v30 = vld [vmem:[#allocation19 + $0x8] sm:$0x3] }
0x1768   :  { %v9458_v26 = vpop.eup %9457 }
0x1769   :  { %v8152_v15 = vmul.f32 %v9458_v26, %v8136_v61  ;;  %v7988_v11 = vmul.f32 %v7985_v50, %v7974_v56 }
0x176b   :  { %v8166_v59 = vmul.f32 %v8159_v7, %v8152_v15  ;;  %v8002_v12 = vadd.f32 %v7999_v22, %v7988_v11 }
0x176c   :  { %v9460_v58 = vpop.eup %9459 }
0x176d   :  { %v8153_v33 = vmul.f32 %v9460_v58, %v8137_v45  ;;  %v8180_v21 = vadd.f32 %v8173_v9, %v8166_v59 }
0x176f   :  { %v8167_v60 = vmul.f32 %v8164_v24, %v8153_v33  ;;  %v8182_v46 = vadd.f32 %v8180_v21, %v8001_v32 }
0x1771   :  { %v8181_v39 = vadd.f32 %v8178_v48, %v8167_v60  ;;  %v8184_v34 = vmax.f32 %v8182_v46, 0.0 }
0x1773   :  { %v8183_v49 = vadd.f32 %v8181_v39, %v8002_v12  ;;  %9332 = vmatprep.mubr.msk.f32.mxu0 %vm6676_vm15, %v8184_v34 }
0x1775   :  { %v8185_v27 = vmax.f32 %v8183_v49, 0.0 }
0x1777   :  { %9333 = vmatmul.mubr.msk.f32.vlgmr.msra.gmra.mxu0 %vm6676_vm15, %v8185_v27 }
0x1778   :  { %9339 = vmatprep.mubr.msk.f32.mxu0 %vm6910_vm0, %v8271_v57 }
0x1837   :  { %v9334_v37 = vpop.f32.mrf.mxu0 }
0x1838   :  { %9335 = vmatprep.subr.mxu0 %v9334_v37 }
0x1839   :  { %v8262_v4 = vpop.f32.mrf.mxu0  ;;  %9336 = vmatpush3.msra.mxu0 %v9334_v37 }
0x183a   :  { %9337 = vmatprep.subr.mxu0 %v8262_v4 }
0x183b   :  { %9338 = vmatpush3.msra.mxu0 %v8262_v4 }
0x183c   :  { %9340 = vmatmul.mubr.msk.f32.vlgmr.msra.gmra.mxu0 %vm6910_vm0, %v8272_v30 }
0x18fc   :  { %v9341_v38 = vpop.f32.mrf.mxu0 }
0x18fd   :  { %v8363_v61 = vadd.f32 %v9341_v38, %v8283_v42 }
0x18fe   :  { %v8357_v10 = vpop.f32.mrf.mxu0 }
0x18ff   :  { %8369 = vst.msk [vmem:[%s9995_s3 + $0x8] sm:$0x3] %vm8368_vm1, %v8363_v61  ;;  %v8358_v20 = vadd.f32 %v8357_v10, %v8278_v5 }
0x1901   :  { %8367 = vst.msk [vmem:[%s9995_s3] sm:$0xff] %vm8366_vm2, %v8358_v20 }
0x1902   :  { %8374 = vsyncpa [#allocation3], 1 }
0x1903   :  { %8375 = vsyncpa [#allocation5], 1 }
0x1904   :  { %8376 = vsyncpa [#allocation8], 1 }
0x1905   :  { %8377 = vsyncpa [#allocation11], 1 }
0x1906   :  { %8378 = vsyncpa [#allocation14], 1 }
0x1907   :  { %8379 = vsyncpa [#allocation17], 1 }
0x1908   :  { %8380 = vsyncpa [#allocation20], 1 }

</bundles_post_ra>
